<compile_context>
chip_gen: v7x
topology: tpu7x:2x2x1
jax: 0.10.0
libtpu: 0.0.40
codegen_flags: <defaults>
</compile_context>

<pallas_src>
import functools

import jax
import jax.numpy as jnp
from jax import lax
from jax.experimental import pallas as pl
from jax.experimental.pallas import tpu as pltpu

_INV_SQRT2 = 0.7071067811865476  # 1/sqrt(2), hoisted GELU constant


def gelu_linear_kernel(x_ref, w_ref, b_ref, o_ref, acc_ref):
    # Grid = (M tiles, N tiles, K tiles); K is the reduction axis (last, "arbitrary").
    @pl.when(pl.program_id(2) == 0)
    def _():
        acc_ref[...] = jnp.zeros_like(acc_ref)

    x = x_ref[...]
    # Exact GELU (matches torch._C._nn.gelu default, erf-based).
    g = 0.5 * x * (1.0 + lax.erf(x * jnp.float32(_INV_SQRT2)))

    acc_ref[...] += jnp.dot(g, w_ref[...], preferred_element_type=jnp.float32)

    @pl.when(pl.program_id(2) == pl.num_programs(2) - 1)
    def _():
        o_ref[...] = (acc_ref[...] + b_ref[...]).astype(o_ref.dtype)


@functools.partial(jax.jit, static_argnames=("tm", "tn", "tk"))
def gelu_linear(x, w_t, b, *, tm=384, tn=768, tk=512):
    """x: (B, S, K); w_t: (K, N); b: (N,). Returns (B, S, N).

    Defaults give grid (1, 1, 6) for the module's shapes: full-M / full-N
    tiles with a short K reduction.  On v7x, tn=384 splits N across the two
    TensorCores via the "parallel" j axis.
    """
    B, S, K = x.shape
    Kw, N = w_t.shape
    assert K == Kw
    M = B * S
    # Hard-coded shapes divide evenly; guard against silent truncation.
    assert M % tm == 0 and N % tn == 0 and K % tk == 0, (
        f"tile sizes must divide (M={M}, N={N}, K={K})"
    )

    x2d = x.reshape(M, K)
    b2d = b.reshape(1, N)

    out = pl.pallas_call(
        gelu_linear_kernel,
        out_shape=jax.ShapeDtypeStruct((M, N), x.dtype),
        grid_spec=pltpu.PrefetchScalarGridSpec(
            num_scalar_prefetch=0,
            grid=(M // tm, N // tn, K // tk),
            in_specs=[
                pl.BlockSpec((tm, tk), lambda i, j, k: (i, k)),  # x tile
                pl.BlockSpec((tk, tn), lambda i, j, k: (k, j)),  # w tile
                pl.BlockSpec((1, tn), lambda i, j, k: (0, j)),   # bias (fetched once)
            ],
            out_specs=pl.BlockSpec((tm, tn), lambda i, j, k: (i, j)),
            scratch_shapes=[pltpu.VMEM((tm, tn), jnp.float32)],
        ),
        compiler_params=pltpu.CompilerParams(
            dimension_semantics=("parallel", "parallel", "arbitrary")
        ),
    )(x2d, w_t, b2d)

    return out.reshape(B, S, N)


def reference(x, w_t, b):
    g = 0.5 * x * (1.0 + lax.erf(x * jnp.float32(_INV_SQRT2)))
    return jnp.einsum("bsk,kn->bsn", g, w_t) + b


if __name__ == "__main__":
    B, S, K, N = 1, 384, 3072, 768  # shapes implied by the module

    key = jax.random.PRNGKey(0)
    kx, kw, kb = jax.random.split(key, 3)

    x = jax.random.normal(kx, (B, S, K), dtype=jnp.float32)
    # Deterministic Linear-style init: U(-1/sqrt(in), 1/sqrt(in)).
    bound = 1.0 / jnp.sqrt(jnp.float32(K))
    w = jax.random.uniform(kw, (N, K), dtype=jnp.float32, minval=-bound, maxval=bound)
    b = jax.random.uniform(kb, (N,), dtype=jnp.float32, minval=-bound, maxval=bound)
    w_t = w.T  # (K, N) for the kernel

    y = gelu_linear(x, w_t, b)
    jax.block_until_ready(y)

    y_ref = reference(x, w_t, b)
    assert y.shape == (B, S, N)
    assert jnp.allclose(y, y_ref, atol=2e-3, rtol=2e-3)

    print("KERNEL_OK")
</pallas_src>

<mosaic_0001>
module attributes {stable_mosaic.version = 11 : i64} {
  func.func @gelu_linear_kernel(%arg0: i32, %arg1: i32, %arg2: i32, %arg3: memref<384x512xf32, #tpu.memory_space<vmem>>, %arg4: memref<512x768xf32, #tpu.memory_space<vmem>>, %arg5: memref<1x768xf32, #tpu.memory_space<vmem>>, %arg6: memref<384x768xf32, #tpu.memory_space<vmem>>, %arg7: memref<384x768xf32, #tpu.memory_space<vmem>>) attributes {dimension_semantics = [#tpu.dimension_semantics<parallel>, #tpu.dimension_semantics<parallel>, #tpu.dimension_semantics<arbitrary>], iteration_bounds = array<i64: 1, 1, 6>, scalar_prefetch = 0 : i64, scratch_operands = 1 : i64, tpu.core_type = #tpu.core_type<tc>, window_params = [{transform_indices = @transform_0, window_bounds = array<i64: 384, 512>}, {transform_indices = @transform_1, window_bounds = array<i64: 512, 768>}, {transform_indices = @transform_2, window_bounds = array<i64: 1, 768>}, {transform_indices = @transform_3, window_bounds = array<i64: 384, 768>}]} {
    %c0_i32 = arith.constant 0 : i32
    %0 = arith.cmpi eq, %arg2, %c0_i32 : i32
    %1 = arith.extui %0 : i1 to i32
    %c0_i32_0 = arith.constant 0 : i32
    %2 = arith.cmpi ne, %1, %c0_i32_0 : i32
    scf.if %2 {
      %cst_12 = arith.constant 0.000000e+00 : f32
      %20 = vector.broadcast %cst_12 : f32 to vector<384x768xf32>
      %c0_13 = arith.constant 0 : index
      %c0_14 = arith.constant 0 : index
      %21 = vector.load %arg7[%c0_13, %c0_14] : memref<384x768xf32, #tpu.memory_space<vmem>>, vector<384x768xf32>
      tpu.vector_store %arg7[%c0_13, %c0_14], %20 {strides = array<i32>} : memref<384x768xf32, #tpu.memory_space<vmem>>, vector<384x768xf32>,
    } else {
    }
    %c0 = arith.constant 0 : index
    %c0_1 = arith.constant 0 : index
    %3 = vector.load %arg3[%c0, %c0_1] : memref<384x512xf32, #tpu.memory_space<vmem>>, vector<384x512xf32>
    %cst = arith.constant 5.000000e-01 : f32
    %4 = vector.broadcast %cst : f32 to vector<384x512xf32>
    %5 = arith.mulf %4, %3 : vector<384x512xf32>
    %cst_2 = arith.constant 0.707106769 : f32
    %6 = vector.broadcast %cst_2 : f32 to vector<384x512xf32>
    %7 = arith.mulf %3, %6 : vector<384x512xf32>
    %8 = math.erf %7 : vector<384x512xf32>
    %cst_3 = arith.constant 1.000000e+00 : f32
    %9 = vector.broadcast %cst_3 : f32 to vector<384x512xf32>
    %10 = arith.addf %9, %8 : vector<384x512xf32>
    %11 = arith.mulf %5, %10 : vector<384x512xf32>
    %c0_4 = arith.constant 0 : index
    %c0_5 = arith.constant 0 : index
    %12 = vector.load %arg7[%c0_4, %c0_5] : memref<384x768xf32, #tpu.memory_space<vmem>>, vector<384x768xf32>
    %c0_6 = arith.constant 0 : index
    %c0_7 = arith.constant 0 : index
    %13 = vector.load %arg4[%c0_6, %c0_7] : memref<512x768xf32, #tpu.memory_space<vmem>>, vector<512x768xf32>
    %cst_8 = arith.constant dense<0.000000e+00> : vector<384x768xf32>
    %14 = tpu.matmul %11, %13, %cst_8 {dimension_numbers = #tpu.dot_dimension_numbers<[1], [0], [0], [1], [0, 0, 1, 1], [], []>} : vector<384x512xf32>, vector<512x768xf32>, vector<384x768xf32> -> vector<384x768xf32>
    %15 = arith.addf %12, %14 : vector<384x768xf32>
    %c0_9 = arith.constant 0 : index
    %c0_10 = arith.constant 0 : index
    %16 = vector.load %arg7[%c0_9, %c0_10] : memref<384x768xf32, #tpu.memory_space<vmem>>, vector<384x768xf32>
    tpu.vector_store %arg7[%c0_9, %c0_10], %15 {strides = array<i32>} : memref<384x768xf32, #tpu.memory_space<vmem>>, vector<384x768xf32>,
    %c5_i32 = arith.constant 5 : i32
    %17 = arith.cmpi eq, %arg2, %c5_i32 : i32
    %18 = arith.extui %17 : i1 to i32
    %c0_i32_11 = arith.constant 0 : i32
    %19 = arith.cmpi ne, %18, %c0_i32_11 : i32
    scf.if %19 {
      %c0_12 = arith.constant 0 : index
      %c0_13 = arith.constant 0 : index
      %20 = vector.load %arg7[%c0_12, %c0_13] : memref<384x768xf32, #tpu.memory_space<vmem>>, vector<384x768xf32>
      %c0_14 = arith.constant 0 : index
      %c0_15 = arith.constant 0 : index
      %21 = vector.load %arg5[%c0_14, %c0_15] : memref<1x768xf32, #tpu.memory_space<vmem>>, vector<1x768xf32>
      %22 = vector.broadcast %21 : vector<1x768xf32> to vector<384x768xf32>
      %23 = arith.addf %20, %22 : vector<384x768xf32>
      %c0_16 = arith.constant 0 : index
      %c0_17 = arith.constant 0 : index
      %24 = vector.load %arg6[%c0_16, %c0_17] : memref<384x768xf32, #tpu.memory_space<vmem>>, vector<384x768xf32>
      tpu.vector_store %arg6[%c0_16, %c0_17], %23 {strides = array<i32>} : memref<384x768xf32, #tpu.memory_space<vmem>>, vector<384x768xf32>,
    } else {
    }
    return
  }
  func.func @transform_0(%arg0: i32, %arg1: i32, %arg2: i32) -> (i32, i32) {
    %c0_i32 = arith.constant 0 : i32
    return %arg0, %arg2 : i32, i32
  }
  func.func @transform_1(%arg0: i32, %arg1: i32, %arg2: i32) -> (i32, i32) {
    %c0_i32 = arith.constant 0 : i32
    return %arg2, %arg1 : i32, i32
  }
  func.func @transform_2(%arg0: i32, %arg1: i32, %arg2: i32) -> (i32, i32) {
    %c0_i32 = arith.constant 0 : i32
    %c0_i32_0 = arith.constant 0 : i32
    return %c0_i32, %arg1 : i32, i32
  }
  func.func @transform_3(%arg0: i32, %arg1: i32, %arg2: i32) -> (i32, i32) {
    %c0_i32 = arith.constant 0 : i32
    return %arg0, %arg1 : i32, i32
  }
}

</mosaic_0001>

<bundles_post_ra>
// kernel: gelu_linear.1
= control target key start
LH: loop header
LB: loop body
LE: loop exit
PB: predicated region body
PF: predicated region fallthrough
CT: control target
= control target key end

     0   :  { %8 = vsyncpa [#allocation4], 0  ;;  %s10860_s0 = inlined_call_operand.hbm [shape: f32[384,3072], index: 0, kind: input, shape index: {}]   ;;  %s10861_s1 = inlined_call_operand.hbm [shape: f32[3072,768], index: 1, kind: input, shape index: {}]   ;;  %s10862_s2 = inlined_call_operand.vmem [shape: f32[1,768], index: 2, kind: input, shape index: {}]   ;;  %s10863_s3 = inlined_call_operand.hbm [shape: f32[384,768], index: 3, kind: output, shape index: {}]  }
   0x1   :  { %10 = vsyncpa [#allocation4 + $0x1], 0 }
   0x2   :  { %11 = vsyncpa [#allocation7], 0 }
   0x3   :  { %13 = vsyncpa [#allocation7 + $0x1], 0 }
   0x4   :  { %14 = vsyncpa [#allocation5], 0  ;;  %s7441_s12 = smov 0   ;;  %s7443_s13 = smov 0  }
   0x5   :  { %s7445_s14 = smov 0   ;;  %s7447_s15 = smov 0  }
   0x6   :  { %s7449_s16 = smov 0   ;;  %s7451_s17 = smov 0  }
   0x7 LB: > { %s6111_s18 = sadd.s32 4294967295, %s7408_s17   ;;  %s32_s19 = sadd.s32 1, %s7404_s16  ;;  %s7408_s17 = sphi %s7451_s17, %s20_s17   ;;  %s7404_s16 = sphi %s7449_s16, %s11566_s16   ;;  %s7400_s15 = sphi %s7447_s15, %s11565_s15   ;;  %s7396_s14 = sphi %s7445_s14, %s11564_s14   ;;  %s7392_s13 = sphi %s7443_s13, %s11563_s13   ;;  %s7388_s12 = sphi %s7441_s12, %s11562_s12  }
   0x8   : > { %p33_p0 = scmp.ge.s32.totalorder %s32_s19, 6  ;;  %s48_s20 = sadd.s32 1, %s7396_s14 }
   0x9   : > { %p55_p1 = scmp.ne.s32.totalorder %s7396_s14, %s7392_s13  ;;  %p56_p2 = scmp.eq.s32.totalorder %s7408_s17, 0 }
   0xa   : > { %s11568_s19 = smov (%p33_p0, %s32_s19), 0  ;;  %p61_p4 = scmp.ne.s32.totalorder %s7392_s13, %s7388_s12 }
   0xb   : > { %p57_p3 = por %p56_p2, %p55_p1  ;;  %s44_s21 = ssub.s32 %s7404_s16, %s11568_s19 }
   0xc   : > { %p62_p5 = scmp.eq.s32.totalorder %s6111_s18, 0  ;;  %p46_p6 = scmp.eq.s32.totalorder %s44_s21, 0 }
   0xd   : > { %p6820_p8 = scmp.lt.s32.totalorder %s7408_s17, 6  ;;  %s7491_s24 = sand.u32 1, %s7396_s14  }
   0xe   : > { %p7482_p7 = por %p62_p5, %p61_p4  ;;  %s6127_s25 = sshll.u32 %s7404_s16, 9 }
   0xf   : > { %s7488_s23 = scalar_select %p46_p6, %s7396_s14, %s48_s20  }
  0x10   : > { %s11205_s22 = scalar_select %p7482_p7, 1, 0 }
  0x11   : > { %s6800_s26 = smul.u32 1536, %s7491_s24  ;;  %s7498_s29 = scalar_lea.hbm %s10860_s0, %s6127_s25 }
  0x12   : > { %p7500_p9 = pnand %p6820_p8, %p57_p3  ;;  %s176_s6 = scalar_lea.sflag [#allocation4], %s7491_s24 }
  0x13   : > { %s179_s4 = scalar_lea.vmem [#allocation3], %s6800_s26  ;;  %s7264_s7 = scalar_lea.hbm %s7498_s29, 24576 }
  0x14   : > { %s189_s5 = sshll.u32 %s179_s4, 4  ;;  %p7265_p11 = scmp.ne.s32.totalorder %s7498_s29, %s7264_s7  ;;  %s7504_s5 = int_to_ptr.vmem [resolvable:$true] %s189_s5 }
  0x15   : > { %p7266_p12 = pneg %p7500_p9  ;;  %s7269_s10 = scalar_lea.hbm %s10860_s0, 147456 }
  0x16   : > { %p7270_p1 = scmp.lt.u32.totalorder %s7498_s29, %s10860_s0  ;;  %p7271_p2 = scmp.lt.u32.totalorder %s7269_s10, %s7264_s7 }
  0x17   : > { %p7267_p13 = pnand %p7266_p12, %p7265_p11  ;;  %p7273_p4 = scmp.lt.u32.totalorder %s7264_s7, %s7498_s29 }
  0x18   : > { %p7272_p3 = por %p7271_p2, %p7270_p1 }
  0x19   : > { %p7268_p0 = pneg %p7267_p13 }
  0x1a   : > { %p7274_p5 = por %p7273_p4, %p7272_p3 }
  0x1c   : > { %p7275_p6 = pnand %p7274_p5, %p7268_p0 }
  0x1e   : > { %7278 = shalt.err (!%p7275_p6)
}
  0x1f   : > { %s7279_s20 = scalar_lea.vmem %s7504_s5, 24576  ;;  %s7410_s21 = smov [#allocation3]  }
  0x20   : > { %p7280_p8 = scmp.ne.s32.totalorder %s7504_s5, %s7279_s20  ;;  %s7284_s25 = sshll.u32 %s7410_s21, 4  ;;  %s7285_s25 = int_to_ptr.vmem [resolvable:$false] %s7284_s25 }
  0x21   : > { %s7286_s26 = scalar_lea.vmem %s7285_s25, 49152  ;;  %p7287_p10 = scmp.lt.s32.totalorder %s7504_s5, %s7285_s25 }
  0x22   : > { %p7282_p11 = pnand %p7280_p8, %p7266_p12  ;;  %p7288_p1 = scmp.lt.s32.totalorder %s7286_s26, %s7279_s20 }
  0x24   : > { %p7283_p13 = pneg %p7282_p11  ;;  %p7289_p2 = por %p7288_p1, %p7287_p10 }
  0x26   : > { %p7290_p3 = pnand %p7289_p2, %p7283_p13 }
  0x28   : > { %7293 = shalt.err (!%p7290_p3)
}
  0x29   : > { %s7411_s27 = smov 3072   ;;  %s7412_s28 = smov 512  }
  0x2a   : > { %s7413_s4 = smov 32   ;;  %p221_p0 = scmp.lt.s32.totalorder %s7408_s17, 7 }
  0x2b   : > { %6816 = dma.hbm_to_vmem [thread:$0]  (!%p7500_p9), %s7498_s29, 24576, %s7504_s5, %s176_s6, %s7411_s27, %s7412_s28, %s7413_s4  }
  0x2c   : > { %s6801_s7 = smul.u32 3072, %s7491_s24  ;;  %p11207_p10 = scmp.ge.s32.totalorder %s7408_s17, 1 }
  0x2d   : > { %s6802_s9 = smul.u32 49152, %s7404_s16  ;;  %s200_s29 = scalar_lea.sflag [#allocation7], %s7491_s24 }
  0x2e   : > { %p7539_p4 = pnand %p11207_p10, %p221_p0  ;;  %s203_s20 = scalar_lea.vmem [#allocation6], %s6801_s7 }
  0x2f   : > { %s7547_s12 = scalar_lea.hbm %s10861_s1, %s6802_s9  ;;  %s213_s21 = sshll.u32 %s203_s20, 4  ;;  %s7549_s21 = int_to_ptr.vmem [resolvable:$true] %s213_s21 }
  0x30   : > { %s7294_s5 = scalar_lea.hbm %s7547_s12, 49152  ;;  %s7299_s26 = scalar_lea.hbm %s10861_s1, 294912 }
  0x31   : > { %p7295_p5 = scmp.ne.s32.totalorder %s7547_s12, %s7294_s5  ;;  %p7300_p11 = scmp.lt.u32.totalorder %s7547_s12, %s10861_s1 }
  0x32   : > { %p7301_p13 = scmp.lt.u32.totalorder %s7299_s26, %s7294_s5  ;;  %p7303_p2 = scmp.lt.u32.totalorder %s7294_s5, %s7547_s12 }
  0x33   : > { %p7297_p6 = pnand %p7295_p5, %p7266_p12 }
  0x34   : > { %p7302_p1 = por %p7301_p13, %p7300_p11 }
  0x35   : > { %p7298_p8 = pneg %p7297_p6 }
  0x36   : > { %p7304_p3 = por %p7303_p2, %p7302_p1 }
  0x38   : > { %p7305_p0 = pnand %p7304_p3, %p7298_p8 }
  0x3a   : > { %7308 = shalt.err (!%p7305_p0)
}
  0x3b   : > { %s7309_s4 = scalar_lea.vmem %s7549_s21, 49152  ;;  %s7414_s7 = smov [#allocation6]  }
  0x3c   : > { %p7310_p10 = scmp.ne.s32.totalorder %s7549_s21, %s7309_s4  ;;  %s7314_s9 = sshll.u32 %s7414_s7, 4  ;;  %s7315_s9 = int_to_ptr.vmem [resolvable:$false] %s7314_s9 }
  0x3d   : > { %s7316_s10 = scalar_lea.vmem %s7315_s9, 98304  ;;  %p7317_p7 = scmp.lt.s32.totalorder %s7549_s21, %s7315_s9 }
  0x3e   : > { %p7312_p5 = pnand %p7310_p10, %p7266_p12  ;;  %p7318_p11 = scmp.lt.s32.totalorder %s7316_s10, %s7309_s4 }
  0x40   : > { %p7313_p6 = pneg %p7312_p5  ;;  %p7319_p13 = por %p7318_p11, %p7317_p7 }
  0x42   : > { %p7320_p1 = pnand %p7319_p13, %p7313_p6 }
  0x44   : > { %7323 = shalt.err (!%p7320_p1)
}
  0x45   : > { %s7415_s11 = smov 768   ;;  %s7416_s20 = smov 48  }
  0x46   : > { %6819 = dma.hbm_to_vmem [thread:$0]  (!%p7500_p9), %s7547_s12, 49152, %s7549_s21, %s200_s29, %s7415_s11, %s7415_s11, %s7416_s20  }
  0x47   : > { %225 = sbr.rel (%p7539_p4) target bundleno = 1312 (0x520), region = 32 }
  0x4e   : > { %s227_s5 = sand.u32 1, %s7392_s13   ;;  %p11209_p7 = scmp.ne.s32.totalorder %s11205_s22, 0 }
  0x4f   : > { %s6803_s6 = smul.u32 1536, %s227_s5  ;;  %s228_s25 = scalar_lea.sflag [#allocation4], %s227_s5 }
  0x51   : > { %s7580_s26 = scalar_lea.vmem [#allocation3], %s6803_s6 }
  0x52   : > { %7375 = dma.done.wait (%p11209_p7), %s228_s25, 24576  }
  0x53   : > { %7377 = vsyncadd (%p11209_p7), %s228_s25, 4294942720  ;;  %s6804_s27 = smul.u32 3072, %s227_s5  ;;  %s237_s30 = scalar_lea.sflag [#allocation7], %s227_s5 }
  0x55   : > { %s7586_s24 = scalar_lea.vmem [#allocation6], %s6804_s27 }
  0x56   : > { %7379 = dma.done.wait (%p11209_p7), %s237_s30, 49152  }
  0x57   : > { %7381 = vsyncadd (%p11209_p7), %s237_s30, 4294918144  ;;  %p6121_p9 = scmp.ne.s32.totalorder %s7400_s15, 0 }
  0x58   : > { %v7417_v0 = vmov (!%p6121_p9), 0.0  }
  0x59   : > { %281 = sbr.rel (%p6121_p9) target bundleno = 233 (0xe9), region = 44  ;;  %282 = vst [vmem:[#allocation2] sm:$0xff] (!%p6121_p9), %v7417_v0  ;;  %283 = vst [vmem:[#allocation2 + $0x8] sm:$0xff] (!%p6121_p9), %v7417_v0 }
  0x5a   : > { %284 = vst [vmem:[#allocation2 + $0x10] sm:$0xff] (!%p6121_p9), %v7417_v0  ;;  %285 = vst [vmem:[#allocation2 + $0x18] sm:$0xff] (!%p6121_p9), %v7417_v0 }
  0x5b   : > { %286 = vst [vmem:[#allocation2 + $0x20] sm:$0xff] (!%p6121_p9), %v7417_v0  ;;  %287 = vst [vmem:[#allocation2 + $0x28] sm:$0xff] (!%p6121_p9), %v7417_v0 }
  0x5c   : > { %288 = vst [vmem:[#allocation2 + $0x30] sm:$0xff] (!%p6121_p9), %v7417_v0  ;;  %289 = vst [vmem:[#allocation2 + $0x38] sm:$0xff] (!%p6121_p9), %v7417_v0 }
  0x5d   : > { %290 = vst [vmem:[#allocation2 + $0x40] sm:$0xff] (!%p6121_p9), %v7417_v0  ;;  %291 = vst [vmem:[#allocation2 + $0x48] sm:$0xff] (!%p6121_p9), %v7417_v0 }
  0x5e   : > { %292 = vst [vmem:[#allocation2 + $0x50] sm:$0xff] (!%p6121_p9), %v7417_v0  ;;  %293 = vst [vmem:[#allocation2 + $0x58] sm:$0xff] (!%p6121_p9), %v7417_v0 }
  0x5f   : > { %294 = vst [vmem:[#allocation2 + $0x60] sm:$0xff] (!%p6121_p9), %v7417_v0  ;;  %295 = vst [vmem:[#allocation2 + $0x68] sm:$0xff] (!%p6121_p9), %v7417_v0 }
  0x60   : > { %296 = vst [vmem:[#allocation2 + $0x70] sm:$0xff] %v7417_v0  ;;  %297 = vst [vmem:[#allocation2 + $0x78] sm:$0xff] %v7417_v0 }
  0x61   : > { %298 = vst [vmem:[#allocation2 + $0x80] sm:$0xff] %v7417_v0  ;;  %299 = vst [vmem:[#allocation2 + $0x88] sm:$0xff] %v7417_v0 }
  0x62   : > { %300 = vst [vmem:[#allocation2 + $0x90] sm:$0xff] %v7417_v0  ;;  %301 = vst [vmem:[#allocation2 + $0x98] sm:$0xff] %v7417_v0 }
  0x63   : > { %302 = vst [vmem:[#allocation2 + $0xa0] sm:$0xff] %v7417_v0  ;;  %303 = vst [vmem:[#allocation2 + $0xa8] sm:$0xff] %v7417_v0 }
  0x64   : > { %304 = vst [vmem:[#allocation2 + $0xb0] sm:$0xff] %v7417_v0  ;;  %305 = vst [vmem:[#allocation2 + $0xb8] sm:$0xff] %v7417_v0 }
  0x65   : > { %306 = vst [vmem:[#allocation2 + $0xc0] sm:$0xff] %v7417_v0  ;;  %307 = vst [vmem:[#allocation2 + $0xc8] sm:$0xff] %v7417_v0 }
  0x66   : > { %308 = vst [vmem:[#allocation2 + $0xd0] sm:$0xff] %v7417_v0  ;;  %309 = vst [vmem:[#allocation2 + $0xd8] sm:$0xff] %v7417_v0 }
  0x67   : > { %310 = vst [vmem:[#allocation2 + $0xe0] sm:$0xff] %v7417_v0  ;;  %311 = vst [vmem:[#allocation2 + $0xe8] sm:$0xff] %v7417_v0 }
  0x68   : > { %312 = vst [vmem:[#allocation2 + $0xf0] sm:$0xff] %v7417_v0  ;;  %313 = vst [vmem:[#allocation2 + $0xf8] sm:$0xff] %v7417_v0 }
  0x69   : > { %314 = vst [vmem:[#allocation2 + $0x100] sm:$0xff] %v7417_v0  ;;  %315 = vst [vmem:[#allocation2 + $0x108] sm:$0xff] %v7417_v0 }
  0x6a   : > { %316 = vst [vmem:[#allocation2 + $0x110] sm:$0xff] %v7417_v0  ;;  %317 = vst [vmem:[#allocation2 + $0x118] sm:$0xff] %v7417_v0 }
  0x6b   : > { %318 = vst [vmem:[#allocation2 + $0x120] sm:$0xff] %v7417_v0  ;;  %319 = vst [vmem:[#allocation2 + $0x128] sm:$0xff] %v7417_v0 }
  0x6c   : > { %320 = vst [vmem:[#allocation2 + $0x130] sm:$0xff] %v7417_v0  ;;  %321 = vst [vmem:[#allocation2 + $0x138] sm:$0xff] %v7417_v0 }
  0x6d   : > { %322 = vst [vmem:[#allocation2 + $0x140] sm:$0xff] %v7417_v0  ;;  %323 = vst [vmem:[#allocation2 + $0x148] sm:$0xff] %v7417_v0 }
  0x6e   : > { %324 = vst [vmem:[#allocation2 + $0x150] sm:$0xff] %v7417_v0  ;;  %325 = vst [vmem:[#allocation2 + $0x158] sm:$0xff] %v7417_v0 }
  0x6f   : > { %326 = vst [vmem:[#allocation2 + $0x160] sm:$0xff] %v7417_v0  ;;  %327 = vst [vmem:[#allocation2 + $0x168] sm:$0xff] %v7417_v0 }
  0x70   : > { %328 = vst [vmem:[#allocation2 + $0x170] sm:$0xff] %v7417_v0  ;;  %329 = vst [vmem:[#allocation2 + $0x178] sm:$0xff] %v7417_v0 }
  0x71   : > { %330 = vst [vmem:[#allocation2 + $0x180] sm:$0xff] %v7417_v0  ;;  %331 = vst [vmem:[#allocation2 + $0x188] sm:$0xff] %v7417_v0 }
  0x72   : > { %332 = vst [vmem:[#allocation2 + $0x190] sm:$0xff] %v7417_v0  ;;  %333 = vst [vmem:[#allocation2 + $0x198] sm:$0xff] %v7417_v0 }
  0x73   : > { %334 = vst [vmem:[#allocation2 + $0x1a0] sm:$0xff] %v7417_v0  ;;  %335 = vst [vmem:[#allocation2 + $0x1a8] sm:$0xff] %v7417_v0 }
  0x74   : > { %336 = vst [vmem:[#allocation2 + $0x1b0] sm:$0xff] %v7417_v0  ;;  %337 = vst [vmem:[#allocation2 + $0x1b8] sm:$0xff] %v7417_v0 }
  0x75   : > { %338 = vst [vmem:[#allocation2 + $0x1c0] sm:$0xff] %v7417_v0  ;;  %339 = vst [vmem:[#allocation2 + $0x1c8] sm:$0xff] %v7417_v0 }
  0x76   : > { %340 = vst [vmem:[#allocation2 + $0x1d0] sm:$0xff] %v7417_v0  ;;  %341 = vst [vmem:[#allocation2 + $0x1d8] sm:$0xff] %v7417_v0 }
  0x77   : > { %342 = vst [vmem:[#allocation2 + $0x1e0] sm:$0xff] %v7417_v0  ;;  %343 = vst [vmem:[#allocation2 + $0x1e8] sm:$0xff] %v7417_v0 }
  0x78   : > { %344 = vst [vmem:[#allocation2 + $0x1f0] sm:$0xff] %v7417_v0  ;;  %345 = vst [vmem:[#allocation2 + $0x1f8] sm:$0xff] %v7417_v0 }
  0x79   : > { %346 = vst [vmem:[#allocation2 + $0x200] sm:$0xff] %v7417_v0  ;;  %347 = vst [vmem:[#allocation2 + $0x208] sm:$0xff] %v7417_v0 }
  0x7a   : > { %348 = vst [vmem:[#allocation2 + $0x210] sm:$0xff] %v7417_v0  ;;  %349 = vst [vmem:[#allocation2 + $0x218] sm:$0xff] %v7417_v0 }
  0x7b   : > { %350 = vst [vmem:[#allocation2 + $0x220] sm:$0xff] %v7417_v0  ;;  %351 = vst [vmem:[#allocation2 + $0x228] sm:$0xff] %v7417_v0 }
  0x7c   : > { %352 = vst [vmem:[#allocation2 + $0x230] sm:$0xff] %v7417_v0  ;;  %353 = vst [vmem:[#allocation2 + $0x238] sm:$0xff] %v7417_v0 }
  0x7d   : > { %354 = vst [vmem:[#allocation2 + $0x240] sm:$0xff] %v7417_v0  ;;  %355 = vst [vmem:[#allocation2 + $0x248] sm:$0xff] %v7417_v0 }
  0x7e   : > { %356 = vst [vmem:[#allocation2 + $0x250] sm:$0xff] %v7417_v0  ;;  %357 = vst [vmem:[#allocation2 + $0x258] sm:$0xff] %v7417_v0 }
  0x7f   : > { %358 = vst [vmem:[#allocation2 + $0x260] sm:$0xff] %v7417_v0  ;;  %359 = vst [vmem:[#allocation2 + $0x268] sm:$0xff] %v7417_v0 }
  0x80   : > { %360 = vst [vmem:[#allocation2 + $0x270] sm:$0xff] %v7417_v0  ;;  %361 = vst [vmem:[#allocation2 + $0x278] sm:$0xff] %v7417_v0 }
  0x81   : > { %362 = vst [vmem:[#allocation2 + $0x280] sm:$0xff] %v7417_v0  ;;  %363 = vst [vmem:[#allocation2 + $0x288] sm:$0xff] %v7417_v0 }
  0x82   : > { %364 = vst [vmem:[#allocation2 + $0x290] sm:$0xff] %v7417_v0  ;;  %365 = vst [vmem:[#allocation2 + $0x298] sm:$0xff] %v7417_v0 }
  0x83   : > { %366 = vst [vmem:[#allocation2 + $0x2a0] sm:$0xff] %v7417_v0  ;;  %367 = vst [vmem:[#allocation2 + $0x2a8] sm:$0xff] %v7417_v0 }
  0x84   : > { %368 = vst [vmem:[#allocation2 + $0x2b0] sm:$0xff] %v7417_v0  ;;  %369 = vst [vmem:[#allocation2 + $0x2b8] sm:$0xff] %v7417_v0 }
  0x85   : > { %370 = vst [vmem:[#allocation2 + $0x2c0] sm:$0xff] %v7417_v0  ;;  %371 = vst [vmem:[#allocation2 + $0x2c8] sm:$0xff] %v7417_v0 }
  0x86   : > { %372 = vst [vmem:[#allocation2 + $0x2d0] sm:$0xff] %v7417_v0  ;;  %373 = vst [vmem:[#allocation2 + $0x2d8] sm:$0xff] %v7417_v0 }
  0x87   : > { %374 = vst [vmem:[#allocation2 + $0x2e0] sm:$0xff] %v7417_v0  ;;  %375 = vst [vmem:[#allocation2 + $0x2e8] sm:$0xff] %v7417_v0 }
  0x88   : > { %376 = vst [vmem:[#allocation2 + $0x2f0] sm:$0xff] %v7417_v0  ;;  %377 = vst [vmem:[#allocation2 + $0x2f8] sm:$0xff] %v7417_v0 }
  0x89   : > { %378 = vst [vmem:[#allocation2 + $0x300] sm:$0xff] %v7417_v0  ;;  %379 = vst [vmem:[#allocation2 + $0x308] sm:$0xff] %v7417_v0 }
  0x8a   : > { %380 = vst [vmem:[#allocation2 + $0x310] sm:$0xff] %v7417_v0  ;;  %381 = vst [vmem:[#allocation2 + $0x318] sm:$0xff] %v7417_v0 }
  0x8b   : > { %382 = vst [vmem:[#allocation2 + $0x320] sm:$0xff] %v7417_v0  ;;  %383 = vst [vmem:[#allocation2 + $0x328] sm:$0xff] %v7417_v0 }
  0x8c   : > { %384 = vst [vmem:[#allocation2 + $0x330] sm:$0xff] %v7417_v0  ;;  %385 = vst [vmem:[#allocation2 + $0x338] sm:$0xff] %v7417_v0 }
  0x8d   : > { %386 = vst [vmem:[#allocation2 + $0x340] sm:$0xff] %v7417_v0  ;;  %387 = vst [vmem:[#allocation2 + $0x348] sm:$0xff] %v7417_v0 }
  0x8e   : > { %388 = vst [vmem:[#allocation2 + $0x350] sm:$0xff] %v7417_v0  ;;  %389 = vst [vmem:[#allocation2 + $0x358] sm:$0xff] %v7417_v0 }
  0x8f   : > { %390 = vst [vmem:[#allocation2 + $0x360] sm:$0xff] %v7417_v0  ;;  %391 = vst [vmem:[#allocation2 + $0x368] sm:$0xff] %v7417_v0 }
  0x90   : > { %392 = vst [vmem:[#allocation2 + $0x370] sm:$0xff] %v7417_v0  ;;  %393 = vst [vmem:[#allocation2 + $0x378] sm:$0xff] %v7417_v0 }
  0x91   : > { %394 = vst [vmem:[#allocation2 + $0x380] sm:$0xff] %v7417_v0  ;;  %395 = vst [vmem:[#allocation2 + $0x388] sm:$0xff] %v7417_v0 }
  0x92   : > { %396 = vst [vmem:[#allocation2 + $0x390] sm:$0xff] %v7417_v0  ;;  %397 = vst [vmem:[#allocation2 + $0x398] sm:$0xff] %v7417_v0 }
  0x93   : > { %398 = vst [vmem:[#allocation2 + $0x3a0] sm:$0xff] %v7417_v0  ;;  %399 = vst [vmem:[#allocation2 + $0x3a8] sm:$0xff] %v7417_v0 }
  0x94   : > { %400 = vst [vmem:[#allocation2 + $0x3b0] sm:$0xff] %v7417_v0  ;;  %401 = vst [vmem:[#allocation2 + $0x3b8] sm:$0xff] %v7417_v0 }
  0x95   : > { %402 = vst [vmem:[#allocation2 + $0x3c0] sm:$0xff] %v7417_v0  ;;  %403 = vst [vmem:[#allocation2 + $0x3c8] sm:$0xff] %v7417_v0 }
  0x96   : > { %404 = vst [vmem:[#allocation2 + $0x3d0] sm:$0xff] %v7417_v0  ;;  %405 = vst [vmem:[#allocation2 + $0x3d8] sm:$0xff] %v7417_v0 }
  0x97   : > { %406 = vst [vmem:[#allocation2 + $0x3e0] sm:$0xff] %v7417_v0  ;;  %407 = vst [vmem:[#allocation2 + $0x3e8] sm:$0xff] %v7417_v0 }
  0x98   : > { %408 = vst [vmem:[#allocation2 + $0x3f0] sm:$0xff] %v7417_v0  ;;  %409 = vst [vmem:[#allocation2 + $0x3f8] sm:$0xff] %v7417_v0 }
  0x99   : > { %410 = vst [vmem:[#allocation2 + $0x400] sm:$0xff] %v7417_v0  ;;  %411 = vst [vmem:[#allocation2 + $0x408] sm:$0xff] %v7417_v0 }
  0x9a   : > { %412 = vst [vmem:[#allocation2 + $0x410] sm:$0xff] %v7417_v0  ;;  %413 = vst [vmem:[#allocation2 + $0x418] sm:$0xff] %v7417_v0 }
  0x9b   : > { %414 = vst [vmem:[#allocation2 + $0x420] sm:$0xff] %v7417_v0  ;;  %415 = vst [vmem:[#allocation2 + $0x428] sm:$0xff] %v7417_v0 }
  0x9c   : > { %416 = vst [vmem:[#allocation2 + $0x430] sm:$0xff] %v7417_v0  ;;  %417 = vst [vmem:[#allocation2 + $0x438] sm:$0xff] %v7417_v0 }
  0x9d   : > { %418 = vst [vmem:[#allocation2 + $0x440] sm:$0xff] %v7417_v0  ;;  %419 = vst [vmem:[#allocation2 + $0x448] sm:$0xff] %v7417_v0 }
  0x9e   : > { %420 = vst [vmem:[#allocation2 + $0x450] sm:$0xff] %v7417_v0  ;;  %421 = vst [vmem:[#allocation2 + $0x458] sm:$0xff] %v7417_v0 }
  0x9f   : > { %422 = vst [vmem:[#allocation2 + $0x460] sm:$0xff] %v7417_v0  ;;  %423 = vst [vmem:[#allocation2 + $0x468] sm:$0xff] %v7417_v0 }
  0xa0   : > { %424 = vst [vmem:[#allocation2 + $0x470] sm:$0xff] %v7417_v0  ;;  %425 = vst [vmem:[#allocation2 + $0x478] sm:$0xff] %v7417_v0 }
  0xa1   : > { %426 = vst [vmem:[#allocation2 + $0x480] sm:$0xff] %v7417_v0  ;;  %427 = vst [vmem:[#allocation2 + $0x488] sm:$0xff] %v7417_v0 }
  0xa2   : > { %428 = vst [vmem:[#allocation2 + $0x490] sm:$0xff] %v7417_v0  ;;  %429 = vst [vmem:[#allocation2 + $0x498] sm:$0xff] %v7417_v0 }
  0xa3   : > { %430 = vst [vmem:[#allocation2 + $0x4a0] sm:$0xff] %v7417_v0  ;;  %431 = vst [vmem:[#allocation2 + $0x4a8] sm:$0xff] %v7417_v0 }
  0xa4   : > { %432 = vst [vmem:[#allocation2 + $0x4b0] sm:$0xff] %v7417_v0  ;;  %433 = vst [vmem:[#allocation2 + $0x4b8] sm:$0xff] %v7417_v0 }
  0xa5   : > { %434 = vst [vmem:[#allocation2 + $0x4c0] sm:$0xff] %v7417_v0  ;;  %435 = vst [vmem:[#allocation2 + $0x4c8] sm:$0xff] %v7417_v0 }
  0xa6   : > { %436 = vst [vmem:[#allocation2 + $0x4d0] sm:$0xff] %v7417_v0  ;;  %437 = vst [vmem:[#allocation2 + $0x4d8] sm:$0xff] %v7417_v0 }
  0xa7   : > { %438 = vst [vmem:[#allocation2 + $0x4e0] sm:$0xff] %v7417_v0  ;;  %439 = vst [vmem:[#allocation2 + $0x4e8] sm:$0xff] %v7417_v0 }
  0xa8   : > { %440 = vst [vmem:[#allocation2 + $0x4f0] sm:$0xff] %v7417_v0  ;;  %441 = vst [vmem:[#allocation2 + $0x4f8] sm:$0xff] %v7417_v0 }
  0xa9   : > { %442 = vst [vmem:[#allocation2 + $0x500] sm:$0xff] %v7417_v0  ;;  %443 = vst [vmem:[#allocation2 + $0x508] sm:$0xff] %v7417_v0 }
  0xaa   : > { %444 = vst [vmem:[#allocation2 + $0x510] sm:$0xff] %v7417_v0  ;;  %445 = vst [vmem:[#allocation2 + $0x518] sm:$0xff] %v7417_v0 }
  0xab   : > { %446 = vst [vmem:[#allocation2 + $0x520] sm:$0xff] %v7417_v0  ;;  %447 = vst [vmem:[#allocation2 + $0x528] sm:$0xff] %v7417_v0 }
  0xac   : > { %448 = vst [vmem:[#allocation2 + $0x530] sm:$0xff] %v7417_v0  ;;  %449 = vst [vmem:[#allocation2 + $0x538] sm:$0xff] %v7417_v0 }
  0xad   : > { %450 = vst [vmem:[#allocation2 + $0x540] sm:$0xff] %v7417_v0  ;;  %451 = vst [vmem:[#allocation2 + $0x548] sm:$0xff] %v7417_v0 }
  0xae   : > { %452 = vst [vmem:[#allocation2 + $0x550] sm:$0xff] %v7417_v0  ;;  %453 = vst [vmem:[#allocation2 + $0x558] sm:$0xff] %v7417_v0 }
  0xaf   : > { %454 = vst [vmem:[#allocation2 + $0x560] sm:$0xff] %v7417_v0  ;;  %455 = vst [vmem:[#allocation2 + $0x568] sm:$0xff] %v7417_v0 }
  0xb0   : > { %456 = vst [vmem:[#allocation2 + $0x570] sm:$0xff] %v7417_v0  ;;  %457 = vst [vmem:[#allocation2 + $0x578] sm:$0xff] %v7417_v0 }
  0xb1   : > { %458 = vst [vmem:[#allocation2 + $0x580] sm:$0xff] %v7417_v0  ;;  %459 = vst [vmem:[#allocation2 + $0x588] sm:$0xff] %v7417_v0 }
  0xb2   : > { %460 = vst [vmem:[#allocation2 + $0x590] sm:$0xff] %v7417_v0  ;;  %461 = vst [vmem:[#allocation2 + $0x598] sm:$0xff] %v7417_v0 }
  0xb3   : > { %462 = vst [vmem:[#allocation2 + $0x5a0] sm:$0xff] %v7417_v0  ;;  %463 = vst [vmem:[#allocation2 + $0x5a8] sm:$0xff] %v7417_v0 }
  0xb4   : > { %464 = vst [vmem:[#allocation2 + $0x5b0] sm:$0xff] %v7417_v0  ;;  %465 = vst [vmem:[#allocation2 + $0x5b8] sm:$0xff] %v7417_v0 }
  0xb5   : > { %466 = vst [vmem:[#allocation2 + $0x5c0] sm:$0xff] %v7417_v0  ;;  %467 = vst [vmem:[#allocation2 + $0x5c8] sm:$0xff] %v7417_v0 }
  0xb6   : > { %468 = vst [vmem:[#allocation2 + $0x5d0] sm:$0xff] %v7417_v0  ;;  %469 = vst [vmem:[#allocation2 + $0x5d8] sm:$0xff] %v7417_v0 }
  0xb7   : > { %470 = vst [vmem:[#allocation2 + $0x5e0] sm:$0xff] %v7417_v0  ;;  %471 = vst [vmem:[#allocation2 + $0x5e8] sm:$0xff] %v7417_v0 }
  0xb8   : > { %472 = vst [vmem:[#allocation2 + $0x5f0] sm:$0xff] %v7417_v0  ;;  %473 = vst [vmem:[#allocation2 + $0x5f8] sm:$0xff] %v7417_v0 }
  0xb9   : > { %474 = vst [vmem:[#allocation2 + $0x600] sm:$0xff] %v7417_v0  ;;  %475 = vst [vmem:[#allocation2 + $0x608] sm:$0xff] %v7417_v0 }
  0xba   : > { %476 = vst [vmem:[#allocation2 + $0x610] sm:$0xff] %v7417_v0  ;;  %477 = vst [vmem:[#allocation2 + $0x618] sm:$0xff] %v7417_v0 }
  0xbb   : > { %478 = vst [vmem:[#allocation2 + $0x620] sm:$0xff] %v7417_v0  ;;  %479 = vst [vmem:[#allocation2 + $0x628] sm:$0xff] %v7417_v0 }
  0xbc   : > { %480 = vst [vmem:[#allocation2 + $0x630] sm:$0xff] %v7417_v0  ;;  %481 = vst [vmem:[#allocation2 + $0x638] sm:$0xff] %v7417_v0 }
  0xbd   : > { %482 = vst [vmem:[#allocation2 + $0x640] sm:$0xff] %v7417_v0  ;;  %483 = vst [vmem:[#allocation2 + $0x648] sm:$0xff] %v7417_v0 }
  0xbe   : > { %484 = vst [vmem:[#allocation2 + $0x650] sm:$0xff] %v7417_v0  ;;  %485 = vst [vmem:[#allocation2 + $0x658] sm:$0xff] %v7417_v0 }
  0xbf   : > { %486 = vst [vmem:[#allocation2 + $0x660] sm:$0xff] %v7417_v0  ;;  %487 = vst [vmem:[#allocation2 + $0x668] sm:$0xff] %v7417_v0 }
  0xc0   : > { %488 = vst [vmem:[#allocation2 + $0x670] sm:$0xff] %v7417_v0  ;;  %489 = vst [vmem:[#allocation2 + $0x678] sm:$0xff] %v7417_v0 }
  0xc1   : > { %490 = vst [vmem:[#allocation2 + $0x680] sm:$0xff] %v7417_v0  ;;  %491 = vst [vmem:[#allocation2 + $0x688] sm:$0xff] %v7417_v0 }
  0xc2   : > { %492 = vst [vmem:[#allocation2 + $0x690] sm:$0xff] %v7417_v0  ;;  %493 = vst [vmem:[#allocation2 + $0x698] sm:$0xff] %v7417_v0 }
  0xc3   : > { %494 = vst [vmem:[#allocation2 + $0x6a0] sm:$0xff] %v7417_v0  ;;  %495 = vst [vmem:[#allocation2 + $0x6a8] sm:$0xff] %v7417_v0 }
  0xc4   : > { %496 = vst [vmem:[#allocation2 + $0x6b0] sm:$0xff] %v7417_v0  ;;  %497 = vst [vmem:[#allocation2 + $0x6b8] sm:$0xff] %v7417_v0 }
  0xc5   : > { %498 = vst [vmem:[#allocation2 + $0x6c0] sm:$0xff] %v7417_v0  ;;  %499 = vst [vmem:[#allocation2 + $0x6c8] sm:$0xff] %v7417_v0 }
  0xc6   : > { %500 = vst [vmem:[#allocation2 + $0x6d0] sm:$0xff] %v7417_v0  ;;  %501 = vst [vmem:[#allocation2 + $0x6d8] sm:$0xff] %v7417_v0 }
  0xc7   : > { %502 = vst [vmem:[#allocation2 + $0x6e0] sm:$0xff] %v7417_v0  ;;  %503 = vst [vmem:[#allocation2 + $0x6e8] sm:$0xff] %v7417_v0 }
  0xc8   : > { %504 = vst [vmem:[#allocation2 + $0x6f0] sm:$0xff] %v7417_v0  ;;  %505 = vst [vmem:[#allocation2 + $0x6f8] sm:$0xff] %v7417_v0 }
  0xc9   : > { %506 = vst [vmem:[#allocation2 + $0x700] sm:$0xff] %v7417_v0  ;;  %507 = vst [vmem:[#allocation2 + $0x708] sm:$0xff] %v7417_v0 }
  0xca   : > { %508 = vst [vmem:[#allocation2 + $0x710] sm:$0xff] %v7417_v0  ;;  %509 = vst [vmem:[#allocation2 + $0x718] sm:$0xff] %v7417_v0 }
  0xcb   : > { %510 = vst [vmem:[#allocation2 + $0x720] sm:$0xff] %v7417_v0  ;;  %511 = vst [vmem:[#allocation2 + $0x728] sm:$0xff] %v7417_v0 }
  0xcc   : > { %512 = vst [vmem:[#allocation2 + $0x730] sm:$0xff] %v7417_v0  ;;  %513 = vst [vmem:[#allocation2 + $0x738] sm:$0xff] %v7417_v0 }
  0xcd   : > { %514 = vst [vmem:[#allocation2 + $0x740] sm:$0xff] %v7417_v0  ;;  %515 = vst [vmem:[#allocation2 + $0x748] sm:$0xff] %v7417_v0 }
  0xce   : > { %516 = vst [vmem:[#allocation2 + $0x750] sm:$0xff] %v7417_v0  ;;  %517 = vst [vmem:[#allocation2 + $0x758] sm:$0xff] %v7417_v0 }
  0xcf   : > { %518 = vst [vmem:[#allocation2 + $0x760] sm:$0xff] %v7417_v0  ;;  %519 = vst [vmem:[#allocation2 + $0x768] sm:$0xff] %v7417_v0 }
  0xd0   : > { %520 = vst [vmem:[#allocation2 + $0x770] sm:$0xff] %v7417_v0  ;;  %521 = vst [vmem:[#allocation2 + $0x778] sm:$0xff] %v7417_v0 }
  0xd1   : > { %522 = vst [vmem:[#allocation2 + $0x780] sm:$0xff] %v7417_v0  ;;  %523 = vst [vmem:[#allocation2 + $0x788] sm:$0xff] %v7417_v0 }
  0xd2   : > { %524 = vst [vmem:[#allocation2 + $0x790] sm:$0xff] %v7417_v0  ;;  %525 = vst [vmem:[#allocation2 + $0x798] sm:$0xff] %v7417_v0 }
  0xd3   : > { %526 = vst [vmem:[#allocation2 + $0x7a0] sm:$0xff] %v7417_v0  ;;  %527 = vst [vmem:[#allocation2 + $0x7a8] sm:$0xff] %v7417_v0 }
  0xd4   : > { %528 = vst [vmem:[#allocation2 + $0x7b0] sm:$0xff] %v7417_v0  ;;  %529 = vst [vmem:[#allocation2 + $0x7b8] sm:$0xff] %v7417_v0 }
  0xd5   : > { %530 = vst [vmem:[#allocation2 + $0x7c0] sm:$0xff] %v7417_v0  ;;  %531 = vst [vmem:[#allocation2 + $0x7c8] sm:$0xff] %v7417_v0 }
  0xd6   : > { %532 = vst [vmem:[#allocation2 + $0x7d0] sm:$0xff] %v7417_v0  ;;  %533 = vst [vmem:[#allocation2 + $0x7d8] sm:$0xff] %v7417_v0 }
  0xd7   : > { %534 = vst [vmem:[#allocation2 + $0x7e0] sm:$0xff] %v7417_v0  ;;  %535 = vst [vmem:[#allocation2 + $0x7e8] sm:$0xff] %v7417_v0 }
  0xd8   : > { %536 = vst [vmem:[#allocation2 + $0x7f0] sm:$0xff] %v7417_v0  ;;  %537 = vst [vmem:[#allocation2 + $0x7f8] sm:$0xff] %v7417_v0 }
  0xd9   : > { %538 = vst [vmem:[#allocation2 + $0x800] sm:$0xff] %v7417_v0  ;;  %539 = vst [vmem:[#allocation2 + $0x808] sm:$0xff] %v7417_v0 }
  0xda   : > { %540 = vst [vmem:[#allocation2 + $0x810] sm:$0xff] %v7417_v0  ;;  %541 = vst [vmem:[#allocation2 + $0x818] sm:$0xff] %v7417_v0 }
  0xdb   : > { %542 = vst [vmem:[#allocation2 + $0x820] sm:$0xff] %v7417_v0  ;;  %543 = vst [vmem:[#allocation2 + $0x828] sm:$0xff] %v7417_v0 }
  0xdc   : > { %544 = vst [vmem:[#allocation2 + $0x830] sm:$0xff] %v7417_v0  ;;  %545 = vst [vmem:[#allocation2 + $0x838] sm:$0xff] %v7417_v0 }
  0xdd   : > { %546 = vst [vmem:[#allocation2 + $0x840] sm:$0xff] %v7417_v0  ;;  %547 = vst [vmem:[#allocation2 + $0x848] sm:$0xff] %v7417_v0 }
  0xde   : > { %548 = vst [vmem:[#allocation2 + $0x850] sm:$0xff] %v7417_v0  ;;  %549 = vst [vmem:[#allocation2 + $0x858] sm:$0xff] %v7417_v0 }
  0xdf   : > { %550 = vst [vmem:[#allocation2 + $0x860] sm:$0xff] %v7417_v0  ;;  %551 = vst [vmem:[#allocation2 + $0x868] sm:$0xff] %v7417_v0 }
  0xe0   : > { %552 = vst [vmem:[#allocation2 + $0x870] sm:$0xff] %v7417_v0  ;;  %553 = vst [vmem:[#allocation2 + $0x878] sm:$0xff] %v7417_v0 }
  0xe1   : > { %554 = vst [vmem:[#allocation2 + $0x880] sm:$0xff] %v7417_v0  ;;  %555 = vst [vmem:[#allocation2 + $0x888] sm:$0xff] %v7417_v0 }
  0xe2   : > { %556 = vst [vmem:[#allocation2 + $0x890] sm:$0xff] %v7417_v0  ;;  %557 = vst [vmem:[#allocation2 + $0x898] sm:$0xff] %v7417_v0 }
  0xe3   : > { %558 = vst [vmem:[#allocation2 + $0x8a0] sm:$0xff] %v7417_v0  ;;  %559 = vst [vmem:[#allocation2 + $0x8a8] sm:$0xff] %v7417_v0 }
  0xe4   : > { %560 = vst [vmem:[#allocation2 + $0x8b0] sm:$0xff] %v7417_v0  ;;  %561 = vst [vmem:[#allocation2 + $0x8b8] sm:$0xff] %v7417_v0 }
  0xe5   : > { %562 = vst [vmem:[#allocation2 + $0x8c0] sm:$0xff] %v7417_v0  ;;  %563 = vst [vmem:[#allocation2 + $0x8c8] sm:$0xff] %v7417_v0 }
  0xe6   : > { %564 = vst [vmem:[#allocation2 + $0x8d0] sm:$0xff] %v7417_v0  ;;  %565 = vst [vmem:[#allocation2 + $0x8d8] sm:$0xff] %v7417_v0 }
  0xe7   : > { %566 = vst [vmem:[#allocation2 + $0x8e0] sm:$0xff] %v7417_v0  ;;  %567 = vst [vmem:[#allocation2 + $0x8e8] sm:$0xff] %v7417_v0 }
  0xe8   : > { %568 = vst [vmem:[#allocation2 + $0x8f0] sm:$0xff] %v7417_v0  ;;  %569 = vst [vmem:[#allocation2 + $0x8f8] sm:$0xff] %v7417_v0 }
  0xe9 PF: > { %v2011_v1 = vld [vmem:[%s7586_s24 + $0x8] sm:$0xff]  ;;  %v2017_v2 = vld [vmem:[%s7586_s24 + $0x38] sm:$0xff]  ;;  %v2010_v6 = vld [vmem:[%s7586_s24] sm:$0xff]  ;;  %p6122_p12 = scmp.ne.s32.totalorder %s7400_s15, 5 }
  0xea   : > { %v2203_v3 = vld [vmem:[%s7586_s24 + $0x608] sm:$0xff]  ;;  %v6128_v4 = vpack.c.bf16 %v2017_v2, %v2011_v1  ;;  %v2209_v5 = vld [vmem:[%s7586_s24 + $0x638] sm:$0xff]  ;;  %v2016_v7 = vld [vmem:[%s7586_s24 + $0x30] sm:$0xff] }
  0xeb   : > { %v6192_v8 = vpack.c.bf16 %v2209_v5, %v2203_v3  ;;  %v6130_v9 = vpack.c.bf16 %v2016_v7, %v2010_v6  ;;  %v2202_v10 = vld [vmem:[%s7586_s24 + $0x600] sm:$0xff]  ;;  %v2208_v11 = vld [vmem:[%s7586_s24 + $0x630] sm:$0xff]  ;;  %v2023_v12 = vld [vmem:[%s7586_s24 + $0x68] sm:$0xff] }
  0xec   : > { %6129 = vmatprep.subr.bf16.mxu1 %v6128_v4  ;;  %v6194_v13 = vpack.c.bf16 %v2208_v11, %v2202_v10  ;;  %v2029_v14 = vld [vmem:[%s7586_s24 + $0x98] sm:$0xff]  ;;  %v2215_v15 = vld [vmem:[%s7586_s24 + $0x668] sm:$0xff]  ;;  %v2022_v19 = vld [vmem:[%s7586_s24 + $0x60] sm:$0xff] }
  0xed   : > { %v2221_v16 = vld [vmem:[%s7586_s24 + $0x698] sm:$0xff]  ;;  %6193 = vmatprep.subr.bf16.mxu0 %v6192_v8  ;;  %6131 = vmatpush1.bf16.msra.mxu1 %v6130_v9  ;;  %v6132_v17 = vpack.c.bf16 %v2029_v14, %v2023_v12  ;;  %v2028_v20 = vld [vmem:[%s7586_s24 + $0x90] sm:$0xff]  ;;  %v2214_v21 = vld [vmem:[%s7586_s24 + $0x660] sm:$0xff] }
  0xee   : > { %v6196_v18 = vpack.c.bf16 %v2221_v16, %v2215_v15  ;;  %6195 = vmatpush1.bf16.msra.mxu0 %v6194_v13  ;;  %v6134_v22 = vpack.c.bf16 %v2028_v20, %v2022_v19  ;;  %v2220_v23 = vld [vmem:[%s7586_s24 + $0x690] sm:$0xff]  ;;  %v2035_v24 = vld [vmem:[%s7586_s24 + $0xc8] sm:$0xff]  ;;  %v2041_v25 = vld [vmem:[%s7586_s24 + $0xf8] sm:$0xff] }
  0xef   : > { %6133 = vmatprep.subr.bf16.mxu1 %v6132_v17  ;;  %v6198_v26 = vpack.c.bf16 %v2220_v23, %v2214_v21  ;;  %v6136_v27 = vpack.c.bf16 %v2041_v25, %v2035_v24  ;;  %v2227_v28 = vld [vmem:[%s7586_s24 + $0x6c8] sm:$0xff]  ;;  %v2233_v29 = vld [vmem:[%s7586_s24 + $0x6f8] sm:$0xff]  ;;  %v2034_v30 = vld [vmem:[%s7586_s24 + $0xc0] sm:$0xff] }
  0xf0   : > { %6197 = vmatprep.subr.bf16.mxu0 %v6196_v18  ;;  %v6200_v31 = vpack.c.bf16 %v2233_v29, %v2227_v28  ;;  %v2040_v32 = vld [vmem:[%s7586_s24 + $0xf0] sm:$0xff]  ;;  %v2226_v33 = vld [vmem:[%s7586_s24 + $0x6c0] sm:$0xff]  ;;  %v2047_v36 = vld [vmem:[%s7586_s24 + $0x128] sm:$0xff] }
  0xf1   : > { %v2232_v34 = vld [vmem:[%s7586_s24 + $0x6f0] sm:$0xff]  ;;  %6135 = vmatpush1.bf16.msra.mxu1 %v6134_v22  ;;  %v6138_v35 = vpack.c.bf16 %v2040_v32, %v2034_v30  ;;  %v2053_v37 = vld [vmem:[%s7586_s24 + $0x158] sm:$0xff]  ;;  %v2239_v38 = vld [vmem:[%s7586_s24 + $0x728] sm:$0xff] }
  0xf2   : > { %6199 = vmatpush1.bf16.msra.mxu0 %v6198_v26  ;;  %6137 = vmatprep.subr.bf16.mxu1 %v6136_v27  ;;  %v6202_v39 = vpack.c.bf16 %v2232_v34, %v2226_v33  ;;  %v6140_v40 = vpack.c.bf16 %v2053_v37, %v2047_v36  ;;  %v2245_v41 = vld [vmem:[%s7586_s24 + $0x758] sm:$0xff]  ;;  %v2046_v42 = vld [vmem:[%s7586_s24 + $0x120] sm:$0xff]  ;;  %v2052_v43 = vld [vmem:[%s7586_s24 + $0x150] sm:$0xff] }
  0xf3   : > { %6201 = vmatprep.subr.bf16.mxu0 %v6200_v31  ;;  %v6204_v44 = vpack.c.bf16 %v2245_v41, %v2239_v38  ;;  %v2238_v45 = vld [vmem:[%s7586_s24 + $0x720] sm:$0xff]  ;;  %v2244_v46 = vld [vmem:[%s7586_s24 + $0x750] sm:$0xff]  ;;  %v2059_v47 = vld [vmem:[%s7586_s24 + $0x188] sm:$0xff]  ;;  %v6142_v51 = vpack.c.bf16 %v2052_v43, %v2046_v42 }
  0xf4   : > { %v2065_v48 = vld [vmem:[%s7586_s24 + $0x1b8] sm:$0xff]  ;;  %v2251_v49 = vld [vmem:[%s7586_s24 + $0x788] sm:$0xff]  ;;  %v6206_v52 = vpack.c.bf16 %v2244_v46, %v2238_v45  ;;  %v2058_v54 = vld [vmem:[%s7586_s24 + $0x180] sm:$0xff] }
  0xf5   : > { %v2257_v50 = vld [vmem:[%s7586_s24 + $0x7b8] sm:$0xff]  ;;  %6139 = vmatpush1.bf16.msra.mxu1 %v6138_v35  ;;  %v6144_v53 = vpack.c.bf16 %v2065_v48, %v2059_v47  ;;  %v2064_v55 = vld [vmem:[%s7586_s24 + $0x1b0] sm:$0xff]  ;;  %v2250_v56 = vld [vmem:[%s7586_s24 + $0x780] sm:$0xff] }
  0xf6   : > { %6203 = vmatpush1.bf16.msra.mxu0 %v6202_v39  ;;  %6141 = vmatprep.subr.bf16.mxu1 %v6140_v40  ;;  %v6208_v57 = vpack.c.bf16 %v2257_v50, %v2251_v49  ;;  %v2256_v58 = vld [vmem:[%s7586_s24 + $0x7b0] sm:$0xff]  ;;  %v2071_v59 = vld [vmem:[%s7586_s24 + $0x1e8] sm:$0xff]  ;;  %v2077_v60 = vld [vmem:[%s7586_s24 + $0x218] sm:$0xff]  ;;  %v6146_v63 = vpack.c.bf16 %v2064_v55, %v2058_v54 }
  0xf7   : > { %6205 = vmatprep.subr.bf16.mxu0 %v6204_v44  ;;  %v2263_v61 = vld [vmem:[%s7586_s24 + $0x7e8] sm:$0xff]  ;;  %v2269_v62 = vld [vmem:[%s7586_s24 + $0x818] sm:$0xff]  ;;  %v6210_v0 = vpack.c.bf16 %v2256_v58, %v2250_v56  ;;  %v6148_v1 = vpack.c.bf16 %v2077_v60, %v2071_v59  ;;  %v2070_v2 = vld [vmem:[%s7586_s24 + $0x1e0] sm:$0xff] }
  0xf8   : > { %v2076_v3 = vld [vmem:[%s7586_s24 + $0x210] sm:$0xff]  ;;  %v2262_v4 = vld [vmem:[%s7586_s24 + $0x7e0] sm:$0xff]  ;;  %v6212_v5 = vpack.c.bf16 %v2269_v62, %v2263_v61  ;;  %v2083_v7 = vld [vmem:[%s7586_s24 + $0x248] sm:$0xff] }
  0xf9   : > { %6143 = vmatpush1.bf16.msra.mxu1 %v6142_v51  ;;  %v2268_v6 = vld [vmem:[%s7586_s24 + $0x810] sm:$0xff]  ;;  %v2089_v8 = vld [vmem:[%s7586_s24 + $0x278] sm:$0xff]  ;;  %v2275_v9 = vld [vmem:[%s7586_s24 + $0x848] sm:$0xff]  ;;  %v6150_v11 = vpack.c.bf16 %v2076_v3, %v2070_v2 }
  0xfa   : > { %6207 = vmatpush1.bf16.msra.mxu0 %v6206_v52  ;;  %6145 = vmatprep.subr.bf16.mxu1 %v6144_v53  ;;  %v2281_v10 = vld [vmem:[%s7586_s24 + $0x878] sm:$0xff]  ;;  %v6214_v12 = vpack.c.bf16 %v2268_v6, %v2262_v4  ;;  %v6152_v13 = vpack.c.bf16 %v2089_v8, %v2083_v7  ;;  %v2082_v14 = vld [vmem:[%s7586_s24 + $0x240] sm:$0xff]  ;;  %v2088_v15 = vld [vmem:[%s7586_s24 + $0x270] sm:$0xff] }
  0xfb   : > { %6209 = vmatprep.subr.bf16.mxu0 %v6208_v57  ;;  %v2274_v16 = vld [vmem:[%s7586_s24 + $0x840] sm:$0xff]  ;;  %v6216_v17 = vpack.c.bf16 %v2281_v10, %v2275_v9  ;;  %v2280_v18 = vld [vmem:[%s7586_s24 + $0x870] sm:$0xff]  ;;  %v2095_v19 = vld [vmem:[%s7586_s24 + $0x2a8] sm:$0xff]  ;;  %v6154_v23 = vpack.c.bf16 %v2088_v15, %v2082_v14 }
  0xfc   : > { %v2101_v20 = vld [vmem:[%s7586_s24 + $0x2d8] sm:$0xff]  ;;  %v2287_v21 = vld [vmem:[%s7586_s24 + $0x8a8] sm:$0xff]  ;;  %v6218_v24 = vpack.c.bf16 %v2280_v18, %v2274_v16  ;;  %v2094_v26 = vld [vmem:[%s7586_s24 + $0x2a0] sm:$0xff] }
  0xfd   : > { %6147 = vmatpush1.bf16.msra.mxu1 %v6146_v63  ;;  %v2293_v22 = vld [vmem:[%s7586_s24 + $0x8d8] sm:$0xff]  ;;  %v6156_v25 = vpack.c.bf16 %v2101_v20, %v2095_v19  ;;  %v2100_v27 = vld [vmem:[%s7586_s24 + $0x2d0] sm:$0xff]  ;;  %v2286_v28 = vld [vmem:[%s7586_s24 + $0x8a0] sm:$0xff] }
  0xfe   : > { %6211 = vmatpush1.bf16.msra.mxu0 %v6210_v0  ;;  %6149 = vmatprep.subr.bf16.mxu1 %v6148_v1  ;;  %v6220_v29 = vpack.c.bf16 %v2293_v22, %v2287_v21  ;;  %v2292_v30 = vld [vmem:[%s7586_s24 + $0x8d0] sm:$0xff]  ;;  %v2107_v31 = vld [vmem:[%s7586_s24 + $0x308] sm:$0xff]  ;;  %v2113_v32 = vld [vmem:[%s7586_s24 + $0x338] sm:$0xff]  ;;  %v6158_v35 = vpack.c.bf16 %v2100_v27, %v2094_v26 }
  0xff   : > { %6213 = vmatprep.subr.bf16.mxu0 %v6212_v5  ;;  %v2299_v33 = vld [vmem:[%s7586_s24 + $0x908] sm:$0xff]  ;;  %v2305_v34 = vld [vmem:[%s7586_s24 + $0x938] sm:$0xff]  ;;  %v6222_v36 = vpack.c.bf16 %v2292_v30, %v2286_v28  ;;  %v6160_v37 = vpack.c.bf16 %v2113_v32, %v2107_v31  ;;  %v2106_v38 = vld [vmem:[%s7586_s24 + $0x300] sm:$0xff] }
 0x100   : > { %v2112_v39 = vld [vmem:[%s7586_s24 + $0x330] sm:$0xff]  ;;  %v2298_v40 = vld [vmem:[%s7586_s24 + $0x900] sm:$0xff]  ;;  %v6224_v41 = vpack.c.bf16 %v2305_v34, %v2299_v33  ;;  %v2119_v43 = vld [vmem:[%s7586_s24 + $0x368] sm:$0xff] }
 0x101   : > { %6151 = vmatpush1.bf16.msra.mxu1 %v6150_v11  ;;  %v2304_v42 = vld [vmem:[%s7586_s24 + $0x930] sm:$0xff]  ;;  %v2125_v44 = vld [vmem:[%s7586_s24 + $0x398] sm:$0xff]  ;;  %v2311_v45 = vld [vmem:[%s7586_s24 + $0x968] sm:$0xff]  ;;  %v6162_v47 = vpack.c.bf16 %v2112_v39, %v2106_v38 }
 0x102   : > { %6215 = vmatpush1.bf16.msra.mxu0 %v6214_v12  ;;  %6153 = vmatprep.subr.bf16.mxu1 %v6152_v13  ;;  %v2317_v46 = vld [vmem:[%s7586_s24 + $0x998] sm:$0xff]  ;;  %v2118_v48 = vld [vmem:[%s7586_s24 + $0x360] sm:$0xff]  ;;  %v6226_v49 = vpack.c.bf16 %v2304_v42, %v2298_v40  ;;  %v6164_v50 = vpack.c.bf16 %v2125_v44, %v2119_v43  ;;  %v2124_v51 = vld [vmem:[%s7586_s24 + $0x390] sm:$0xff] }
 0x103   : > { %6217 = vmatprep.subr.bf16.mxu0 %v6216_v17  ;;  %v2310_v52 = vld [vmem:[%s7586_s24 + $0x960] sm:$0xff]  ;;  %v2316_v53 = vld [vmem:[%s7586_s24 + $0x990] sm:$0xff]  ;;  %v6228_v54 = vpack.c.bf16 %v2317_v46, %v2311_v45  ;;  %v2131_v55 = vld [vmem:[%s7586_s24 + $0x3c8] sm:$0xff]  ;;  %v6166_v61 = vpack.c.bf16 %v2124_v51, %v2118_v48 }
 0x104   : > { %v2137_v56 = vld [vmem:[%s7586_s24 + $0x3f8] sm:$0xff]  ;;  %v2323_v57 = vld [vmem:[%s7586_s24 + $0x9c8] sm:$0xff]  ;;  %v7966_v59 = vld [vmem:[%s7586_s24 + $0x3c0] sm:$0xff]  ;;  %v6230_v4 = vpack.c.bf16 %v2316_v53, %v2310_v52 }
 0x105   : > { %6155 = vmatpush1.bf16.msra.mxu1 %v6154_v23  ;;  %v2329_v58 = vld [vmem:[%s7586_s24 + $0x9f8] sm:$0xff]  ;;  %v7969_v60 = vld [vmem:[%s7586_s24 + $0x3f0] sm:$0xff]  ;;  %v7972_v62 = vld [vmem:[%s7586_s24 + $0x9c0] sm:$0xff]  ;;  %v6168_v5 = vpack.c.bf16 %v2137_v56, %v2131_v55 }
 0x106   : > { %6219 = vmatpush1.bf16.msra.mxu0 %v6218_v24  ;;  %6157 = vmatprep.subr.bf16.mxu1 %v6156_v25  ;;  %v7975_v63 = vld [vmem:[%s7586_s24 + $0x9f0] sm:$0xff]  ;;  %v7978_v0 = vld [vmem:[%s7586_s24 + $0x428] sm:$0xff]  ;;  %v7981_v1 = vld [vmem:[%s7586_s24 + $0x458] sm:$0xff]  ;;  %v6232_v14 = vpack.c.bf16 %v2329_v58, %v2323_v57  ;;  %v6170_v25 = vpack.c.bf16 %v7969_v60, %v7966_v59 }
 0x107   : > { %6221 = vmatprep.subr.bf16.mxu0 %v6220_v29  ;;  %v7984_v2 = vld [vmem:[%s7586_s24 + $0xa28] sm:$0xff]  ;;  %v7987_v3 = vld [vmem:[%s7586_s24 + $0xa58] sm:$0xff]  ;;  %v7990_v6 = vld [vmem:[%s7586_s24 + $0x420] sm:$0xff]  ;;  %v6234_v30 = vpack.c.bf16 %v7975_v63, %v7972_v62  ;;  %v6172_v31 = vpack.c.bf16 %v7981_v1, %v7978_v0 }
 0x108   : > { %v7993_v7 = vld [vmem:[%s7586_s24 + $0x450] sm:$0xff]  ;;  %v7996_v8 = vld [vmem:[%s7586_s24 + $0xa20] sm:$0xff]  ;;  %v8002_v10 = vld [vmem:[%s7586_s24 + $0x488] sm:$0xff]  ;;  %v6236_v32 = vpack.c.bf16 %v7987_v3, %v7984_v2 }
 0x109   : > { %6159 = vmatpush1.bf16.msra.mxu1 %v6158_v35  ;;  %v7999_v9 = vld [vmem:[%s7586_s24 + $0xa50] sm:$0xff]  ;;  %v8005_v11 = vld [vmem:[%s7586_s24 + $0x4b8] sm:$0xff]  ;;  %v8008_v12 = vld [vmem:[%s7586_s24 + $0xa88] sm:$0xff]  ;;  %v6174_v39 = vpack.c.bf16 %v7993_v7, %v7990_v6 }
 0x10a   : > { %6223 = vmatpush1.bf16.msra.mxu0 %v6222_v36  ;;  %6161 = vmatprep.subr.bf16.mxu1 %v6160_v37  ;;  %v8011_v13 = vld [vmem:[%s7586_s24 + $0xab8] sm:$0xff]  ;;  %v8014_v15 = vld [vmem:[%s7586_s24 + $0x480] sm:$0xff]  ;;  %v8017_v16 = vld [vmem:[%s7586_s24 + $0x4b0] sm:$0xff]  ;;  %v6238_v40 = vpack.c.bf16 %v7999_v9, %v7996_v8 }
 0x10b   : > { %6225 = vmatprep.subr.bf16.mxu0 %v6224_v41  ;;  %v8020_v17 = vld [vmem:[%s7586_s24 + $0xa80] sm:$0xff]  ;;  %v8023_v18 = vld [vmem:[%s7586_s24 + $0xab0] sm:$0xff]  ;;  %v8026_v19 = vld [vmem:[%s7586_s24 + $0x4e8] sm:$0xff]  ;;  %v6176_v41 = vpack.c.bf16 %v8005_v11, %v8002_v10  ;;  %v6240_v42 = vpack.c.bf16 %v8011_v13, %v8008_v12  ;;  %v6178_v46 = vpack.c.bf16 %v8017_v16, %v8014_v15 }
 0x10c   : > { %v8029_v20 = vld [vmem:[%s7586_s24 + $0x518] sm:$0xff]  ;;  %v8032_v21 = vld [vmem:[%s7586_s24 + $0xae8] sm:$0xff]  ;;  %v8038_v23 = vld [vmem:[%s7586_s24 + $0x4e0] sm:$0xff] }
 0x10d   : > { %6163 = vmatpush1.bf16.msra.mxu1 %v6162_v47  ;;  %v8035_v22 = vld [vmem:[%s7586_s24 + $0xb18] sm:$0xff]  ;;  %v8041_v24 = vld [vmem:[%s7586_s24 + $0x510] sm:$0xff]  ;;  %v8046_v26 = vld [vmem:[%s7586_s24 + $0xae0] sm:$0xff]  ;;  %v6242_v47 = vpack.c.bf16 %v8023_v18, %v8020_v17  ;;  %v6180_v48 = vpack.c.bf16 %v8029_v20, %v8026_v19 }
 0x10e   : > { %6227 = vmatpush1.bf16.msra.mxu0 %v6226_v49  ;;  %6165 = vmatprep.subr.bf16.mxu1 %v6164_v50  ;;  %v8049_v27 = vld [vmem:[%s7586_s24 + $0xb10] sm:$0xff]  ;;  %v8052_v28 = vld [vmem:[%s7586_s24 + $0x548] sm:$0xff]  ;;  %v8055_v29 = vld [vmem:[%s7586_s24 + $0x578] sm:$0xff]  ;;  %v6244_v55 = vpack.c.bf16 %v8035_v22, %v8032_v21  ;;  %v6182_v56 = vpack.c.bf16 %v8041_v24, %v8038_v23 }
 0x10f   : > { %6229 = vmatprep.subr.bf16.mxu0 %v6228_v54  ;;  %v8064_v33 = vld [vmem:[%s7586_s24 + $0xb48] sm:$0xff]  ;;  %v8067_v34 = vld [vmem:[%s7586_s24 + $0xb78] sm:$0xff]  ;;  %v8070_v35 = vld [vmem:[%s7586_s24 + $0x540] sm:$0xff] }
 0x110   : > { %v8073_v36 = vld [vmem:[%s7586_s24 + $0x570] sm:$0xff]  ;;  %v8076_v37 = vld [vmem:[%s7586_s24 + $0xb40] sm:$0xff]  ;;  %v8090_v43 = vld [vmem:[%s7586_s24 + $0x5a8] sm:$0xff] }
 0x111   : > { %6167 = vmatpush1.bf16.msra.mxu1 %v6166_v61  ;;  %v8079_v38 = vld [vmem:[%s7586_s24 + $0xb70] sm:$0xff]  ;;  %v8093_v44 = vld [vmem:[%s7586_s24 + $0x5d8] sm:$0xff]  ;;  %v571_v45 = vld [vmem:[%s7580_s26 + $0x8] sm:$0xff]  ;;  %v6246_v61 = vpack.c.bf16 %v8049_v27, %v8046_v26  ;;  %v11211_v26 = vpack.c.bf16 %v8067_v34, %v8064_v33 }
 0x112   : > { %6231 = vmatpush1.bf16.msra.mxu0 %v6230_v4  ;;  %6169 = vmatprep.subr.bf16.mxu1 %v6168_v5  ;;  %v8103_v49 = vld [vmem:[%s7586_s24 + $0xba8] sm:$0xff]  ;;  %v8106_v50 = vld [vmem:[%s7586_s24 + $0xbd8] sm:$0xff]  ;;  %v955_v51 = vmul.f32 0.70710677, %v571_v45  ;;  %v570_v53 = vld [vmem:[%s7580_s26] sm:$0xff]  ;;  %v8151_v10 = vmul.f32 0.5, %v571_v45 }
 0x113   : > { %6233 = vmatprep.subr.bf16.mxu0 %v6232_v14  ;;  %v573_v52 = vld [vmem:[%s7580_s26 + $0x18] sm:$0xff]  ;;  %v572_v54 = vld [vmem:[%s7580_s26 + $0x10] sm:$0xff]  ;;  %v8116_v57 = vld [vmem:[%s7586_s24 + $0x5a0] sm:$0xff]  ;;  %v954_v60 = vmul.f32 0.70710677, %v570_v53 }
 0x114   : > { %v8119_v58 = vld [vmem:[%s7586_s24 + $0x5d0] sm:$0xff]  ;;  %v957_v59 = vmul.f32 0.70710677, %v573_v52  ;;  %v8126_v63 = vld [vmem:[%s7586_s24 + $0xba0] sm:$0xff]  ;;  %6880 = verf.f32 %v955_v51  ;;  %v956_v1 = vmul.f32 0.70710677, %v572_v54 }
 0x115   : > { %6171 = vmatpush1.bf16.msra.mxu1 %v6170_v25  ;;  %v8129_v0 = vld [vmem:[%s7586_s24 + $0xbd0] sm:$0xff]  ;;  %v8132_v2 = vld [vmem:[%s7586_s24 + $0x18] sm:$0xff]  ;;  %v8141_v6 = vld [vmem:[%s7586_s24 + $0x48] sm:$0xff]  ;;  %v8153_v11 = vmul.f32 0.5, %v573_v52  ;;  %v8179_v25 = vmul.f32 0.5, %v572_v54 }
 0x116   : > { %6235 = vmatpush1.bf16.msra.mxu0 %v6234_v30  ;;  %6173 = vmatprep.subr.bf16.mxu1 %v6172_v31  ;;  %6882 = verf.f32 %v957_v59  ;;  %v8144_v7 = vld [vmem:[%s7586_s24 + $0x28] sm:$0xff]  ;;  %v8147_v8 = vld [vmem:[%s7586_s24 + $0x58] sm:$0xff]  ;;  %v8156_v12 = vld [vmem:[%s7586_s24 + $0x10] sm:$0xff]  ;;  %v8164_v30 = vmul.f32 0.5, %v570_v53 }
 0x117   : > { %6237 = vmatprep.subr.bf16.mxu0 %v6236_v32  ;;  %6884 = verf.f32 %v954_v60  ;;  %v8159_v13 = vld [vmem:[%s7586_s24 + $0x40] sm:$0xff]  ;;  %v575_v14 = vld [vmem:[%s7580_s26 + $0x28] sm:$0xff]  ;;  %v577_v32 = vld [vmem:[%s7580_s26 + $0x38] sm:$0xff] }
 0x118   : > { %6886 = verf.f32 %v956_v1  ;;  %v959_v31 = vmul.f32 0.70710677, %v575_v14  ;;  %v574_v45 = vld [vmem:[%s7580_s26 + $0x20] sm:$0xff]  ;;  %v576_v51 = vld [vmem:[%s7580_s26 + $0x30] sm:$0xff]  ;;  %v961_v60 = vmul.f32 0.70710677, %v577_v32  ;;  %v6258_v4 = vpack.c.bf16 %v8159_v13, %v8156_v12 }
 0x119   : > { %6175 = vmatpush1.bf16.msra.mxu1 %v6174_v39  ;;  %v8174_v59 = vld [vmem:[%s7586_s24 + $0x20] sm:$0xff]  ;;  %v8177_v53 = vld [vmem:[%s7586_s24 + $0x50] sm:$0xff]  ;;  %v958_v1 = vmul.f32 0.70710677, %v574_v45  ;;  %v579_v52 = vld [vmem:[%s7580_s26 + $0x48] sm:$0xff]  ;;  %v8206_v15 = vmul.f32 0.5, %v577_v32 }
 0x11a   : > { %6239 = vmatpush1.bf16.msra.mxu0 %v6238_v40  ;;  %6177 = vmatprep.subr.bf16.mxu1 %v6176_v41  ;;  %6888 = verf.f32 %v959_v31  ;;  %v960_v41 = vmul.f32 0.70710677, %v576_v51  ;;  %v581_v9 = vld [vmem:[%s7580_s26 + $0x58] sm:$0xff]  ;;  %v578_v39 = vld [vmem:[%s7580_s26 + $0x40] sm:$0xff]  ;;  %v580_v54 = vld [vmem:[%s7580_s26 + $0x50] sm:$0xff]  ;;  %v8214_v31 = vmul.f32 0.5, %v576_v51 }
 0x11b   : > { %6241 = vmatprep.subr.bf16.mxu0 %v6240_v42  ;;  %6890 = verf.f32 %v961_v60  ;;  %v963_v42 = vmul.f32 0.70710677, %v579_v52  ;;  %v583_v3 = vld [vmem:[%s7580_s26 + $0x68] sm:$0xff]  ;;  %v965_v40 = vmul.f32 0.70710677, %v581_v9  ;;  %v585_v5 = vld [vmem:[%s7580_s26 + $0x78] sm:$0xff] }
 0x11c   : > { %6892 = verf.f32 %v958_v1  ;;  %v962_v62 = vmul.f32 0.70710677, %v578_v39  ;;  %v8204_v60 = vmul.f32 0.5, %v575_v14  ;;  %v964_v16 = vmul.f32 0.70710677, %v580_v54  ;;  %v584_v18 = vld [vmem:[%s7580_s26 + $0x70] sm:$0xff] }
 0x11d   : > { %6179 = vmatpush1.bf16.msra.mxu1 %v6178_v46  ;;  %6894 = verf.f32 %v960_v41  ;;  %v582_v46 = vld [vmem:[%s7580_s26 + $0x60] sm:$0xff]  ;;  %v8212_v1 = vmul.f32 0.5, %v574_v45  ;;  %v967_v17 = vmul.f32 0.70710677, %v583_v3  ;;  %v8217_v20 = vmul.f32 0.5, %v579_v52  ;;  %v8251_v51 = vld [vmem:[%s7586_s24 + $0xa8] sm:$0xff] }
 0x11e   : > { %6243 = vmatpush1.bf16.msra.mxu0 %v6242_v47  ;;  %6181 = vmatprep.subr.bf16.mxu1 %v6180_v48  ;;  %6896 = verf.f32 %v963_v42  ;;  %v6881_v19 = vpop.eup %6880  ;;  %v8219_v47 = vmul.f32 0.5, %v581_v9  ;;  %v969_v48 = vmul.f32 0.70710677, %v585_v5  ;;  %v8224_v22 = vmul.f32 0.5, %v578_v39  ;;  %v8254_v52 = vld [vmem:[%s7580_s26 + $0x98] sm:$0xff] }
 0x11f   : > { %6245 = vmatprep.subr.bf16.mxu0 %v6244_v55  ;;  %6898 = verf.f32 %v965_v40  ;;  %v1339_v21 = vadd.f32 1.0, %v6881_v19  ;;  %v966_v55 = vmul.f32 0.70710677, %v582_v46  ;;  %v11210_v9 = vpack.c.bf16 %v8055_v29, %v8052_v28 }
 0x120   : > { %v6883_v14 = vpop.eup %6882  ;;  %6900 = verf.f32 %v962_v62  ;;  %v8232_v23 = vmul.f32 0.5, %v580_v54  ;;  %v968_v24 = vmul.f32 0.70710677, %v584_v18  ;;  %v8243_v28 = vmul.f32 0.5, %v583_v3  ;;  %v8262_v3 = vld [vmem:[%s7586_s24 + $0x88] sm:$0xff]  ;;  %v8277_v54 = vld [vmem:[%s7586_s24 + $0x70] sm:$0xff] }
 0x121   : > { %6183 = vmatpush1.bf16.msra.mxu1 %v6182_v56  ;;  %v6885_v32 = vpop.eup %6884  ;;  %v1341_v45 = vadd.f32 1.0, %v6883_v14  ;;  %6902 = verf.f32 %v964_v16  ;;  %v8235_v56 = vld [vmem:[%s7580_s26 + $0x88] sm:$0xff]  ;;  %v8241_v27 = vmul.f32 %v1339_v21, %v8151_v10  ;;  %v8245_v29 = vmul.f32 0.5, %v585_v5  ;;  %v8265_v10 = vld [vmem:[%s7586_s24 + $0xb8] sm:$0xff]  ;;  %v8268_v5 = vld [vmem:[%s7580_s26 + $0x80] sm:$0xff] }
 0x122   : > { %6247 = vmatpush1.bf16.msra.mxu0 %v6246_v61  ;;  %6185 = vmatprep.subr.bf16.mxu1 %v11210_v9  ;;  %v6887_v62 = vpop.eup %6886  ;;  %6904 = verf.f32 %v967_v17  ;;  %v8248_v61 = vld [vmem:[%s7586_s24 + $0x78] sm:$0xff]  ;;  %v1338_v33 = vadd.f32 1.0, %v6885_v32  ;;  %v8259_v34 = vmul.f32 0.5, %v582_v46  ;;  %v11213_v41 = vpack.c.bf16 %v8073_v36, %v8070_v35  ;;  %v8280_v16 = vld [vmem:[%s7586_s24 + $0xa0] sm:$0xff]  ;;  %v8293_v14 = vld [vmem:[%s7580_s26 + $0x90] sm:$0xff] }
 0x123   : > { %6249 = vmatprep.subr.bf16.mxu0 %v11211_v26  ;;  %v8257_v39 = vmul.f32 %v1341_v45, %v8153_v11  ;;  %6906 = verf.f32 %v969_v48  ;;  %2458 = vmatprep.mubr.f32.mxu1 %v8241_v27  ;;  %v1340_v11 = vadd.f32 1.0, %v6887_v62  ;;  %v8274_v42 = vmul.f32 0.5, %v584_v18  ;;  %v8309_v9 = vld [vmem:[%s7580_s26 + $0xa8] sm:$0xff] }
 0x124   : > { %v6889_v40 = vpop.eup %6888  ;;  %6908 = verf.f32 %v966_v55  ;;  %v971_v46 = vmul.f32 0.70710677, %v8235_v56  ;;  %v11214_v35 = vpack.c.bf16 %v8079_v38, %v8076_v37  ;;  %v11215_v36 = vpack.c.bf16 %v8093_v44, %v8090_v43  ;;  %v8302_v43 = vld [vmem:[%s7586_s24 + $0x80] sm:$0xff]  ;;  %v8305_v44 = vld [vmem:[%s7586_s24 + $0xb0] sm:$0xff] }
 0x125   : > { %11212 = vst [vmem:[#allocation12_spill] sm:$0xff] %v8257_v39  ;;  %6187 = vmatpush1.bf16.msra.mxu1 %v11213_v41  ;;  %v6891_v17 = vpop.eup %6890  ;;  %v1343_v18 = vadd.f32 1.0, %v6889_v40  ;;  %6910 = verf.f32 %v968_v24  ;;  %v6260_v19 = vpack.c.bf16 %v8251_v51, %v8248_v61  ;;  %v973_v48 = vmul.f32 0.70710677, %v8254_v52  ;;  %2811 = vmatprep.mubr.f32.mxu0 %v8257_v39  ;;  %v2086_v39 = vld [vmem:[%s7586_s24 + $0x260] sm:$0xff] }
 0x126   : > { %6251 = vmatpush1.bf16.msra.mxu0 %v11214_v35  ;;  %6189 = vmatprep.subr.bf16.mxu1 %v11215_v36  ;;  %v6893_v21 = vpop.eup %6892  ;;  %v11216_v55 = vpack.c.bf16 %v8106_v50, %v8103_v49  ;;  %v1345_v37 = vadd.f32 1.0, %v6891_v17  ;;  %v6388_v38 = vpack.c.bf16 %v8265_v10, %v8262_v3  ;;  %6912 = verf.f32 %v971_v46  ;;  %v8339_v36 = vld [vmem:[%s7580_s26 + $0xa0] sm:$0xff] }
 0x127   : > { %v970_v32 = vmul.f32 0.70710677, %v8268_v5  ;;  %v6895_v45 = vpop.eup %6894  ;;  %v8312_v49 = vmul.f32 %v1338_v33, %v8164_v30  ;;  %v1342_v50 = vadd.f32 1.0, %v6893_v21  ;;  %v6262_v24 = vpack.c.bf16 %v8280_v16, %v8277_v54  ;;  %v8324_v30 = vld [vmem:[%s7580_s26 + $0xb8] sm:$0xff] }
 0x128   : > { %6253 = vmatprep.subr.bf16.mxu0 %v11216_v55  ;;  %6914 = verf.f32 %v973_v48  ;;  %v6897_v62 = vpop.eup %6896  ;;  %v11217_v26 = vpack.c.bf16 %v8119_v58, %v8116_v57  ;;  %v8320_v40 = vmul.f32 %v1340_v11, %v8179_v25  ;;  %v1344_v41 = vadd.f32 1.0, %v6895_v45 }
 0x129   : > { %6916 = verf.f32 %v970_v32  ;;  %v972_v46 = vmul.f32 0.70710677, %v8293_v14  ;;  %v6899_v33 = vpop.eup %6898  ;;  %v11219_v17 = vpack.c.bf16 %v8129_v0, %v8126_v63  ;;  %v11220_v35 = vpack.c.bf16 %v8141_v6, %v8132_v2  ;;  %v8370_v32 = vld [vmem:[%s7580_s26 + $0xc8] sm:$0xff] }
 0x12a   : > { %6191 = vmatpush1.bf16.msra.mxu1 %v11217_v26  ;;  %11218 = vst [vmem:[#allocation13_spill] sm:$0xff] %v8320_v40  ;;  %v8333_v57 = vmul.f32 %v1343_v18, %v8204_v60  ;;  %v1347_v58 = vadd.f32 1.0, %v6897_v62  ;;  %v6390_v25 = vpack.c.bf16 %v8305_v44, %v8302_v43  ;;  %v975_v11 = vmul.f32 0.70710677, %v8309_v9  ;;  %v6901_v48 = vpop.eup %6900  ;;  %v2038_v44 = vld [vmem:[%s7586_s24 + $0xe0] sm:$0xff] }
 0x12b   : > { %6255 = vmatpush1.bf16.msra.mxu0 %v11219_v17  ;;  %6257 = vmatprep.subr.bf16.mxu1 %v11220_v35  ;;  %v11221_v63 = vpack.c.bf16 %v8147_v8, %v8144_v7  ;;  %v8345_v0 = vmul.f32 %v1345_v37, %v8206_v15  ;;  %v1349_v2 = vadd.f32 1.0, %v6899_v33  ;;  %v8348_v6 = vmul.f32 0.5, %v8235_v56  ;;  %v6903_v60 = vpop.eup %6902  ;;  %v8356_v8 = vld [vmem:[%s7580_s26 + $0xb0] sm:$0xff]  ;;  %v2039_v17 = vld [vmem:[%s7586_s24 + $0xe8] sm:$0xff]  ;;  %v2045_v35 = vld [vmem:[%s7586_s24 + $0x118] sm:$0xff] }
 0x12c   : > { %6918 = verf.f32 %v972_v46  ;;  %v8352_v18 = vmul.f32 %v1342_v50, %v8212_v1  ;;  %v1346_v21 = vadd.f32 1.0, %v6901_v48  ;;  %v977_v7 = vmul.f32 0.70710677, %v8324_v30  ;;  %v6905_v15 = vpop.eup %6904 }
 0x12d   : > { %6385 = vmatprep.subr.bf16.mxu0 %v11221_v63  ;;  %11222 = vst [vmem:[#allocation14_spill] sm:$0xff] %v8345_v0  ;;  %2459 = vmatmul.mubr.f32.vlgmr.msra.gmra.mrb[0].mxu1 %v8312_v49  ;;  %6920 = verf.f32 %v975_v11  ;;  %v8363_v56 = vmul.f32 %v1344_v41, %v8214_v31  ;;  %v8366_v55 = vmul.f32 %v1347_v58, %v8217_v20  ;;  %v1348_v1 = vadd.f32 1.0, %v6903_v60  ;;  %v6907_v45 = vpop.eup %6906  ;;  %v2043_v41 = vld [vmem:[%s7586_s24 + $0x108] sm:$0xff]  ;;  %v2036_v58 = vld [vmem:[%s7586_s24 + $0xd0] sm:$0xff] }
 0x12e   : > { %2812 = vmatmul.mubr.f32.vlgmr.msra.gmra.mrb[0].mxu0 %v8320_v40  ;;  %6259 = vmatpush1.bf16.msra.mxu1 %v6258_v4  ;;  %v974_v37 = vmul.f32 0.70710677, %v8339_v36  ;;  %v11224_v50 = vpack.c.bf16 %v8177_v53, %v8174_v59  ;;  %v8377_v4 = vmul.f32 %v1349_v2, %v8219_v47  ;;  %v1351_v12 = vadd.f32 1.0, %v6905_v15  ;;  %v6909_v31 = vpop.eup %6908  ;;  %v8391_v47 = vld [vmem:[%s7580_s26 + $0xd8] sm:$0xff] }
 0x12f   : > { %11223 = vst [vmem:[#allocation15_spill] sm:$0xff] %v8363_v56  ;;  %2464 = vmatprep.mubr.f32.mxu1 %v8333_v57  ;;  %v8380_v13 = vmul.f32 0.5, %v8254_v52  ;;  %6922 = verf.f32 %v977_v7  ;;  %2817 = vmatprep.mubr.f32.mxu0 %v8345_v0  ;;  %v1353_v20 = vadd.f32 1.0, %v6907_v45  ;;  %v8387_v59 = vmul.f32 0.5, %v8268_v5  ;;  %v6911_v52 = vpop.eup %6910  ;;  %v8405_v5 = vld [vmem:[%s7580_s26 + $0xc0] sm:$0xff] }
 0x130   : > { %6387 = vmatpush1.bf16.msra.mxu0 %v11224_v50  ;;  %11225 = vst [vmem:[#allocation16_spill] sm:$0xff] %v8377_v4  ;;  %6261 = vmatprep.subr.bf16.mxu1 %v6260_v19  ;;  %6924 = verf.f32 %v974_v37  ;;  %v976_v53 = vmul.f32 0.70710677, %v8356_v8  ;;  %v8395_v62 = vmul.f32 %v1346_v21, %v8224_v22  ;;  %v1350_v26 = vadd.f32 1.0, %v6909_v31  ;;  %v6913_v19 = vpop.eup %6912  ;;  %v8455_v21 = vld [vmem:[%s7580_s26 + $0xf8] sm:$0xff] }
 0x131   : > { %2465 = vmatmul.mubr.f32.gmra.mrb[2].mxu1 %v8352_v18  ;;  %6389 = vmatprep.subr.bf16.mxu0 %v6388_v38  ;;  %v8401_v61 = vmul.f32 0.5, %v8293_v14  ;;  %v979_v51 = vmul.f32 0.70710677, %v8370_v32  ;;  %v8410_v22 = vmul.f32 %v1348_v1, %v8232_v23  ;;  %v8413_v3 = vmul.f32 %v1351_v12, %v8243_v28  ;;  %v8416_v14 = vld [vmem:[%s7580_s26 + $0xd0] sm:$0xff]  ;;  %v2037_v38 = vld [vmem:[%s7586_s24 + $0xd8] sm:$0xff] }
 0x132   : > { %2818 = vmatmul.mubr.f32.gmra.mrb[2].mxu0 %v8363_v56  ;;  %2470 = vmatprep.mubr.f32.mxu1 %v8366_v55  ;;  %v1352_v10 = vadd.f32 1.0, %v6911_v52  ;;  %6926 = verf.f32 %v976_v53  ;;  %v6915_v46 = vpop.eup %6914  ;;  %v8422_v33 = vmul.f32 %v1353_v20, %v8245_v29  ;;  %v1355_v23 = vadd.f32 1.0, %v6913_v19  ;;  %v8466_v20 = vld [vmem:[%s7580_s26 + $0xf0] sm:$0xff]  ;;  %v8475_v19 = vld [vmem:[%s7580_s26 + $0x108] sm:$0xff]  ;;  %v8767_v56 = vld [vmem:[%s7580_s26 + $0x218] sm:$0xff] }
 0x133   : > { %11226 = vst [vmem:[#allocation17_spill] sm:$0xff] %v8410_v22  ;;  %2823 = vmatprep.mubr.f32.mxu0 %v8377_v4  ;;  %6263 = vmatpush1.bf16.msra.mxu1 %v6262_v24  ;;  %6928 = verf.f32 %v979_v51  ;;  %v981_v28 = vmul.f32 0.70710677, %v8391_v47  ;;  %v6917_v11 = vpop.eup %6916  ;;  %v1357_v29 = vadd.f32 1.0, %v6915_v46  ;;  %v783_v48 = vmul.f32 0.5, %v8309_v9  ;;  %v2042_v24 = vld [vmem:[%s7586_s24 + $0x100] sm:$0xff] }
 0x134   : > { %11227 = vst [vmem:[#allocation18_spill] sm:$0xff] %v8422_v33  ;;  %6391 = vmatpush1.bf16.msra.mxu0 %v6390_v25  ;;  %v785_v54 = vmul.f32 0.5, %v8324_v30  ;;  %v978_v16 = vmul.f32 0.70710677, %v8405_v5  ;;  %v8440_v63 = vmul.f32 %v1350_v26, %v8259_v34  ;;  %v8443_v2 = vmul.f32 %v1352_v10, %v8274_v42  ;;  %v2044_v25 = vld [vmem:[%s7586_s24 + $0x110] sm:$0xff]  ;;  %v599_v42 = vld [vmem:[%s7580_s26 + $0xe8] sm:$0xff] }
 0x135   : > { %2471 = vmatmul.mubr.f32.gmra.mrb[4].mxu1 %v8395_v62  ;;  %v1354_v43 = vadd.f32 1.0, %v6917_v11  ;;  %6930 = verf.f32 %v981_v28  ;;  %v8450_v30 = vmul.f32 %v1355_v23, %v8348_v6  ;;  %v980_v34 = vmul.f32 0.70710677, %v8416_v14  ;;  %v8462_v6 = vld [vmem:[%s7580_s26 + $0xe0] sm:$0xff]  ;;  %v8489_v28 = vld [vmem:[%s7580_s26 + $0x118] sm:$0xff]  ;;  %v8763_v4 = vld [vmem:[%s7580_s26 + $0x208] sm:$0xff] }
 0x136   : > { %11228 = vst [vmem:[#allocation19_spill] sm:$0xff] %v8443_v2  ;;  %v6919_v9 = vpop.eup %6918  ;;  %2824 = vmatmul.mubr.f32.gmra.mrb[4].mxu0 %v8410_v22  ;;  %2476 = vmatprep.mubr.f32.mxu1 %v8413_v3  ;;  %6932 = verf.f32 %v978_v16  ;;  %v6264_v60 = vpack.c.bf16 %v2043_v41, %v2037_v38  ;;  %v8459_v15 = vmul.f32 %v1357_v29, %v8380_v13  ;;  %v782_v12 = vmul.f32 0.5, %v8339_v36  ;;  %v8496_v11 = vld [vmem:[%s7580_s26 + $0x100] sm:$0xff] }
 0x137   : > { %v6921_v7 = vpop.eup %6920  ;;  %2829 = vmatprep.mubr.f32.mxu0 %v8422_v33  ;;  %v1356_v1 = vadd.f32 1.0, %v6919_v9  ;;  %v6392_v37 = vpack.c.bf16 %v2045_v35, %v2039_v17  ;;  %v6266_v45 = vpack.c.bf16 %v2042_v24, %v2036_v58  ;;  %6934 = verf.f32 %v980_v34 }
 0x138   : > { %11229 = vst [vmem:[#allocation20_spill] sm:$0xff] %v8459_v15  ;;  %v1359_v50 = vadd.f32 1.0, %v6921_v7  ;;  %6265 = vmatprep.subr.bf16.mxu1 %v6264_v60  ;;  %v6394_v31 = vpack.c.bf16 %v2044_v25, %v2038_v44  ;;  %v8470_v13 = vmul.f32 %v1354_v43, %v8387_v59  ;;  %v784_v52 = vmul.f32 0.5, %v8356_v8  ;;  %v8510_v44 = vld [vmem:[%s7580_s26 + $0x128] sm:$0xff] }
 0x139   : > { %v6923_v53 = vpop.eup %6922  ;;  %2477 = vmatmul.mubr.f32.gmra.mrb[6].mxu1 %v8440_v63  ;;  %6393 = vmatprep.subr.bf16.mxu0 %v6392_v37  ;;  %v983_v26 = vmul.f32 0.70710677, %v599_v42  ;;  %v985_v51 = vmul.f32 0.70710677, %v8455_v21  ;;  %v8480_v10 = vmul.f32 %v1356_v1, %v8401_v61  ;;  %v982_v8 = vmul.f32 0.70710677, %v8462_v6 }
 0x13a   : > { %v6925_v36 = vpop.eup %6924  ;;  %2830 = vmatmul.mubr.f32.gmra.mrb[6].mxu0 %v8443_v2  ;;  %2482 = vmatprep.mubr.f32.mxu1 %v8450_v30  ;;  %v8482_v38 = vmul.f32 %v1359_v50, %v783_v48  ;;  %v1361_v59 = vadd.f32 1.0, %v6923_v53  ;;  %v787_v46 = vmul.f32 0.5, %v8370_v32  ;;  %v984_v23 = vmul.f32 0.70710677, %v8466_v20  ;;  %v8526_v50 = vld [vmem:[%s7580_s26 + $0x130] sm:$0xff]  ;;  %v2078_v2 = vld [vmem:[%s7586_s24 + $0x220] sm:$0xff] }
 0x13b   : > { %11230 = vst [vmem:[#allocation21_spill] sm:$0xff] %v8480_v10  ;;  %2835 = vmatprep.mubr.f32.mxu0 %v8459_v15  ;;  %v1358_v41 = vadd.f32 1.0, %v6925_v36  ;;  %6267 = vmatpush1.bf16.msra.mxu1 %v6266_v45  ;;  %6936 = verf.f32 %v983_v26  ;;  %v789_v35 = vmul.f32 0.5, %v8391_v47  ;;  %v987_v58 = vmul.f32 0.70710677, %v8475_v19  ;;  %v8523_v45 = vld [vmem:[%s7580_s26 + $0x120] sm:$0xff] }
 0x13c   : > { %v6927_v61 = vpop.eup %6926  ;;  %v8491_v17 = vmul.f32 %v1361_v59, %v785_v54  ;;  %6395 = vmatpush1.bf16.msra.mxu0 %v6394_v31  ;;  %6938 = verf.f32 %v985_v51  ;;  %v786_v16 = vmul.f32 0.5, %v8405_v5  ;;  %v8503_v54 = vld [vmem:[%s7580_s26 + $0x110] sm:$0xff]  ;;  %v788_v24 = vmul.f32 0.5, %v8416_v14  ;;  %v8517_v14 = vld [vmem:[%s7580_s26 + $0x138] sm:$0xff]  ;;  %v2051_v26 = vld [vmem:[%s7586_s24 + $0x148] sm:$0xff] }
 0x13d   : > { %v6929_v32 = vpop.eup %6928  ;;  %2483 = vmatmul.mubr.f32.gmra.mrb[8].mxu1 %v8470_v13  ;;  %v8499_v29 = vmul.f32 %v1358_v41, %v782_v12  ;;  %v1360_v48 = vadd.f32 1.0, %v6927_v61  ;;  %6940 = verf.f32 %v982_v8  ;;  %v989_v43 = vmul.f32 0.70710677, %v8489_v28  ;;  %v2057_v8 = vld [vmem:[%s7586_s24 + $0x178] sm:$0xff]  ;;  %v2048_v41 = vld [vmem:[%s7586_s24 + $0x130] sm:$0xff] }
 0x13e   : > { %11231 = vst [vmem:[#allocation22_spill] sm:$0xff] %v8491_v17  ;;  %2836 = vmatmul.mubr.f32.gmra.mrb[8].mxu0 %v8480_v10  ;;  %2488 = vmatprep.mubr.f32.mxu1 %v8482_v38  ;;  %v1363_v47 = vadd.f32 1.0, %v6929_v32  ;;  %6942 = verf.f32 %v984_v23  ;;  %v791_v9 = vmul.f32 0.5, %v599_v42  ;;  %v986_v34 = vmul.f32 0.70710677, %v8496_v11  ;;  %v2049_v42 = vld [vmem:[%s7586_s24 + $0x138] sm:$0xff] }
 0x13f   : > { %v6931_v5 = vpop.eup %6930  ;;  %2841 = vmatprep.mubr.f32.mxu0 %v8491_v17  ;;  %v8513_v25 = vmul.f32 %v1360_v48, %v784_v52  ;;  %6944 = verf.f32 %v987_v58  ;;  %v988_v37 = vmul.f32 0.70710677, %v8503_v54  ;;  %v793_v31 = vmul.f32 0.5, %v8455_v21  ;;  %v2055_v52 = vld [vmem:[%s7586_s24 + $0x168] sm:$0xff]  ;;  %v2050_v32 = vld [vmem:[%s7586_s24 + $0x140] sm:$0xff]  ;;  %v2056_v48 = vld [vmem:[%s7586_s24 + $0x170] sm:$0xff] }
 0x140   : > { %v6933_v60 = vpop.eup %6932  ;;  %v8519_v7 = vmul.f32 %v1363_v47, %v787_v46  ;;  %v1365_v1 = vadd.f32 1.0, %v6931_v5  ;;  %6946 = verf.f32 %v989_v43  ;;  %v991_v53 = vmul.f32 0.70710677, %v8510_v44  ;;  %v2054_v46 = vld [vmem:[%s7586_s24 + $0x160] sm:$0xff]  ;;  %v8553_v43 = vld [vmem:[%s7580_s26 + $0x148] sm:$0xff] }
 0x141   : > { %11232 = vst [vmem:[#allocation23_spill] sm:$0xff] %v8513_v25  ;;  %2489 = vmatmul.mubr.f32.gmra.mrb[10].mxu1 %v8499_v29  ;;  %v1362_v12 = vadd.f32 1.0, %v6933_v60  ;;  %6948 = verf.f32 %v986_v34  ;;  %v6935_v51 = vpop.eup %6934  ;;  %v790_v59 = vmul.f32 0.5, %v8462_v6  ;;  %v993_v21 = vmul.f32 0.70710677, %v8517_v14  ;;  %v8660_v10 = vld [vmem:[%s7580_s26 + $0x1a8] sm:$0xff] }
 0x142   : > { %2842 = vmatmul.mubr.f32.gmra.mrb[10].mxu0 %v8513_v25  ;;  %2494 = vmatprep.mubr.f32.mxu1 %v8519_v7  ;;  %v8536_v36 = vmul.f32 %v1365_v1, %v789_v35  ;;  %6950 = verf.f32 %v988_v37  ;;  %v1364_v61 = vadd.f32 1.0, %v6935_v51  ;;  %v792_v58 = vmul.f32 0.5, %v8466_v20  ;;  %v8559_v1 = vld [vmem:[%s7580_s26 + $0x158] sm:$0xff]  ;;  %v8563_v51 = vld [vmem:[%s7580_s26 + $0x140] sm:$0xff] }
 0x143   : > { %v8543_v23 = vmul.f32 %v1362_v12, %v786_v16  ;;  %6952 = verf.f32 %v991_v53  ;;  %v795_v6 = vmul.f32 0.5, %v8475_v19  ;;  %v990_v35 = vmul.f32 0.70710677, %v8523_v45 }
 0x144   : > { %11233 = vst [vmem:[#allocation24_spill] sm:$0xff] %v8536_v36  ;;  %2847 = vmatprep.mubr.f32.mxu0 %v8536_v36  ;;  %6954 = verf.f32 %v993_v21  ;;  %v992_v47 = vmul.f32 0.70710677, %v8526_v50  ;;  %v8556_v20 = vmul.f32 %v1364_v61, %v788_v24  ;;  %v6268_v5 = vpack.c.bf16 %v2055_v52, %v2049_v42 }
 0x145   : > { %v6937_v16 = vpop.eup %6936  ;;  %2495 = vmatmul.mubr.f32.gmra.mrb[12].mxu1 %v8543_v23  ;;  %v6396_v34 = vpack.c.bf16 %v2057_v8, %v2051_v26  ;;  %v6270_v60 = vpack.c.bf16 %v2054_v46, %v2048_v41  ;;  %v797_v12 = vmul.f32 0.5, %v8489_v28  ;;  %6956 = verf.f32 %v990_v35  ;;  %v8573_v46 = vld [vmem:[%s7580_s26 + $0x150] sm:$0xff] }
 0x146   : > { %11234 = vst [vmem:[#allocation25_spill] sm:$0xff] %v8556_v20  ;;  %v6939_v37 = vpop.eup %6938  ;;  %v1367_v19 = vadd.f32 1.0, %v6937_v16  ;;  %v6398_v53 = vpack.c.bf16 %v2056_v48, %v2050_v32  ;;  %2848 = vmatmul.mubr.f32.gmra.mrb[12].mxu0 %v8556_v20  ;;  %v794_v24 = vmul.f32 0.5, %v8496_v11  ;;  %6958 = verf.f32 %v992_v47  ;;  %6269 = vmatprep.subr.bf16.mxu1 %v6268_v5  ;;  %v2066_v20 = vld [vmem:[%s7586_s24 + $0x1c0] sm:$0xff] }
 0x147   : > { %v6941_v21 = vpop.eup %6940  ;;  %v1369_v36 = vadd.f32 1.0, %v6939_v37  ;;  %v995_v42 = vmul.f32 0.70710677, %v8553_v43  ;;  %v796_v8 = vmul.f32 0.5, %v8503_v54  ;;  %6397 = vmatprep.subr.bf16.mxu0 %v6396_v34  ;;  %6271 = vmatpush1.bf16.msra.mxu1 %v6270_v60  ;;  %v997_v41 = vmul.f32 0.70710677, %v8559_v1 }
 0x148   : > { %v6943_v52 = vpop.eup %6942  ;;  %v8568_v26 = vmul.f32 %v1367_v19, %v791_v9  ;;  %v1366_v28 = vadd.f32 1.0, %v6941_v21  ;;  %6399 = vmatpush1.bf16.msra.mxu0 %v6398_v53  ;;  %v994_v48 = vmul.f32 0.70710677, %v8563_v51  ;;  %v8579_v9 = vld [vmem:[%s7580_s26 + $0x168] sm:$0xff]  ;;  %v799_v16 = vmul.f32 0.5, %v8510_v44  ;;  %v8590_v60 = vld [vmem:[%s7580_s26 + $0x178] sm:$0xff] }
 0x149   : > { %v6945_v61 = vpop.eup %6944  ;;  %v8575_v32 = vmul.f32 %v1369_v36, %v793_v31  ;;  %v1368_v11 = vadd.f32 1.0, %v6943_v52  ;;  %6960 = verf.f32 %v995_v42  ;;  %v996_v34 = vmul.f32 0.70710677, %v8573_v46  ;;  %v8598_v21 = vld [vmem:[%s7580_s26 + $0x160] sm:$0xff] }
 0x14a   : > { %11235 = vst [vmem:[#allocation26_spill] sm:$0xff] %v8568_v26  ;;  %v6947_v35 = vpop.eup %6946  ;;  %2500 = vmatprep.mubr.f32.mxu1 %v8568_v26  ;;  %v8582_v54 = vmul.f32 %v1366_v28, %v790_v59  ;;  %v1371_v47 = vadd.f32 1.0, %v6945_v61  ;;  %6962 = verf.f32 %v997_v41  ;;  %v801_v44 = vmul.f32 0.5, %v8517_v14  ;;  %v8605_v41 = vld [vmem:[%s7580_s26 + $0x170] sm:$0xff] }
 0x14b   : > { %11236 = vst [vmem:[#allocation27_spill] sm:$0xff] %v8575_v32  ;;  %v6949_v31 = vpop.eup %6948  ;;  %2853 = vmatprep.mubr.f32.mxu0 %v8575_v32  ;;  %v8586_v36 = vmul.f32 %v1368_v11, %v792_v58  ;;  %v1373_v5 = vadd.f32 1.0, %v6947_v35  ;;  %6964 = verf.f32 %v994_v48  ;;  %v999_v53 = vmul.f32 0.70710677, %v8579_v9 }
 0x14c   : > { %11237 = vst [vmem:[#allocation28_spill] sm:$0xff] %v8582_v54  ;;  %v6951_v37 = vpop.eup %6950  ;;  %2501 = vmatmul.mubr.f32.gmra.mrb[14].mxu1 %v8582_v54  ;;  %v8593_v59 = vmul.f32 %v1371_v47, %v795_v6  ;;  %v1370_v19 = vadd.f32 1.0, %v6949_v31  ;;  %v798_v28 = vmul.f32 0.5, %v8523_v45  ;;  %6966 = verf.f32 %v996_v34  ;;  %v8617_v47 = vld [vmem:[%s7580_s26 + $0x188] sm:$0xff]  ;;  %v8625_v34 = vld [vmem:[%s7580_s26 + $0x198] sm:$0xff] }
 0x14d   : > { %11238 = vst [vmem:[#allocation29_spill] sm:$0xff] %v8586_v36  ;;  %v6953_v58 = vpop.eup %6952  ;;  %2854 = vmatmul.mubr.f32.gmra.mrb[14].mxu0 %v8586_v36  ;;  %v8601_v42 = vmul.f32 %v1373_v5, %v797_v12  ;;  %v1372_v52 = vadd.f32 1.0, %v6951_v37  ;;  %6968 = verf.f32 %v999_v53  ;;  %v1001_v11 = vmul.f32 0.70710677, %v8590_v60 }
 0x14e   : > { %11239 = vst [vmem:[#allocation30_spill] sm:$0xff] %v8593_v59  ;;  %v6955_v6 = vpop.eup %6954  ;;  %2506 = vmatprep.mubr.f32.mxu1 %v8593_v59  ;;  %v8608_v14 = vmul.f32 %v1370_v19, %v794_v24  ;;  %v1375_v61 = vadd.f32 1.0, %v6953_v58  ;;  %v800_v45 = vmul.f32 0.5, %v8526_v50  ;;  %v998_v35 = vmul.f32 0.70710677, %v8598_v21  ;;  %v8628_v50 = vld [vmem:[%s7580_s26 + $0x180] sm:$0xff] }
 0x14f   : > { %11240 = vst [vmem:[#allocation31_spill] sm:$0xff] %v8601_v42  ;;  %2859 = vmatprep.mubr.f32.mxu0 %v8601_v42  ;;  %v8612_v12 = vmul.f32 %v1372_v52, %v796_v8  ;;  %v1377_v48 = vadd.f32 1.0, %v6955_v6  ;;  %v6957_v24 = vpop.eup %6956  ;;  %v803_v5 = vmul.f32 0.5, %v8553_v43  ;;  %6970 = verf.f32 %v1001_v11  ;;  %v8635_v58 = vld [vmem:[%s7580_s26 + $0x190] sm:$0xff]  ;;  %v2061_v43 = vld [vmem:[%s7586_s24 + $0x198] sm:$0xff]  ;;  %v2067_v52 = vld [vmem:[%s7586_s24 + $0x1c8] sm:$0xff] }
 0x150   : > { %11241 = vst [vmem:[#allocation32_spill] sm:$0xff] %v8608_v14  ;;  %2507 = vmatmul.mubr.f32.gmra.mrb[16].mxu1 %v8608_v14  ;;  %v8620_v31 = vmul.f32 %v1375_v61, %v799_v16  ;;  %v1000_v8 = vmul.f32 0.70710677, %v8605_v41  ;;  %v6959_v37 = vpop.eup %6958  ;;  %v1374_v53 = vadd.f32 1.0, %v6957_v24  ;;  %v805_v16 = vmul.f32 0.5, %v8559_v1 }
 0x151   : > { %11242 = vst [vmem:[#allocation33_spill] sm:$0xff] %v8612_v12  ;;  %2860 = vmatmul.mubr.f32.gmra.mrb[16].mxu0 %v8612_v12  ;;  %v8631_v19 = vmul.f32 %v1377_v48, %v801_v44  ;;  %6972 = verf.f32 %v998_v35  ;;  %v1376_v6 = vadd.f32 1.0, %v6959_v37  ;;  %v802_v61 = vmul.f32 0.5, %v8563_v51  ;;  %v2063_v44 = vld [vmem:[%s7586_s24 + $0x1a8] sm:$0xff]  ;;  %v2069_v48 = vld [vmem:[%s7586_s24 + $0x1d8] sm:$0xff]  ;;  %v2060_v51 = vld [vmem:[%s7586_s24 + $0x190] sm:$0xff] }
 0x152   : > { %11243 = vst [vmem:[#allocation34_spill] sm:$0xff] %v8620_v31  ;;  %2512 = vmatprep.mubr.f32.mxu1 %v8620_v31  ;;  %6974 = verf.f32 %v1000_v8  ;;  %v1003_v11 = vmul.f32 0.70710677, %v8617_v47  ;;  %v8645_v35 = vmul.f32 %v1374_v53, %v798_v28  ;;  %v804_v24 = vmul.f32 0.5, %v8573_v46  ;;  %v2068_v28 = vld [vmem:[%s7586_s24 + $0x1d0] sm:$0xff]  ;;  %v2207_v31 = vld [vmem:[%s7586_s24 + $0x628] sm:$0xff] }
 0x153   : > { %11244 = vst [vmem:[#allocation35_spill] sm:$0xff] %v8631_v19  ;;  %v6961_v1 = vpop.eup %6960  ;;  %2865 = vmatprep.mubr.f32.mxu0 %v8631_v19  ;;  %v1005_v12 = vmul.f32 0.70710677, %v8625_v34  ;;  %v1002_v37 = vmul.f32 0.70710677, %v8628_v50  ;;  %v8651_v42 = vmul.f32 %v1376_v6, %v800_v45  ;;  %v807_v32 = vmul.f32 0.5, %v8579_v9 }
 0x154   : > { %11245 = vst [vmem:[#allocation36_spill] sm:$0xff] %v8645_v35  ;;  %v6963_v8 = vpop.eup %6962  ;;  %v1379_v36 = vadd.f32 1.0, %v6961_v1  ;;  %6976 = verf.f32 %v1003_v11  ;;  %v2062_v19 = vld [vmem:[%s7586_s24 + $0x1a0] sm:$0xff]  ;;  %2513 = vmatmul.mubr.f32.gmra.mrb[18].mxu1 %v8645_v35  ;;  %v1004_v25 = vmul.f32 0.70710677, %v8635_v58  ;;  %v6272_v17 = vpack.c.bf16 %v2067_v52, %v2061_v43  ;;  %v8666_v11 = vld [vmem:[%s7580_s26 + $0x1b8] sm:$0xff] }
 0x155   : > { %11246 = vst [vmem:[#allocation37_spill] sm:$0xff] %v8651_v42  ;;  %v6965_v53 = vpop.eup %6964  ;;  %v1381_v46 = vadd.f32 1.0, %v6963_v8  ;;  %6978 = verf.f32 %v1005_v12  ;;  %2866 = vmatmul.mubr.f32.gmra.mrb[18].mxu0 %v8651_v42  ;;  %v6400_v6 = vpack.c.bf16 %v2069_v48, %v2063_v44  ;;  %v6274_v12 = vpack.c.bf16 %v2066_v20, %v2060_v51  ;;  %v8671_v52 = vld [vmem:[%s7580_s26 + $0x1a0] sm:$0xff]  ;;  %v8678_v48 = vld [vmem:[%s7580_s26 + $0x1b0] sm:$0xff] }
 0x156   : > { %v8663_v45 = vmul.f32 %v1379_v36, %v803_v5  ;;  %v1378_v9 = vadd.f32 1.0, %v6965_v53  ;;  %6980 = verf.f32 %v1002_v37  ;;  %v6967_v1 = vpop.eup %6966  ;;  %6273 = vmatprep.subr.bf16.mxu1 %v6272_v17  ;;  %v6402_v43 = vpack.c.bf16 %v2068_v28, %v2062_v19 }
 0x157   : > { %v8668_v15 = vmul.f32 %v1381_v46, %v805_v16  ;;  %6982 = verf.f32 %v1004_v25  ;;  %v6969_v8 = vpop.eup %6968  ;;  %v1380_v5 = vadd.f32 1.0, %v6967_v1  ;;  %6401 = vmatprep.subr.bf16.mxu0 %v6400_v6  ;;  %v1007_v44 = vmul.f32 0.70710677, %v8660_v10  ;;  %6275 = vmatpush1.bf16.msra.mxu1 %v6274_v12  ;;  %v8685_v16 = vld [vmem:[%s7580_s26 + $0x1c8] sm:$0xff]  ;;  %v8702_v12 = vld [vmem:[%s7580_s26 + $0x1c0] sm:$0xff] }
 0x158   : > { %11247 = vst [vmem:[#allocation38_spill] sm:$0xff] %v8663_v45  ;;  %2518 = vmatprep.mubr.f32.mxu1 %v8663_v45  ;;  %v8674_v36 = vmul.f32 %v1378_v9, %v802_v61  ;;  %v1383_v25 = vadd.f32 1.0, %v6969_v8  ;;  %v809_v17 = vmul.f32 0.5, %v8590_v60  ;;  %v806_v20 = vmul.f32 0.5, %v8598_v21  ;;  %6403 = vmatpush1.bf16.msra.mxu0 %v6402_v43  ;;  %v8696_v9 = vld [vmem:[%s7580_s26 + $0x1d8] sm:$0xff] }
 0x159   : > { %11248 = vst [vmem:[#allocation39_spill] sm:$0xff] %v8668_v15  ;;  %2871 = vmatprep.mubr.f32.mxu0 %v8668_v15  ;;  %v1009_v19 = vmul.f32 0.70710677, %v8666_v11  ;;  %v6971_v61 = vpop.eup %6970  ;;  %v8688_v37 = vmul.f32 %v1380_v5, %v804_v24  ;;  %v808_v51 = vmul.f32 0.5, %v8605_v41  ;;  %6984 = verf.f32 %v1007_v44  ;;  %v8709_v5 = vld [vmem:[%s7580_s26 + $0x1d0] sm:$0xff] }
 0x15a   : > { %11249 = vst [vmem:[#allocation40_spill] sm:$0xff] %v8674_v36  ;;  %2519 = vmatmul.mubr.f32.gmra.mrb[20].mxu1 %v8674_v36  ;;  %v1006_v60 = vmul.f32 0.70710677, %v8671_v52  ;;  %v8692_v21 = vmul.f32 %v1383_v25, %v807_v32  ;;  %v1385_v53 = vadd.f32 1.0, %v6971_v61  ;;  %v1008_v46 = vmul.f32 0.70710677, %v8678_v48 }
 0x15b   : > { %11250 = vst [vmem:[#allocation41_spill] sm:$0xff] %v8688_v37  ;;  %v6973_v28 = vpop.eup %6972  ;;  %6986 = verf.f32 %v1009_v19  ;;  %2872 = vmatmul.mubr.f32.gmra.mrb[20].mxu0 %v8688_v37  ;;  %v811_v41 = vmul.f32 0.5, %v8617_v47  ;;  %v1011_v1 = vmul.f32 0.70710677, %v8685_v16  ;;  %v813_v8 = vmul.f32 0.5, %v8625_v34  ;;  %v8716_v61 = vld [vmem:[%s7580_s26 + $0x1e8] sm:$0xff] }
 0x15c   : > { %11251 = vst [vmem:[#allocation42_spill] sm:$0xff] %v8692_v21  ;;  %v6975_v6 = vpop.eup %6974  ;;  %v1382_v24 = vadd.f32 1.0, %v6973_v28  ;;  %6988 = verf.f32 %v1006_v60  ;;  %2524 = vmatprep.mubr.f32.mxu1 %v8692_v21  ;;  %v8705_v32 = vmul.f32 %v1385_v53, %v809_v17  ;;  %v810_v47 = vmul.f32 0.5, %v8628_v50 }
 0x15d   : > { %v1384_v43 = vadd.f32 1.0, %v6975_v6  ;;  %6990 = verf.f32 %v1008_v46  ;;  %v1013_v19 = vmul.f32 0.70710677, %v8696_v9  ;;  %v812_v28 = vmul.f32 0.5, %v8635_v58 }
 0x15e   : > { %11252 = vst [vmem:[#allocation43_spill] sm:$0xff] %v8705_v32  ;;  %v6977_v44 = vpop.eup %6976  ;;  %v8711_v25 = vmul.f32 %v1382_v24, %v806_v20  ;;  %6992 = verf.f32 %v1011_v1  ;;  %2877 = vmatprep.mubr.f32.mxu0 %v8705_v32  ;;  %v1010_v20 = vmul.f32 0.70710677, %v8702_v12  ;;  %v815_v46 = vmul.f32 0.5, %v8660_v10  ;;  %v8730_v24 = vld [vmem:[%s7580_s26 + $0x1e0] sm:$0xff]  ;;  %v8737_v10 = vld [vmem:[%s7580_s26 + $0x1f0] sm:$0xff] }
 0x15f   : > { %v6979_v17 = vpop.eup %6978  ;;  %v8719_v60 = vmul.f32 %v1384_v43, %v808_v51  ;;  %v1387_v34 = vadd.f32 1.0, %v6977_v44  ;;  %6994 = verf.f32 %v1013_v19  ;;  %v1012_v6 = vmul.f32 0.70710677, %v8709_v5  ;;  %v8727_v51 = vld [vmem:[%s7580_s26 + $0x1f8] sm:$0xff] }
 0x160   : > { %11253 = vst [vmem:[#allocation44_spill] sm:$0xff] %v8711_v25  ;;  %v6981_v50 = vpop.eup %6980  ;;  %2525 = vmatmul.mubr.f32.gmra.mrb[22].mxu1 %v8711_v25  ;;  %v1389_v53 = vadd.f32 1.0, %v6979_v17  ;;  %6996 = verf.f32 %v1010_v20  ;;  %v1015_v44 = vmul.f32 0.70710677, %v8716_v61  ;;  %v2073_v19 = vld [vmem:[%s7586_s24 + $0x1f8] sm:$0xff]  ;;  %v2079_v17 = vld [vmem:[%s7586_s24 + $0x228] sm:$0xff] }
 0x161   : > { %11254 = vst [vmem:[#allocation45_spill] sm:$0xff] %v8719_v60  ;;  %v6983_v58 = vpop.eup %6982  ;;  %2878 = vmatmul.mubr.f32.gmra.mrb[22].mxu0 %v8719_v60  ;;  %v8733_v1 = vmul.f32 %v1387_v34, %v811_v41  ;;  %v1386_v43 = vadd.f32 1.0, %v6981_v50  ;;  %v817_v15 = vmul.f32 0.5, %v8666_v11  ;;  %6998 = verf.f32 %v1012_v6  ;;  %v2075_v60 = vld [vmem:[%s7586_s24 + $0x208] sm:$0xff]  ;;  %v2081_v41 = vld [vmem:[%s7586_s24 + $0x238] sm:$0xff]  ;;  %v2072_v34 = vld [vmem:[%s7586_s24 + $0x1f0] sm:$0xff] }
 0x162   : > { %v8741_v32 = vmul.f32 %v1389_v53, %v813_v8  ;;  %v1388_v37 = vadd.f32 1.0, %v6983_v58  ;;  %v814_v50 = vmul.f32 0.5, %v8671_v52  ;;  %7000 = verf.f32 %v1015_v44  ;;  %v2074_v8 = vld [vmem:[%s7586_s24 + $0x200] sm:$0xff]  ;;  %v2080_v53 = vld [vmem:[%s7586_s24 + $0x230] sm:$0xff] }
 0x163   : > { %11255 = vst [vmem:[#allocation46_spill] sm:$0xff] %v8733_v1  ;;  %2530 = vmatprep.mubr.f32.mxu1 %v8733_v1  ;;  %v8748_v20 = vmul.f32 %v1386_v43, %v810_v47  ;;  %v1017_v42 = vmul.f32 0.70710677, %v8727_v51  ;;  %v6985_v58 = vpop.eup %6984  ;;  %v816_v6 = vmul.f32 0.5, %v8678_v48  ;;  %v1014_v47 = vmul.f32 0.70710677, %v8730_v24 }
 0x164   : > { %11256 = vst [vmem:[#allocation47_spill] sm:$0xff] %v8741_v32  ;;  %2883 = vmatprep.mubr.f32.mxu0 %v8741_v32  ;;  %v8756_v11 = vmul.f32 %v1388_v37, %v812_v28  ;;  %v1016_v43 = vmul.f32 0.70710677, %v8737_v10  ;;  %v1391_v44 = vadd.f32 1.0, %v6985_v58  ;;  %v6276_v33 = vpack.c.bf16 %v2079_v17, %v2073_v19  ;;  %v9813_v1 = vld [vmem:[%s7580_s26 + $0x5c8] sm:$0xff] }
 0x165   : > { %11257 = vst [vmem:[#allocation48_spill] sm:$0xff] %v8748_v20  ;;  %v6987_v52 = vpop.eup %6986  ;;  %2531 = vmatmul.mubr.f32.gmra.mrb[24].mxu1 %v8748_v20  ;;  %7002 = verf.f32 %v1017_v42  ;;  %v6404_v22 = vpack.c.bf16 %v2081_v41, %v2075_v60  ;;  %v6278_v48 = vpack.c.bf16 %v2078_v2, %v2072_v34  ;;  %v6406_v28 = vpack.c.bf16 %v2080_v53, %v2074_v8  ;;  %v8773_v60 = vld [vmem:[%s7580_s26 + $0x200] sm:$0xff]  ;;  %v8780_v34 = vld [vmem:[%s7580_s26 + $0x210] sm:$0xff] }
 0x166   : > { %11258 = vst [vmem:[#allocation49_spill] sm:$0xff] %v8756_v11  ;;  %v6989_v32 = vpop.eup %6988  ;;  %2884 = vmatmul.mubr.f32.gmra.mrb[24].mxu0 %v8756_v11  ;;  %v1393_v37 = vadd.f32 1.0, %v6987_v52  ;;  %7004 = verf.f32 %v1014_v47  ;;  %v8769_v40 = vmul.f32 %v1391_v44, %v815_v46  ;;  %v819_v42 = vmul.f32 0.5, %v8685_v16  ;;  %6277 = vmatprep.subr.bf16.mxu1 %v6276_v33  ;;  %v8800_v52 = vld [vmem:[%s7580_s26 + $0x238] sm:$0xff]  ;;  %v2090_v11 = vld [vmem:[%s7586_s24 + $0x280] sm:$0xff] }
 0x167   : > { %v6991_v0 = vpop.eup %6990  ;;  %v1390_v58 = vadd.f32 1.0, %v6989_v32  ;;  %7006 = verf.f32 %v1016_v43  ;;  %6405 = vmatprep.subr.bf16.mxu0 %v6404_v22  ;;  %v821_v41 = vmul.f32 0.5, %v8696_v9  ;;  %6279 = vmatpush1.bf16.msra.mxu1 %v6278_v48  ;;  %v1019_v46 = vmul.f32 0.70710677, %v8763_v4  ;;  %v8788_v32 = vld [vmem:[%s7580_s26 + $0x228] sm:$0xff]  ;;  %v8806_v48 = vld [vmem:[%s7580_s26 + $0x220] sm:$0xff] }
 0x168   : > { %11259 = vst [vmem:[#allocation50_spill] sm:$0xff] %v8769_v40  ;;  %v6993_v19 = vpop.eup %6992  ;;  %v8775_v17 = vmul.f32 %v1393_v37, %v817_v15  ;;  %v1392_v2 = vadd.f32 1.0, %v6991_v0  ;;  %6407 = vmatpush1.bf16.msra.mxu0 %v6406_v28  ;;  %2536 = vmatprep.mubr.f32.mxu1 %v8769_v40  ;;  %v818_v22 = vmul.f32 0.5, %v8702_v12  ;;  %v1021_v15 = vmul.f32 0.70710677, %v8767_v56 }
 0x169   : > { %v8783_v16 = vmul.f32 %v1390_v58, %v814_v50  ;;  %v1395_v33 = vadd.f32 1.0, %v6993_v19  ;;  %v6995_v0 = vpop.eup %6994  ;;  %v820_v8 = vmul.f32 0.5, %v8709_v5  ;;  %7008 = verf.f32 %v1019_v46 }
 0x16a   : > { %11260 = vst [vmem:[#allocation51_spill] sm:$0xff] %v8775_v17  ;;  %2889 = vmatprep.mubr.f32.mxu0 %v8775_v17  ;;  %v8791_v9 = vmul.f32 %v1392_v2, %v816_v6  ;;  %v1018_v50 = vmul.f32 0.70710677, %v8773_v60  ;;  %v6997_v53 = vpop.eup %6996  ;;  %v1397_v12 = vadd.f32 1.0, %v6995_v0  ;;  %7010 = verf.f32 %v1021_v15  ;;  %v8813_v2 = vld [vmem:[%s7580_s26 + $0x230] sm:$0xff]  ;;  %v8819_v15 = vld [vmem:[%s7580_s26 + $0x248] sm:$0xff] }
 0x16b   : > { %11261 = vst [vmem:[#allocation52_spill] sm:$0xff] %v8783_v16  ;;  %2537 = vmatmul.mubr.f32.gmra.mrb[26].mxu1 %v8783_v16  ;;  %v8796_v47 = vmul.f32 %v1395_v33, %v819_v42  ;;  %v1020_v43 = vmul.f32 0.70710677, %v8780_v34  ;;  %v6999_v6 = vpop.eup %6998  ;;  %v1394_v5 = vadd.f32 1.0, %v6997_v53  ;;  %v823_v44 = vmul.f32 0.5, %v8716_v61 }
 0x16c   : > { %11262 = vst [vmem:[#allocation53_spill] sm:$0xff] %v8791_v9  ;;  %2890 = vmatmul.mubr.f32.gmra.mrb[26].mxu0 %v8791_v9  ;;  %7012 = verf.f32 %v1018_v50  ;;  %v1023_v37 = vmul.f32 0.70710677, %v8788_v32  ;;  %v7001_v28 = vpop.eup %7000  ;;  %v8809_v58 = vmul.f32 %v1397_v12, %v821_v41  ;;  %v1396_v42 = vadd.f32 1.0, %v6999_v6  ;;  %v2084_v9 = vld [vmem:[%s7586_s24 + $0x250] sm:$0xff] }
 0x16d   : > { %11263 = vst [vmem:[#allocation54_spill] sm:$0xff] %v8796_v47  ;;  %2542 = vmatprep.mubr.f32.mxu1 %v8796_v47  ;;  %v825_v19 = vmul.f32 0.5, %v8727_v51  ;;  %7014 = verf.f32 %v1020_v43  ;;  %v8815_v46 = vmul.f32 %v1394_v5, %v818_v22  ;;  %v1399_v33 = vadd.f32 1.0, %v7001_v28  ;;  %v8832_v5 = vld [vmem:[%s7580_s26 + $0x258] sm:$0xff] }
 0x16e   : > { %11264 = vst [vmem:[#allocation55_spill] sm:$0xff] %v8809_v58  ;;  %7016 = verf.f32 %v1023_v37  ;;  %v1025_v61 = vmul.f32 0.70710677, %v8800_v52  ;;  %2895 = vmatprep.mubr.f32.mxu0 %v8809_v58  ;;  %v8822_v41 = vmul.f32 %v1396_v42, %v820_v8  ;;  %v822_v51 = vmul.f32 0.5, %v8730_v24  ;;  %v8835_v8 = vld [vmem:[%s7580_s26 + $0x240] sm:$0xff]  ;;  %v8838_v24 = vld [vmem:[%s7580_s26 + $0x250] sm:$0xff] }
 0x16f   : > { %11265 = vst [vmem:[#allocation56_spill] sm:$0xff] %v8815_v46  ;;  %v7003_v0 = vpop.eup %7002  ;;  %v824_v50 = vmul.f32 0.5, %v8737_v10  ;;  %v1022_v22 = vmul.f32 0.70710677, %v8806_v48  ;;  %2543 = vmatmul.mubr.f32.gmra.mrb[28].mxu1 %v8815_v46  ;;  %v8828_v12 = vmul.f32 %v1399_v33, %v823_v44  ;;  %v1024_v6 = vmul.f32 0.70710677, %v8813_v2 }
 0x170   : > { %11266 = vst [vmem:[#allocation57_spill] sm:$0xff] %v8822_v41  ;;  %v7005_v53 = vpop.eup %7004  ;;  %v1401_v43 = vadd.f32 1.0, %v7003_v0  ;;  %7018 = verf.f32 %v1025_v61  ;;  %2896 = vmatmul.mubr.f32.gmra.mrb[28].mxu0 %v8822_v41  ;;  %v827_v44 = vmul.f32 0.5, %v8763_v4  ;;  %v1027_v28 = vmul.f32 0.70710677, %v8819_v15  ;;  %v2085_v42 = vld [vmem:[%s7586_s24 + $0x258] sm:$0xff] }
 0x171   : > { %11267 = vst [vmem:[#allocation58_spill] sm:$0xff] %v8828_v12  ;;  %v7007_v10 = vpop.eup %7006  ;;  %v1398_v37 = vadd.f32 1.0, %v7005_v53  ;;  %7020 = verf.f32 %v1022_v22  ;;  %v2091_v33 = vld [vmem:[%s7586_s24 + $0x288] sm:$0xff]  ;;  %2548 = vmatprep.mubr.f32.mxu1 %v8828_v12  ;;  %v829_v58 = vmul.f32 0.5, %v8767_v56  ;;  %v2093_v53 = vld [vmem:[%s7586_s24 + $0x298] sm:$0xff]  ;;  %v826_v22 = vmul.f32 0.5, %v8773_v60 }
 0x172   : > { %v8846_v61 = vmul.f32 %v1401_v43, %v825_v19  ;;  %v1400_v0 = vadd.f32 1.0, %v7007_v10  ;;  %7022 = verf.f32 %v1024_v6  ;;  %v2087_v41 = vld [vmem:[%s7586_s24 + $0x268] sm:$0xff]  ;;  %v1029_v17 = vmul.f32 0.70710677, %v8832_v5  ;;  %v2092_v12 = vld [vmem:[%s7586_s24 + $0x290] sm:$0xff]  ;;  %v8871_v47 = vld [vmem:[%s7580_s26 + $0x278] sm:$0xff] }
 0x173   : > { %v8852_v4 = vmul.f32 %v1398_v37, %v822_v51  ;;  %7024 = verf.f32 %v1027_v28  ;;  %v7009_v19 = vpop.eup %7008  ;;  %v828_v56 = vmul.f32 0.5, %v8780_v34  ;;  %v1026_v51 = vmul.f32 0.70710677, %v8835_v8  ;;  %v8867_v46 = vld [vmem:[%s7580_s26 + $0x268] sm:$0xff] }
 0x174   : > { %11268 = vst [vmem:[#allocation59_spill] sm:$0xff] %v8846_v61  ;;  %2901 = vmatprep.mubr.f32.mxu0 %v8846_v61  ;;  %v8860_v43 = vmul.f32 %v1400_v0, %v824_v50  ;;  %v1028_v6 = vmul.f32 0.70710677, %v8838_v24  ;;  %v7011_v60 = vpop.eup %7010  ;;  %v1403_v10 = vadd.f32 1.0, %v7009_v19  ;;  %7026 = verf.f32 %v1029_v17 }
 0x175   : > { %11269 = vst [vmem:[#allocation60_spill] sm:$0xff] %v8852_v4  ;;  %2549 = vmatmul.mubr.f32.gmra.mrb[30].mxu1 %v8852_v4  ;;  %v6280_v37 = vpack.c.bf16 %v2091_v33, %v2085_v42  ;;  %v6408_v28 = vpack.c.bf16 %v2093_v53, %v2087_v41  ;;  %v1405_v50 = vadd.f32 1.0, %v7011_v60  ;;  %7028 = verf.f32 %v1026_v51  ;;  %v8877_v41 = vld [vmem:[%s7580_s26 + $0x260] sm:$0xff]  ;;  %v8892_v53 = vld [vmem:[%s7580_s26 + $0x288] sm:$0xff] }
 0x176   : > { %11270 = vst [vmem:[#allocation61_spill] sm:$0xff] %v8860_v43  ;;  %v7013_v61 = vpop.eup %7012  ;;  %2902 = vmatmul.mubr.f32.gmra.mrb[30].mxu0 %v8860_v43  ;;  %v6282_v34 = vpack.c.bf16 %v2090_v11, %v2084_v9  ;;  %v6410_v0 = vpack.c.bf16 %v2092_v12, %v2086_v39  ;;  %v8873_v40 = vmul.f32 %v1403_v10, %v827_v44  ;;  %v831_v17 = vmul.f32 0.5, %v8788_v32  ;;  %v8884_v12 = vld [vmem:[%s7580_s26 + $0x270] sm:$0xff]  ;;  %v2102_v43 = vld [vmem:[%s7586_s24 + $0x2e0] sm:$0xff] }
 0x177   : > { %v7015_v16 = vpop.eup %7014  ;;  %v1402_v19 = vadd.f32 1.0, %v7013_v61  ;;  %7030 = verf.f32 %v1028_v6  ;;  %6281 = vmatprep.subr.bf16.mxu1 %v6280_v37  ;;  %6409 = vmatprep.subr.bf16.mxu0 %v6408_v28  ;;  %v8879_v33 = vmul.f32 %v1405_v50, %v829_v58  ;;  %v833_v39 = vmul.f32 0.5, %v8800_v52  ;;  %v8904_v37 = vld [vmem:[%s7580_s26 + $0x298] sm:$0xff] }
 0x178   : > { %11271 = vst [vmem:[#allocation62_spill] sm:$0xff] %v8873_v40  ;;  %v7017_v42 = vpop.eup %7016  ;;  %v1404_v11 = vadd.f32 1.0, %v7015_v16  ;;  %6283 = vmatpush1.bf16.msra.mxu1 %v6282_v34  ;;  %6411 = vmatpush1.bf16.msra.mxu0 %v6410_v0  ;;  %v1031_v9 = vmul.f32 0.70710677, %v8867_v46  ;;  %v830_v61 = vmul.f32 0.5, %v8806_v48  ;;  %v832_v51 = vmul.f32 0.5, %v8813_v2 }
 0x179   : > { %11272 = vst [vmem:[#allocation63_spill] sm:$0xff] %v8879_v33  ;;  %2554 = vmatprep.mubr.f32.mxu1 %v8873_v40  ;;  %v8887_v32 = vmul.f32 %v1402_v19, %v826_v22  ;;  %v1407_v44 = vadd.f32 1.0, %v7017_v42  ;;  %v1033_v58 = vmul.f32 0.70710677, %v8871_v47  ;;  %2907 = vmatprep.mubr.f32.mxu0 %v8879_v33  ;;  %v1030_v22 = vmul.f32 0.70710677, %v8877_v41 }
 0x17a   : > { %v7019_v16 = vpop.eup %7018  ;;  %v8895_v52 = vmul.f32 %v1404_v11, %v828_v56  ;;  %7032 = verf.f32 %v1031_v9  ;;  %v1032_v10 = vmul.f32 0.70710677, %v8884_v12  ;;  %v835_v28 = vmul.f32 0.5, %v8819_v15  ;;  %v8910_v34 = vld [vmem:[%s7580_s26 + $0x280] sm:$0xff]  ;;  %v8917_v11 = vld [vmem:[%s7580_s26 + $0x290] sm:$0xff] }
 0x17b   : > { %11273 = vst [vmem:[#allocation64_spill] sm:$0xff] %v8887_v32  ;;  %v7021_v6 = vpop.eup %7020  ;;  %2555 = vmatmul.mubr.f32.gmra.mrb[32].mxu1 %v8887_v32  ;;  %v8900_v60 = vmul.f32 %v1407_v44, %v831_v17  ;;  %v1409_v48 = vadd.f32 1.0, %v7019_v16  ;;  %7034 = verf.f32 %v1033_v58  ;;  %v1035_v50 = vmul.f32 0.70710677, %v8892_v53  ;;  %v8923_v58 = vld [vmem:[%s7580_s26 + $0x2a8] sm:$0xff]  ;;  %v8975_v32 = vld [vmem:[%s7580_s26 + $0x2d8] sm:$0xff] }
 0x17c   : > { %11274 = vst [vmem:[#allocation65_spill] sm:$0xff] %v8895_v52  ;;  %v7023_v56 = vpop.eup %7022  ;;  %2908 = vmatmul.mubr.f32.gmra.mrb[32].mxu0 %v8895_v52  ;;  %v1406_v2 = vadd.f32 1.0, %v7021_v6  ;;  %7036 = verf.f32 %v1030_v22  ;;  %v837_v42 = vmul.f32 0.5, %v8832_v5  ;;  %v1037_v15 = vmul.f32 0.70710677, %v8904_v37  ;;  %v2096_v52 = vld [vmem:[%s7586_s24 + $0x2b0] sm:$0xff] }
 0x17d   : > { %11275 = vst [vmem:[#allocation66_spill] sm:$0xff] %v8900_v60  ;;  %v7025_v0 = vpop.eup %7024  ;;  %2560 = vmatprep.mubr.f32.mxu1 %v8900_v60  ;;  %v8913_v19 = vmul.f32 %v1409_v48, %v833_v39  ;;  %v1408_v17 = vadd.f32 1.0, %v7023_v56  ;;  %7038 = verf.f32 %v1032_v10  ;;  %v834_v5 = vmul.f32 0.5, %v8835_v8  ;;  %v8942_v8 = vld [vmem:[%s7580_s26 + $0x2b0] sm:$0xff]  ;;  %v8971_v60 = vld [vmem:[%s7580_s26 + $0x2c8] sm:$0xff] }
 0x17e   : > { %v8919_v9 = vmul.f32 %v1406_v2, %v830_v61  ;;  %v1411_v44 = vadd.f32 1.0, %v7025_v0  ;;  %7040 = verf.f32 %v1035_v50  ;;  %v7027_v16 = vpop.eup %7026  ;;  %v836_v22 = vmul.f32 0.5, %v8838_v24  ;;  %v8936_v2 = vld [vmem:[%s7580_s26 + $0x2b8] sm:$0xff] }
 0x17f   : > { %11276 = vst [vmem:[#allocation67_spill] sm:$0xff] %v8913_v19  ;;  %2913 = vmatprep.mubr.f32.mxu0 %v8913_v19  ;;  %v8926_v39 = vmul.f32 %v1408_v17, %v832_v51  ;;  %v1034_v61 = vmul.f32 0.70710677, %v8910_v34  ;;  %v7029_v6 = vpop.eup %7028  ;;  %v1413_v10 = vadd.f32 1.0, %v7027_v16  ;;  %7042 = verf.f32 %v1037_v15  ;;  %v8939_v51 = vld [vmem:[%s7580_s26 + $0x2a0] sm:$0xff]  ;;  %v2097_v17 = vld [vmem:[%s7586_s24 + $0x2b8] sm:$0xff] }
 0x180   : > { %11277 = vst [vmem:[#allocation68_spill] sm:$0xff] %v8919_v9  ;;  %2561 = vmatmul.mubr.f32.gmra.mrb[34].mxu1 %v8919_v9  ;;  %v8932_v48 = vmul.f32 %v1411_v44, %v835_v28  ;;  %v1036_v56 = vmul.f32 0.70710677, %v8917_v11  ;;  %v1410_v50 = vadd.f32 1.0, %v7029_v6  ;;  %v839_v28 = vmul.f32 0.5, %v8867_v46  ;;  %v2103_v44 = vld [vmem:[%s7586_s24 + $0x2e8] sm:$0xff] }
 0x181   : > { %11278 = vst [vmem:[#allocation69_spill] sm:$0xff] %v8926_v39  ;;  %v7031_v24 = vpop.eup %7030  ;;  %2914 = vmatmul.mubr.f32.gmra.mrb[34].mxu0 %v8926_v39  ;;  %7044 = verf.f32 %v1034_v61  ;;  %v1039_v0 = vmul.f32 0.70710677, %v8923_v58  ;;  %v8950_v15 = vmul.f32 %v1413_v10, %v837_v42  ;;  %v841_v19 = vmul.f32 0.5, %v8871_v47  ;;  %v2099_v39 = vld [vmem:[%s7586_s24 + $0x2c8] sm:$0xff]  ;;  %v2105_v6 = vld [vmem:[%s7586_s24 + $0x2f8] sm:$0xff] }
 0x182   : > { %11279 = vst [vmem:[#allocation70_spill] sm:$0xff] %v8932_v48  ;;  %2566 = vmatprep.mubr.f32.mxu1 %v8932_v48  ;;  %v1412_v16 = vadd.f32 1.0, %v7031_v24  ;;  %7046 = verf.f32 %v1036_v56  ;;  %v8956_v46 = vmul.f32 %v1410_v50, %v834_v5  ;;  %v838_v61 = vmul.f32 0.5, %v8877_v41  ;;  %v2098_v9 = vld [vmem:[%s7586_s24 + $0x2c0] sm:$0xff]  ;;  %v2104_v48 = vld [vmem:[%s7586_s24 + $0x2f0] sm:$0xff] }
 0x183   : > { %11280 = vst [vmem:[#allocation71_spill] sm:$0xff] %v8950_v15  ;;  %7048 = verf.f32 %v1039_v0  ;;  %v1041_v33 = vmul.f32 0.70710677, %v8936_v2  ;;  %2919 = vmatprep.mubr.f32.mxu0 %v8950_v15  ;;  %v840_v47 = vmul.f32 0.5, %v8884_v12  ;;  %v1038_v5 = vmul.f32 0.70710677, %v8939_v51 }
 0x184   : > { %11281 = vst [vmem:[#allocation72_spill] sm:$0xff] %v8956_v46  ;;  %v7033_v42 = vpop.eup %7032  ;;  %v8964_v10 = vmul.f32 %v1412_v16, %v836_v22  ;;  %v1040_v56 = vmul.f32 0.70710677, %v8942_v8  ;;  %2567 = vmatmul.mubr.f32.gmra.mrb[36].mxu1 %v8956_v46  ;;  %v6284_v50 = vpack.c.bf16 %v2103_v44, %v2097_v17  ;;  %v6412_v0 = vpack.c.bf16 %v2105_v6, %v2099_v39  ;;  %v8981_v39 = vld [vmem:[%s7580_s26 + $0x2c0] sm:$0xff]  ;;  %v8996_v6 = vld [vmem:[%s7580_s26 + $0x2e8] sm:$0xff] }
 0x185   : > { %v7035_v41 = vpop.eup %7034  ;;  %v1415_v24 = vadd.f32 1.0, %v7033_v42  ;;  %7050 = verf.f32 %v1041_v33  ;;  %v6286_v12 = vpack.c.bf16 %v2102_v43, %v2096_v52  ;;  %v6414_v16 = vpack.c.bf16 %v2104_v48, %v2098_v9  ;;  %v8988_v48 = vld [vmem:[%s7580_s26 + $0x2d0] sm:$0xff] }
 0x186   : > { %11282 = vst [vmem:[#allocation73_spill] sm:$0xff] %v8964_v10  ;;  %v7037_v15 = vpop.eup %7036  ;;  %2920 = vmatmul.mubr.f32.gmra.mrb[36].mxu0 %v8964_v10  ;;  %v1417_v22 = vadd.f32 1.0, %v7035_v41  ;;  %7052 = verf.f32 %v1038_v5  ;;  %v843_v33 = vmul.f32 0.5, %v8892_v53  ;;  %6285 = vmatprep.subr.bf16.mxu1 %v6284_v50  ;;  %v845_v52 = vmul.f32 0.5, %v8904_v37  ;;  %v9008_v50 = vld [vmem:[%s7580_s26 + $0x2f8] sm:$0xff]  ;;  %v2114_v10 = vld [vmem:[%s7586_s24 + $0x340] sm:$0xff] }
 0x187   : > { %v7039_v40 = vpop.eup %7038  ;;  %v8977_v4 = vmul.f32 %v1415_v24, %v839_v28  ;;  %v1414_v42 = vadd.f32 1.0, %v7037_v15  ;;  %7054 = verf.f32 %v1040_v56  ;;  %6413 = vmatprep.subr.bf16.mxu0 %v6412_v0  ;;  %6287 = vmatpush1.bf16.msra.mxu1 %v6286_v12  ;;  %v1043_v9 = vmul.f32 0.70710677, %v8971_v60  ;;  %v9014_v12 = vld [vmem:[%s7580_s26 + $0x2e0] sm:$0xff] }
 0x188   : > { %v7041_v17 = vpop.eup %7040  ;;  %v8983_v44 = vmul.f32 %v1417_v22, %v841_v19  ;;  %v1416_v43 = vadd.f32 1.0, %v7039_v40  ;;  %6415 = vmatpush1.bf16.msra.mxu0 %v6414_v16  ;;  %v842_v15 = vmul.f32 0.5, %v8910_v34  ;;  %v1045_v19 = vmul.f32 0.70710677, %v8975_v32 }
 0x189   : > { %11283 = vst [vmem:[#allocation74_spill] sm:$0xff] %v8977_v4  ;;  %2572 = vmatprep.mubr.f32.mxu1 %v8977_v4  ;;  %v8991_v53 = vmul.f32 %v1414_v42, %v838_v61  ;;  %v1419_v28 = vadd.f32 1.0, %v7041_v17  ;;  %v7043_v40 = vpop.eup %7042  ;;  %v844_v5 = vmul.f32 0.5, %v8917_v11  ;;  %7056 = verf.f32 %v1043_v9 }
 0x18a   : > { %11284 = vst [vmem:[#allocation75_spill] sm:$0xff] %v8983_v44  ;;  %2925 = vmatprep.mubr.f32.mxu0 %v8983_v44  ;;  %v8999_v37 = vmul.f32 %v1416_v43, %v840_v47  ;;  %v1042_v61 = vmul.f32 0.70710677, %v8981_v39  ;;  %v1421_v34 = vadd.f32 1.0, %v7043_v40  ;;  %7058 = verf.f32 %v1045_v19  ;;  %v9021_v43 = vld [vmem:[%s7580_s26 + $0x2f0] sm:$0xff]  ;;  %v9027_v19 = vld [vmem:[%s7580_s26 + $0x308] sm:$0xff] }
 0x18b   : > { %11285 = vst [vmem:[#allocation76_spill] sm:$0xff] %v8991_v53  ;;  %v7045_v56 = vpop.eup %7044  ;;  %2573 = vmatmul.mubr.f32.gmra.mrb[38].mxu1 %v8991_v53  ;;  %v9004_v41 = vmul.f32 %v1419_v28, %v843_v33  ;;  %v1044_v24 = vmul.f32 0.70710677, %v8988_v48  ;;  %v847_v0 = vmul.f32 0.5, %v8923_v58  ;;  %v1047_v22 = vmul.f32 0.70710677, %v8996_v6 }
 0x18c   : > { %11286 = vst [vmem:[#allocation77_spill] sm:$0xff] %v8999_v37  ;;  %v7047_v47 = vpop.eup %7046  ;;  %2926 = vmatmul.mubr.f32.gmra.mrb[38].mxu0 %v8999_v37  ;;  %v1418_v11 = vadd.f32 1.0, %v7045_v56  ;;  %7060 = verf.f32 %v1042_v61  ;;  %v9017_v42 = vmul.f32 %v1421_v34, %v845_v52  ;;  %v849_v17 = vmul.f32 0.5, %v8936_v2  ;;  %v2108_v37 = vld [vmem:[%s7586_s24 + $0x310] sm:$0xff]  ;;  %v9079_v53 = vld [vmem:[%s7580_s26 + $0x338] sm:$0xff] }
 0x18d   : > { %11287 = vst [vmem:[#allocation78_spill] sm:$0xff] %v9004_v41  ;;  %v7049_v16 = vpop.eup %7048  ;;  %2578 = vmatprep.mubr.f32.mxu1 %v9004_v41  ;;  %v1420_v33 = vadd.f32 1.0, %v7047_v47  ;;  %7062 = verf.f32 %v1044_v24  ;;  %v1049_v58 = vmul.f32 0.70710677, %v9008_v50  ;;  %v846_v2 = vmul.f32 0.5, %v8939_v51  ;;  %v9046_v51 = vld [vmem:[%s7580_s26 + $0x310] sm:$0xff] }
 0x18e   : > { %11288 = vst [vmem:[#allocation79_spill] sm:$0xff] %v9017_v42  ;;  %v9023_v9 = vmul.f32 %v1418_v11, %v842_v15  ;;  %v1423_v28 = vadd.f32 1.0, %v7049_v16  ;;  %7064 = verf.f32 %v1047_v22  ;;  %2931 = vmatprep.mubr.f32.mxu0 %v9017_v42  ;;  %v848_v61 = vmul.f32 0.5, %v8942_v8  ;;  %v9040_v11 = vld [vmem:[%s7580_s26 + $0x318] sm:$0xff]  ;;  %v9075_v41 = vld [vmem:[%s7580_s26 + $0x328] sm:$0xff] }
 0x18f   : > { %v7051_v40 = vpop.eup %7050  ;;  %v9030_v52 = vmul.f32 %v1420_v33, %v844_v5  ;;  %v1046_v15 = vmul.f32 0.70710677, %v9014_v12  ;;  %7066 = verf.f32 %v1049_v58  ;;  %v1048_v47 = vmul.f32 0.70710677, %v9021_v43  ;;  %v9043_v5 = vld [vmem:[%s7580_s26 + $0x300] sm:$0xff]  ;;  %v2109_v33 = vld [vmem:[%s7586_s24 + $0x318] sm:$0xff] }
 0x190   : > { %11289 = vst [vmem:[#allocation80_spill] sm:$0xff] %v9023_v9  ;;  %v7053_v56 = vpop.eup %7052  ;;  %2579 = vmatmul.mubr.f32.gmra.mrb[40].mxu1 %v9023_v9  ;;  %v9036_v34 = vmul.f32 %v1423_v28, %v847_v0  ;;  %v1425_v24 = vadd.f32 1.0, %v7051_v40  ;;  %v851_v0 = vmul.f32 0.5, %v8971_v60  ;;  %v1051_v16 = vmul.f32 0.70710677, %v9027_v19  ;;  %v2115_v28 = vld [vmem:[%s7586_s24 + $0x348] sm:$0xff] }
 0x191   : > { %11290 = vst [vmem:[#allocation81_spill] sm:$0xff] %v9030_v52  ;;  %v7055_v8 = vpop.eup %7054  ;;  %2932 = vmatmul.mubr.f32.gmra.mrb[40].mxu0 %v9030_v52  ;;  %v1422_v22 = vadd.f32 1.0, %v7053_v56  ;;  %7068 = verf.f32 %v1046_v15  ;;  %v853_v42 = vmul.f32 0.5, %v8975_v32  ;;  %v2111_v52 = vld [vmem:[%s7586_s24 + $0x328] sm:$0xff]  ;;  %v2117_v56 = vld [vmem:[%s7586_s24 + $0x358] sm:$0xff]  ;;  %v850_v15 = vmul.f32 0.5, %v8981_v39 }
 0x192   : > { %11291 = vst [vmem:[#allocation82_spill] sm:$0xff] %v9036_v34  ;;  %2584 = vmatprep.mubr.f32.mxu1 %v9036_v34  ;;  %v9054_v58 = vmul.f32 %v1425_v24, %v849_v17  ;;  %v1424_v40 = vadd.f32 1.0, %v7055_v8  ;;  %7070 = verf.f32 %v1048_v47  ;;  %v1053_v44 = vmul.f32 0.70710677, %v9040_v11  ;;  %v2110_v9 = vld [vmem:[%s7586_s24 + $0x320] sm:$0xff]  ;;  %v2116_v34 = vld [vmem:[%s7586_s24 + $0x350] sm:$0xff] }
 0x193   : > { %v9060_v60 = vmul.f32 %v1422_v22, %v846_v2  ;;  %7072 = verf.f32 %v1051_v16  ;;  %v7057_v17 = vpop.eup %7056  ;;  %v852_v32 = vmul.f32 0.5, %v8988_v48  ;;  %v1050_v2 = vmul.f32 0.70710677, %v9043_v5 }
 0x194   : > { %11292 = vst [vmem:[#allocation83_spill] sm:$0xff] %v9054_v58  ;;  %2937 = vmatprep.mubr.f32.mxu0 %v9054_v58  ;;  %v9068_v24 = vmul.f32 %v1424_v40, %v848_v61  ;;  %v1052_v47 = vmul.f32 0.70710677, %v9046_v51  ;;  %v7059_v39 = vpop.eup %7058  ;;  %v1427_v8 = vadd.f32 1.0, %v7057_v17  ;;  %7074 = verf.f32 %v1053_v44 }
 0x195   : > { %11293 = vst [vmem:[#allocation84_spill] sm:$0xff] %v9060_v60  ;;  %2585 = vmatmul.mubr.f32.gmra.mrb[42].mxu1 %v9060_v60  ;;  %v6288_v22 = vpack.c.bf16 %v2115_v28, %v2109_v33  ;;  %v6416_v16 = vpack.c.bf16 %v2117_v56, %v2111_v52  ;;  %v1429_v61 = vadd.f32 1.0, %v7059_v39  ;;  %7076 = verf.f32 %v1050_v2  ;;  %v9085_v52 = vld [vmem:[%s7580_s26 + $0x320] sm:$0xff]  ;;  %v9100_v56 = vld [vmem:[%s7580_s26 + $0x348] sm:$0xff] }
 0x196   : > { %11294 = vst [vmem:[#allocation85_spill] sm:$0xff] %v9068_v24  ;;  %v7061_v58 = vpop.eup %7060  ;;  %2938 = vmatmul.mubr.f32.gmra.mrb[42].mxu0 %v9068_v24  ;;  %v6290_v48 = vpack.c.bf16 %v2114_v10, %v2108_v37  ;;  %v6418_v40 = vpack.c.bf16 %v2116_v34, %v2110_v9  ;;  %v9081_v46 = vmul.f32 %v1427_v8, %v851_v0  ;;  %v855_v44 = vmul.f32 0.5, %v8996_v6  ;;  %v9092_v34 = vld [vmem:[%s7580_s26 + $0x330] sm:$0xff]  ;;  %v2126_v24 = vld [vmem:[%s7586_s24 + $0x3a0] sm:$0xff] }
 0x197   : > { %v7063_v4 = vpop.eup %7062  ;;  %v1426_v17 = vadd.f32 1.0, %v7061_v58  ;;  %7078 = verf.f32 %v1052_v47  ;;  %6289 = vmatprep.subr.bf16.mxu1 %v6288_v22  ;;  %6417 = vmatprep.subr.bf16.mxu0 %v6416_v16  ;;  %v9087_v28 = vmul.f32 %v1429_v61, %v853_v42  ;;  %v857_v37 = vmul.f32 0.5, %v9008_v50  ;;  %v9112_v22 = vld [vmem:[%s7580_s26 + $0x358] sm:$0xff] }
 0x198   : > { %11295 = vst [vmem:[#allocation86_spill] sm:$0xff] %v9081_v46  ;;  %v7065_v33 = vpop.eup %7064  ;;  %v1428_v10 = vadd.f32 1.0, %v7063_v4  ;;  %6291 = vmatpush1.bf16.msra.mxu1 %v6290_v48  ;;  %6419 = vmatpush1.bf16.msra.mxu0 %v6418_v40  ;;  %v1055_v9 = vmul.f32 0.70710677, %v9075_v41  ;;  %v854_v58 = vmul.f32 0.5, %v9014_v12  ;;  %v856_v2 = vmul.f32 0.5, %v9021_v43 }
 0x199   : > { %11296 = vst [vmem:[#allocation87_spill] sm:$0xff] %v9087_v28  ;;  %2590 = vmatprep.mubr.f32.mxu1 %v9081_v46  ;;  %v9095_v6 = vmul.f32 %v1426_v17, %v850_v15  ;;  %v1431_v0 = vadd.f32 1.0, %v7065_v33  ;;  %v1057_v42 = vmul.f32 0.70710677, %v9079_v53  ;;  %v7067_v4 = vpop.eup %7066  ;;  %2943 = vmatprep.mubr.f32.mxu0 %v9087_v28  ;;  %v1054_v15 = vmul.f32 0.70710677, %v9085_v52 }
 0x19a   : > { %v9103_v50 = vmul.f32 %v1428_v10, %v852_v32  ;;  %7080 = verf.f32 %v1055_v9  ;;  %v1433_v12 = vadd.f32 1.0, %v7067_v4  ;;  %v1056_v8 = vmul.f32 0.70710677, %v9092_v34  ;;  %v9118_v48 = vld [vmem:[%s7580_s26 + $0x340] sm:$0xff]  ;;  %v9125_v10 = vld [vmem:[%s7580_s26 + $0x350] sm:$0xff] }
 0x19b   : > { %11297 = vst [vmem:[#allocation88_spill] sm:$0xff] %v9095_v6  ;;  %v7069_v47 = vpop.eup %7068  ;;  %2591 = vmatmul.mubr.f32.gmra.mrb[44].mxu1 %v9095_v6  ;;  %v9108_v39 = vmul.f32 %v1431_v0, %v855_v44  ;;  %7082 = verf.f32 %v1057_v42  ;;  %v859_v16 = vmul.f32 0.5, %v9027_v19  ;;  %v1059_v61 = vmul.f32 0.70710677, %v9100_v56  ;;  %v9131_v42 = vld [vmem:[%s7580_s26 + $0x368] sm:$0xff]  ;;  %v9183_v6 = vld [vmem:[%s7580_s26 + $0x398] sm:$0xff] }
 0x19c   : > { %11298 = vst [vmem:[#allocation89_spill] sm:$0xff] %v9103_v50  ;;  %v7071_v32 = vpop.eup %7070  ;;  %2944 = vmatmul.mubr.f32.gmra.mrb[44].mxu0 %v9103_v50  ;;  %v1430_v43 = vadd.f32 1.0, %v7069_v47  ;;  %7084 = verf.f32 %v1054_v15  ;;  %v9121_v17 = vmul.f32 %v1433_v12, %v857_v37  ;;  %v861_v33 = vmul.f32 0.5, %v9040_v11  ;;  %v2120_v50 = vld [vmem:[%s7586_s24 + $0x370] sm:$0xff] }
 0x19d   : > { %11299 = vst [vmem:[#allocation90_spill] sm:$0xff] %v9108_v39  ;;  %v7073_v40 = vpop.eup %7072  ;;  %2596 = vmatprep.mubr.f32.mxu1 %v9108_v39  ;;  %v1432_v44 = vadd.f32 1.0, %v7071_v32  ;;  %7086 = verf.f32 %v1056_v8  ;;  %v1061_v19 = vmul.f32 0.70710677, %v9112_v22  ;;  %v858_v11 = vmul.f32 0.5, %v9043_v5  ;;  %v9150_v5 = vld [vmem:[%s7580_s26 + $0x370] sm:$0xff] }
 0x19e   : > { %11300 = vst [vmem:[#allocation91_spill] sm:$0xff] %v9121_v17  ;;  %v9127_v9 = vmul.f32 %v1430_v43, %v854_v58  ;;  %v1435_v0 = vadd.f32 1.0, %v7073_v40  ;;  %7088 = verf.f32 %v1059_v61  ;;  %v7075_v4 = vpop.eup %7074  ;;  %2949 = vmatprep.mubr.f32.mxu0 %v9121_v17  ;;  %v860_v15 = vmul.f32 0.5, %v9046_v51  ;;  %v9144_v43 = vld [vmem:[%s7580_s26 + $0x378] sm:$0xff]  ;;  %v9179_v39 = vld [vmem:[%s7580_s26 + $0x388] sm:$0xff] }
 0x19f   : > { %v9134_v37 = vmul.f32 %v1432_v44, %v856_v2  ;;  %v1058_v58 = vmul.f32 0.70710677, %v9118_v48  ;;  %v7077_v47 = vpop.eup %7076  ;;  %v1437_v8 = vadd.f32 1.0, %v7075_v4  ;;  %7090 = verf.f32 %v1061_v19  ;;  %v9147_v2 = vld [vmem:[%s7580_s26 + $0x360] sm:$0xff]  ;;  %v2121_v44 = vld [vmem:[%s7586_s24 + $0x378] sm:$0xff] }
 0x1a0   : > { %11301 = vst [vmem:[#allocation92_spill] sm:$0xff] %v9127_v9  ;;  %2597 = vmatmul.mubr.f32.gmra.mrb[46].mxu1 %v9127_v9  ;;  %v9140_v12 = vmul.f32 %v1435_v0, %v859_v16  ;;  %v1060_v32 = vmul.f32 0.70710677, %v9125_v10  ;;  %v1434_v61 = vadd.f32 1.0, %v7077_v47  ;;  %v863_v16 = vmul.f32 0.5, %v9075_v41  ;;  %v2127_v0 = vld [vmem:[%s7586_s24 + $0x3a8] sm:$0xff] }
 0x1a1   : > { %11302 = vst [vmem:[#allocation93_spill] sm:$0xff] %v9134_v37  ;;  %v7079_v51 = vpop.eup %7078  ;;  %2950 = vmatmul.mubr.f32.gmra.mrb[46].mxu0 %v9134_v37  ;;  %7092 = verf.f32 %v1058_v58  ;;  %v1063_v40 = vmul.f32 0.70710677, %v9131_v42  ;;  %v9158_v19 = vmul.f32 %v1437_v8, %v861_v33  ;;  %v865_v17 = vmul.f32 0.5, %v9079_v53  ;;  %v2123_v37 = vld [vmem:[%s7586_s24 + $0x388] sm:$0xff]  ;;  %v2129_v47 = vld [vmem:[%s7586_s24 + $0x3b8] sm:$0xff] }
 0x1a2   : > { %11303 = vst [vmem:[#allocation94_spill] sm:$0xff] %v9140_v12  ;;  %2602 = vmatprep.mubr.f32.mxu1 %v9140_v12  ;;  %v1436_v4 = vadd.f32 1.0, %v7079_v51  ;;  %7094 = verf.f32 %v1060_v32  ;;  %v9164_v41 = vmul.f32 %v1434_v61, %v858_v11  ;;  %v862_v58 = vmul.f32 0.5, %v9085_v52  ;;  %v2122_v9 = vld [vmem:[%s7586_s24 + $0x380] sm:$0xff]  ;;  %v2128_v12 = vld [vmem:[%s7586_s24 + $0x3b0] sm:$0xff] }
 0x1a3   : > { %11304 = vst [vmem:[#allocation95_spill] sm:$0xff] %v9158_v19  ;;  %7096 = verf.f32 %v1063_v40  ;;  %v1065_v28 = vmul.f32 0.70710677, %v9144_v43  ;;  %2955 = vmatprep.mubr.f32.mxu0 %v9158_v19  ;;  %v864_v53 = vmul.f32 0.5, %v9092_v34  ;;  %v1062_v11 = vmul.f32 0.70710677, %v9147_v2 }
 0x1a4   : > { %11305 = vst [vmem:[#allocation96_spill] sm:$0xff] %v9164_v41  ;;  %v7081_v33 = vpop.eup %7080  ;;  %v9172_v8 = vmul.f32 %v1436_v4, %v860_v15  ;;  %v1064_v32 = vmul.f32 0.70710677, %v9150_v5  ;;  %2603 = vmatmul.mubr.f32.gmra.mrb[48].mxu1 %v9164_v41  ;;  %v6292_v61 = vpack.c.bf16 %v2127_v0, %v2121_v44  ;;  %v6420_v40 = vpack.c.bf16 %v2129_v47, %v2123_v37  ;;  %v9189_v37 = vld [vmem:[%s7580_s26 + $0x380] sm:$0xff]  ;;  %v9204_v47 = vld [vmem:[%s7580_s26 + $0x3a8] sm:$0xff] }
 0x1a5   : > { %v7083_v52 = vpop.eup %7082  ;;  %v1439_v51 = vadd.f32 1.0, %v7081_v33  ;;  %7098 = verf.f32 %v1065_v28  ;;  %v6294_v34 = vpack.c.bf16 %v2126_v24, %v2120_v50  ;;  %v6422_v4 = vpack.c.bf16 %v2128_v12, %v2122_v9  ;;  %v9196_v12 = vld [vmem:[%s7580_s26 + $0x390] sm:$0xff] }
 0x1a6   : > { %11306 = vst [vmem:[#allocation97_spill] sm:$0xff] %v9172_v8  ;;  %v7085_v19 = vpop.eup %7084  ;;  %2956 = vmatmul.mubr.f32.gmra.mrb[48].mxu0 %v9172_v8  ;;  %v1441_v15 = vadd.f32 1.0, %v7083_v52  ;;  %7100 = verf.f32 %v1062_v11  ;;  %v867_v28 = vmul.f32 0.5, %v9100_v56  ;;  %6293 = vmatprep.subr.bf16.mxu1 %v6292_v61  ;;  %v869_v50 = vmul.f32 0.5, %v9112_v22  ;;  %v9216_v61 = vld [vmem:[%s7580_s26 + $0x3b8] sm:$0xff]  ;;  %v2138_v8 = vld [vmem:[%s7586_s24 + $0x400] sm:$0xff] }
 0x1a7   : > { %v7087_v46 = vpop.eup %7086  ;;  %v9185_v60 = vmul.f32 %v1439_v51, %v863_v16  ;;  %v1438_v33 = vadd.f32 1.0, %v7085_v19  ;;  %7102 = verf.f32 %v1064_v32  ;;  %6421 = vmatprep.subr.bf16.mxu0 %v6420_v40  ;;  %6295 = vmatpush1.bf16.msra.mxu1 %v6294_v34  ;;  %v1067_v9 = vmul.f32 0.70710677, %v9179_v39  ;;  %v9222_v34 = vld [vmem:[%s7580_s26 + $0x3a0] sm:$0xff] }
 0x1a8   : > { %v7089_v44 = vpop.eup %7088  ;;  %v9191_v0 = vmul.f32 %v1441_v15, %v865_v17  ;;  %v1440_v24 = vadd.f32 1.0, %v7087_v46  ;;  %6423 = vmatpush1.bf16.msra.mxu0 %v6422_v4  ;;  %v866_v19 = vmul.f32 0.5, %v9118_v48  ;;  %v1069_v17 = vmul.f32 0.70710677, %v9183_v6 }
 0x1a9   : > { %11307 = vst [vmem:[#allocation98_spill] sm:$0xff] %v9185_v60  ;;  %2608 = vmatprep.mubr.f32.mxu1 %v9185_v60  ;;  %v9199_v56 = vmul.f32 %v1438_v33, %v862_v58  ;;  %v1443_v16 = vadd.f32 1.0, %v7089_v44  ;;  %v7091_v46 = vpop.eup %7090  ;;  %v868_v11 = vmul.f32 0.5, %v9125_v10  ;;  %7104 = verf.f32 %v1067_v9 }
 0x1aa   : > { %11308 = vst [vmem:[#allocation99_spill] sm:$0xff] %v9191_v0  ;;  %2961 = vmatprep.mubr.f32.mxu0 %v9191_v0  ;;  %v9207_v22 = vmul.f32 %v1440_v24, %v864_v53  ;;  %v1066_v58 = vmul.f32 0.70710677, %v9189_v37  ;;  %v1445_v48 = vadd.f32 1.0, %v7091_v46  ;;  %7106 = verf.f32 %v1069_v17  ;;  %v9229_v24 = vld [vmem:[%s7580_s26 + $0x3b0] sm:$0xff]  ;;  %v9235_v17 = vld [vmem:[%s7580_s26 + $0x3c8] sm:$0xff] }
 0x1ab   : > { %11309 = vst [vmem:[#allocation100_spill] sm:$0xff] %v9199_v56  ;;  %v7093_v32 = vpop.eup %7092  ;;  %2609 = vmatmul.mubr.f32.gmra.mrb[50].mxu1 %v9199_v56  ;;  %v9212_v52 = vmul.f32 %v1443_v16, %v867_v28  ;;  %v1068_v51 = vmul.f32 0.70710677, %v9196_v12  ;;  %v871_v40 = vmul.f32 0.5, %v9131_v42  ;;  %v1071_v15 = vmul.f32 0.70710677, %v9204_v47 }
 0x1ac   : > { %11310 = vst [vmem:[#allocation101_spill] sm:$0xff] %v9207_v22  ;;  %v7095_v53 = vpop.eup %7094  ;;  %2962 = vmatmul.mubr.f32.gmra.mrb[50].mxu0 %v9207_v22  ;;  %v1442_v10 = vadd.f32 1.0, %v7093_v32  ;;  %7108 = verf.f32 %v1066_v58  ;;  %v9225_v33 = vmul.f32 %v1445_v48, %v869_v50  ;;  %v873_v44 = vmul.f32 0.5, %v9144_v43  ;;  %v2132_v22 = vld [vmem:[%s7586_s24 + $0x3d0] sm:$0xff]  ;;  %v9287_v56 = vld [vmem:[%s7580_s26 + $0x3f8] sm:$0xff] }
 0x1ad   : > { %11311 = vst [vmem:[#allocation102_spill] sm:$0xff] %v9212_v52  ;;  %v7097_v4 = vpop.eup %7096  ;;  %2614 = vmatprep.mubr.f32.mxu1 %v9212_v52  ;;  %v1444_v28 = vadd.f32 1.0, %v7095_v53  ;;  %7110 = verf.f32 %v1068_v51  ;;  %v1073_v42 = vmul.f32 0.70710677, %v9216_v61  ;;  %v870_v43 = vmul.f32 0.5, %v9147_v2  ;;  %v9254_v2 = vld [vmem:[%s7580_s26 + $0x3d0] sm:$0xff] }
 0x1ae   : > { %11312 = vst [vmem:[#allocation103_spill] sm:$0xff] %v9225_v33  ;;  %v9231_v9 = vmul.f32 %v1442_v10, %v866_v19  ;;  %v1447_v16 = vadd.f32 1.0, %v7097_v4  ;;  %7112 = verf.f32 %v1071_v15  ;;  %2967 = vmatprep.mubr.f32.mxu0 %v9225_v33  ;;  %v872_v58 = vmul.f32 0.5, %v9150_v5  ;;  %v9248_v10 = vld [vmem:[%s7580_s26 + $0x3d8] sm:$0xff]  ;;  %v9283_v52 = vld [vmem:[%s7580_s26 + $0x3e8] sm:$0xff] }
 0x1af   : > { %v7099_v46 = vpop.eup %7098  ;;  %v9238_v50 = vmul.f32 %v1444_v28, %v868_v11  ;;  %v1070_v19 = vmul.f32 0.70710677, %v9222_v34  ;;  %7114 = verf.f32 %v1073_v42  ;;  %v1072_v53 = vmul.f32 0.70710677, %v9229_v24  ;;  %v9251_v11 = vld [vmem:[%s7580_s26 + $0x3c0] sm:$0xff]  ;;  %v2133_v28 = vld [vmem:[%s7586_s24 + $0x3d8] sm:$0xff] }
 0x1b0   : > { %11313 = vst [vmem:[#allocation104_spill] sm:$0xff] %v9231_v9  ;;  %v7101_v32 = vpop.eup %7100  ;;  %2615 = vmatmul.mubr.f32.gmra.mrb[52].mxu1 %v9231_v9  ;;  %v9244_v48 = vmul.f32 %v1447_v16, %v871_v40  ;;  %v1449_v51 = vadd.f32 1.0, %v7099_v46  ;;  %v875_v40 = vmul.f32 0.5, %v9179_v39  ;;  %v1075_v4 = vmul.f32 0.70710677, %v9235_v17  ;;  %v2139_v16 = vld [vmem:[%s7586_s24 + $0x408] sm:$0xff] }
 0x1b1   : > { %11314 = vst [vmem:[#allocation105_spill] sm:$0xff] %v9238_v50  ;;  %v7103_v5 = vpop.eup %7102  ;;  %2968 = vmatmul.mubr.f32.gmra.mrb[52].mxu0 %v9238_v50  ;;  %v1446_v15 = vadd.f32 1.0, %v7101_v32  ;;  %7116 = verf.f32 %v1070_v19  ;;  %v877_v33 = vmul.f32 0.5, %v9183_v6  ;;  %v2135_v50 = vld [vmem:[%s7586_s24 + $0x3e8] sm:$0xff]  ;;  %v2141_v32 = vld [vmem:[%s7586_s24 + $0x418] sm:$0xff]  ;;  %v874_v19 = vmul.f32 0.5, %v9189_v37 }
 0x1b2   : > { %11315 = vst [vmem:[#allocation106_spill] sm:$0xff] %v9244_v48  ;;  %2620 = vmatprep.mubr.f32.mxu1 %v9244_v48  ;;  %v9262_v42 = vmul.f32 %v1449_v51, %v873_v44  ;;  %v1448_v46 = vadd.f32 1.0, %v7103_v5  ;;  %7118 = verf.f32 %v1072_v53  ;;  %v1077_v0 = vmul.f32 0.70710677, %v9248_v10  ;;  %v2134_v9 = vld [vmem:[%s7586_s24 + $0x3e0] sm:$0xff]  ;;  %v2140_v48 = vld [vmem:[%s7586_s24 + $0x410] sm:$0xff] }
 0x1b3   : > { %v9268_v39 = vmul.f32 %v1446_v15, %v870_v43  ;;  %7120 = verf.f32 %v1075_v4  ;;  %v7105_v44 = vpop.eup %7104  ;;  %v876_v6 = vmul.f32 0.5, %v9196_v12  ;;  %v1074_v43 = vmul.f32 0.70710677, %v9251_v11 }
 0x1b4   : > { %11316 = vst [vmem:[#allocation107_spill] sm:$0xff] %v9262_v42  ;;  %2973 = vmatprep.mubr.f32.mxu0 %v9262_v42  ;;  %v9276_v51 = vmul.f32 %v1448_v46, %v872_v58  ;;  %v1076_v53 = vmul.f32 0.70710677, %v9254_v2  ;;  %v7107_v37 = vpop.eup %7106  ;;  %v1451_v5 = vadd.f32 1.0, %v7105_v44  ;;  %7122 = verf.f32 %v1077_v0 }
 0x1b5   : > { %11317 = vst [vmem:[#allocation108_spill] sm:$0xff] %v9268_v39  ;;  %2621 = vmatmul.mubr.f32.gmra.mrb[54].mxu1 %v9268_v39  ;;  %v6296_v15 = vpack.c.bf16 %v2139_v16, %v2133_v28  ;;  %v6424_v4 = vpack.c.bf16 %v2141_v32, %v2135_v50  ;;  %v1453_v58 = vadd.f32 1.0, %v7107_v37  ;;  %7124 = verf.f32 %v1074_v43  ;;  %v9293_v50 = vld [vmem:[%s7580_s26 + $0x3e0] sm:$0xff]  ;;  %v9308_v32 = vld [vmem:[%s7580_s26 + $0x408] sm:$0xff] }
 0x1b6   : > { %11318 = vst [vmem:[#allocation109_spill] sm:$0xff] %v9276_v51  ;;  %v7109_v42 = vpop.eup %7108  ;;  %2974 = vmatmul.mubr.f32.gmra.mrb[54].mxu0 %v9276_v51  ;;  %v6298_v12 = vpack.c.bf16 %v2138_v8, %v2132_v22  ;;  %v6426_v46 = vpack.c.bf16 %v2140_v48, %v2134_v9  ;;  %v9289_v41 = vmul.f32 %v1451_v5, %v875_v40  ;;  %v879_v0 = vmul.f32 0.5, %v9204_v47  ;;  %v9300_v48 = vld [vmem:[%s7580_s26 + $0x3f0] sm:$0xff]  ;;  %v2150_v51 = vld [vmem:[%s7586_s24 + $0x460] sm:$0xff] }
 0x1b7   : > { %v7111_v60 = vpop.eup %7110  ;;  %v1450_v44 = vadd.f32 1.0, %v7109_v42  ;;  %7126 = verf.f32 %v1076_v53  ;;  %6297 = vmatprep.subr.bf16.mxu1 %v6296_v15  ;;  %6425 = vmatprep.subr.bf16.mxu0 %v6424_v4  ;;  %v9295_v16 = vmul.f32 %v1453_v58, %v877_v33  ;;  %v881_v22 = vmul.f32 0.5, %v9216_v61  ;;  %v9320_v15 = vld [vmem:[%s7580_s26 + $0x418] sm:$0xff] }
 0x1b8   : > { %11319 = vst [vmem:[#allocation110_spill] sm:$0xff] %v9289_v41  ;;  %v7113_v28 = vpop.eup %7112  ;;  %v1452_v8 = vadd.f32 1.0, %v7111_v60  ;;  %6299 = vmatpush1.bf16.msra.mxu1 %v6298_v12  ;;  %6427 = vmatpush1.bf16.msra.mxu0 %v6426_v46  ;;  %v1079_v9 = vmul.f32 0.70710677, %v9283_v52  ;;  %v878_v42 = vmul.f32 0.5, %v9222_v34  ;;  %v880_v43 = vmul.f32 0.5, %v9229_v24 }
 0x1b9   : > { %11320 = vst [vmem:[#allocation111_spill] sm:$0xff] %v9295_v16  ;;  %2626 = vmatprep.mubr.f32.mxu1 %v9289_v41  ;;  %v9303_v47 = vmul.f32 %v1450_v44, %v874_v19  ;;  %v1455_v40 = vadd.f32 1.0, %v7113_v28  ;;  %v1081_v33 = vmul.f32 0.70710677, %v9287_v56  ;;  %v7115_v60 = vpop.eup %7114  ;;  %2979 = vmatprep.mubr.f32.mxu0 %v9295_v16  ;;  %v1078_v19 = vmul.f32 0.70710677, %v9293_v50 }
 0x1ba   : > { %v9311_v61 = vmul.f32 %v1452_v8, %v876_v6  ;;  %7128 = verf.f32 %v1079_v9  ;;  %v1457_v34 = vadd.f32 1.0, %v7115_v60  ;;  %v1080_v5 = vmul.f32 0.70710677, %v9300_v48  ;;  %v9326_v12 = vld [vmem:[%s7580_s26 + $0x400] sm:$0xff]  ;;  %v9333_v8 = vld [vmem:[%s7580_s26 + $0x410] sm:$0xff] }
 0x1bb   : > { %11321 = vst [vmem:[#allocation112_spill] sm:$0xff] %v9303_v47  ;;  %v7117_v53 = vpop.eup %7116  ;;  %2627 = vmatmul.mubr.f32.gmra.mrb[56].mxu1 %v9303_v47  ;;  %v9316_v37 = vmul.f32 %v1455_v40, %v879_v0  ;;  %7130 = verf.f32 %v1081_v33  ;;  %v883_v4 = vmul.f32 0.5, %v9235_v17  ;;  %v1083_v58 = vmul.f32 0.70710677, %v9308_v32  ;;  %v9339_v33 = vld [vmem:[%s7580_s26 + $0x428] sm:$0xff]  ;;  %v9391_v47 = vld [vmem:[%s7580_s26 + $0x458] sm:$0xff] }
 0x1bc   : > { %11322 = vst [vmem:[#allocation113_spill] sm:$0xff] %v9311_v61  ;;  %v7119_v6 = vpop.eup %7118  ;;  %2980 = vmatmul.mubr.f32.gmra.mrb[56].mxu0 %v9311_v61  ;;  %v1454_v24 = vadd.f32 1.0, %v7117_v53  ;;  %7132 = verf.f32 %v1078_v19  ;;  %v9329_v44 = vmul.f32 %v1457_v34, %v881_v22  ;;  %v885_v28 = vmul.f32 0.5, %v9248_v10  ;;  %v2144_v61 = vld [vmem:[%s7586_s24 + $0x430] sm:$0xff] }
 0x1bd   : > { %11323 = vst [vmem:[#allocation114_spill] sm:$0xff] %v9316_v37  ;;  %v7121_v46 = vpop.eup %7120  ;;  %2632 = vmatprep.mubr.f32.mxu1 %v9316_v37  ;;  %v1456_v0 = vadd.f32 1.0, %v7119_v6  ;;  %7134 = verf.f32 %v1080_v5  ;;  %v1085_v17 = vmul.f32 0.70710677, %v9320_v15  ;;  %v882_v10 = vmul.f32 0.5, %v9251_v11  ;;  %v9358_v11 = vld [vmem:[%s7580_s26 + $0x430] sm:$0xff] }
 0x1be   : > { %11324 = vst [vmem:[#allocation115_spill] sm:$0xff] %v9329_v44  ;;  %v9335_v9 = vmul.f32 %v1454_v24, %v878_v42  ;;  %v1459_v40 = vadd.f32 1.0, %v7121_v46  ;;  %7136 = verf.f32 %v1083_v58  ;;  %v7123_v60 = vpop.eup %7122  ;;  %2985 = vmatprep.mubr.f32.mxu0 %v9329_v44  ;;  %v884_v19 = vmul.f32 0.5, %v9254_v2  ;;  %v9352_v24 = vld [vmem:[%s7580_s26 + $0x438] sm:$0xff]  ;;  %v9387_v37 = vld [vmem:[%s7580_s26 + $0x448] sm:$0xff] }
 0x1bf   : > { %v9342_v22 = vmul.f32 %v1456_v0, %v880_v43  ;;  %v1082_v42 = vmul.f32 0.70710677, %v9326_v12  ;;  %v7125_v53 = vpop.eup %7124  ;;  %v1461_v5 = vadd.f32 1.0, %v7123_v60  ;;  %7138 = verf.f32 %v1085_v17  ;;  %v9355_v43 = vld [vmem:[%s7580_s26 + $0x420] sm:$0xff]  ;;  %v2145_v0 = vld [vmem:[%s7586_s24 + $0x438] sm:$0xff] }
 0x1c0   : > { %11325 = vst [vmem:[#allocation116_spill] sm:$0xff] %v9335_v9  ;;  %2633 = vmatmul.mubr.f32.gmra.mrb[58].mxu1 %v9335_v9  ;;  %v9348_v34 = vmul.f32 %v1459_v40, %v883_v4  ;;  %v1084_v6 = vmul.f32 0.70710677, %v9333_v8  ;;  %v1458_v58 = vadd.f32 1.0, %v7125_v53  ;;  %v887_v4 = vmul.f32 0.5, %v9283_v52  ;;  %v2151_v40 = vld [vmem:[%s7586_s24 + $0x468] sm:$0xff] }
 0x1c1   : > { %11326 = vst [vmem:[#allocation117_spill] sm:$0xff] %v9342_v22  ;;  %v7127_v2 = vpop.eup %7126  ;;  %2986 = vmatmul.mubr.f32.gmra.mrb[58].mxu0 %v9342_v22  ;;  %7140 = verf.f32 %v1082_v42  ;;  %v1087_v46 = vmul.f32 0.70710677, %v9339_v33  ;;  %v9366_v17 = vmul.f32 %v1461_v5, %v885_v28  ;;  %v889_v44 = vmul.f32 0.5, %v9287_v56  ;;  %v2147_v22 = vld [vmem:[%s7586_s24 + $0x448] sm:$0xff]  ;;  %v2153_v53 = vld [vmem:[%s7586_s24 + $0x478] sm:$0xff] }
 0x1c2   : > { %11327 = vst [vmem:[#allocation118_spill] sm:$0xff] %v9348_v34  ;;  %2638 = vmatprep.mubr.f32.mxu1 %v9348_v34  ;;  %v1460_v60 = vadd.f32 1.0, %v7127_v2  ;;  %7142 = verf.f32 %v1084_v6  ;;  %v9372_v52 = vmul.f32 %v1458_v58, %v882_v10  ;;  %v886_v42 = vmul.f32 0.5, %v9293_v50  ;;  %v2146_v9 = vld [vmem:[%s7586_s24 + $0x440] sm:$0xff]  ;;  %v2152_v34 = vld [vmem:[%s7586_s24 + $0x470] sm:$0xff] }
 0x1c3   : > { %11328 = vst [vmem:[#allocation119_spill] sm:$0xff] %v9366_v17  ;;  %7144 = verf.f32 %v1087_v46  ;;  %v1089_v16 = vmul.f32 0.70710677, %v9352_v24  ;;  %2991 = vmatprep.mubr.f32.mxu0 %v9366_v17  ;;  %v888_v56 = vmul.f32 0.5, %v9300_v48  ;;  %v1086_v10 = vmul.f32 0.70710677, %v9355_v43 }
 0x1c4   : > { %11329 = vst [vmem:[#allocation120_spill] sm:$0xff] %v9372_v52  ;;  %v7129_v28 = vpop.eup %7128  ;;  %v9380_v5 = vmul.f32 %v1460_v60, %v884_v19  ;;  %v1088_v6 = vmul.f32 0.70710677, %v9358_v11  ;;  %2639 = vmatmul.mubr.f32.gmra.mrb[60].mxu1 %v9372_v52  ;;  %v6300_v58 = vpack.c.bf16 %v2151_v40, %v2145_v0  ;;  %v6428_v46 = vpack.c.bf16 %v2153_v53, %v2147_v22  ;;  %v9397_v22 = vld [vmem:[%s7580_s26 + $0x440] sm:$0xff]  ;;  %v9412_v53 = vld [vmem:[%s7580_s26 + $0x468] sm:$0xff] }
 0x1c5   : > { %v7131_v50 = vpop.eup %7130  ;;  %v1463_v2 = vadd.f32 1.0, %v7129_v28  ;;  %7146 = verf.f32 %v1089_v16  ;;  %v6302_v48 = vpack.c.bf16 %v2150_v51, %v2144_v61  ;;  %v6430_v60 = vpack.c.bf16 %v2152_v34, %v2146_v9  ;;  %v9404_v34 = vld [vmem:[%s7580_s26 + $0x450] sm:$0xff] }
 0x1c6   : > { %11330 = vst [vmem:[#allocation121_spill] sm:$0xff] %v9380_v5  ;;  %v7133_v17 = vpop.eup %7132  ;;  %2992 = vmatmul.mubr.f32.gmra.mrb[60].mxu0 %v9380_v5  ;;  %v1465_v19 = vadd.f32 1.0, %v7131_v50  ;;  %7148 = verf.f32 %v1086_v10  ;;  %v891_v16 = vmul.f32 0.5, %v9308_v32  ;;  %6301 = vmatprep.subr.bf16.mxu1 %v6300_v58  ;;  %v893_v61 = vmul.f32 0.5, %v9320_v15  ;;  %v9424_v58 = vld [vmem:[%s7580_s26 + $0x478] sm:$0xff]  ;;  %v2162_v5 = vld [vmem:[%s7586_s24 + $0x4c0] sm:$0xff] }
 0x1c7   : > { %v7135_v41 = vpop.eup %7134  ;;  %v9393_v39 = vmul.f32 %v1463_v2, %v887_v4  ;;  %v1462_v28 = vadd.f32 1.0, %v7133_v17  ;;  %7150 = verf.f32 %v1088_v6  ;;  %6429 = vmatprep.subr.bf16.mxu0 %v6428_v46  ;;  %6303 = vmatpush1.bf16.msra.mxu1 %v6302_v48  ;;  %v1091_v9 = vmul.f32 0.70710677, %v9387_v37  ;;  %v9430_v48 = vld [vmem:[%s7580_s26 + $0x460] sm:$0xff] }
 0x1c8   : > { %v7137_v0 = vpop.eup %7136  ;;  %v9399_v40 = vmul.f32 %v1465_v19, %v889_v44  ;;  %v1464_v51 = vadd.f32 1.0, %v7135_v41  ;;  %6431 = vmatpush1.bf16.msra.mxu0 %v6430_v60  ;;  %v890_v17 = vmul.f32 0.5, %v9326_v12  ;;  %v1093_v44 = vmul.f32 0.70710677, %v9391_v47 }
 0x1c9   : > { %11331 = vst [vmem:[#allocation122_spill] sm:$0xff] %v9393_v39  ;;  %2644 = vmatprep.mubr.f32.mxu1 %v9393_v39  ;;  %v9407_v32 = vmul.f32 %v1462_v28, %v886_v42  ;;  %v1467_v4 = vadd.f32 1.0, %v7137_v0  ;;  %v7139_v41 = vpop.eup %7138  ;;  %v892_v10 = vmul.f32 0.5, %v9333_v8  ;;  %7152 = verf.f32 %v1091_v9 }
 0x1ca   : > { %11332 = vst [vmem:[#allocation123_spill] sm:$0xff] %v9399_v40  ;;  %2997 = vmatprep.mubr.f32.mxu0 %v9399_v40  ;;  %v9415_v15 = vmul.f32 %v1464_v51, %v888_v56  ;;  %v1090_v42 = vmul.f32 0.70710677, %v9397_v22  ;;  %v1469_v12 = vadd.f32 1.0, %v7139_v41  ;;  %7154 = verf.f32 %v1093_v44  ;;  %v9437_v51 = vld [vmem:[%s7580_s26 + $0x470] sm:$0xff]  ;;  %v9443_v44 = vld [vmem:[%s7580_s26 + $0x488] sm:$0xff] }
 0x1cb   : > { %11333 = vst [vmem:[#allocation124_spill] sm:$0xff] %v9407_v32  ;;  %v7141_v6 = vpop.eup %7140  ;;  %2645 = vmatmul.mubr.f32.gmra.mrb[62].mxu1 %v9407_v32  ;;  %v9420_v50 = vmul.f32 %v1467_v4, %v891_v16  ;;  %v1092_v2 = vmul.f32 0.70710677, %v9404_v34  ;;  %v895_v46 = vmul.f32 0.5, %v9339_v33  ;;  %v1095_v19 = vmul.f32 0.70710677, %v9412_v53 }
 0x1cc   : > { %11334 = vst [vmem:[#allocation125_spill] sm:$0xff] %v9415_v15  ;;  %v7143_v56 = vpop.eup %7142  ;;  %2998 = vmatmul.mubr.f32.gmra.mrb[62].mxu0 %v9415_v15  ;;  %v1466_v8 = vadd.f32 1.0, %v7141_v6  ;;  %7156 = verf.f32 %v1090_v42  ;;  %v9433_v28 = vmul.f32 %v1469_v12, %v893_v61  ;;  %v897_v0 = vmul.f32 0.5, %v9352_v24  ;;  %v2156_v15 = vld [vmem:[%s7586_s24 + $0x490] sm:$0xff]  ;;  %v9495_v32 = vld [vmem:[%s7580_s26 + $0x4b8] sm:$0xff] }
 0x1cd   : > { %11335 = vst [vmem:[#allocation126_spill] sm:$0xff] %v9420_v50  ;;  %v7145_v60 = vpop.eup %7144  ;;  %2650 = vmatprep.mubr.f32.mxu1 %v9420_v50  ;;  %v1468_v16 = vadd.f32 1.0, %v7143_v56  ;;  %7158 = verf.f32 %v1092_v2  ;;  %v1097_v33 = vmul.f32 0.70710677, %v9424_v58  ;;  %v894_v24 = vmul.f32 0.5, %v9355_v43  ;;  %v9462_v43 = vld [vmem:[%s7580_s26 + $0x490] sm:$0xff] }
 0x1ce   : > { %11336 = vst [vmem:[#allocation127_spill] sm:$0xff] %v9433_v28  ;;  %v9439_v9 = vmul.f32 %v1466_v8, %v890_v17  ;;  %v1471_v4 = vadd.f32 1.0, %v7145_v60  ;;  %7160 = verf.f32 %v1095_v19  ;;  %3003 = vmatprep.mubr.f32.mxu0 %v9433_v28  ;;  %v896_v42 = vmul.f32 0.5, %v9358_v11  ;;  %v9456_v8 = vld [vmem:[%s7580_s26 + $0x498] sm:$0xff]  ;;  %v9491_v50 = vld [vmem:[%s7580_s26 + $0x4a8] sm:$0xff] }
 0x1cf   : > { %v7147_v41 = vpop.eup %7146  ;;  %v9446_v61 = vmul.f32 %v1468_v16, %v892_v10  ;;  %v1094_v17 = vmul.f32 0.70710677, %v9430_v48  ;;  %7162 = verf.f32 %v1097_v33  ;;  %v1096_v56 = vmul.f32 0.70710677, %v9437_v51  ;;  %v9459_v10 = vld [vmem:[%s7580_s26 + $0x480] sm:$0xff]  ;;  %v2157_v16 = vld [vmem:[%s7586_s24 + $0x498] sm:$0xff] }
 0x1d0   : > { %11337 = vst [vmem:[#allocation128_spill] sm:$0xff] %v9439_v9  ;;  %v7149_v6 = vpop.eup %7148  ;;  %2651 = vmatmul.mubr.f32.gmra.mrb[64].mxu1 %v9439_v9  ;;  %v9452_v12 = vmul.f32 %v1471_v4, %v895_v46  ;;  %v1473_v2 = vadd.f32 1.0, %v7147_v41  ;;  %v899_v46 = vmul.f32 0.5, %v9387_v37  ;;  %v1099_v60 = vmul.f32 0.70710677, %v9443_v44  ;;  %v2163_v4 = vld [vmem:[%s7586_s24 + $0x4c8] sm:$0xff] }
 0x1d1   : > { %11338 = vst [vmem:[#allocation129_spill] sm:$0xff] %v9446_v61  ;;  %v7151_v11 = vpop.eup %7150  ;;  %3004 = vmatmul.mubr.f32.gmra.mrb[64].mxu0 %v9446_v61  ;;  %v1470_v19 = vadd.f32 1.0, %v7149_v6  ;;  %7164 = verf.f32 %v1094_v17  ;;  %v901_v28 = vmul.f32 0.5, %v9391_v47  ;;  %v2159_v61 = vld [vmem:[%s7586_s24 + $0x4a8] sm:$0xff]  ;;  %v2165_v6 = vld [vmem:[%s7586_s24 + $0x4d8] sm:$0xff]  ;;  %v898_v17 = vmul.f32 0.5, %v9397_v22 }
 0x1d2   : > { %11339 = vst [vmem:[#allocation130_spill] sm:$0xff] %v9452_v12  ;;  %2656 = vmatprep.mubr.f32.mxu1 %v9452_v12  ;;  %v9470_v33 = vmul.f32 %v1473_v2, %v897_v0  ;;  %v1472_v41 = vadd.f32 1.0, %v7151_v11  ;;  %7166 = verf.f32 %v1096_v56  ;;  %v1101_v40 = vmul.f32 0.70710677, %v9456_v8  ;;  %v2158_v9 = vld [vmem:[%s7586_s24 + $0x4a0] sm:$0xff]  ;;  %v2164_v12 = vld [vmem:[%s7586_s24 + $0x4d0] sm:$0xff] }
 0x1d3   : > { %v9476_v37 = vmul.f32 %v1470_v19, %v894_v24  ;;  %7168 = verf.f32 %v1099_v60  ;;  %v7153_v0 = vpop.eup %7152  ;;  %v900_v47 = vmul.f32 0.5, %v9404_v34  ;;  %v1098_v24 = vmul.f32 0.70710677, %v9459_v10 }
 0x1d4   : > { %11340 = vst [vmem:[#allocation131_spill] sm:$0xff] %v9470_v33  ;;  %3009 = vmatprep.mubr.f32.mxu0 %v9470_v33  ;;  %v9484_v2 = vmul.f32 %v1472_v41, %v896_v42  ;;  %v1100_v56 = vmul.f32 0.70710677, %v9462_v43  ;;  %v7155_v22 = vpop.eup %7154  ;;  %v1475_v11 = vadd.f32 1.0, %v7153_v0  ;;  %7170 = verf.f32 %v1101_v40 }
 0x1d5   : > { %11341 = vst [vmem:[#allocation132_spill] sm:$0xff] %v9476_v37  ;;  %2657 = vmatmul.mubr.f32.gmra.mrb[66].mxu1 %v9476_v37  ;;  %v6304_v19 = vpack.c.bf16 %v2163_v4, %v2157_v16  ;;  %v6432_v60 = vpack.c.bf16 %v2165_v6, %v2159_v61  ;;  %v1477_v42 = vadd.f32 1.0, %v7155_v22  ;;  %7172 = verf.f32 %v1098_v24  ;;  %v9501_v61 = vld [vmem:[%s7580_s26 + $0x4a0] sm:$0xff]  ;;  %v9516_v6 = vld [vmem:[%s7580_s26 + $0x4c8] sm:$0xff] }
 0x1d6   : > { %11342 = vst [vmem:[#allocation133_spill] sm:$0xff] %v9484_v2  ;;  %v7157_v33 = vpop.eup %7156  ;;  %3010 = vmatmul.mubr.f32.gmra.mrb[66].mxu0 %v9484_v2  ;;  %v6306_v34 = vpack.c.bf16 %v2162_v5, %v2156_v15  ;;  %v6434_v41 = vpack.c.bf16 %v2164_v12, %v2158_v9  ;;  %v9497_v52 = vmul.f32 %v1475_v11, %v899_v46  ;;  %v903_v40 = vmul.f32 0.5, %v9412_v53  ;;  %v9508_v12 = vld [vmem:[%s7580_s26 + $0x4b0] sm:$0xff]  ;;  %v2174_v2 = vld [vmem:[%s7586_s24 + $0x520] sm:$0xff] }
 0x1d7   : > { %v7159_v39 = vpop.eup %7158  ;;  %v1474_v0 = vadd.f32 1.0, %v7157_v33  ;;  %7174 = verf.f32 %v1100_v56  ;;  %6305 = vmatprep.subr.bf16.mxu1 %v6304_v19  ;;  %6433 = vmatprep.subr.bf16.mxu0 %v6432_v60  ;;  %v9503_v4 = vmul.f32 %v1477_v42, %v901_v28  ;;  %v905_v15 = vmul.f32 0.5, %v9424_v58  ;;  %v9528_v19 = vld [vmem:[%s7580_s26 + $0x4d8] sm:$0xff] }
 0x1d8   : > { %11343 = vst [vmem:[#allocation134_spill] sm:$0xff] %v9497_v52  ;;  %v7161_v16 = vpop.eup %7160  ;;  %v1476_v5 = vadd.f32 1.0, %v7159_v39  ;;  %6307 = vmatpush1.bf16.msra.mxu1 %v6306_v34  ;;  %6435 = vmatpush1.bf16.msra.mxu0 %v6434_v41  ;;  %v1103_v9 = vmul.f32 0.70710677, %v9491_v50  ;;  %v902_v33 = vmul.f32 0.5, %v9430_v48  ;;  %v904_v24 = vmul.f32 0.5, %v9437_v51 }
 0x1d9   : > { %11344 = vst [vmem:[#allocation135_spill] sm:$0xff] %v9503_v4  ;;  %2662 = vmatprep.mubr.f32.mxu1 %v9497_v52  ;;  %v9511_v53 = vmul.f32 %v1474_v0, %v898_v17  ;;  %v1479_v46 = vadd.f32 1.0, %v7161_v16  ;;  %v1105_v28 = vmul.f32 0.70710677, %v9495_v32  ;;  %v7163_v39 = vpop.eup %7162  ;;  %3015 = vmatprep.mubr.f32.mxu0 %v9503_v4  ;;  %v1102_v17 = vmul.f32 0.70710677, %v9501_v61 }
 0x1da   : > { %v9519_v58 = vmul.f32 %v1476_v5, %v900_v47  ;;  %7176 = verf.f32 %v1103_v9  ;;  %v1481_v48 = vadd.f32 1.0, %v7163_v39  ;;  %v1104_v11 = vmul.f32 0.70710677, %v9508_v12  ;;  %v9534_v34 = vld [vmem:[%s7580_s26 + $0x4c0] sm:$0xff]  ;;  %v9541_v5 = vld [vmem:[%s7580_s26 + $0x4d0] sm:$0xff] }
 0x1db   : > { %11345 = vst [vmem:[#allocation136_spill] sm:$0xff] %v9511_v53  ;;  %v7165_v56 = vpop.eup %7164  ;;  %2663 = vmatmul.mubr.f32.gmra.mrb[68].mxu1 %v9511_v53  ;;  %v9524_v22 = vmul.f32 %v1479_v46, %v903_v40  ;;  %7178 = verf.f32 %v1105_v28  ;;  %v907_v60 = vmul.f32 0.5, %v9443_v44  ;;  %v1107_v42 = vmul.f32 0.70710677, %v9516_v6  ;;  %v9547_v28 = vld [vmem:[%s7580_s26 + $0x4e8] sm:$0xff]  ;;  %v9599_v53 = vld [vmem:[%s7580_s26 + $0x518] sm:$0xff] }
 0x1dc   : > { %11346 = vst [vmem:[#allocation137_spill] sm:$0xff] %v9519_v58  ;;  %v7167_v47 = vpop.eup %7166  ;;  %3016 = vmatmul.mubr.f32.gmra.mrb[68].mxu0 %v9519_v58  ;;  %v1478_v51 = vadd.f32 1.0, %v7165_v56  ;;  %7180 = verf.f32 %v1102_v17  ;;  %v9537_v0 = vmul.f32 %v1481_v48, %v905_v15  ;;  %v909_v16 = vmul.f32 0.5, %v9456_v8  ;;  %v2168_v58 = vld [vmem:[%s7586_s24 + $0x4f0] sm:$0xff] }
 0x1dd   : > { %11347 = vst [vmem:[#allocation138_spill] sm:$0xff] %v9524_v22  ;;  %v7169_v41 = vpop.eup %7168  ;;  %2668 = vmatprep.mubr.f32.mxu1 %v9524_v22  ;;  %v1480_v40 = vadd.f32 1.0, %v7167_v47  ;;  %7182 = verf.f32 %v1104_v11  ;;  %v1109_v44 = vmul.f32 0.70710677, %v9528_v19  ;;  %v906_v8 = vmul.f32 0.5, %v9459_v10  ;;  %v9566_v10 = vld [vmem:[%s7580_s26 + $0x4f0] sm:$0xff] }
 0x1de   : > { %11348 = vst [vmem:[#allocation139_spill] sm:$0xff] %v9537_v0  ;;  %v9543_v9 = vmul.f32 %v1478_v51, %v902_v33  ;;  %v1483_v46 = vadd.f32 1.0, %v7169_v41  ;;  %7184 = verf.f32 %v1107_v42  ;;  %v7171_v39 = vpop.eup %7170  ;;  %3021 = vmatprep.mubr.f32.mxu0 %v9537_v0  ;;  %v908_v17 = vmul.f32 0.5, %v9462_v43  ;;  %v9560_v51 = vld [vmem:[%s7580_s26 + $0x4f8] sm:$0xff]  ;;  %v9595_v22 = vld [vmem:[%s7580_s26 + $0x508] sm:$0xff] }
 0x1df   : > { %v9550_v15 = vmul.f32 %v1480_v40, %v904_v24  ;;  %v1106_v33 = vmul.f32 0.70710677, %v9534_v34  ;;  %v7173_v56 = vpop.eup %7172  ;;  %v1485_v11 = vadd.f32 1.0, %v7171_v39  ;;  %7186 = verf.f32 %v1109_v44  ;;  %v9563_v24 = vld [vmem:[%s7580_s26 + $0x4e0] sm:$0xff]  ;;  %v2169_v40 = vld [vmem:[%s7586_s24 + $0x4f8] sm:$0xff] }
 0x1e0   : > { %11349 = vst [vmem:[#allocation140_spill] sm:$0xff] %v9543_v9  ;;  %2669 = vmatmul.mubr.f32.gmra.mrb[70].mxu1 %v9543_v9  ;;  %v9556_v48 = vmul.f32 %v1483_v46, %v907_v60  ;;  %v1108_v47 = vmul.f32 0.70710677, %v9541_v5  ;;  %v1482_v42 = vadd.f32 1.0, %v7173_v56  ;;  %v911_v60 = vmul.f32 0.5, %v9491_v50  ;;  %v2175_v46 = vld [vmem:[%s7586_s24 + $0x528] sm:$0xff] }
 0x1e1   : > { %11350 = vst [vmem:[#allocation141_spill] sm:$0xff] %v9550_v15  ;;  %v7175_v43 = vpop.eup %7174  ;;  %3022 = vmatmul.mubr.f32.gmra.mrb[70].mxu0 %v9550_v15  ;;  %7188 = verf.f32 %v1106_v33  ;;  %v1111_v41 = vmul.f32 0.70710677, %v9547_v28  ;;  %v9574_v44 = vmul.f32 %v1485_v11, %v909_v16  ;;  %v913_v0 = vmul.f32 0.5, %v9495_v32  ;;  %v2171_v15 = vld [vmem:[%s7586_s24 + $0x508] sm:$0xff]  ;;  %v2177_v56 = vld [vmem:[%s7586_s24 + $0x538] sm:$0xff] }
 0x1e2   : > { %11351 = vst [vmem:[#allocation142_spill] sm:$0xff] %v9556_v48  ;;  %2674 = vmatprep.mubr.f32.mxu1 %v9556_v48  ;;  %v1484_v39 = vadd.f32 1.0, %v7175_v43  ;;  %7190 = verf.f32 %v1108_v47  ;;  %v9580_v50 = vmul.f32 %v1482_v42, %v906_v8  ;;  %v910_v33 = vmul.f32 0.5, %v9501_v61  ;;  %v2170_v9 = vld [vmem:[%s7586_s24 + $0x500] sm:$0xff]  ;;  %v2176_v48 = vld [vmem:[%s7586_s24 + $0x530] sm:$0xff] }
 0x1e3   : > { %11352 = vst [vmem:[#allocation143_spill] sm:$0xff] %v9574_v44  ;;  %7192 = verf.f32 %v1111_v41  ;;  %v1113_v4 = vmul.f32 0.70710677, %v9560_v51  ;;  %3027 = vmatprep.mubr.f32.mxu0 %v9574_v44  ;;  %v912_v32 = vmul.f32 0.5, %v9508_v12  ;;  %v1110_v8 = vmul.f32 0.70710677, %v9563_v24 }
 0x1e4   : > { %11353 = vst [vmem:[#allocation144_spill] sm:$0xff] %v9580_v50  ;;  %v7177_v16 = vpop.eup %7176  ;;  %v9588_v11 = vmul.f32 %v1484_v39, %v908_v17  ;;  %v1112_v47 = vmul.f32 0.70710677, %v9566_v10  ;;  %2675 = vmatmul.mubr.f32.gmra.mrb[72].mxu1 %v9580_v50  ;;  %v6308_v42 = vpack.c.bf16 %v2175_v46, %v2169_v40  ;;  %v6436_v41 = vpack.c.bf16 %v2177_v56, %v2171_v15  ;;  %v9605_v15 = vld [vmem:[%s7580_s26 + $0x500] sm:$0xff]  ;;  %v9620_v56 = vld [vmem:[%s7580_s26 + $0x528] sm:$0xff] }
 0x1e5   : > { %v7179_v61 = vpop.eup %7178  ;;  %v1487_v43 = vadd.f32 1.0, %v7177_v16  ;;  %7194 = verf.f32 %v1113_v4  ;;  %v6310_v12 = vpack.c.bf16 %v2174_v2, %v2168_v58  ;;  %v6438_v39 = vpack.c.bf16 %v2176_v48, %v2170_v9  ;;  %v9612_v48 = vld [vmem:[%s7580_s26 + $0x510] sm:$0xff] }
 0x1e6   : > { %11354 = vst [vmem:[#allocation145_spill] sm:$0xff] %v9588_v11  ;;  %v7181_v44 = vpop.eup %7180  ;;  %3028 = vmatmul.mubr.f32.gmra.mrb[72].mxu0 %v9588_v11  ;;  %v1489_v17 = vadd.f32 1.0, %v7179_v61  ;;  %7196 = verf.f32 %v1110_v8  ;;  %v915_v4 = vmul.f32 0.5, %v9516_v6  ;;  %6309 = vmatprep.subr.bf16.mxu1 %v6308_v42  ;;  %v917_v58 = vmul.f32 0.5, %v9528_v19  ;;  %v9632_v42 = vld [vmem:[%s7580_s26 + $0x538] sm:$0xff]  ;;  %v2186_v11 = vld [vmem:[%s7586_s24 + $0x580] sm:$0xff] }
 0x1e7   : > { %v7183_v52 = vpop.eup %7182  ;;  %v9601_v37 = vmul.f32 %v1487_v43, %v911_v60  ;;  %v1486_v16 = vadd.f32 1.0, %v7181_v44  ;;  %7198 = verf.f32 %v1112_v47  ;;  %6437 = vmatprep.subr.bf16.mxu0 %v6436_v41  ;;  %6311 = vmatpush1.bf16.msra.mxu1 %v6310_v12  ;;  %v1115_v9 = vmul.f32 0.70710677, %v9595_v22  ;;  %v9638_v12 = vld [vmem:[%s7580_s26 + $0x520] sm:$0xff] }
 0x1e8   : > { %v7185_v40 = vpop.eup %7184  ;;  %v9607_v46 = vmul.f32 %v1489_v17, %v913_v0  ;;  %v1488_v2 = vadd.f32 1.0, %v7183_v52  ;;  %6439 = vmatpush1.bf16.msra.mxu0 %v6438_v39  ;;  %v914_v44 = vmul.f32 0.5, %v9534_v34  ;;  %v1117_v0 = vmul.f32 0.70710677, %v9599_v53 }
 0x1e9   : > { %11355 = vst [vmem:[#allocation146_spill] sm:$0xff] %v9601_v37  ;;  %2680 = vmatprep.mubr.f32.mxu1 %v9601_v37  ;;  %v9615_v6 = vmul.f32 %v1486_v16, %v910_v33  ;;  %v1491_v60 = vadd.f32 1.0, %v7185_v40  ;;  %v7187_v52 = vpop.eup %7186  ;;  %v916_v8 = vmul.f32 0.5, %v9541_v5  ;;  %7200 = verf.f32 %v1115_v9 }
 0x1ea   : > { %11356 = vst [vmem:[#allocation147_spill] sm:$0xff] %v9607_v46  ;;  %3033 = vmatprep.mubr.f32.mxu0 %v9607_v46  ;;  %v9623_v19 = vmul.f32 %v1488_v2, %v912_v32  ;;  %v1114_v33 = vmul.f32 0.70710677, %v9605_v15  ;;  %v1493_v34 = vadd.f32 1.0, %v7187_v52  ;;  %7202 = verf.f32 %v1117_v0  ;;  %v9645_v2 = vld [vmem:[%s7580_s26 + $0x530] sm:$0xff]  ;;  %v9651_v0 = vld [vmem:[%s7580_s26 + $0x548] sm:$0xff] }
 0x1eb   : > { %11357 = vst [vmem:[#allocation148_spill] sm:$0xff] %v9615_v6  ;;  %v7189_v47 = vpop.eup %7188  ;;  %2681 = vmatmul.mubr.f32.gmra.mrb[74].mxu1 %v9615_v6  ;;  %v9628_v61 = vmul.f32 %v1491_v60, %v915_v4  ;;  %v1116_v43 = vmul.f32 0.70710677, %v9612_v48  ;;  %v919_v41 = vmul.f32 0.5, %v9547_v28  ;;  %v1119_v17 = vmul.f32 0.70710677, %v9620_v56 }
 0x1ec   : > { %11358 = vst [vmem:[#allocation149_spill] sm:$0xff] %v9623_v19  ;;  %v7191_v32 = vpop.eup %7190  ;;  %3034 = vmatmul.mubr.f32.gmra.mrb[74].mxu0 %v9623_v19  ;;  %v1490_v5 = vadd.f32 1.0, %v7189_v47  ;;  %7204 = verf.f32 %v1114_v33  ;;  %v9641_v16 = vmul.f32 %v1493_v34, %v917_v58  ;;  %v921_v40 = vmul.f32 0.5, %v9560_v51  ;;  %v2180_v19 = vld [vmem:[%s7586_s24 + $0x550] sm:$0xff]  ;;  %v9703_v6 = vld [vmem:[%s7580_s26 + $0x578] sm:$0xff] }
 0x1ed   : > { %11359 = vst [vmem:[#allocation150_spill] sm:$0xff] %v9628_v61  ;;  %v7193_v39 = vpop.eup %7192  ;;  %2686 = vmatprep.mubr.f32.mxu1 %v9628_v61  ;;  %v1492_v4 = vadd.f32 1.0, %v7191_v32  ;;  %7206 = verf.f32 %v1116_v43  ;;  %v1121_v28 = vmul.f32 0.70710677, %v9632_v42  ;;  %v918_v51 = vmul.f32 0.5, %v9563_v24  ;;  %v9670_v24 = vld [vmem:[%s7580_s26 + $0x550] sm:$0xff] }
 0x1ee   : > { %11360 = vst [vmem:[#allocation151_spill] sm:$0xff] %v9641_v16  ;;  %v9647_v9 = vmul.f32 %v1490_v5, %v914_v44  ;;  %v1495_v60 = vadd.f32 1.0, %v7193_v39  ;;  %7208 = verf.f32 %v1119_v17  ;;  %3039 = vmatprep.mubr.f32.mxu0 %v9641_v16  ;;  %v920_v33 = vmul.f32 0.5, %v9566_v10  ;;  %v9664_v5 = vld [vmem:[%s7580_s26 + $0x558] sm:$0xff]  ;;  %v9699_v61 = vld [vmem:[%s7580_s26 + $0x568] sm:$0xff] }
 0x1ef   : > { %v7195_v52 = vpop.eup %7194  ;;  %v9654_v58 = vmul.f32 %v1492_v4, %v916_v8  ;;  %v1118_v44 = vmul.f32 0.70710677, %v9638_v12  ;;  %7210 = verf.f32 %v1121_v28  ;;  %v1120_v32 = vmul.f32 0.70710677, %v9645_v2  ;;  %v9667_v8 = vld [vmem:[%s7580_s26 + $0x540] sm:$0xff]  ;;  %v2181_v4 = vld [vmem:[%s7586_s24 + $0x558] sm:$0xff] }
 0x1f0   : > { %11361 = vst [vmem:[#allocation152_spill] sm:$0xff] %v9647_v9  ;;  %v7197_v47 = vpop.eup %7196  ;;  %2687 = vmatmul.mubr.f32.gmra.mrb[76].mxu1 %v9647_v9  ;;  %v9660_v34 = vmul.f32 %v1495_v60, %v919_v41  ;;  %v1497_v43 = vadd.f32 1.0, %v7195_v52  ;;  %v923_v41 = vmul.f32 0.5, %v9595_v22  ;;  %v1123_v39 = vmul.f32 0.70710677, %v9651_v0  ;;  %v2187_v60 = vld [vmem:[%s7586_s24 + $0x588] sm:$0xff] }
 0x1f1   : > { %11362 = vst [vmem:[#allocation153_spill] sm:$0xff] %v9654_v58  ;;  %v7199_v10 = vpop.eup %7198  ;;  %3040 = vmatmul.mubr.f32.gmra.mrb[76].mxu0 %v9654_v58  ;;  %v1494_v17 = vadd.f32 1.0, %v7197_v47  ;;  %7212 = verf.f32 %v1118_v44  ;;  %v925_v16 = vmul.f32 0.5, %v9599_v53  ;;  %v2183_v58 = vld [vmem:[%s7586_s24 + $0x568] sm:$0xff]  ;;  %v2189_v47 = vld [vmem:[%s7586_s24 + $0x598] sm:$0xff]  ;;  %v922_v44 = vmul.f32 0.5, %v9605_v15 }
 0x1f2   : > { %11363 = vst [vmem:[#allocation154_spill] sm:$0xff] %v9660_v34  ;;  %2692 = vmatprep.mubr.f32.mxu1 %v9660_v34  ;;  %v9678_v28 = vmul.f32 %v1497_v43, %v921_v40  ;;  %v1496_v52 = vadd.f32 1.0, %v7199_v10  ;;  %7214 = verf.f32 %v1120_v32  ;;  %v1125_v46 = vmul.f32 0.70710677, %v9664_v5  ;;  %v2182_v9 = vld [vmem:[%s7586_s24 + $0x560] sm:$0xff]  ;;  %v2188_v34 = vld [vmem:[%s7586_s24 + $0x590] sm:$0xff] }
 0x1f3   : > { %v9684_v22 = vmul.f32 %v1494_v17, %v918_v51  ;;  %7216 = verf.f32 %v1123_v39  ;;  %v7201_v40 = vpop.eup %7200  ;;  %v924_v53 = vmul.f32 0.5, %v9612_v48  ;;  %v1122_v51 = vmul.f32 0.70710677, %v9667_v8 }
 0x1f4   : > { %11364 = vst [vmem:[#allocation155_spill] sm:$0xff] %v9678_v28  ;;  %3045 = vmatprep.mubr.f32.mxu0 %v9678_v28  ;;  %v9692_v43 = vmul.f32 %v1496_v52, %v920_v33  ;;  %v1124_v32 = vmul.f32 0.70710677, %v9670_v24  ;;  %v7203_v15 = vpop.eup %7202  ;;  %v1499_v10 = vadd.f32 1.0, %v7201_v40  ;;  %7218 = verf.f32 %v1125_v46 }
 0x1f5   : > { %11365 = vst [vmem:[#allocation156_spill] sm:$0xff] %v9684_v22  ;;  %2693 = vmatmul.mubr.f32.gmra.mrb[78].mxu1 %v9684_v22  ;;  %v6312_v17 = vpack.c.bf16 %v2187_v60, %v2181_v4  ;;  %v6440_v39 = vpack.c.bf16 %v2189_v47, %v2183_v58  ;;  %v1501_v33 = vadd.f32 1.0, %v7203_v15  ;;  %7220 = verf.f32 %v1122_v51  ;;  %v9709_v58 = vld [vmem:[%s7580_s26 + $0x560] sm:$0xff]  ;;  %v9724_v47 = vld [vmem:[%s7580_s26 + $0x588] sm:$0xff] }
 0x1f6   : > { %11366 = vst [vmem:[#allocation157_spill] sm:$0xff] %v9692_v43  ;;  %v7205_v28 = vpop.eup %7204  ;;  %3046 = vmatmul.mubr.f32.gmra.mrb[78].mxu0 %v9692_v43  ;;  %v6314_v48 = vpack.c.bf16 %v2186_v11, %v2180_v19  ;;  %v6442_v52 = vpack.c.bf16 %v2188_v34, %v2182_v9  ;;  %v9705_v50 = vmul.f32 %v1499_v10, %v923_v41  ;;  %v927_v46 = vmul.f32 0.5, %v9620_v56  ;;  %v9716_v34 = vld [vmem:[%s7580_s26 + $0x570] sm:$0xff] }
 0x1f7   : > { %v7207_v37 = vpop.eup %7206  ;;  %v1498_v40 = vadd.f32 1.0, %v7205_v28  ;;  %7222 = verf.f32 %v1124_v32  ;;  %6313 = vmatprep.subr.bf16.mxu1 %v6312_v17  ;;  %6441 = vmatprep.subr.bf16.mxu0 %v6440_v39  ;;  %v9711_v60 = vmul.f32 %v1501_v33, %v925_v16  ;;  %v929_v19 = vmul.f32 0.5, %v9632_v42  ;;  %v9736_v17 = vld [vmem:[%s7580_s26 + $0x598] sm:$0xff] }
 0x1f8   : > { %11367 = vst [vmem:[#allocation158_spill] sm:$0xff] %v9705_v50  ;;  %v7209_v4 = vpop.eup %7208  ;;  %v1500_v11 = vadd.f32 1.0, %v7207_v37  ;;  %6315 = vmatpush1.bf16.msra.mxu1 %v6314_v48  ;;  %6443 = vmatpush1.bf16.msra.mxu0 %v6442_v52  ;;  %v1127_v9 = vmul.f32 0.70710677, %v9699_v61  ;;  %v926_v28 = vmul.f32 0.5, %v9638_v12  ;;  %v928_v51 = vmul.f32 0.5, %v9645_v2 }
 0x1f9   : > { %11368 = vst [vmem:[#allocation159_spill] sm:$0xff] %v9711_v60  ;;  %2698 = vmatprep.mubr.f32.mxu1 %v9705_v50  ;;  %v9719_v56 = vmul.f32 %v1498_v40, %v922_v44  ;;  %v1503_v41 = vadd.f32 1.0, %v7209_v4  ;;  %v1129_v16 = vmul.f32 0.70710677, %v9703_v6  ;;  %v7211_v37 = vpop.eup %7210  ;;  %3051 = vmatprep.mubr.f32.mxu0 %v9711_v60  ;;  %v1126_v44 = vmul.f32 0.70710677, %v9709_v58 }
 0x1fa   : > { %v9727_v42 = vmul.f32 %v1500_v11, %v924_v53  ;;  %7224 = verf.f32 %v1127_v9  ;;  %v1505_v12 = vadd.f32 1.0, %v7211_v37  ;;  %v1128_v10 = vmul.f32 0.70710677, %v9716_v34  ;;  %v9742_v48 = vld [vmem:[%s7580_s26 + $0x580] sm:$0xff]  ;;  %v9749_v11 = vld [vmem:[%s7580_s26 + $0x590] sm:$0xff]  ;;  %v9758_v37 = vld [vmem:[%s7580_s26 + $0x5b8] sm:$0xff] }
 0x1fb   : > { %11369 = vst [vmem:[#allocation160_spill] sm:$0xff] %v9719_v56  ;;  %v7213_v32 = vpop.eup %7212  ;;  %2699 = vmatmul.mubr.f32.gmra.mrb[80].mxu1 %v9719_v56  ;;  %v9732_v15 = vmul.f32 %v1503_v41, %v927_v46  ;;  %7226 = verf.f32 %v1129_v16  ;;  %v931_v39 = vmul.f32 0.5, %v9651_v0  ;;  %v1131_v33 = vmul.f32 0.70710677, %v9724_v47  ;;  %v9755_v16 = vld [vmem:[%s7580_s26 + $0x5a8] sm:$0xff]  ;;  %v2198_v50 = vld [vmem:[%s7586_s24 + $0x5e0] sm:$0xff] }
 0x1fc   : > { %11370 = vst [vmem:[#allocation161_spill] sm:$0xff] %v9727_v42  ;;  %v7215_v53 = vpop.eup %7214  ;;  %3052 = vmatmul.mubr.f32.gmra.mrb[80].mxu0 %v9727_v42  ;;  %v1502_v2 = vadd.f32 1.0, %v7213_v32  ;;  %7228 = verf.f32 %v1126_v44  ;;  %v9745_v40 = vmul.f32 %v1505_v12, %v929_v19  ;;  %v933_v4 = vmul.f32 0.5, %v9664_v5  ;;  %v9767_v12 = vld [vmem:[%s7580_s26 + $0x5a0] sm:$0xff] }
 0x1fd   : > { %11371 = vst [vmem:[#allocation162_spill] sm:$0xff] %v9732_v15  ;;  %v7217_v52 = vpop.eup %7216  ;;  %2704 = vmatprep.mubr.f32.mxu1 %v9732_v15  ;;  %v1504_v46 = vadd.f32 1.0, %v7215_v53  ;;  %7230 = verf.f32 %v1128_v10  ;;  %v1133_v41 = vmul.f32 0.70710677, %v9736_v17  ;;  %v930_v44 = vmul.f32 0.5, %v9667_v8  ;;  %v9770_v10 = vld [vmem:[%s7580_s26 + $0x5b0] sm:$0xff] }
 0x1fe   : > { %11372 = vst [vmem:[#allocation163_spill] sm:$0xff] %v9745_v40  ;;  %v9751_v0 = vmul.f32 %v1502_v2, %v926_v28  ;;  %v1507_v9 = vadd.f32 1.0, %v7217_v52  ;;  %7232 = verf.f32 %v1131_v33  ;;  %v7219_v19 = vpop.eup %7218  ;;  %3057 = vmatprep.mubr.f32.mxu0 %v9745_v40  ;;  %v932_v28 = vmul.f32 0.5, %v9670_v24  ;;  %v2193_v52 = vld [vmem:[%s7586_s24 + $0x5b8] sm:$0xff]  ;;  %v2199_v8 = vld [vmem:[%s7586_s24 + $0x5e8] sm:$0xff] }
 0x1ff   : > { %v9761_v5 = vmul.f32 %v1504_v46, %v928_v51  ;;  %v1130_v32 = vmul.f32 0.70710677, %v9742_v48  ;;  %v7221_v53 = vpop.eup %7220  ;;  %v1509_v33 = vadd.f32 1.0, %v7219_v19  ;;  %7234 = verf.f32 %v1133_v41 }
 0x200   : > { %11373 = vst [vmem:[#allocation164_spill] sm:$0xff] %v9751_v0  ;;  %2705 = vmatmul.mubr.f32.gmra.mrb[82].mxu1 %v9751_v0  ;;  %v9773_v2 = vmul.f32 %v1507_v9, %v931_v39  ;;  %v1132_v51 = vmul.f32 0.70710677, %v9749_v11  ;;  %v9778_v24 = vpop.f32.mrb[0].mxu1  ;;  %v1506_v40 = vadd.f32 1.0, %v7221_v53  ;;  %v935_v42 = vmul.f32 0.5, %v9699_v61 }
 0x201   : > { %11374 = vst [vmem:[#allocation165_spill] sm:$0xff] %v9761_v5  ;;  %v7223_v46 = vpop.eup %7222  ;;  %3058 = vmatmul.mubr.f32.gmra.mrb[82].mxu0 %v9761_v5  ;;  %7236 = verf.f32 %v1130_v32  ;;  %v1135_v39 = vmul.f32 0.70710677, %v9755_v16  ;;  %v9783_v9 = vpop.f32.mrb[0].mxu0  ;;  %v9788_v19 = vmul.f32 %v1509_v33, %v933_v4  ;;  %v937_v5 = vmul.f32 0.5, %v9703_v6  ;;  %v2195_v53 = vld [vmem:[%s7586_s24 + $0x5c8] sm:$0xff] }
 0x202   : > { %11375 = vst [vmem:[#allocation166_spill] sm:$0xff] %v9773_v2  ;;  %v9785_v41 = vpop.f32.mrb[1].mxu1  ;;  %2710 = vmatprep.mubr.f32.mxu1 %v9773_v2  ;;  %v1508_v60 = vadd.f32 1.0, %v7223_v46  ;;  %7238 = verf.f32 %v1132_v51  ;;  %v2201_v61 = vld [vmem:[%s7586_s24 + $0x5f8] sm:$0xff]  ;;  %v2192_v32 = vld [vmem:[%s7586_s24 + $0x5b0] sm:$0xff]  ;;  %v9794_v43 = vpop.f32.mrb[1].mxu0  ;;  %v9796_v0 = vmul.f32 %v1506_v40, %v930_v44  ;;  %v6316_v22 = vpack.c.bf16 %v2199_v8, %v2193_v52 }
 0x203   : > { %11376 = vst [vmem:[#allocation167_spill] sm:$0xff] %v9788_v19  ;;  %v934_v15 = vmul.f32 0.5, %v9709_v58  ;;  %7240 = verf.f32 %v1135_v39  ;;  %v1137_v56 = vmul.f32 0.70710677, %v9758_v37  ;;  %v2194_v4 = vld [vmem:[%s7586_s24 + $0x5c0] sm:$0xff]  ;;  %v2200_v33 = vld [vmem:[%s7586_s24 + $0x5f0] sm:$0xff]  ;;  %3063 = vmatprep.mubr.f32.mxu0 %v9788_v19  ;;  %v6444_v20 = vpack.c.bf16 %v2201_v61, %v2195_v53 }
 0x204   : > { %11377 = vst [vmem:[#allocation168_spill] sm:$0xff] %v9796_v0  ;;  %v7225_v46 = vpop.eup %7224  ;;  %v9804_v6 = vmul.f32 %v1508_v60, %v932_v28  ;;  %v936_v51 = vmul.f32 0.5, %v9716_v34  ;;  %v1134_v2 = vmul.f32 0.70710677, %v9767_v12  ;;  %v1136_v40 = vmul.f32 0.70710677, %v9770_v10  ;;  %2711 = vmatmul.mubr.f32.gmra.mrb[84].mxu1 %v9796_v0  ;;  %6317 = vmatprep.subr.bf16.mxu1 %v6316_v22 }
 0x205   : > { %v9809_v44 = vpop.f32.mrb[2].mxu1  ;;  %v7227_v58 = vpop.eup %7226  ;;  %v1511_v39 = vadd.f32 1.0, %v7225_v46  ;;  %7242 = verf.f32 %v1137_v56  ;;  %v6318_v25 = vpack.c.bf16 %v2198_v50, %v2192_v32  ;;  %v6446_v21 = vpack.c.bf16 %v2200_v33, %v2194_v4  ;;  %v9821_v0 = vld [vmem:[%s7580_s26 + $0x5d8] sm:$0xff]  ;;  %6445 = vmatprep.subr.bf16.mxu0 %v6444_v20  ;;  %v9829_v46 = vld [vmem:[%s7580_s26 + $0x5c0] sm:$0xff]  ;;  %v9839_v33 = vld [vmem:[%s7580_s26 + $0x5e8] sm:$0xff] }
 0x206   : > { %11378 = vst [vmem:[#allocation169_spill] sm:$0xff] %v9804_v6  ;;  %v9815_v60 = vpop.f32.mrb[2].mxu0  ;;  %v9817_v28 = vpop.f32.mrb[3].mxu1  ;;  %3064 = vmatmul.mubr.f32.gmra.mrb[84].mxu0 %v9804_v6  ;;  %v1513_v19 = vadd.f32 1.0, %v7227_v58  ;;  %7244 = verf.f32 %v1134_v2  ;;  %v939_v61 = vmul.f32 0.5, %v9724_v47  ;;  %v9832_v58 = vld [vmem:[%s7580_s26 + $0x5d0] sm:$0xff] }
 0x207   : > { %v7229_v34 = vpop.eup %7228  ;;  %v9823_v56 = vpop.f32.mrb[3].mxu0  ;;  %v9825_v8 = vmul.f32 %v1511_v39, %v935_v42  ;;  %7246 = verf.f32 %v1136_v40  ;;  %v941_v4 = vmul.f32 0.5, %v9736_v17  ;;  %6319 = vmatpush1.bf16.msra.mxu1 %v6318_v25  ;;  %6447 = vmatpush1.bf16.msra.mxu0 %v6446_v21  ;;  %v1139_v42 = vmul.f32 0.70710677, %v9813_v1 }
 0x208   : > { %v7231_v52 = vpop.eup %7230  ;;  %v1510_v53 = vadd.f32 1.0, %v7229_v34  ;;  %v9834_v2 = vmul.f32 %v1513_v19, %v937_v5  ;;  %v9841_v47 = vpop.f32.mrb[4].mxu1  ;;  %v938_v40 = vmul.f32 0.5, %v9742_v48  ;;  %v1141_v5 = vmul.f32 0.70710677, %v9821_v0 }
 0x209   : > { %11379 = vst [vmem:[#allocation170_spill] sm:$0xff] %v9825_v8  ;;  %v7233_v50 = vpop.eup %7232  ;;  %v1512_v32 = vadd.f32 1.0, %v7231_v52  ;;  %2716 = vmatprep.mubr.f32.mxu1 %v9825_v8  ;;  %v9848_v19 = vpop.f32.mrb[4].mxu0  ;;  %v940_v39 = vmul.f32 0.5, %v9749_v11  ;;  %7248 = verf.f32 %v1139_v42  ;;  %v943_v42 = vmul.f32 0.5, %v9755_v16  ;;  %v2211_v16 = vld [vmem:[%s7586_s24 + $0x648] sm:$0xff] }
 0x20a   : > { %11380 = vst [vmem:[#allocation171_spill] sm:$0xff] %v9834_v2  ;;  %v9844_v20 = vmul.f32 %v1510_v53, %v934_v15  ;;  %v1515_v22 = vadd.f32 1.0, %v7233_v50  ;;  %v9850_v21 = vpop.f32.mrb[5].mxu1  ;;  %v7235_v25 = vpop.eup %7234  ;;  %3069 = vmatprep.mubr.f32.mxu0 %v9834_v2  ;;  %v1138_v15 = vmul.f32 0.70710677, %v9829_v46  ;;  %7250 = verf.f32 %v1141_v5  ;;  %v9864_v2 = vld [vmem:[%s7580_s26 + $0x5f8] sm:$0xff] }
 0x20b   : > { %v9853_v17 = vmul.f32 %v1512_v32, %v936_v51  ;;  %v9857_v48 = vpop.f32.mrb[5].mxu0  ;;  %v7237_v34 = vpop.eup %7236  ;;  %v1517_v53 = vadd.f32 1.0, %v7235_v25  ;;  %v1140_v50 = vmul.f32 0.70710677, %v9832_v58  ;;  %v9867_v51 = vld [vmem:[%s7580_s26 + $0x5e0] sm:$0xff] }
 0x20c   : > { %11381 = vst [vmem:[#allocation172_spill] sm:$0xff] %v9844_v20  ;;  %2717 = vmatmul.mubr.f32.gmra.mrb[86].mxu1 %v9844_v20  ;;  %v9860_v52 = vmul.f32 %v1515_v22, %v939_v61  ;;  %v7239_v11 = vpop.eup %7238  ;;  %v1514_v32 = vadd.f32 1.0, %v7237_v34  ;;  %7252 = verf.f32 %v1138_v15  ;;  %v1143_v61 = vmul.f32 0.70710677, %v9839_v33  ;;  %v9873_v22 = vld [vmem:[%s7580_s26 + $0x5f0] sm:$0xff]  ;;  %v9875_v5 = vpop.f32.mrb[6].mxu1 }
 0x20d   : > { %11382 = vst [vmem:[#allocation173_spill] sm:$0xff] %v9853_v17  ;;  %3070 = vmatmul.mubr.f32.gmra.mrb[86].mxu0 %v9853_v17  ;;  %v7241_v25 = vpop.eup %7240  ;;  %v9878_v6 = vmul.f32 %v1517_v53, %v941_v4  ;;  %v1516_v20 = vadd.f32 1.0, %v7239_v11  ;;  %v945_v17 = vmul.f32 0.5, %v9758_v37  ;;  %7254 = verf.f32 %v1140_v50  ;;  %v2205_v34 = vld [vmem:[%s7586_s24 + $0x618] sm:$0xff]  ;;  %v9883_v15 = vpop.f32.mrb[6].mxu0 }
 0x20e   : > { %11383 = vst [vmem:[#allocation174_spill] sm:$0xff] %v9860_v52  ;;  %2722 = vmatprep.mubr.f32.mxu1 %v9860_v52  ;;  %v9885_v8 = vpop.f32.mrb[7].mxu1  ;;  %v9887_v36 = vmul.f32 %v1514_v32, %v938_v40  ;;  %v1519_v45 = vadd.f32 1.0, %v7241_v25  ;;  %7256 = verf.f32 %v1143_v61  ;;  %v1145_v35 = vmul.f32 0.70710677, %v9864_v2  ;;  %v2213_v52 = vld [vmem:[%s7586_s24 + $0x658] sm:$0xff] }
 0x20f   : > { %11384 = vst [vmem:[#allocation175_spill] sm:$0xff] %v9878_v6  ;;  %v9892_v4 = vpop.f32.mrb[7].mxu0  ;;  %v7243_v53 = vpop.eup %7242  ;;  %3075 = vmatprep.mubr.f32.mxu0 %v9878_v6  ;;  %v9895_v37 = vmul.f32 %v1516_v20, %v940_v39  ;;  %v942_v50 = vmul.f32 0.5, %v9767_v12  ;;  %v944_v11 = vmul.f32 0.5, %v9770_v10  ;;  %v1142_v40 = vmul.f32 0.70710677, %v9867_v51 }
 0x210   : > { %11385 = vst [vmem:[#allocation176_spill] sm:$0xff] %v9887_v36  ;;  %v7245_v32 = vpop.eup %7244  ;;  %2723 = vmatmul.mubr.f32.gmra.mrb[88].mxu1 %v9887_v36  ;;  %v9901_v61 = vmul.f32 %v1519_v45, %v943_v42  ;;  %v1521_v25 = vadd.f32 1.0, %v7243_v53  ;;  %7258 = verf.f32 %v1145_v35  ;;  %v1144_v14 = vmul.f32 0.70710677, %v9873_v22  ;;  %v9904_v59 = vpop.f32.mrb[8].mxu1 }
 0x211   : > { %11386 = vst [vmem:[#allocation177_spill] sm:$0xff] %v9895_v37  ;;  %v7247_v6 = vpop.eup %7246  ;;  %3076 = vmatmul.mubr.f32.gmra.mrb[88].mxu0 %v9895_v37  ;;  %v1518_v20 = vadd.f32 1.0, %v7245_v32  ;;  %7260 = verf.f32 %v1142_v40  ;;  %v6320_v12 = vpack.c.bf16 %v2211_v16, %v2205_v34  ;;  %v6448_v10 = vpack.c.bf16 %v2213_v52, %v2207_v31  ;;  %v9907_v39 = vpop.f32.mrb[8].mxu0  ;;  %v1723_v16 = vld [vmem:[#allocation2 + $0x8] sm:$0xff] }
 0x212   : > { %11387 = vst [vmem:[#allocation178_spill] sm:$0xff] %v9901_v61  ;;  %v9909_v54 = vpop.f32.mrb[9].mxu1  ;;  %2728 = vmatprep.mubr.f32.mxu1 %v9901_v61  ;;  %v9912_v45 = vmul.f32 %v1521_v25, %v945_v17  ;;  %v1520_v35 = vadd.f32 1.0, %v7247_v6  ;;  %7262 = verf.f32 %v1144_v14  ;;  %v9914_v42 = vpop.f32.mrb[9].mxu0  ;;  %v947_v37 = vmul.f32 0.5, %v9813_v1  ;;  %v1722_v14 = vld [vmem:[#allocation2] sm:$0xff] }
 0x213   : > { %v9916_v53 = vmul.f32 %v1518_v20, %v942_v50  ;;  %6321 = vmatprep.subr.bf16.mxu1 %v6320_v12  ;;  %6449 = vmatprep.subr.bf16.mxu0 %v6448_v10  ;;  %v7249_v34 = vpop.eup %7248  ;;  %v949_v52 = vmul.f32 0.5, %v9821_v0  ;;  %v946_v17 = vmul.f32 0.5, %v9829_v46  ;;  %v948_v6 = vmul.f32 0.5, %v9832_v58  ;;  %v1728_v25 = vld [vmem:[#allocation2 + $0x30] sm:$0xff]  ;;  %v1729_v46 = vld [vmem:[#allocation2 + $0x38] sm:$0xff] }
 0x214   : > { %11388 = vst [vmem:[#allocation179_spill] sm:$0xff] %v9912_v45  ;;  %3081 = vmatprep.mubr.f32.mxu0 %v9912_v45  ;;  %v9920_v31 = vmul.f32 %v1520_v35, %v944_v11  ;;  %v9925_v40 = vpop.f32.mrb[10].mxu1  ;;  %v7251_v50 = vpop.eup %7250  ;;  %v1523_v1 = vadd.f32 1.0, %v7249_v34  ;;  %v2814_v32 = vadd.f32 %v9783_v9, %v9778_v24  ;;  %v2816_v11 = vadd.f32 %v9794_v43, %v9785_v41 }
 0x215   : > { %11389 = vst [vmem:[#allocation180_spill] sm:$0xff] %v9916_v53  ;;  %2729 = vmatmul.mubr.f32.gmra.mrb[90].mxu1 %v9916_v53  ;;  %v2820_v0 = vadd.f32 %v9815_v60, %v9809_v44  ;;  %v9934_v58 = vpop.f32.mrb[10].mxu0  ;;  %v9936_v20 = vpop.f32.mrb[11].mxu1  ;;  %v1525_v10 = vadd.f32 1.0, %v7251_v50  ;;  %v951_v35 = vmul.f32 0.5, %v9839_v33  ;;  %v953_v24 = vmul.f32 0.5, %v9864_v2 }
 0x216   : > { %11390 = vst [vmem:[#allocation181_spill] sm:$0xff] %v9920_v31  ;;  %v7253_v12 = vpop.eup %7252  ;;  %3082 = vmatmul.mubr.f32.gmra.mrb[90].mxu0 %v9920_v31  ;;  %v2822_v43 = vadd.f32 %v9823_v56, %v9817_v28  ;;  %v9943_v9 = vpop.f32.mrb[11].mxu0  ;;  %v9945_v44 = vmul.f32 %v1523_v1, %v947_v37  ;;  %v4512_v34 = vadd.f32 %v2814_v32, %v1722_v14  ;;  %v1734_v33 = vld [vmem:[#allocation2 + $0x60] sm:$0xff]  ;;  %v950_v2 = vmul.f32 0.5, %v9867_v51  ;;  %v1735_v14 = vld [vmem:[#allocation2 + $0x68] sm:$0xff] }
 0x217   : > { %v7255_v41 = vpop.eup %7254  ;;  %v1522_v60 = vadd.f32 1.0, %v7253_v12  ;;  %v4513_v45 = vadd.f32 %v2816_v11, %v1723_v16  ;;  %v9947_v61 = vmul.f32 %v1525_v10, %v949_v52  ;;  %v4518_v50 = vadd.f32 %v2820_v0, %v1728_v25  ;;  %v1740_v52 = vld [vmem:[#allocation2 + $0x90] sm:$0xff]  ;;  %v1747_v10 = vld [vmem:[#allocation2 + $0xc8] sm:$0xff] }
 0x218   : > { %v7257_v53 = vpop.eup %7256  ;;  %v1524_v31 = vadd.f32 1.0, %v7255_v41  ;;  %v4519_v36 = vadd.f32 %v2822_v43, %v1729_v46  ;;  %v9949_v26 = vpop.f32.mrb[12].mxu1  ;;  %2734 = vmatprep.mubr.f32.mxu1 %v9945_v44  ;;  %v952_v37 = vmul.f32 0.5, %v9873_v22  ;;  %4800 = vst [vmem:[#allocation2] sm:$0xff] %v4512_v34  ;;  %v2828_v51 = vadd.f32 %v9857_v48, %v9850_v21  ;;  %v9985_v43 = vld [vmem:[%s7586_s24 + $0x620] sm:$0xff]  ;;  %v9988_v41 = vld [vmem:[%s7586_s24 + $0x650] sm:$0xff] }
 0x219   : > { %v9952_v28 = vmul.f32 %v1522_v60, %v946_v17  ;;  %v1527_v56 = vadd.f32 1.0, %v7257_v53  ;;  %4801 = vst [vmem:[#allocation2 + $0x8] sm:$0xff] %v4513_v45  ;;  %v2498_v16 = vpop.f32.mrb[13].mxu1  ;;  %3087 = vmatprep.mubr.f32.mxu0 %v9947_v61  ;;  %4806 = vst [vmem:[#allocation2 + $0x30] sm:$0xff] %v4518_v50  ;;  %v2826_v17 = vadd.f32 %v9848_v19, %v9841_v47  ;;  %v1741_v45 = vld [vmem:[#allocation2 + $0x98] sm:$0xff]  ;;  %v1746_v53 = vld [vmem:[#allocation2 + $0xc0] sm:$0xff] }
 0x21a   : > { %v7259_v1 = vpop.eup %7258  ;;  %v9957_v32 = vmul.f32 %v1524_v31, %v948_v6  ;;  %4807 = vst [vmem:[#allocation2 + $0x38] sm:$0xff] %v4519_v36  ;;  %v2832_v22 = vadd.f32 %v9883_v15, %v9875_v5  ;;  %v2849_v11 = vpop.f32.mrb[12].mxu0  ;;  %v2834_v47 = vadd.f32 %v9892_v4, %v9885_v8  ;;  %v2838_v19 = vadd.f32 %v9907_v39, %v9904_v59  ;;  %v9974_v15 = vld [vmem:[%s7586_s24 + $0x610] sm:$0xff]  ;;  %v9977_v6 = vld [vmem:[%s7586_s24 + $0x640] sm:$0xff] }
 0x21b   : > { %v7261_v25 = vpop.eup %7260  ;;  %2735 = vmatmul.mubr.f32.gmra.mrb[92].mxu1 %v9952_v28  ;;  %v9966_v31 = vmul.f32 %v1527_v56, %v951_v35  ;;  %v1529_v36 = vadd.f32 1.0, %v7259_v1  ;;  %v2851_v21 = vpop.f32.mrb[13].mxu0  ;;  %v4524_v0 = vadd.f32 %v2826_v17, %v1734_v33  ;;  %v4525_v46 = vadd.f32 %v2828_v51, %v1735_v14  ;;  %v1753_v56 = vld [vmem:[#allocation2 + $0xf8] sm:$0xff]  ;;  %v1759_v14 = vld [vmem:[#allocation2 + $0x128] sm:$0xff] }
 0x21c   : > { %v7263_v48 = vpop.eup %7262  ;;  %3088 = vmatmul.mubr.f32.gmra.mrb[92].mxu0 %v9957_v32  ;;  %v1526_v5 = vadd.f32 1.0, %v7261_v25  ;;  %v4530_v12 = vadd.f32 %v2832_v22, %v1740_v52  ;;  %v4531_v59 = vadd.f32 %v2834_v47, %v1741_v45  ;;  %v4536_v39 = vadd.f32 %v2838_v19, %v1746_v53  ;;  %v1764_v22 = vld [vmem:[#allocation2 + $0x150] sm:$0xff]  ;;  %v2219_v53 = vld [vmem:[%s7586_s24 + $0x688] sm:$0xff]  ;;  %v2225_v25 = vld [vmem:[%s7586_s24 + $0x6b8] sm:$0xff] }
 0x21d   : > { %2740 = vmatprep.mubr.f32.mxu1 %v9966_v31  ;;  %v9980_v8 = vmul.f32 %v1529_v36, %v953_v24  ;;  %v1528_v4 = vadd.f32 1.0, %v7263_v48  ;;  %4812 = vst [vmem:[#allocation2 + $0x60] sm:$0xff] %v4524_v0  ;;  %4813 = vst [vmem:[#allocation2 + $0x68] sm:$0xff] %v4525_v46  ;;  %v2840_v60 = vadd.f32 %v9914_v42, %v9909_v54  ;;  %v1752_v24 = vld [vmem:[#allocation2 + $0xf0] sm:$0xff]  ;;  %v2217_v54 = vld [vmem:[%s7586_s24 + $0x678] sm:$0xff] }
 0x21e   : > { %v9982_v35 = vmul.f32 %v1526_v5, %v950_v2  ;;  %4818 = vst [vmem:[#allocation2 + $0x90] sm:$0xff] %v4530_v12  ;;  %v6322_v50 = vpack.c.bf16 %v9977_v6, %v9974_v15  ;;  %4819 = vst [vmem:[#allocation2 + $0x98] sm:$0xff] %v4531_v59  ;;  %v2844_v33 = vadd.f32 %v9934_v58, %v9925_v40  ;;  %v1758_v2 = vld [vmem:[#allocation2 + $0x120] sm:$0xff]  ;;  %v2223_v42 = vld [vmem:[%s7586_s24 + $0x6a8] sm:$0xff] }
 0x21f   : > { %3093 = vmatprep.mubr.f32.mxu0 %v9980_v8  ;;  %v9993_v34 = vmul.f32 %v1528_v4, %v952_v37  ;;  %4824 = vst [vmem:[#allocation2 + $0xc0] sm:$0xff] %v4536_v39  ;;  %v2502_v52 = vpop.f32.mrb[14].mxu1  ;;  %v4537_v37 = vadd.f32 %v2840_v60, %v1747_v10  ;;  %v2846_v1 = vadd.f32 %v9943_v9, %v9936_v20  ;;  %v1765_v36 = vld [vmem:[#allocation2 + $0x158] sm:$0xff]  ;;  %v2222_v5 = vld [vmem:[%s7586_s24 + $0x6a0] sm:$0xff]  ;;  %v2224_v6 = vld [vmem:[%s7586_s24 + $0x6b0] sm:$0xff] }
 0x220   : > { %2741 = vmatmul.mubr.f32.gmra.mrb[94].mxu1 %v9982_v35  ;;  %v2850_v17 = vadd.f32 %v2849_v11, %v9949_v26  ;;  %v2852_v51 = vadd.f32 %v2851_v21, %v2498_v16  ;;  %v2855_v40 = vpop.f32.mrb[14].mxu0  ;;  %v2504_v58 = vpop.f32.mrb[15].mxu1  ;;  %v6450_v45 = vpack.c.bf16 %v9988_v41, %v9985_v43  ;;  %v4542_v20 = vadd.f32 %v2844_v33, %v1752_v24  ;;  %v2216_v16 = vld [vmem:[%s7586_s24 + $0x670] sm:$0xff]  ;;  %v2218_v15 = vld [vmem:[%s7586_s24 + $0x680] sm:$0xff]  ;;  %v2229_v12 = vld [vmem:[%s7586_s24 + $0x6d8] sm:$0xff] }
 0x221   : > { %3094 = vmatmul.mubr.f32.gmra.mrb[94].mxu0 %v9993_v34  ;;  %3164 = vmatprep.mubr.f32.mxu1 %v8241_v27  ;;  %v2856_v9 = vadd.f32 %v2855_v40, %v2502_v52  ;;  %v2857_v26 = vpop.f32.mrb[15].mxu0  ;;  %4825 = vst [vmem:[#allocation2 + $0xc8] sm:$0xff] %v4537_v37  ;;  %v4543_v11 = vadd.f32 %v2846_v1, %v1753_v56  ;;  %v2235_v4 = vld [vmem:[%s7586_s24 + $0x708] sm:$0xff]  ;;  %v1770_v39 = vld [vmem:[#allocation2 + $0x180] sm:$0xff]  ;;  %v2237_v60 = vld [vmem:[%s7586_s24 + $0x718] sm:$0xff] }
 0x222   : > { %3870 = vmatprep.mubr.f32.mxu0 %v8241_v27  ;;  %v4548_v47 = vadd.f32 %v2850_v17, %v1758_v2  ;;  %v4549_v19 = vadd.f32 %v2852_v51, %v1759_v14  ;;  %v2858_v21 = vadd.f32 %v2857_v26, %v2504_v58  ;;  %v6324_v48 = vpack.c.bf16 %v2223_v42, %v2217_v54  ;;  %v2231_v41 = vld [vmem:[%s7586_s24 + $0x6e8] sm:$0xff]  ;;  %v2228_v52 = vld [vmem:[%s7586_s24 + $0x6d0] sm:$0xff]  ;;  %v2234_v54 = vld [vmem:[%s7586_s24 + $0x700] sm:$0xff] }
 0x223   : > { %4830 = vst [vmem:[#allocation2 + $0xf0] sm:$0xff] %v4542_v20  ;;  %v4554_v0 = vadd.f32 %v2856_v9, %v1764_v22  ;;  %v2508_v46 = vpop.f32.mrb[16].mxu1  ;;  %v6452_v27 = vpack.c.bf16 %v2225_v25, %v2219_v53  ;;  %4831 = vst [vmem:[#allocation2 + $0xf8] sm:$0xff] %v4543_v11  ;;  %v1771_v33 = vld [vmem:[#allocation2 + $0x188] sm:$0xff]  ;;  %v6326_v2 = vpack.c.bf16 %v2222_v5, %v2216_v16  ;;  %v2230_v42 = vld [vmem:[%s7586_s24 + $0x6e0] sm:$0xff] }
 0x224   : > { %3165 = vmatmul.mubr.f32.vlgmr.msra.gmra.mrb[96].mxu1 %v8312_v49  ;;  %4836 = vst [vmem:[#allocation2 + $0x120] sm:$0xff] %v4548_v47  ;;  %4837 = vst [vmem:[#allocation2 + $0x128] sm:$0xff] %v4549_v19  ;;  %v4555_v59 = vadd.f32 %v2858_v21, %v1765_v36  ;;  %v2861_v10 = vpop.f32.mrb[16].mxu0  ;;  %v2510_v43 = vpop.f32.mrb[17].mxu1  ;;  %v6456_v1 = vpack.c.bf16 %v2237_v60, %v2231_v41  ;;  %v2236_v17 = vld [vmem:[%s7586_s24 + $0x710] sm:$0xff]  ;;  %v2241_v51 = vld [vmem:[%s7586_s24 + $0x738] sm:$0xff]  ;;  %v6330_v9 = vpack.c.bf16 %v2234_v54, %v2228_v52 }
 0x225   : > { %3871 = vmatmul.mubr.f32.vlgmr.msra.gmra.mrb[96].mxu0 %v8312_v49  ;;  %6323 = vmatpush1.bf16.msra.mxu1 %v6322_v50  ;;  %4842 = vst [vmem:[#allocation2 + $0x150] sm:$0xff] %v4554_v0  ;;  %v2862_v24 = vadd.f32 %v2861_v10, %v2508_v46  ;;  %v2863_v56 = vpop.f32.mrb[17].mxu0  ;;  %v6454_v49 = vpack.c.bf16 %v2224_v6, %v2218_v15  ;;  %v2247_v22 = vld [vmem:[%s7586_s24 + $0x768] sm:$0xff]  ;;  %v1776_v53 = vld [vmem:[#allocation2 + $0x1b0] sm:$0xff]  ;;  %v2246_v19 = vld [vmem:[%s7586_s24 + $0x760] sm:$0xff] }
 0x226   : > { %6451 = vmatpush1.bf16.msra.mxu0 %v6450_v45  ;;  %3170 = vmatprep.mubr.f32.mxu1 %v8333_v57  ;;  %4843 = vst [vmem:[#allocation2 + $0x158] sm:$0xff] %v4555_v59  ;;  %v2864_v14 = vadd.f32 %v2863_v56, %v2510_v43  ;;  %v6328_v50 = vpack.c.bf16 %v2235_v4, %v2229_v12  ;;  %v2249_v45 = vld [vmem:[%s7586_s24 + $0x778] sm:$0xff]  ;;  %v2240_v47 = vld [vmem:[%s7586_s24 + $0x730] sm:$0xff]  ;;  %v2242_v21 = vld [vmem:[%s7586_s24 + $0x740] sm:$0xff] }
 0x227   : > { %3876 = vmatprep.mubr.f32.mxu0 %v8333_v57  ;;  %6325 = vmatprep.subr.bf16.mxu1 %v6324_v48  ;;  %v4560_v37 = vadd.f32 %v2862_v24, %v1770_v39  ;;  %v2514_v58 = vpop.f32.mrb[18].mxu1  ;;  %v2243_v57 = vld [vmem:[%s7586_s24 + $0x748] sm:$0xff]  ;;  %v6458_v16 = vpack.c.bf16 %v2236_v17, %v2230_v42  ;;  %v6332_v11 = vpack.c.bf16 %v2247_v22, %v2241_v51  ;;  %v2248_v5 = vld [vmem:[%s7586_s24 + $0x770] sm:$0xff]  ;;  %v2253_v15 = vld [vmem:[%s7586_s24 + $0x798] sm:$0xff] }
 0x228   : > { %3171 = vmatmul.mubr.f32.gmra.mrb[98].mxu1 %v8352_v18  ;;  %6453 = vmatprep.subr.bf16.mxu0 %v6452_v27  ;;  %v4561_v40 = vadd.f32 %v2864_v14, %v1771_v33  ;;  %v2867_v25 = vpop.f32.mrb[18].mxu0  ;;  %v2516_v20 = vpop.f32.mrb[19].mxu1  ;;  %v2259_v6 = vld [vmem:[%s7586_s24 + $0x7c8] sm:$0xff]  ;;  %v2261_v27 = vld [vmem:[%s7586_s24 + $0x7d8] sm:$0xff]  ;;  %v6334_v59 = vpack.c.bf16 %v2246_v19, %v2240_v47  ;;  %v2252_v39 = vld [vmem:[%s7586_s24 + $0x790] sm:$0xff] }
 0x229   : > { %3877 = vmatmul.mubr.f32.gmra.mrb[98].mxu0 %v8352_v18  ;;  %3176 = vmatprep.mubr.f32.mxu1 %v8366_v55  ;;  %4848 = vst [vmem:[#allocation2 + $0x180] sm:$0xff] %v4560_v37  ;;  %v2868_v36 = vadd.f32 %v2867_v25, %v2514_v58  ;;  %v1777_v18 = vld [vmem:[#allocation2 + $0x1b8] sm:$0xff]  ;;  %v2869_v26 = vpop.f32.mrb[19].mxu0  ;;  %v2255_v46 = vld [vmem:[%s7586_s24 + $0x7a8] sm:$0xff]  ;;  %v2258_v10 = vld [vmem:[%s7586_s24 + $0x7c0] sm:$0xff]  ;;  %v6336_v41 = vpack.c.bf16 %v2259_v6, %v2253_v15 }
 0x22a   : > { %3882 = vmatprep.mubr.f32.mxu0 %v8366_v55  ;;  %6327 = vmatpush1.bf16.msra.mxu1 %v6326_v2  ;;  %4849 = vst [vmem:[#allocation2 + $0x188] sm:$0xff] %v4561_v40  ;;  %v2870_v48 = vadd.f32 %v2869_v26, %v2516_v20  ;;  %v6460_v55 = vpack.c.bf16 %v2249_v45, %v2243_v57  ;;  %v2254_v60 = vld [vmem:[%s7586_s24 + $0x7a0] sm:$0xff]  ;;  %v2260_v24 = vld [vmem:[%s7586_s24 + $0x7d0] sm:$0xff]  ;;  %v1783_v14 = vld [vmem:[#allocation2 + $0x1e8] sm:$0xff] }
 0x22b   : > { %6455 = vmatpush1.bf16.msra.mxu0 %v6454_v49  ;;  %6329 = vmatprep.subr.bf16.mxu1 %v6328_v50  ;;  %v4566_v0 = vadd.f32 %v2868_v36, %v1776_v53  ;;  %v1782_v33 = vld [vmem:[#allocation2 + $0x1e0] sm:$0xff]  ;;  %v2265_v50 = vld [vmem:[%s7586_s24 + $0x7f8] sm:$0xff]  ;;  %v2271_v52 = vld [vmem:[%s7586_s24 + $0x828] sm:$0xff]  ;;  %v6466_v22 = vpack.c.bf16 %v2260_v24, %v2254_v60 }
 0x22c   : > { %3177 = vmatmul.mubr.f32.gmra.mrb[100].mxu1 %v8395_v62  ;;  %6457 = vmatprep.subr.bf16.mxu0 %v6456_v1  ;;  %v4567_v12 = vadd.f32 %v2870_v48, %v1777_v18  ;;  %v2267_v42 = vld [vmem:[%s7586_s24 + $0x808] sm:$0xff]  ;;  %v2273_v37 = vld [vmem:[%s7586_s24 + $0x838] sm:$0xff]  ;;  %v6338_v1 = vpack.c.bf16 %v2258_v10, %v2252_v39  ;;  %v2264_v51 = vld [vmem:[%s7586_s24 + $0x7f0] sm:$0xff] }
 0x22d   : > { %3883 = vmatmul.mubr.f32.gmra.mrb[100].mxu0 %v8395_v62  ;;  %3182 = vmatprep.mubr.f32.mxu1 %v8413_v3  ;;  %v2520_v4 = vpop.f32.mrb[20].mxu1  ;;  %4854 = vst [vmem:[#allocation2 + $0x1b0] sm:$0xff] %v4566_v0  ;;  %v6462_v62 = vpack.c.bf16 %v2248_v5, %v2242_v21  ;;  %v2270_v58 = vld [vmem:[%s7586_s24 + $0x820] sm:$0xff]  ;;  %v2272_v45 = vld [vmem:[%s7586_s24 + $0x830] sm:$0xff]  ;;  %v2277_v36 = vld [vmem:[%s7586_s24 + $0x858] sm:$0xff] }
 0x22e   : > { %3888 = vmatprep.mubr.f32.mxu0 %v8413_v3  ;;  %6331 = vmatpush1.bf16.msra.mxu1 %v6330_v9  ;;  %v2522_v43 = vpop.f32.mrb[21].mxu1  ;;  %4855 = vst [vmem:[#allocation2 + $0x1b8] sm:$0xff] %v4567_v12  ;;  %v2873_v56 = vpop.f32.mrb[20].mxu0  ;;  %v6464_v3 = vpack.c.bf16 %v2261_v27, %v2255_v46  ;;  %v2266_v57 = vld [vmem:[%s7586_s24 + $0x800] sm:$0xff]  ;;  %v1788_v25 = vld [vmem:[#allocation2 + $0x210] sm:$0xff]  ;;  %v2283_v18 = vld [vmem:[%s7586_s24 + $0x888] sm:$0xff]  ;;  %v6342_v21 = vpack.c.bf16 %v2270_v58, %v2264_v51 }
 0x22f   : > { %6459 = vmatpush1.bf16.msra.mxu0 %v6458_v16  ;;  %6333 = vmatprep.subr.bf16.mxu1 %v6332_v11  ;;  %v2874_v2 = vadd.f32 %v2873_v56, %v2520_v4  ;;  %v2875_v49 = vpop.f32.mrb[21].mxu0  ;;  %v1789_v16 = vld [vmem:[#allocation2 + $0x218] sm:$0xff]  ;;  %v2279_v47 = vld [vmem:[%s7586_s24 + $0x868] sm:$0xff]  ;;  %v6344_v5 = vpack.c.bf16 %v2283_v18, %v2277_v36  ;;  %v2276_v15 = vld [vmem:[%s7586_s24 + $0x850] sm:$0xff] }
 0x230   : > { %3183 = vmatmul.mubr.f32.gmra.mrb[102].mxu1 %v8440_v63  ;;  %6461 = vmatprep.subr.bf16.mxu0 %v6460_v55  ;;  %v2876_v54 = vadd.f32 %v2875_v49, %v2522_v43  ;;  %v2285_v19 = vld [vmem:[%s7586_s24 + $0x898] sm:$0xff]  ;;  %v2282_v6 = vld [vmem:[%s7586_s24 + $0x880] sm:$0xff]  ;;  %v2284_v12 = vld [vmem:[%s7586_s24 + $0x890] sm:$0xff] }
 0x231   : > { %3889 = vmatmul.mubr.f32.gmra.mrb[102].mxu0 %v8440_v63  ;;  %3188 = vmatprep.mubr.f32.mxu1 %v8450_v30  ;;  %v4572_v17 = vadd.f32 %v2874_v2, %v1782_v33  ;;  %v6340_v63 = vpack.c.bf16 %v2271_v52, %v2265_v50  ;;  %v2278_v0 = vld [vmem:[%s7586_s24 + $0x860] sm:$0xff]  ;;  %v6472_v27 = vpack.c.bf16 %v2285_v19, %v2279_v47  ;;  %v2289_v4 = vld [vmem:[%s7586_s24 + $0x8b8] sm:$0xff]  ;;  %v1795_v24 = vld [vmem:[#allocation2 + $0x248] sm:$0xff] }
 0x232   : > { %3894 = vmatprep.mubr.f32.mxu0 %v8450_v30  ;;  %6335 = vmatpush1.bf16.msra.mxu1 %v6334_v59  ;;  %v4573_v40 = vadd.f32 %v2876_v54, %v1783_v14  ;;  %v6468_v30 = vpack.c.bf16 %v2273_v37, %v2267_v42  ;;  %v2295_v59 = vld [vmem:[%s7586_s24 + $0x8e8] sm:$0xff]  ;;  %v1794_v39 = vld [vmem:[#allocation2 + $0x240] sm:$0xff]  ;;  %v6346_v33 = vpack.c.bf16 %v2282_v6, %v2276_v15  ;;  %v2288_v14 = vld [vmem:[%s7586_s24 + $0x8b0] sm:$0xff] }
 0x233   : > { %6463 = vmatpush1.bf16.msra.mxu0 %v6462_v62  ;;  %6337 = vmatprep.subr.bf16.mxu1 %v6336_v41  ;;  %v2526_v53 = vpop.f32.mrb[22].mxu1  ;;  %4860 = vst [vmem:[#allocation2 + $0x1e0] sm:$0xff] %v4572_v17  ;;  %v2291_v62 = vld [vmem:[%s7586_s24 + $0x8c8] sm:$0xff]  ;;  %v2297_v41 = vld [vmem:[%s7586_s24 + $0x8f8] sm:$0xff]  ;;  %v6348_v2 = vpack.c.bf16 %v2295_v59, %v2289_v4  ;;  %v2294_v49 = vld [vmem:[%s7586_s24 + $0x8e0] sm:$0xff] }
 0x234   : > { %3189 = vmatmul.mubr.f32.gmra.mrb[104].mxu1 %v8470_v13  ;;  %6465 = vmatprep.subr.bf16.mxu0 %v6464_v3  ;;  %v2879_v20 = vpop.f32.mrb[22].mxu0  ;;  %v2528_v9 = vpop.f32.mrb[23].mxu1  ;;  %4861 = vst [vmem:[#allocation2 + $0x1e8] sm:$0xff] %v4573_v40  ;;  %v6474_v3 = vpack.c.bf16 %v2284_v12, %v2278_v0  ;;  %v2290_v50 = vld [vmem:[%s7586_s24 + $0x8c0] sm:$0xff]  ;;  %v6476_v52 = vpack.c.bf16 %v2297_v41, %v2291_v62  ;;  %v2296_v54 = vld [vmem:[%s7586_s24 + $0x8f0] sm:$0xff]  ;;  %v2301_v42 = vld [vmem:[%s7586_s24 + $0x918] sm:$0xff] }
 0x235   : > { %3895 = vmatmul.mubr.f32.gmra.mrb[104].mxu0 %v8470_v13  ;;  %3194 = vmatprep.mubr.f32.mxu1 %v8482_v38  ;;  %v2880_v26 = vadd.f32 %v2879_v20, %v2526_v53  ;;  %v2881_v11 = vpop.f32.mrb[23].mxu0  ;;  %v6470_v13 = vpack.c.bf16 %v2272_v45, %v2266_v57  ;;  %v2307_v37 = vld [vmem:[%s7586_s24 + $0x948] sm:$0xff]  ;;  %v1801_v58 = vld [vmem:[#allocation2 + $0x278] sm:$0xff]  ;;  %v6350_v57 = vpack.c.bf16 %v2294_v49, %v2288_v14  ;;  %v2306_v20 = vld [vmem:[%s7586_s24 + $0x940] sm:$0xff] }
 0x236   : > { %3900 = vmatprep.mubr.f32.mxu0 %v8482_v38  ;;  %6339 = vmatpush1.bf16.msra.mxu1 %v6338_v1  ;;  %v2882_v48 = vadd.f32 %v2881_v11, %v2528_v9  ;;  %v11391_v1 = vld [vmem:[#allocation26_spill] sm:$0xff]  ;;  %v2303_v51 = vld [vmem:[%s7586_s24 + $0x928] sm:$0xff]  ;;  %v6478_v53 = vpack.c.bf16 %v2296_v54, %v2290_v50  ;;  %v2302_v9 = vld [vmem:[%s7586_s24 + $0x920] sm:$0xff] }
 0x237   : > { %6467 = vmatpush1.bf16.msra.mxu0 %v6466_v22  ;;  %6341 = vmatprep.subr.bf16.mxu1 %v6340_v63  ;;  %v4578_v55 = vadd.f32 %v2880_v26, %v1788_v25  ;;  %v2309_v22 = vld [vmem:[%s7586_s24 + $0x958] sm:$0xff]  ;;  %v1800_v63 = vld [vmem:[#allocation2 + $0x270] sm:$0xff]  ;;  %v11392_v36 = vld [vmem:[#allocation28_spill] sm:$0xff] }
 0x238   : > { %3195 = vmatmul.mubr.f32.gmra.mrb[106].mxu1 %v8499_v29  ;;  %6469 = vmatprep.subr.bf16.mxu0 %v6468_v30  ;;  %v4579_v38 = vadd.f32 %v2882_v48, %v1789_v16  ;;  %v2532_v46 = vpop.f32.mrb[24].mxu1  ;;  %v6352_v30 = vpack.c.bf16 %v2307_v37, %v2301_v42  ;;  %v2300_v25 = vld [vmem:[%s7586_s24 + $0x910] sm:$0xff]  ;;  %v6480_v16 = vpack.c.bf16 %v2309_v22, %v2303_v51  ;;  %v2313_v47 = vld [vmem:[%s7586_s24 + $0x978] sm:$0xff]  ;;  %v2319_v19 = vld [vmem:[%s7586_s24 + $0x9a8] sm:$0xff] }
 0x239   : > { %3901 = vmatmul.mubr.f32.gmra.mrb[106].mxu0 %v8499_v29  ;;  %3200 = vmatprep.mubr.f32.mxu1 %v8519_v7  ;;  %4866 = vst [vmem:[#allocation2 + $0x210] sm:$0xff] %v4578_v55  ;;  %v2885_v10 = vpop.f32.mrb[24].mxu0  ;;  %v2534_v43 = vpop.f32.mrb[25].mxu1  ;;  %v2308_v11 = vld [vmem:[%s7586_s24 + $0x950] sm:$0xff]  ;;  %v2321_v55 = vld [vmem:[%s7586_s24 + $0x9b8] sm:$0xff]  ;;  %v1806_v15 = vld [vmem:[#allocation2 + $0x2a0] sm:$0xff]  ;;  %v6354_v6 = vpack.c.bf16 %v2306_v20, %v2300_v25 }
 0x23a   : > { %3906 = vmatprep.mubr.f32.mxu0 %v8519_v7  ;;  %6343 = vmatpush1.bf16.msra.mxu1 %v6342_v21  ;;  %4867 = vst [vmem:[#allocation2 + $0x218] sm:$0xff] %v4579_v38  ;;  %v2886_v60 = vadd.f32 %v2885_v10, %v2532_v46  ;;  %v2887_v29 = vpop.f32.mrb[25].mxu0  ;;  %v11393_v21 = vld [vmem:[#allocation30_spill] sm:$0xff]  ;;  %v6482_v46 = vpack.c.bf16 %v2308_v11, %v2302_v9  ;;  %v2318_v4 = vld [vmem:[%s7586_s24 + $0x9a0] sm:$0xff]  ;;  %v2333_v14 = vld [vmem:[%s7586_s24 + $0xa18] sm:$0xff] }
 0x23b   : > { %6471 = vmatpush1.bf16.msra.mxu0 %v6470_v13  ;;  %v2888_v56 = vadd.f32 %v2887_v29, %v2534_v43  ;;  %6345 = vmatprep.subr.bf16.mxu1 %v6344_v5  ;;  %v2315_v13 = vld [vmem:[%s7586_s24 + $0x988] sm:$0xff]  ;;  %v2312_v12 = vld [vmem:[%s7586_s24 + $0x970] sm:$0xff]  ;;  %v2314_v59 = vld [vmem:[%s7586_s24 + $0x980] sm:$0xff] }
 0x23c   : > { %3201 = vmatmul.mubr.f32.gmra.mrb[108].mxu1 %v8543_v23  ;;  %v4584_v7 = vadd.f32 %v2886_v60, %v1794_v39  ;;  %6473 = vmatprep.subr.bf16.mxu0 %v6472_v27  ;;  %v6356_v27 = vpack.c.bf16 %v2319_v19, %v2313_v47  ;;  %v11394_v39 = vld [vmem:[#allocation32_spill] sm:$0xff]  ;;  %v6484_v62 = vpack.c.bf16 %v2321_v55, %v2315_v13  ;;  %v2320_v41 = vld [vmem:[%s7586_s24 + $0x9b0] sm:$0xff]  ;;  %v2325_v60 = vld [vmem:[%s7586_s24 + $0x9d8] sm:$0xff] }
 0x23d   : > { %3907 = vmatmul.mubr.f32.gmra.mrb[108].mxu0 %v8543_v23  ;;  %3206 = vmatprep.mubr.f32.mxu1 %v11391_v1  ;;  %v4585_v17 = vadd.f32 %v2888_v56, %v1795_v24  ;;  %v2331_v24 = vld [vmem:[%s7586_s24 + $0xa08] sm:$0xff]  ;;  %v11395_v29 = vld [vmem:[#allocation34_spill] sm:$0xff]  ;;  %v6358_v50 = vpack.c.bf16 %v2318_v4, %v2312_v12  ;;  %v2330_v37 = vld [vmem:[%s7586_s24 + $0xa00] sm:$0xff] }
 0x23e   : > { %3912 = vmatprep.mubr.f32.mxu0 %v11391_v1  ;;  %4872 = vst [vmem:[#allocation2 + $0x240] sm:$0xff] %v4584_v7  ;;  %v2538_v40 = vpop.f32.mrb[26].mxu1  ;;  %6347 = vmatpush1.bf16.msra.mxu1 %v6346_v33  ;;  %v1807_v56 = vld [vmem:[#allocation2 + $0x2a8] sm:$0xff]  ;;  %v6360_v54 = vpack.c.bf16 %v2331_v24, %v2325_v60  ;;  %v2324_v42 = vld [vmem:[%s7586_s24 + $0x9d0] sm:$0xff]  ;;  %v2326_v1 = vld [vmem:[%s7586_s24 + $0x9e0] sm:$0xff] }
 0x23f   : > { %4873 = vst [vmem:[#allocation2 + $0x248] sm:$0xff] %v4585_v17  ;;  %v2891_v23 = vpop.f32.mrb[26].mxu0  ;;  %v2540_v45 = vpop.f32.mrb[27].mxu1  ;;  %6475 = vmatpush1.bf16.msra.mxu0 %v6474_v3  ;;  %6349 = vmatprep.subr.bf16.mxu1 %v6348_v2  ;;  %v2327_v2 = vld [vmem:[%s7586_s24 + $0x9e8] sm:$0xff]  ;;  %v11396_v17 = vld [vmem:[#allocation36_spill] sm:$0xff]  ;;  %v2345_v20 = vld [vmem:[%s7586_s24 + $0xa78] sm:$0xff] }
 0x240   : > { %3207 = vmatmul.mubr.f32.gmra.mrb[110].mxu1 %v11392_v36  ;;  %v2892_v18 = vadd.f32 %v2891_v23, %v2538_v40  ;;  %v2893_v26 = vpop.f32.mrb[27].mxu0  ;;  %6477 = vmatprep.subr.bf16.mxu0 %v6476_v52  ;;  %v6486_v52 = vpack.c.bf16 %v2320_v41, %v2314_v59  ;;  %v6488_v40 = vpack.c.bf16 %v2333_v14, %v2327_v2  ;;  %v11397_v23 = vld [vmem:[#allocation38_spill] sm:$0xff]  ;;  %v2339_v25 = vld [vmem:[%s7586_s24 + $0xa48] sm:$0xff]  ;;  %v11398_v13 = vld [vmem:[#allocation40_spill] sm:$0xff] }
 0x241   : > { %3913 = vmatmul.mubr.f32.gmra.mrb[110].mxu0 %v11392_v36  ;;  %3212 = vmatprep.mubr.f32.mxu1 %v11393_v21  ;;  %v2894_v48 = vadd.f32 %v2893_v26, %v2540_v45  ;;  %v1812_v45 = vld [vmem:[#allocation2 + $0x2d0] sm:$0xff]  ;;  %v1813_v36 = vld [vmem:[#allocation2 + $0x2d8] sm:$0xff]  ;;  %v6362_v26 = vpack.c.bf16 %v2330_v37, %v2324_v42  ;;  %v1818_v59 = vld [vmem:[#allocation2 + $0x300] sm:$0xff] }
 0x242   : > { %3918 = vmatprep.mubr.f32.mxu0 %v11393_v21  ;;  %v4590_v5 = vadd.f32 %v2892_v18, %v1800_v63  ;;  %6351 = vmatpush1.bf16.msra.mxu1 %v6350_v57  ;;  %v2544_v38 = vpop.f32.mrb[28].mxu1  ;;  %v2332_v63 = vld [vmem:[%s7586_s24 + $0xa10] sm:$0xff]  ;;  %v2343_v57 = vld [vmem:[%s7586_s24 + $0xa68] sm:$0xff]  ;;  %v2342_v21 = vld [vmem:[%s7586_s24 + $0xa60] sm:$0xff] }
 0x243   : > { %v4591_v0 = vadd.f32 %v2894_v48, %v1801_v58  ;;  %6479 = vmatpush1.bf16.msra.mxu0 %v6478_v53  ;;  %6353 = vmatprep.subr.bf16.mxu1 %v6352_v30  ;;  %v2897_v10 = vpop.f32.mrb[28].mxu0  ;;  %v2546_v43 = vpop.f32.mrb[29].mxu1  ;;  %v2337_v58 = vld [vmem:[%s7586_s24 + $0xa38] sm:$0xff]  ;;  %v6490_v11 = vpack.c.bf16 %v2332_v63, %v2326_v1  ;;  %v2336_v19 = vld [vmem:[%s7586_s24 + $0xa30] sm:$0xff]  ;;  %v2338_v48 = vld [vmem:[%s7586_s24 + $0xa40] sm:$0xff] }
 0x244   : > { %3213 = vmatmul.mubr.f32.gmra.mrb[112].mxu1 %v11394_v39  ;;  %4878 = vst [vmem:[#allocation2 + $0x270] sm:$0xff] %v4590_v5  ;;  %6481 = vmatprep.subr.bf16.mxu0 %v6480_v16  ;;  %v2898_v33 = vadd.f32 %v2897_v10, %v2544_v38  ;;  %v2899_v3 = vpop.f32.mrb[29].mxu0  ;;  %v6364_v47 = vpack.c.bf16 %v2343_v57, %v2337_v58  ;;  %v11399_v38 = vld [vmem:[#allocation42_spill] sm:$0xff]  ;;  %v2357_v12 = vld [vmem:[%s7586_s24 + $0xad8] sm:$0xff]  ;;  %v2363_v42 = vld [vmem:[%s7586_s24 + $0xb08] sm:$0xff] }
 0x245   : > { %3919 = vmatmul.mubr.f32.gmra.mrb[112].mxu0 %v11394_v39  ;;  %3218 = vmatprep.mubr.f32.mxu1 %v11395_v29  ;;  %4879 = vst [vmem:[#allocation2 + $0x278] sm:$0xff] %v4591_v0  ;;  %v2900_v49 = vadd.f32 %v2899_v3, %v2546_v43  ;;  %v6492_v5 = vpack.c.bf16 %v2345_v20, %v2339_v25  ;;  %v2355_v0 = vld [vmem:[%s7586_s24 + $0xac8] sm:$0xff]  ;;  %v2348_v24 = vld [vmem:[%s7586_s24 + $0xa90] sm:$0xff]  ;;  %v2369_v37 = vld [vmem:[%s7586_s24 + $0xb38] sm:$0xff] }
 0x246   : > { %3924 = vmatprep.mubr.f32.mxu0 %v11395_v29  ;;  %6355 = vmatpush1.bf16.msra.mxu1 %v6354_v6  ;;  %v4596_v7 = vadd.f32 %v2898_v33, %v1806_v15  ;;  %v2344_v15 = vld [vmem:[%s7586_s24 + $0xa70] sm:$0xff]  ;;  %v2349_v6 = vld [vmem:[%s7586_s24 + $0xa98] sm:$0xff]  ;;  %v1819_v39 = vld [vmem:[#allocation2 + $0x308] sm:$0xff]  ;;  %v6366_v10 = vpack.c.bf16 %v2342_v21, %v2336_v19  ;;  %v6500_v20 = vpack.c.bf16 %v2369_v37, %v2363_v42 }
 0x247   : > { %6483 = vmatpush1.bf16.msra.mxu0 %v6482_v46  ;;  %6357 = vmatprep.subr.bf16.mxu1 %v6356_v27  ;;  %v4597_v51 = vadd.f32 %v2900_v49, %v1807_v56  ;;  %v2351_v27 = vld [vmem:[%s7586_s24 + $0xaa8] sm:$0xff]  ;;  %v6494_v41 = vpack.c.bf16 %v2344_v15, %v2338_v48  ;;  %v6368_v60 = vpack.c.bf16 %v2355_v0, %v2349_v6  ;;  %v2354_v29 = vld [vmem:[%s7586_s24 + $0xac0] sm:$0xff]  ;;  %v2356_v49 = vld [vmem:[%s7586_s24 + $0xad0] sm:$0xff] }
 0x248   : > { %3219 = vmatmul.mubr.f32.gmra.mrb[114].mxu1 %v11396_v17  ;;  %v2550_v22 = vpop.f32.mrb[30].mxu1  ;;  %6485 = vmatprep.subr.bf16.mxu0 %v6484_v62  ;;  %4884 = vst [vmem:[#allocation2 + $0x2a0] sm:$0xff] %v4596_v7  ;;  %v2350_v33 = vld [vmem:[%s7586_s24 + $0xaa0] sm:$0xff]  ;;  %v6496_v14 = vpack.c.bf16 %v2357_v12, %v2351_v27  ;;  %v2367_v7 = vld [vmem:[%s7586_s24 + $0xb28] sm:$0xff]  ;;  %v2360_v57 = vld [vmem:[%s7586_s24 + $0xaf0] sm:$0xff] }
 0x249   : > { %3925 = vmatmul.mubr.f32.gmra.mrb[114].mxu0 %v11396_v17  ;;  %3224 = vmatprep.mubr.f32.mxu1 %v11397_v23  ;;  %v2903_v53 = vpop.f32.mrb[30].mxu0  ;;  %v2552_v30 = vpop.f32.mrb[31].mxu1  ;;  %4885 = vst [vmem:[#allocation2 + $0x2a8] sm:$0xff] %v4597_v51  ;;  %v11400_v56 = vld [vmem:[#allocation44_spill] sm:$0xff]  ;;  %v1824_v17 = vld [vmem:[#allocation2 + $0x330] sm:$0xff]  ;;  %v6370_v51 = vpack.c.bf16 %v2354_v29, %v2348_v24  ;;  %v6498_v63 = vpack.c.bf16 %v2356_v49, %v2350_v33  ;;  %v2375_v19 = vld [vmem:[%s7586_s24 + $0xb68] sm:$0xff] }
 0x24a   : > { %3930 = vmatprep.mubr.f32.mxu0 %v11397_v23  ;;  %v2904_v9 = vadd.f32 %v2903_v53, %v2550_v22  ;;  %v2905_v18 = vpop.f32.mrb[31].mxu0  ;;  %6359 = vmatpush1.bf16.msra.mxu1 %v6358_v50  ;;  %v2361_v50 = vld [vmem:[%s7586_s24 + $0xaf8] sm:$0xff]  ;;  %v2366_v23 = vld [vmem:[%s7586_s24 + $0xb20] sm:$0xff]  ;;  %v2372_v6 = vld [vmem:[%s7586_s24 + $0xb50] sm:$0xff] }
 0x24b   : > { %v2906_v16 = vadd.f32 %v2905_v18, %v2552_v30  ;;  %6487 = vmatpush1.bf16.msra.mxu0 %v6486_v52  ;;  %6361 = vmatprep.subr.bf16.mxu1 %v6360_v54  ;;  %v11401_v52 = vld [vmem:[#allocation46_spill] sm:$0xff]  ;;  %v6372_v58 = vpack.c.bf16 %v2367_v7, %v2361_v50  ;;  %v11402_v53 = vld [vmem:[#allocation48_spill] sm:$0xff]  ;;  %v2379_v18 = vld [vmem:[%s7586_s24 + $0xb88] sm:$0xff] }
 0x24c   : > { %3225 = vmatmul.mubr.f32.gmra.mrb[116].mxu1 %v11398_v13  ;;  %v4602_v55 = vadd.f32 %v2904_v9, %v1812_v45  ;;  %6489 = vmatprep.subr.bf16.mxu0 %v6488_v40  ;;  %v2362_v45 = vld [vmem:[%s7586_s24 + $0xb00] sm:$0xff]  ;;  %v2368_v9 = vld [vmem:[%s7586_s24 + $0xb30] sm:$0xff]  ;;  %v2381_v21 = vld [vmem:[%s7586_s24 + $0xb98] sm:$0xff] }
 0x24d   : > { %3931 = vmatmul.mubr.f32.gmra.mrb[116].mxu0 %v11398_v13  ;;  %3230 = vmatprep.mubr.f32.mxu1 %v11399_v38  ;;  %v4603_v46 = vadd.f32 %v2906_v16, %v1813_v36  ;;  %v2373_v36 = vld [vmem:[%s7586_s24 + $0xb58] sm:$0xff]  ;;  %v6374_v13 = vpack.c.bf16 %v2366_v23, %v2360_v57  ;;  %v2378_v0 = vld [vmem:[%s7586_s24 + $0xb80] sm:$0xff]  ;;  %v2387_v24 = vld [vmem:[%s7586_s24 + $0xbc8] sm:$0xff] }
 0x24e   : > { %3936 = vmatprep.mubr.f32.mxu0 %v11399_v38  ;;  %4890 = vst [vmem:[#allocation2 + $0x2d0] sm:$0xff] %v4602_v55  ;;  %v2556_v4 = vpop.f32.mrb[32].mxu1  ;;  %6363 = vmatpush1.bf16.msra.mxu1 %v6362_v26  ;;  %v11403_v26 = vld [vmem:[#allocation50_spill] sm:$0xff]  ;;  %v6376_v15 = vpack.c.bf16 %v2379_v18, %v2373_v36  ;;  %v2374_v38 = vld [vmem:[%s7586_s24 + $0xb60] sm:$0xff]  ;;  %v2393_v29 = vld [vmem:[%s7586_s24 + $0xbf8] sm:$0xff] }
 0x24f   : > { %4891 = vst [vmem:[#allocation2 + $0x2d8] sm:$0xff] %v4603_v46  ;;  %v2909_v43 = vpop.f32.mrb[32].mxu0  ;;  %v2558_v62 = vpop.f32.mrb[33].mxu1  ;;  %6491 = vmatpush1.bf16.msra.mxu0 %v6490_v11  ;;  %6365 = vmatprep.subr.bf16.mxu1 %v6364_v47  ;;  %v1825_v11 = vld [vmem:[#allocation2 + $0x338] sm:$0xff]  ;;  %v11404_v46 = vld [vmem:[#allocation52_spill] sm:$0xff]  ;;  %v2384_v7 = vld [vmem:[%s7586_s24 + $0xbb0] sm:$0xff]  ;;  %v6508_v37 = vpack.c.bf16 %v2393_v29, %v2387_v24 }
 0x250   : > { %3231 = vmatmul.mubr.f32.gmra.mrb[118].mxu1 %v11400_v56  ;;  %v2910_v3 = vadd.f32 %v2909_v43, %v2556_v4  ;;  %v2911_v2 = vpop.f32.mrb[33].mxu0  ;;  %6493 = vmatprep.subr.bf16.mxu0 %v6492_v5  ;;  %v6502_v5 = vpack.c.bf16 %v2368_v9, %v2362_v45  ;;  %v6504_v4 = vpack.c.bf16 %v2381_v21, %v2375_v19  ;;  %v11405_v43 = vld [vmem:[#allocation54_spill] sm:$0xff] }
 0x251   : > { %3937 = vmatmul.mubr.f32.gmra.mrb[118].mxu0 %v11400_v56  ;;  %3236 = vmatprep.mubr.f32.mxu1 %v11401_v52  ;;  %v2912_v54 = vadd.f32 %v2911_v2, %v2558_v62  ;;  %v1830_v62 = vld [vmem:[#allocation2 + $0x360] sm:$0xff]  ;;  %v1831_v56 = vld [vmem:[#allocation2 + $0x368] sm:$0xff]  ;;  %v6378_v2 = vpack.c.bf16 %v2378_v0, %v2372_v6  ;;  %v11409_v9 = vld [vmem:[#allocation62_spill] sm:$0xff] }
 0x252   : > { %3942 = vmatprep.mubr.f32.mxu0 %v11401_v52  ;;  %v4608_v1 = vadd.f32 %v2910_v3, %v1818_v59  ;;  %6367 = vmatpush1.bf16.msra.mxu1 %v6366_v10  ;;  %v2380_v59 = vld [vmem:[%s7586_s24 + $0xb90] sm:$0xff]  ;;  %v2391_v10 = vld [vmem:[%s7586_s24 + $0xbe8] sm:$0xff]  ;;  %v2390_v52 = vld [vmem:[%s7586_s24 + $0xbe0] sm:$0xff] }
 0x253   : > { %v4609_v22 = vadd.f32 %v2912_v54, %v1819_v39  ;;  %v2562_v40 = vpop.f32.mrb[34].mxu1  ;;  %6495 = vmatpush1.bf16.msra.mxu0 %v6494_v41  ;;  %6369 = vmatprep.subr.bf16.mxu1 %v6368_v60  ;;  %v2385_v39 = vld [vmem:[%s7586_s24 + $0xbb8] sm:$0xff]  ;;  %v6506_v49 = vpack.c.bf16 %v2380_v59, %v2374_v38  ;;  %v11406_v54 = vld [vmem:[#allocation56_spill] sm:$0xff]  ;;  %v11415_v24 = vld [vmem:[#allocation74_spill] sm:$0xff] }
 0x254   : > { %3237 = vmatmul.mubr.f32.gmra.mrb[120].mxu1 %v11402_v53  ;;  %4896 = vst [vmem:[#allocation2 + $0x300] sm:$0xff] %v4608_v1  ;;  %v2915_v30 = vpop.f32.mrb[34].mxu0  ;;  %v2564_v25 = vpop.f32.mrb[35].mxu1  ;;  %6497 = vmatprep.subr.bf16.mxu0 %v6496_v14  ;;  %v6380_v50 = vpack.c.bf16 %v2391_v10, %v2385_v39  ;;  %v2386_v1 = vld [vmem:[%s7586_s24 + $0xbc0] sm:$0xff]  ;;  %v1849_v10 = vld [vmem:[#allocation2 + $0x3f8] sm:$0xff] }
 0x255   : > { %3943 = vmatmul.mubr.f32.gmra.mrb[120].mxu0 %v11402_v53  ;;  %3242 = vmatprep.mubr.f32.mxu1 %v11403_v26  ;;  %4897 = vst [vmem:[#allocation2 + $0x308] sm:$0xff] %v4609_v22  ;;  %v2916_v16 = vadd.f32 %v2915_v30, %v2562_v40  ;;  %v2917_v47 = vpop.f32.mrb[35].mxu0  ;;  %v11408_v53 = vld [vmem:[#allocation60_spill] sm:$0xff] }
 0x256   : > { %3948 = vmatprep.mubr.f32.mxu0 %v11403_v26  ;;  %v2918_v48 = vadd.f32 %v2917_v47, %v2564_v25  ;;  %6371 = vmatpush1.bf16.msra.mxu1 %v6370_v51  ;;  %v11407_v51 = vld [vmem:[#allocation58_spill] sm:$0xff]  ;;  %v1837_v25 = vld [vmem:[#allocation2 + $0x398] sm:$0xff]  ;;  %v1842_v47 = vld [vmem:[#allocation2 + $0x3c0] sm:$0xff] }
 0x257   : > { %v4614_v55 = vadd.f32 %v2916_v16, %v1824_v17  ;;  %6499 = vmatpush1.bf16.msra.mxu0 %v6498_v63  ;;  %6373 = vmatprep.subr.bf16.mxu1 %v6372_v58  ;;  %v2568_v12 = vpop.f32.mrb[36].mxu1  ;;  %v2392_v17 = vld [vmem:[%s7586_s24 + $0xbf0] sm:$0xff]  ;;  %v6382_v63 = vpack.c.bf16 %v2390_v52, %v2384_v7  ;;  %v11412_v0 = vld [vmem:[#allocation68_spill] sm:$0xff] }
 0x258   : > { %3243 = vmatmul.mubr.f32.gmra.mrb[122].mxu1 %v11404_v46  ;;  %v4615_v27 = vadd.f32 %v2918_v48, %v1825_v11  ;;  %6501 = vmatprep.subr.bf16.mxu0 %v6500_v20  ;;  %v2570_v60 = vpop.f32.mrb[37].mxu1  ;;  %v1836_v58 = vld [vmem:[#allocation2 + $0x390] sm:$0xff]  ;;  %v6510_v45 = vpack.c.bf16 %v2392_v17, %v2386_v1  ;;  %v11410_v11 = vld [vmem:[#allocation64_spill] sm:$0xff] }
 0x259   : > { %3949 = vmatmul.mubr.f32.gmra.mrb[122].mxu0 %v11404_v46  ;;  %3248 = vmatprep.mubr.f32.mxu1 %v11405_v43  ;;  %4902 = vst [vmem:[#allocation2 + $0x330] sm:$0xff] %v4614_v55  ;;  %v2921_v41 = vpop.f32.mrb[36].mxu0  ;;  %v11411_v48 = vld [vmem:[#allocation66_spill] sm:$0xff]  ;;  %v1843_v55 = vld [vmem:[#allocation2 + $0x3c8] sm:$0xff]  ;;  %v11418_v17 = vld [vmem:[#allocation80_spill] sm:$0xff] }
 0x25a   : > { %3954 = vmatprep.mubr.f32.mxu0 %v11405_v43  ;;  %4903 = vst [vmem:[#allocation2 + $0x338] sm:$0xff] %v4615_v27  ;;  %v2922_v33 = vadd.f32 %v2921_v41, %v2568_v12  ;;  %v2923_v3 = vpop.f32.mrb[37].mxu0  ;;  %6375 = vmatpush1.bf16.msra.mxu1 %v6374_v13  ;;  %v11413_v27 = vld [vmem:[#allocation70_spill] sm:$0xff]  ;;  %v11414_v41 = vld [vmem:[#allocation72_spill] sm:$0xff] }
 0x25b   : > { %v2924_v14 = vadd.f32 %v2923_v3, %v2570_v60  ;;  %6503 = vmatpush1.bf16.msra.mxu0 %v6502_v5  ;;  %6377 = vmatprep.subr.bf16.mxu1 %v6376_v15  ;;  %v1848_v12 = vld [vmem:[#allocation2 + $0x3f0] sm:$0xff] }
 0x25c   : > { %3249 = vmatmul.mubr.f32.gmra.mrb[124].mxu1 %v11406_v54  ;;  %v4620_v42 = vadd.f32 %v2922_v33, %v1830_v62  ;;  %6505 = vmatprep.subr.bf16.mxu0 %v6504_v4  ;;  %v11417_v52 = vld [vmem:[#allocation78_spill] sm:$0xff] }
 0x25d   : > { %3955 = vmatmul.mubr.f32.gmra.mrb[124].mxu0 %v11406_v54  ;;  %3254 = vmatprep.mubr.f32.mxu1 %v11407_v51  ;;  %v4621_v22 = vadd.f32 %v2924_v14, %v1831_v56  ;;  %v1854_v56 = vld [vmem:[#allocation2 + $0x420] sm:$0xff] }
 0x25e   : > { %3960 = vmatprep.mubr.f32.mxu0 %v11407_v51  ;;  %4908 = vst [vmem:[#allocation2 + $0x360] sm:$0xff] %v4620_v42  ;;  %v2574_v40 = vpop.f32.mrb[38].mxu1  ;;  %6379 = vmatpush1.bf16.msra.mxu1 %v6378_v2  ;;  %v11416_v14 = vld [vmem:[#allocation76_spill] sm:$0xff]  ;;  %v1860_v51 = vld [vmem:[#allocation2 + $0x450] sm:$0xff] }
 0x25f   : > { %4909 = vst [vmem:[#allocation2 + $0x368] sm:$0xff] %v4621_v22  ;;  %v2927_v57 = vpop.f32.mrb[38].mxu0  ;;  %v2576_v23 = vpop.f32.mrb[39].mxu1  ;;  %6507 = vmatpush1.bf16.msra.mxu0 %v6506_v49  ;;  %6381 = vmatprep.subr.bf16.mxu1 %v6380_v50  ;;  %v1855_v50 = vld [vmem:[#allocation2 + $0x428] sm:$0xff] }
 0x260   : > { %3255 = vmatmul.mubr.f32.gmra.mrb[126].mxu1 %v11408_v53  ;;  %v2928_v30 = vadd.f32 %v2927_v57, %v2574_v40  ;;  %v2929_v20 = vpop.f32.mrb[39].mxu0  ;;  %6509 = vmatprep.subr.bf16.mxu0 %v6508_v37  ;;  %v1861_v57 = vld [vmem:[#allocation2 + $0x458] sm:$0xff] }
 0x261   : > { %3961 = vmatmul.mubr.f32.gmra.mrb[126].mxu0 %v11408_v53  ;;  %3260 = vmatprep.mubr.f32.mxu1 %v11409_v9  ;;  %v2930_v36 = vadd.f32 %v2929_v20, %v2576_v23 }
 0x262   : > { %3966 = vmatprep.mubr.f32.mxu0 %v11409_v9  ;;  %v4626_v18 = vadd.f32 %v2928_v30, %v1836_v58  ;;  %6383 = vmatpush1.bf16.msra.mxu1 %v6382_v63  ;;  %v11419_v63 = vld [vmem:[#allocation82_spill] sm:$0xff]  ;;  %v11420_v30 = vld [vmem:[#allocation84_spill] sm:$0xff] }
 0x263   : > { %v4627_v26 = vadd.f32 %v2930_v36, %v1837_v25  ;;  %v2580_v16 = vpop.f32.mrb[40].mxu1  ;;  %6511 = vmatpush1.bf16.msra.mxu0 %v6510_v45  ;;  %v11421_v9 = vld [vmem:[#allocation86_spill] sm:$0xff]  ;;  %v1866_v36 = vld [vmem:[#allocation2 + $0x480] sm:$0xff] }
 0x264   : > { %3261 = vmatmul.mubr.f32.gmra.mrb[128].mxu1 %v11410_v11  ;;  %4914 = vst [vmem:[#allocation2 + $0x390] sm:$0xff] %v4626_v18  ;;  %v2933_v19 = vpop.f32.mrb[40].mxu0  ;;  %v2582_v21 = vpop.f32.mrb[41].mxu1 }
 0x265   : > { %3967 = vmatmul.mubr.f32.gmra.mrb[128].mxu0 %v11410_v11  ;;  %3266 = vmatprep.mubr.f32.mxu1 %v11411_v48  ;;  %4915 = vst [vmem:[#allocation2 + $0x398] sm:$0xff] %v4627_v26  ;;  %v2934_v13 = vadd.f32 %v2933_v19, %v2580_v16  ;;  %v2935_v5 = vpop.f32.mrb[41].mxu0  ;;  %v1867_v11 = vld [vmem:[#allocation2 + $0x488] sm:$0xff] }
 0x266   : > { %3972 = vmatprep.mubr.f32.mxu0 %v11411_v48  ;;  %v2936_v15 = vadd.f32 %v2935_v5, %v2582_v21  ;;  %v11422_v21 = vld [vmem:[#allocation88_spill] sm:$0xff] }
 0x267   : > { %v4632_v6 = vadd.f32 %v2934_v13, %v1842_v47  ;;  %v11423_v13 = vld [vmem:[#allocation90_spill] sm:$0xff] }
 0x268   : > { %3267 = vmatmul.mubr.f32.gmra.mrb[130].mxu1 %v11412_v0  ;;  %v4633_v38 = vadd.f32 %v2936_v15, %v1843_v55  ;;  %v2586_v46 = vpop.f32.mrb[42].mxu1  ;;  %v1872_v15 = vld [vmem:[#allocation2 + $0x4b0] sm:$0xff] }
 0x269   : > { %3973 = vmatmul.mubr.f32.gmra.mrb[130].mxu0 %v11412_v0  ;;  %3272 = vmatprep.mubr.f32.mxu1 %v11413_v27  ;;  %4920 = vst [vmem:[#allocation2 + $0x3c0] sm:$0xff] %v4632_v6  ;;  %v2939_v4 = vpop.f32.mrb[42].mxu0  ;;  %v2588_v59 = vpop.f32.mrb[43].mxu1 }
 0x26a   : > { %3978 = vmatprep.mubr.f32.mxu0 %v11413_v27  ;;  %4921 = vst [vmem:[#allocation2 + $0x3c8] sm:$0xff] %v4633_v38  ;;  %v2940_v39 = vadd.f32 %v2939_v4, %v2586_v46  ;;  %v2941_v43 = vpop.f32.mrb[43].mxu0  ;;  %v11424_v38 = vld [vmem:[#allocation92_spill] sm:$0xff]  ;;  %v1873_v27 = vld [vmem:[#allocation2 + $0x4b8] sm:$0xff]  ;;  %v11425_v4 = vld [vmem:[#allocation94_spill] sm:$0xff] }
 0x26b   : > { %v2942_v62 = vadd.f32 %v2941_v43, %v2588_v59 }
 0x26c   : > { %3273 = vmatmul.mubr.f32.gmra.mrb[132].mxu1 %v11414_v41  ;;  %v4638_v60 = vadd.f32 %v2940_v39, %v1848_v12 }
 0x26d   : > { %3979 = vmatmul.mubr.f32.gmra.mrb[132].mxu0 %v11414_v41  ;;  %3278 = vmatprep.mubr.f32.mxu1 %v11415_v24  ;;  %v4639_v29 = vadd.f32 %v2942_v62, %v1849_v10  ;;  %v11426_v62 = vld [vmem:[#allocation96_spill] sm:$0xff] }
 0x26e   : > { %3984 = vmatprep.mubr.f32.mxu0 %v11415_v24  ;;  %4926 = vst [vmem:[#allocation2 + $0x3f0] sm:$0xff] %v4638_v60  ;;  %v2592_v33 = vpop.f32.mrb[44].mxu1  ;;  %v1878_v41 = vld [vmem:[#allocation2 + $0x4e0] sm:$0xff] }
 0x26f   : > { %4927 = vst [vmem:[#allocation2 + $0x3f8] sm:$0xff] %v4639_v29  ;;  %v2945_v3 = vpop.f32.mrb[44].mxu0  ;;  %v2594_v2 = vpop.f32.mrb[45].mxu1  ;;  %v11427_v29 = vld [vmem:[#allocation98_spill] sm:$0xff] }
 0x270   : > { %3279 = vmatmul.mubr.f32.gmra.mrb[134].mxu1 %v11416_v14  ;;  %v2946_v49 = vadd.f32 %v2945_v3, %v2592_v33  ;;  %v2947_v7 = vpop.f32.mrb[45].mxu0 }
 0x271   : > { %3985 = vmatmul.mubr.f32.gmra.mrb[134].mxu0 %v11416_v14  ;;  %3284 = vmatprep.mubr.f32.mxu1 %v11417_v52  ;;  %v2948_v54 = vadd.f32 %v2947_v7, %v2594_v2 }
 0x272   : > { %3990 = vmatprep.mubr.f32.mxu0 %v11417_v52  ;;  %v4644_v42 = vadd.f32 %v2946_v49, %v1854_v56  ;;  %v1879_v56 = vld [vmem:[#allocation2 + $0x4e8] sm:$0xff]  ;;  %v11428_v49 = vld [vmem:[#allocation100_spill] sm:$0xff]  ;;  %v11429_v52 = vld [vmem:[#allocation102_spill] sm:$0xff] }
 0x273   : > { %v4645_v37 = vadd.f32 %v2948_v54, %v1855_v50  ;;  %v2598_v1 = vpop.f32.mrb[46].mxu1  ;;  %v1884_v54 = vld [vmem:[#allocation2 + $0x510] sm:$0xff] }
 0x274   : > { %3285 = vmatmul.mubr.f32.gmra.mrb[136].mxu1 %v11418_v17  ;;  %4932 = vst [vmem:[#allocation2 + $0x420] sm:$0xff] %v4644_v42  ;;  %v2951_v22 = vpop.f32.mrb[46].mxu0  ;;  %v2600_v40 = vpop.f32.mrb[47].mxu1 }
 0x275   : > { %3991 = vmatmul.mubr.f32.gmra.mrb[136].mxu0 %v11418_v17  ;;  %3290 = vmatprep.mubr.f32.mxu1 %v11419_v63  ;;  %4933 = vst [vmem:[#allocation2 + $0x428] sm:$0xff] %v4645_v37  ;;  %v2952_v58 = vadd.f32 %v2951_v22, %v2598_v1  ;;  %v2953_v23 = vpop.f32.mrb[47].mxu0  ;;  %v1885_v17 = vld [vmem:[#allocation2 + $0x518] sm:$0xff] }
 0x276   : > { %3996 = vmatprep.mubr.f32.mxu0 %v11419_v63  ;;  %v2954_v45 = vadd.f32 %v2953_v23, %v2600_v40  ;;  %v11430_v40 = vld [vmem:[#allocation104_spill] sm:$0xff] }
 0x277   : > { %v4650_v53 = vadd.f32 %v2952_v58, %v1860_v51  ;;  %v2604_v20 = vpop.f32.mrb[48].mxu1  ;;  %v11431_v58 = vld [vmem:[#allocation106_spill] sm:$0xff] }
 0x278   : > { %3291 = vmatmul.mubr.f32.gmra.mrb[138].mxu1 %v11420_v30  ;;  %v4651_v25 = vadd.f32 %v2954_v45, %v1861_v57  ;;  %v2606_v26 = vpop.f32.mrb[49].mxu1  ;;  %v1890_v45 = vld [vmem:[#allocation2 + $0x540] sm:$0xff] }
 0x279   : > { %3997 = vmatmul.mubr.f32.gmra.mrb[138].mxu0 %v11420_v30  ;;  %3296 = vmatprep.mubr.f32.mxu1 %v11421_v9  ;;  %4938 = vst [vmem:[#allocation2 + $0x450] sm:$0xff] %v4650_v53  ;;  %v2957_v18 = vpop.f32.mrb[48].mxu0 }
 0x27a   : > { %4002 = vmatprep.mubr.f32.mxu0 %v11421_v9  ;;  %4939 = vst [vmem:[#allocation2 + $0x458] sm:$0xff] %v4651_v25  ;;  %v2958_v16 = vadd.f32 %v2957_v18, %v2604_v20  ;;  %v2959_v47 = vpop.f32.mrb[49].mxu0  ;;  %v11432_v25 = vld [vmem:[#allocation108_spill] sm:$0xff]  ;;  %v1891_v9 = vld [vmem:[#allocation2 + $0x548] sm:$0xff]  ;;  %v11433_v18 = vld [vmem:[#allocation110_spill] sm:$0xff] }
 0x27b   : > { %v2960_v19 = vadd.f32 %v2959_v47, %v2606_v26 }
 0x27c   : > { %3297 = vmatmul.mubr.f32.gmra.mrb[140].mxu1 %v11422_v21  ;;  %v4656_v48 = vadd.f32 %v2958_v16, %v1866_v36 }
 0x27d   : > { %4003 = vmatmul.mubr.f32.gmra.mrb[140].mxu0 %v11422_v21  ;;  %3302 = vmatprep.mubr.f32.mxu1 %v11423_v13  ;;  %v4657_v55 = vadd.f32 %v2960_v19, %v1867_v11  ;;  %v11434_v19 = vld [vmem:[#allocation112_spill] sm:$0xff]  ;;  %v1896_v21 = vld [vmem:[#allocation2 + $0x570] sm:$0xff] }
 0x27e   : > { %4008 = vmatprep.mubr.f32.mxu0 %v11423_v13  ;;  %4944 = vst [vmem:[#allocation2 + $0x480] sm:$0xff] %v4656_v48  ;;  %v2610_v5 = vpop.f32.mrb[50].mxu1 }
 0x27f   : > { %4945 = vst [vmem:[#allocation2 + $0x488] sm:$0xff] %v4657_v55  ;;  %v2963_v6 = vpop.f32.mrb[50].mxu0  ;;  %v2612_v0 = vpop.f32.mrb[51].mxu1  ;;  %v11435_v55 = vld [vmem:[#allocation114_spill] sm:$0xff] }
 0x280   : > { %3303 = vmatmul.mubr.f32.gmra.mrb[142].mxu1 %v11424_v38  ;;  %v2964_v46 = vadd.f32 %v2963_v6, %v2610_v5  ;;  %v2965_v12 = vpop.f32.mrb[51].mxu0 }
 0x281   : > { %4009 = vmatmul.mubr.f32.gmra.mrb[142].mxu0 %v11424_v38  ;;  %3308 = vmatprep.mubr.f32.mxu1 %v11425_v4  ;;  %v2966_v59 = vadd.f32 %v2965_v12, %v2612_v0 }
 0x282   : > { %4014 = vmatprep.mubr.f32.mxu0 %v11425_v4  ;;  %v4662_v39 = vadd.f32 %v2964_v46, %v1872_v15  ;;  %v1897_v15 = vld [vmem:[#allocation2 + $0x578] sm:$0xff]  ;;  %v11436_v46 = vld [vmem:[#allocation116_spill] sm:$0xff]  ;;  %v11437_v4 = vld [vmem:[#allocation118_spill] sm:$0xff] }
 0x283   : > { %v4663_v10 = vadd.f32 %v2966_v59, %v1873_v27  ;;  %v2616_v43 = vpop.f32.mrb[52].mxu1  ;;  %v1902_v59 = vld [vmem:[#allocation2 + $0x5a0] sm:$0xff] }
 0x284   : > { %3309 = vmatmul.mubr.f32.gmra.mrb[144].mxu1 %v11426_v62  ;;  %4950 = vst [vmem:[#allocation2 + $0x4b0] sm:$0xff] %v4662_v39  ;;  %v2969_v60 = vpop.f32.mrb[52].mxu0  ;;  %v2618_v24 = vpop.f32.mrb[53].mxu1 }
 0x285   : > { %4015 = vmatmul.mubr.f32.gmra.mrb[144].mxu0 %v11426_v62  ;;  %3314 = vmatprep.mubr.f32.mxu1 %v11427_v29  ;;  %4951 = vst [vmem:[#allocation2 + $0x4b8] sm:$0xff] %v4663_v10  ;;  %v2970_v33 = vadd.f32 %v2969_v60, %v2616_v43  ;;  %v2971_v3 = vpop.f32.mrb[53].mxu0  ;;  %v1903_v62 = vld [vmem:[#allocation2 + $0x5a8] sm:$0xff] }
 0x286   : > { %4020 = vmatprep.mubr.f32.mxu0 %v11427_v29  ;;  %v2972_v2 = vadd.f32 %v2971_v3, %v2618_v24  ;;  %v11438_v24 = vld [vmem:[#allocation120_spill] sm:$0xff] }
 0x287   : > { %v4668_v14 = vadd.f32 %v2970_v33, %v1878_v41  ;;  %v11439_v33 = vld [vmem:[#allocation122_spill] sm:$0xff] }
 0x288   : > { %3315 = vmatmul.mubr.f32.gmra.mrb[146].mxu1 %v11428_v49  ;;  %v4669_v50 = vadd.f32 %v2972_v2, %v1879_v56  ;;  %v2622_v7 = vpop.f32.mrb[54].mxu1  ;;  %v1908_v2 = vld [vmem:[#allocation2 + $0x5d0] sm:$0xff] }
 0x289   : > { %4021 = vmatmul.mubr.f32.gmra.mrb[146].mxu0 %v11428_v49  ;;  %3320 = vmatprep.mubr.f32.mxu1 %v11429_v52  ;;  %4956 = vst [vmem:[#allocation2 + $0x4e0] sm:$0xff] %v4668_v14  ;;  %v2975_v42 = vpop.f32.mrb[54].mxu0  ;;  %v2624_v37 = vpop.f32.mrb[55].mxu1 }
 0x28a   : > { %4026 = vmatprep.mubr.f32.mxu0 %v11429_v52  ;;  %4957 = vst [vmem:[#allocation2 + $0x4e8] sm:$0xff] %v4669_v50  ;;  %v2976_v1 = vadd.f32 %v2975_v42, %v2622_v7  ;;  %v2977_v51 = vpop.f32.mrb[55].mxu0  ;;  %v11440_v50 = vld [vmem:[#allocation124_spill] sm:$0xff]  ;;  %v1909_v52 = vld [vmem:[#allocation2 + $0x5d8] sm:$0xff]  ;;  %v11441_v42 = vld [vmem:[#allocation126_spill] sm:$0xff] }
 0x28b   : > { %v2978_v22 = vadd.f32 %v2977_v51, %v2624_v37 }
 0x28c   : > { %3321 = vmatmul.mubr.f32.gmra.mrb[148].mxu1 %v11430_v40  ;;  %v4674_v63 = vadd.f32 %v2976_v1, %v1884_v54 }
 0x28d   : > { %4027 = vmatmul.mubr.f32.gmra.mrb[148].mxu0 %v11430_v40  ;;  %3326 = vmatprep.mubr.f32.mxu1 %v11431_v58  ;;  %v4675_v57 = vadd.f32 %v2978_v22, %v1885_v17  ;;  %v11442_v22 = vld [vmem:[#allocation128_spill] sm:$0xff] }
 0x28e   : > { %4032 = vmatprep.mubr.f32.mxu0 %v11431_v58  ;;  %4962 = vst [vmem:[#allocation2 + $0x510] sm:$0xff] %v4674_v63  ;;  %v2628_v23 = vpop.f32.mrb[56].mxu1  ;;  %v1914_v40 = vld [vmem:[#allocation2 + $0x600] sm:$0xff] }
 0x28f   : > { %4963 = vst [vmem:[#allocation2 + $0x518] sm:$0xff] %v4675_v57  ;;  %v2981_v53 = vpop.f32.mrb[56].mxu0  ;;  %v2630_v30 = vpop.f32.mrb[57].mxu1  ;;  %v11443_v57 = vld [vmem:[#allocation130_spill] sm:$0xff] }
 0x290   : > { %3327 = vmatmul.mubr.f32.gmra.mrb[150].mxu1 %v11432_v25  ;;  %v2982_v20 = vadd.f32 %v2981_v53, %v2628_v23  ;;  %v2983_v36 = vpop.f32.mrb[57].mxu0 }
 0x291   : > { %4033 = vmatmul.mubr.f32.gmra.mrb[150].mxu0 %v11432_v25  ;;  %3332 = vmatprep.mubr.f32.mxu1 %v11433_v18  ;;  %v2984_v26 = vadd.f32 %v2983_v36, %v2630_v30 }
 0x292   : > { %4038 = vmatprep.mubr.f32.mxu0 %v11433_v18  ;;  %v4680_v16 = vadd.f32 %v2982_v20, %v1890_v45  ;;  %v1915_v45 = vld [vmem:[#allocation2 + $0x608] sm:$0xff]  ;;  %v11444_v20 = vld [vmem:[#allocation132_spill] sm:$0xff]  ;;  %v11445_v18 = vld [vmem:[#allocation134_spill] sm:$0xff] }
 0x293   : > { %v4681_v11 = vadd.f32 %v2984_v26, %v1891_v9  ;;  %v2634_v47 = vpop.f32.mrb[58].mxu1  ;;  %v1920_v26 = vld [vmem:[#allocation2 + $0x630] sm:$0xff] }
 0x294   : > { %3333 = vmatmul.mubr.f32.gmra.mrb[152].mxu1 %v11434_v19  ;;  %4968 = vst [vmem:[#allocation2 + $0x540] sm:$0xff] %v4680_v16  ;;  %v2987_v48 = vpop.f32.mrb[58].mxu0  ;;  %v2636_v13 = vpop.f32.mrb[59].mxu1 }
 0x295   : > { %4039 = vmatmul.mubr.f32.gmra.mrb[152].mxu0 %v11434_v19  ;;  %3338 = vmatprep.mubr.f32.mxu1 %v11435_v55  ;;  %4969 = vst [vmem:[#allocation2 + $0x548] sm:$0xff] %v4681_v11  ;;  %v2988_v5 = vadd.f32 %v2987_v48, %v2634_v47  ;;  %v2989_v6 = vpop.f32.mrb[59].mxu0  ;;  %v1921_v19 = vld [vmem:[#allocation2 + $0x638] sm:$0xff] }
 0x296   : > { %4044 = vmatprep.mubr.f32.mxu0 %v11435_v55  ;;  %v2990_v0 = vadd.f32 %v2989_v6, %v2636_v13  ;;  %v11446_v13 = vld [vmem:[#allocation136_spill] sm:$0xff] }
 0x297   : > { %v4686_v38 = vadd.f32 %v2988_v5, %v1896_v21  ;;  %v2640_v12 = vpop.f32.mrb[60].mxu1  ;;  %v11447_v5 = vld [vmem:[#allocation138_spill] sm:$0xff] }
 0x298   : > { %3339 = vmatmul.mubr.f32.gmra.mrb[154].mxu1 %v11436_v46  ;;  %v4687_v27 = vadd.f32 %v2990_v0, %v1897_v15  ;;  %v2642_v10 = vpop.f32.mrb[61].mxu1  ;;  %v1926_v0 = vld [vmem:[#allocation2 + $0x660] sm:$0xff] }
 0x299   : > { %4045 = vmatmul.mubr.f32.gmra.mrb[154].mxu0 %v11436_v46  ;;  %3344 = vmatprep.mubr.f32.mxu1 %v11437_v4  ;;  %4974 = vst [vmem:[#allocation2 + $0x570] sm:$0xff] %v4686_v38  ;;  %v2993_v39 = vpop.f32.mrb[60].mxu0 }
 0x29a   : > { %4050 = vmatprep.mubr.f32.mxu0 %v11437_v4  ;;  %4975 = vst [vmem:[#allocation2 + $0x578] sm:$0xff] %v4687_v27  ;;  %v2994_v43 = vadd.f32 %v2993_v39, %v2640_v12  ;;  %v2995_v41 = vpop.f32.mrb[61].mxu0  ;;  %v11448_v27 = vld [vmem:[#allocation140_spill] sm:$0xff]  ;;  %v1927_v4 = vld [vmem:[#allocation2 + $0x668] sm:$0xff]  ;;  %v11449_v39 = vld [vmem:[#allocation142_spill] sm:$0xff] }
 0x29b   : > { %v2996_v60 = vadd.f32 %v2995_v41, %v2642_v10 }
 0x29c   : > { %3345 = vmatmul.mubr.f32.gmra.mrb[156].mxu1 %v11438_v24  ;;  %v4692_v29 = vadd.f32 %v2994_v43, %v1902_v59 }
 0x29d   : > { %4051 = vmatmul.mubr.f32.gmra.mrb[156].mxu0 %v11438_v24  ;;  %3350 = vmatprep.mubr.f32.mxu1 %v11439_v33  ;;  %v4693_v56 = vadd.f32 %v2996_v60, %v1903_v62  ;;  %v11450_v60 = vld [vmem:[#allocation144_spill] sm:$0xff]  ;;  %v1932_v24 = vld [vmem:[#allocation2 + $0x690] sm:$0xff] }
 0x29e   : > { %4056 = vmatprep.mubr.f32.mxu0 %v11439_v33  ;;  %4980 = vst [vmem:[#allocation2 + $0x5a0] sm:$0xff] %v4692_v29  ;;  %v2646_v3 = vpop.f32.mrb[62].mxu1 }
 0x29f   : > { %4981 = vst [vmem:[#allocation2 + $0x5a8] sm:$0xff] %v4693_v56  ;;  %v2999_v14 = vpop.f32.mrb[62].mxu0  ;;  %v2648_v49 = vpop.f32.mrb[63].mxu1  ;;  %v11451_v56 = vld [vmem:[#allocation146_spill] sm:$0xff] }
 0x2a0   : > { %3351 = vmatmul.mubr.f32.gmra.mrb[158].mxu1 %v11440_v50  ;;  %v3000_v7 = vadd.f32 %v2999_v14, %v2646_v3  ;;  %v3001_v54 = vpop.f32.mrb[63].mxu0 }
 0x2a1   : > { %4057 = vmatmul.mubr.f32.gmra.mrb[158].mxu0 %v11440_v50  ;;  %3356 = vmatprep.mubr.f32.mxu1 %v11441_v42  ;;  %v3002_v37 = vadd.f32 %v3001_v54, %v2648_v49 }
 0x2a2   : > { %4062 = vmatprep.mubr.f32.mxu0 %v11441_v42  ;;  %v4698_v1 = vadd.f32 %v3000_v7, %v1908_v2  ;;  %v1933_v2 = vld [vmem:[#allocation2 + $0x698] sm:$0xff]  ;;  %v11452_v7 = vld [vmem:[#allocation148_spill] sm:$0xff]  ;;  %v11453_v42 = vld [vmem:[#allocation150_spill] sm:$0xff] }
 0x2a3   : > { %v4699_v17 = vadd.f32 %v3002_v37, %v1909_v52  ;;  %v2652_v51 = vpop.f32.mrb[64].mxu1  ;;  %v1938_v37 = vld [vmem:[#allocation2 + $0x6c0] sm:$0xff] }
 0x2a4   : > { %3357 = vmatmul.mubr.f32.gmra.mrb[160].mxu1 %v11442_v22  ;;  %4986 = vst [vmem:[#allocation2 + $0x5d0] sm:$0xff] %v4698_v1  ;;  %v3005_v63 = vpop.f32.mrb[64].mxu0  ;;  %v2654_v58 = vpop.f32.mrb[65].mxu1 }
 0x2a5   : > { %4063 = vmatmul.mubr.f32.gmra.mrb[160].mxu0 %v11442_v22  ;;  %3362 = vmatprep.mubr.f32.mxu1 %v11443_v57  ;;  %4987 = vst [vmem:[#allocation2 + $0x5d8] sm:$0xff] %v4699_v17  ;;  %v3006_v23 = vadd.f32 %v3005_v63, %v2652_v51  ;;  %v3007_v53 = vpop.f32.mrb[65].mxu0  ;;  %v1939_v22 = vld [vmem:[#allocation2 + $0x6c8] sm:$0xff] }
 0x2a6   : > { %4068 = vmatprep.mubr.f32.mxu0 %v11443_v57  ;;  %v3008_v30 = vadd.f32 %v3007_v53, %v2654_v58  ;;  %v11454_v58 = vld [vmem:[#allocation152_spill] sm:$0xff] }
 0x2a7   : > { %v4704_v25 = vadd.f32 %v3006_v23, %v1914_v40  ;;  %v11455_v23 = vld [vmem:[#allocation154_spill] sm:$0xff] }
 0x2a8   : > { %3363 = vmatmul.mubr.f32.gmra.mrb[162].mxu1 %v11444_v20  ;;  %v4705_v9 = vadd.f32 %v3008_v30, %v1915_v45  ;;  %v2658_v36 = vpop.f32.mrb[66].mxu1  ;;  %v1944_v30 = vld [vmem:[#allocation2 + $0x6f0] sm:$0xff] }
 0x2a9   : > { %4069 = vmatmul.mubr.f32.gmra.mrb[162].mxu0 %v11444_v20  ;;  %3368 = vmatprep.mubr.f32.mxu1 %v11445_v18  ;;  %4992 = vst [vmem:[#allocation2 + $0x600] sm:$0xff] %v4704_v25  ;;  %v3011_v16 = vpop.f32.mrb[66].mxu0  ;;  %v2660_v11 = vpop.f32.mrb[67].mxu1 }
 0x2aa   : > { %4074 = vmatprep.mubr.f32.mxu0 %v11445_v18  ;;  %4993 = vst [vmem:[#allocation2 + $0x608] sm:$0xff] %v4705_v9  ;;  %v3012_v47 = vadd.f32 %v3011_v16, %v2658_v36  ;;  %v3013_v21 = vpop.f32.mrb[67].mxu0  ;;  %v11456_v9 = vld [vmem:[#allocation156_spill] sm:$0xff]  ;;  %v1945_v18 = vld [vmem:[#allocation2 + $0x6f8] sm:$0xff]  ;;  %v11457_v16 = vld [vmem:[#allocation158_spill] sm:$0xff] }
 0x2ab   : > { %v3014_v48 = vadd.f32 %v3013_v21, %v2660_v11 }
 0x2ac   : > { %3369 = vmatmul.mubr.f32.gmra.mrb[164].mxu1 %v11446_v13  ;;  %v4710_v55 = vadd.f32 %v3012_v47, %v1920_v26 }
 0x2ad   : > { %4075 = vmatmul.mubr.f32.gmra.mrb[164].mxu0 %v11446_v13  ;;  %3374 = vmatprep.mubr.f32.mxu1 %v11447_v5  ;;  %v4711_v15 = vadd.f32 %v3014_v48, %v1921_v19  ;;  %v11458_v48 = vld [vmem:[#allocation160_spill] sm:$0xff] }
 0x2ae   : > { %4080 = vmatprep.mubr.f32.mxu0 %v11447_v5  ;;  %4998 = vst [vmem:[#allocation2 + $0x630] sm:$0xff] %v4710_v55  ;;  %v2664_v6 = vpop.f32.mrb[68].mxu1  ;;  %v1950_v13 = vld [vmem:[#allocation2 + $0x720] sm:$0xff] }
 0x2af   : > { %4999 = vst [vmem:[#allocation2 + $0x638] sm:$0xff] %v4711_v15  ;;  %v3017_v38 = vpop.f32.mrb[68].mxu0  ;;  %v2666_v46 = vpop.f32.mrb[69].mxu1  ;;  %v11459_v15 = vld [vmem:[#allocation162_spill] sm:$0xff] }
 0x2b0   : > { %3375 = vmatmul.mubr.f32.gmra.mrb[166].mxu1 %v11448_v27  ;;  %v3018_v12 = vadd.f32 %v3017_v38, %v2664_v6  ;;  %v3019_v59 = vpop.f32.mrb[69].mxu0 }
 0x2b1   : > { %4081 = vmatmul.mubr.f32.gmra.mrb[166].mxu0 %v11448_v27  ;;  %3380 = vmatprep.mubr.f32.mxu1 %v11449_v39  ;;  %v3020_v10 = vadd.f32 %v3019_v59, %v2666_v46 }
 0x2b2   : > { %4086 = vmatprep.mubr.f32.mxu0 %v11449_v39  ;;  %v4716_v43 = vadd.f32 %v3018_v12, %v1926_v0  ;;  %v1951_v0 = vld [vmem:[#allocation2 + $0x728] sm:$0xff]  ;;  %v11460_v12 = vld [vmem:[#allocation164_spill] sm:$0xff]  ;;  %v11461_v39 = vld [vmem:[#allocation166_spill] sm:$0xff] }
 0x2b3   : > { %v4717_v62 = vadd.f32 %v3020_v10, %v1927_v4  ;;  %v2670_v41 = vpop.f32.mrb[70].mxu1  ;;  %v1956_v10 = vld [vmem:[#allocation2 + $0x750] sm:$0xff] }
 0x2b4   : > { %3381 = vmatmul.mubr.f32.gmra.mrb[168].mxu1 %v11450_v60  ;;  %5004 = vst [vmem:[#allocation2 + $0x660] sm:$0xff] %v4716_v43  ;;  %v3023_v29 = vpop.f32.mrb[70].mxu0  ;;  %v2672_v33 = vpop.f32.mrb[71].mxu1 }
 0x2b5   : > { %4087 = vmatmul.mubr.f32.gmra.mrb[168].mxu0 %v11450_v60  ;;  %3386 = vmatprep.mubr.f32.mxu1 %v11451_v56  ;;  %5005 = vst [vmem:[#allocation2 + $0x668] sm:$0xff] %v4717_v62  ;;  %v3024_v3 = vadd.f32 %v3023_v29, %v2670_v41  ;;  %v3025_v14 = vpop.f32.mrb[71].mxu0  ;;  %v1957_v60 = vld [vmem:[#allocation2 + $0x758] sm:$0xff] }
 0x2b6   : > { %4092 = vmatprep.mubr.f32.mxu0 %v11451_v56  ;;  %v3026_v49 = vadd.f32 %v3025_v14, %v2672_v33  ;;  %v11462_v33 = vld [vmem:[#allocation168_spill] sm:$0xff] }
 0x2b7   : > { %v4722_v50 = vadd.f32 %v3024_v3, %v1932_v24  ;;  %v2676_v54 = vpop.f32.mrb[72].mxu1  ;;  %v11463_v3 = vld [vmem:[#allocation170_spill] sm:$0xff] }
 0x2b8   : > { %3387 = vmatmul.mubr.f32.gmra.mrb[170].mxu1 %v11452_v7  ;;  %v4723_v52 = vadd.f32 %v3026_v49, %v1933_v2  ;;  %v2678_v17 = vpop.f32.mrb[73].mxu1  ;;  %v1962_v49 = vld [vmem:[#allocation2 + $0x780] sm:$0xff] }
 0x2b9   : > { %4093 = vmatmul.mubr.f32.gmra.mrb[170].mxu0 %v11452_v7  ;;  %3392 = vmatprep.mubr.f32.mxu1 %v11453_v42  ;;  %5010 = vst [vmem:[#allocation2 + $0x690] sm:$0xff] %v4722_v50  ;;  %v3029_v1 = vpop.f32.mrb[72].mxu0 }
 0x2ba   : > { %4098 = vmatprep.mubr.f32.mxu0 %v11453_v42  ;;  %5011 = vst [vmem:[#allocation2 + $0x698] sm:$0xff] %v4723_v52  ;;  %v3030_v51 = vadd.f32 %v3029_v1, %v2676_v54  ;;  %v3031_v40 = vpop.f32.mrb[73].mxu0  ;;  %v11464_v52 = vld [vmem:[#allocation172_spill] sm:$0xff]  ;;  %v1963_v42 = vld [vmem:[#allocation2 + $0x788] sm:$0xff]  ;;  %v11465_v1 = vld [vmem:[#allocation174_spill] sm:$0xff] }
 0x2bb   : > { %v3032_v63 = vadd.f32 %v3031_v40, %v2678_v17 }
 0x2bc   : > { %3393 = vmatmul.mubr.f32.gmra.mrb[172].mxu1 %v11454_v58  ;;  %v4728_v57 = vadd.f32 %v3030_v51, %v1938_v37 }
 0x2bd   : > { %4099 = vmatmul.mubr.f32.gmra.mrb[172].mxu0 %v11454_v58  ;;  %3398 = vmatprep.mubr.f32.mxu1 %v11455_v23  ;;  %v4729_v45 = vadd.f32 %v3032_v63, %v1939_v22  ;;  %v11466_v63 = vld [vmem:[#allocation176_spill] sm:$0xff]  ;;  %v1968_v58 = vld [vmem:[#allocation2 + $0x7b0] sm:$0xff] }
 0x2be   : > { %4104 = vmatprep.mubr.f32.mxu0 %v11455_v23  ;;  %5016 = vst [vmem:[#allocation2 + $0x6c0] sm:$0xff] %v4728_v57  ;;  %v2682_v53 = vpop.f32.mrb[74].mxu1 }
 0x2bf   : > { %5017 = vst [vmem:[#allocation2 + $0x6c8] sm:$0xff] %v4729_v45  ;;  %v3035_v25 = vpop.f32.mrb[74].mxu0  ;;  %v2684_v20 = vpop.f32.mrb[75].mxu1  ;;  %v11467_v45 = vld [vmem:[#allocation178_spill] sm:$0xff] }
 0x2c0   : > { %3399 = vmatmul.mubr.f32.gmra.mrb[174].mxu1 %v11456_v9  ;;  %v3036_v36 = vadd.f32 %v3035_v25, %v2682_v53  ;;  %v3037_v26 = vpop.f32.mrb[75].mxu0 }
 0x2c1   : > { %4105 = vmatmul.mubr.f32.gmra.mrb[174].mxu0 %v11456_v9  ;;  %3404 = vmatprep.mubr.f32.mxu1 %v11457_v16  ;;  %v3038_v11 = vadd.f32 %v3037_v26, %v2684_v20 }
 0x2c2   : > { %4110 = vmatprep.mubr.f32.mxu0 %v11457_v16  ;;  %v4734_v47 = vadd.f32 %v3036_v36, %v1944_v30  ;;  %v1969_v30 = vld [vmem:[#allocation2 + $0x7b8] sm:$0xff]  ;;  %v11468_v36 = vld [vmem:[#allocation180_spill] sm:$0xff] }
 0x2c3   : > { %v4735_v19 = vadd.f32 %v3038_v11, %v1945_v18  ;;  %v2688_v21 = vpop.f32.mrb[76].mxu1  ;;  %v1974_v16 = vld [vmem:[#allocation2 + $0x7e0] sm:$0xff] }
 0x2c4   : > { %3405 = vmatmul.mubr.f32.gmra.mrb[176].mxu1 %v11458_v48  ;;  %5022 = vst [vmem:[#allocation2 + $0x6f0] sm:$0xff] %v4734_v47  ;;  %v3041_v55 = vpop.f32.mrb[76].mxu0  ;;  %v2690_v5 = vpop.f32.mrb[77].mxu1 }
 0x2c5   : > { %4111 = vmatmul.mubr.f32.gmra.mrb[176].mxu0 %v11458_v48  ;;  %3410 = vmatprep.mubr.f32.mxu1 %v11459_v15  ;;  %5023 = vst [vmem:[#allocation2 + $0x6f8] sm:$0xff] %v4735_v19  ;;  %v3042_v6 = vadd.f32 %v3041_v55, %v2688_v21  ;;  %v3043_v38 = vpop.f32.mrb[77].mxu0  ;;  %v1975_v21 = vld [vmem:[#allocation2 + $0x7e8] sm:$0xff] }
 0x2c6   : > { %4116 = vmatprep.mubr.f32.mxu0 %v11459_v15  ;;  %v3044_v46 = vadd.f32 %v3043_v38, %v2690_v5 }
 0x2c7   : > { %v4740_v27 = vadd.f32 %v3042_v6, %v1950_v13  ;;  %v1980_v6 = vld [vmem:[#allocation2 + $0x810] sm:$0xff] }
 0x2c8   : > { %3411 = vmatmul.mubr.f32.gmra.mrb[178].mxu1 %v11460_v12  ;;  %v4741_v4 = vadd.f32 %v3044_v46, %v1951_v0  ;;  %v2694_v59 = vpop.f32.mrb[78].mxu1  ;;  %v1981_v46 = vld [vmem:[#allocation2 + $0x818] sm:$0xff] }
 0x2c9   : > { %4117 = vmatmul.mubr.f32.gmra.mrb[178].mxu0 %v11460_v12  ;;  %3416 = vmatprep.mubr.f32.mxu1 %v11461_v39  ;;  %5028 = vst [vmem:[#allocation2 + $0x720] sm:$0xff] %v4740_v27  ;;  %v3047_v43 = vpop.f32.mrb[78].mxu0  ;;  %v2696_v62 = vpop.f32.mrb[79].mxu1  ;;  %v11469_v12 = vld [vmem:[#allocation12_spill] sm:$0xff] }
 0x2ca   : > { %4122 = vmatprep.mubr.f32.mxu0 %v11461_v39  ;;  %5029 = vst [vmem:[#allocation2 + $0x728] sm:$0xff] %v4741_v4  ;;  %v3048_v41 = vadd.f32 %v3047_v43, %v2694_v59  ;;  %v3049_v24 = vpop.f32.mrb[79].mxu0  ;;  %v11470_v39 = vld [vmem:[#allocation13_spill] sm:$0xff] }
 0x2cb   : > { %v3050_v29 = vadd.f32 %v3049_v24, %v2696_v62 }
 0x2cc   : > { %3417 = vmatmul.mubr.f32.gmra.mrb[180].mxu1 %v11462_v33  ;;  %v4746_v56 = vadd.f32 %v3048_v41, %v1956_v10  ;;  %v1986_v10 = vld [vmem:[#allocation2 + $0x840] sm:$0xff] }
 0x2cd   : > { %4123 = vmatmul.mubr.f32.gmra.mrb[180].mxu0 %v11462_v33  ;;  %3422 = vmatprep.mubr.f32.mxu1 %v11463_v3  ;;  %v4747_v2 = vadd.f32 %v3050_v29, %v1957_v60  ;;  %v11471_v60 = vld [vmem:[#allocation14_spill] sm:$0xff] }
 0x2ce   : > { %4128 = vmatprep.mubr.f32.mxu0 %v11463_v3  ;;  %5034 = vst [vmem:[#allocation2 + $0x750] sm:$0xff] %v4746_v56  ;;  %v2700_v14 = vpop.f32.mrb[80].mxu1  ;;  %v11472_v3 = vld [vmem:[#allocation15_spill] sm:$0xff] }
 0x2cf   : > { %5035 = vst [vmem:[#allocation2 + $0x758] sm:$0xff] %v4747_v2  ;;  %v3053_v50 = vpop.f32.mrb[80].mxu0  ;;  %v2702_v7 = vpop.f32.mrb[81].mxu1 }
 0x2d0   : > { %3423 = vmatmul.mubr.f32.gmra.mrb[182].mxu1 %v11464_v52  ;;  %v3054_v54 = vadd.f32 %v3053_v50, %v2700_v14  ;;  %v3055_v37 = vpop.f32.mrb[81].mxu0  ;;  %v1992_v14 = vld [vmem:[#allocation2 + $0x870] sm:$0xff]  ;;  %v11473_v50 = vld [vmem:[#allocation16_spill] sm:$0xff] }
 0x2d1   : > { %4129 = vmatmul.mubr.f32.gmra.mrb[182].mxu0 %v11464_v52  ;;  %3428 = vmatprep.mubr.f32.mxu1 %v11465_v1  ;;  %v3056_v17 = vadd.f32 %v3055_v37, %v2702_v7 }
 0x2d2   : > { %4134 = vmatprep.mubr.f32.mxu0 %v11465_v1  ;;  %v4752_v51 = vadd.f32 %v3054_v54, %v1962_v49  ;;  %v1993_v54 = vld [vmem:[#allocation2 + $0x878] sm:$0xff] }
 0x2d3   : > { %v4753_v22 = vadd.f32 %v3056_v17, %v1963_v42  ;;  %v2706_v40 = vpop.f32.mrb[82].mxu1  ;;  %v11474_v17 = vld [vmem:[#allocation17_spill] sm:$0xff] }
 0x2d4   : > { %3429 = vmatmul.mubr.f32.gmra.mrb[184].mxu1 %v11466_v63  ;;  %5040 = vst [vmem:[#allocation2 + $0x780] sm:$0xff] %v4752_v51  ;;  %v3059_v57 = vpop.f32.mrb[82].mxu0  ;;  %v2708_v23 = vpop.f32.mrb[83].mxu1 }
 0x2d5   : > { %4135 = vmatmul.mubr.f32.gmra.mrb[184].mxu0 %v11466_v63  ;;  %3434 = vmatprep.mubr.f32.mxu1 %v11467_v45  ;;  %5041 = vst [vmem:[#allocation2 + $0x788] sm:$0xff] %v4753_v22  ;;  %v3060_v53 = vadd.f32 %v3059_v57, %v2706_v40  ;;  %v3061_v25 = vpop.f32.mrb[83].mxu0  ;;  %v11475_v22 = vld [vmem:[#allocation18_spill] sm:$0xff]  ;;  %v1998_v63 = vld [vmem:[#allocation2 + $0x8a0] sm:$0xff] }
 0x2d6   : > { %4140 = vmatprep.mubr.f32.mxu0 %v11467_v45  ;;  %v3062_v20 = vadd.f32 %v3061_v25, %v2708_v23  ;;  %v1999_v45 = vld [vmem:[#allocation2 + $0x8a8] sm:$0xff] }
 0x2d7   : > { %v4758_v9 = vadd.f32 %v3060_v53, %v1968_v58  ;;  %v2712_v26 = vpop.f32.mrb[84].mxu1 }
 0x2d8   : > { %3435 = vmatmul.mubr.f32.gmra.mrb[186].mxu1 %v11468_v36  ;;  %v4759_v18 = vadd.f32 %v3062_v20, %v1969_v30  ;;  %v2714_v47 = vpop.f32.mrb[85].mxu1  ;;  %v11476_v30 = vld [vmem:[#allocation19_spill] sm:$0xff]  ;;  %v11477_v20 = vld [vmem:[#allocation20_spill] sm:$0xff] }
 0x2d9   : > { %4141 = vmatmul.mubr.f32.gmra.mrb[186].mxu0 %v11468_v36  ;;  %5046 = vst [vmem:[#allocation2 + $0x7b0] sm:$0xff] %v4758_v9  ;;  %3440 = vmatprep.mubr.f32.mxu1 %v9945_v44  ;;  %v3065_v11 = vpop.f32.mrb[84].mxu0 }
 0x2da   : > { %4146 = vmatprep.mubr.f32.mxu0 %v9945_v44  ;;  %5047 = vst [vmem:[#allocation2 + $0x7b8] sm:$0xff] %v4759_v18  ;;  %v3066_v19 = vadd.f32 %v3065_v11, %v2712_v26  ;;  %v3067_v48 = vpop.f32.mrb[85].mxu0  ;;  %v2004_v26 = vld [vmem:[#allocation2 + $0x8d0] sm:$0xff] }
 0x2db   : > { %v3068_v13 = vadd.f32 %v3067_v48, %v2714_v47  ;;  %v11478_v47 = vld [vmem:[#allocation21_spill] sm:$0xff] }
 0x2dc   : > { %3441 = vmatmul.mubr.f32.gmra.mrb[188].mxu1 %v9952_v28  ;;  %v4764_v55 = vadd.f32 %v3066_v19, %v1974_v16 }
 0x2dd   : > { %4147 = vmatmul.mubr.f32.gmra.mrb[188].mxu0 %v9952_v28  ;;  %3446 = vmatprep.mubr.f32.mxu1 %v9966_v31  ;;  %v4765_v5 = vadd.f32 %v3068_v13, %v1975_v21  ;;  %v2005_v21 = vld [vmem:[#allocation2 + $0x8d8] sm:$0xff]  ;;  %v11479_v13 = vld [vmem:[#allocation22_spill] sm:$0xff] }
 0x2de   : > { %5052 = vst [vmem:[#allocation2 + $0x7e0] sm:$0xff] %v4764_v55  ;;  %4152 = vmatprep.mubr.f32.mxu0 %v9966_v31 }
 0x2df   : > { %v2718_v15 = vpop.f32.mrb[86].mxu1  ;;  %5053 = vst [vmem:[#allocation2 + $0x7e8] sm:$0xff] %v4765_v5 }
 0x2e0   : > { %v3071_v44 = vpop.f32.mrb[86].mxu0  ;;  %v2720_v0 = vpop.f32.mrb[87].mxu1  ;;  %3447 = vmatmul.mubr.f32.gmra.mrb[190].mxu1 %v9982_v35 }
 0x2e1   : > { %v3072_v38 = vadd.f32 %v3071_v44, %v2718_v15  ;;  %v3073_v27 = vpop.f32.mrb[87].mxu0  ;;  %4153 = vmatmul.mubr.f32.gmra.mrb[190].mxu0 %v9982_v35  ;;  %3517 = vmatprep.mubr.f32.mxu1 %v11469_v12  ;;  %v1987_v35 = vld [vmem:[#allocation2 + $0x848] sm:$0xff]  ;;  %v11481_v44 = vld [vmem:[#allocation24_spill] sm:$0xff] }
 0x2e2   : > { %v3074_v28 = vadd.f32 %v3073_v27, %v2720_v0  ;;  %4223 = vmatprep.mubr.f32.mxu0 %v11469_v12  ;;  %v11482_v0 = vld [vmem:[#allocation25_spill] sm:$0xff]  ;;  %v11485_v27 = vld [vmem:[#allocation31_spill] sm:$0xff] }
 0x2e3   : > { %v4770_v4 = vadd.f32 %v3072_v38, %v1980_v6  ;;  %v2724_v31 = vpop.f32.mrb[88].mxu1  ;;  %v11480_v6 = vld [vmem:[#allocation23_spill] sm:$0xff]  ;;  %v11486_v12 = vld [vmem:[#allocation33_spill] sm:$0xff] }
 0x2e4   : > { %v4771_v59 = vadd.f32 %v3074_v28, %v1981_v46  ;;  %3518 = vmatmul.mubr.f32.vlgmr.msra.gmra.mrb[96].mxu1 %v11470_v39  ;;  %v3077_v43 = vpop.f32.mrb[88].mxu0  ;;  %v2726_v62 = vpop.f32.mrb[89].mxu1  ;;  %v11483_v38 = vld [vmem:[#allocation27_spill] sm:$0xff]  ;;  %v11484_v46 = vld [vmem:[#allocation29_spill] sm:$0xff] }
 0x2e5   : > { %5058 = vst [vmem:[#allocation2 + $0x810] sm:$0xff] %v4770_v4  ;;  %4224 = vmatmul.mubr.f32.vlgmr.msra.gmra.mrb[96].mxu0 %v11470_v39  ;;  %v3078_v41 = vadd.f32 %v3077_v43, %v2724_v31  ;;  %3523 = vmatprep.mubr.f32.mxu1 %v11471_v60  ;;  %v3079_v24 = vpop.f32.mrb[89].mxu0  ;;  %v11487_v28 = vld [vmem:[#allocation35_spill] sm:$0xff]  ;;  %v11488_v4 = vld [vmem:[#allocation37_spill] sm:$0xff] }
 0x2e6   : > { %5059 = vst [vmem:[#allocation2 + $0x818] sm:$0xff] %v4771_v59  ;;  %4229 = vmatprep.mubr.f32.mxu0 %v11471_v60  ;;  %v3080_v29 = vadd.f32 %v3079_v24, %v2726_v62  ;;  %v11489_v59 = vld [vmem:[#allocation39_spill] sm:$0xff]  ;;  %v11490_v31 = vld [vmem:[#allocation41_spill] sm:$0xff] }
 0x2e7   : > { %v4776_v33 = vadd.f32 %v3078_v41, %v1986_v10  ;;  %v11491_v39 = vld [vmem:[#allocation43_spill] sm:$0xff]  ;;  %v11492_v10 = vld [vmem:[#allocation45_spill] sm:$0xff] }
 0x2e8   : > { %v4777_v56 = vadd.f32 %v3080_v29, %v1987_v35  ;;  %3524 = vmatmul.mubr.f32.gmra.mrb[98].mxu1 %v11472_v3  ;;  %v2730_v2 = vpop.f32.mrb[90].mxu1  ;;  %v11493_v43 = vld [vmem:[#allocation47_spill] sm:$0xff]  ;;  %v11494_v62 = vld [vmem:[#allocation49_spill] sm:$0xff] }
 0x2e9   : > { %5064 = vst [vmem:[#allocation2 + $0x840] sm:$0xff] %v4776_v33  ;;  %4230 = vmatmul.mubr.f32.gmra.mrb[98].mxu0 %v11472_v3  ;;  %v3083_v49 = vpop.f32.mrb[90].mxu0  ;;  %3529 = vmatprep.mubr.f32.mxu1 %v11473_v50  ;;  %v2732_v7 = vpop.f32.mrb[91].mxu1  ;;  %v11495_v41 = vld [vmem:[#allocation51_spill] sm:$0xff]  ;;  %v11496_v60 = vld [vmem:[#allocation53_spill] sm:$0xff] }
 0x2ea   : > { %5065 = vst [vmem:[#allocation2 + $0x848] sm:$0xff] %v4777_v56  ;;  %v3084_v52 = vadd.f32 %v3083_v49, %v2730_v2  ;;  %4235 = vmatprep.mubr.f32.mxu0 %v11473_v50  ;;  %v3085_v42 = vpop.f32.mrb[91].mxu0  ;;  %v11497_v35 = vld [vmem:[#allocation55_spill] sm:$0xff]  ;;  %v11498_v24 = vld [vmem:[#allocation57_spill] sm:$0xff] }
 0x2eb   : > { %v3086_v37 = vadd.f32 %v3085_v42, %v2732_v7  ;;  %v11499_v29 = vld [vmem:[#allocation59_spill] sm:$0xff]  ;;  %v11500_v33 = vld [vmem:[#allocation61_spill] sm:$0xff] }
 0x2ec   : > { %v4782_v1 = vadd.f32 %v3084_v52, %v1992_v14  ;;  %3530 = vmatmul.mubr.f32.gmra.mrb[100].mxu1 %v11474_v17  ;;  %v11501_v56 = vld [vmem:[#allocation63_spill] sm:$0xff]  ;;  %v11502_v3 = vld [vmem:[#allocation65_spill] sm:$0xff] }
 0x2ed   : > { %v4783_v51 = vadd.f32 %v3086_v37, %v1993_v54  ;;  %4236 = vmatmul.mubr.f32.gmra.mrb[100].mxu0 %v11474_v17  ;;  %3535 = vmatprep.mubr.f32.mxu1 %v11475_v22  ;;  %v11503_v2 = vld [vmem:[#allocation67_spill] sm:$0xff]  ;;  %v11504_v14 = vld [vmem:[#allocation69_spill] sm:$0xff] }
 0x2ee   : > { %5070 = vst [vmem:[#allocation2 + $0x870] sm:$0xff] %v4782_v1  ;;  %v2736_v40 = vpop.f32.mrb[92].mxu1  ;;  %4241 = vmatprep.mubr.f32.mxu0 %v11475_v22  ;;  %v11505_v49 = vld [vmem:[#allocation71_spill] sm:$0xff]  ;;  %v11506_v50 = vld [vmem:[#allocation73_spill] sm:$0xff] }
 0x2ef   : > { %5071 = vst [vmem:[#allocation2 + $0x878] sm:$0xff] %v4783_v51  ;;  %v3089_v58 = vpop.f32.mrb[92].mxu0  ;;  %v2738_v57 = vpop.f32.mrb[93].mxu1  ;;  %v11507_v7 = vld [vmem:[#allocation75_spill] sm:$0xff]  ;;  %v11508_v52 = vld [vmem:[#allocation77_spill] sm:$0xff] }
 0x2f0   : > { %v3090_v23 = vadd.f32 %v3089_v58, %v2736_v40  ;;  %v3091_v53 = vpop.f32.mrb[93].mxu0  ;;  %3536 = vmatmul.mubr.f32.gmra.mrb[102].mxu1 %v11476_v30  ;;  %v11509_v54 = vld [vmem:[#allocation79_spill] sm:$0xff]  ;;  %v11510_v42 = vld [vmem:[#allocation81_spill] sm:$0xff] }
 0x2f1   : > { %v3092_v25 = vadd.f32 %v3091_v53, %v2738_v57  ;;  %4242 = vmatmul.mubr.f32.gmra.mrb[102].mxu0 %v11476_v30  ;;  %3541 = vmatprep.mubr.f32.mxu1 %v11477_v20  ;;  %v11511_v37 = vld [vmem:[#allocation83_spill] sm:$0xff]  ;;  %v11512_v1 = vld [vmem:[#allocation85_spill] sm:$0xff] }
 0x2f2   : > { %v4788_v9 = vadd.f32 %v3090_v23, %v1998_v63  ;;  %4247 = vmatprep.mubr.f32.mxu0 %v11477_v20  ;;  %v11513_v17 = vld [vmem:[#allocation87_spill] sm:$0xff]  ;;  %v11514_v51 = vld [vmem:[#allocation89_spill] sm:$0xff] }
 0x2f3   : > { %v4789_v36 = vadd.f32 %v3092_v25, %v1999_v45  ;;  %v2742_v18 = vpop.f32.mrb[94].mxu1  ;;  %v11515_v22 = vld [vmem:[#allocation91_spill] sm:$0xff]  ;;  %v11516_v40 = vld [vmem:[#allocation93_spill] sm:$0xff] }
 0x2f4   : > { %5076 = vst [vmem:[#allocation2 + $0x8a0] sm:$0xff] %v4788_v9  ;;  %v3095_v16 = vpop.f32.mrb[94].mxu0  ;;  %v2744_v11 = vpop.f32.mrb[95].mxu1  ;;  %3542 = vmatmul.mubr.f32.gmra.mrb[104].mxu1 %v11478_v47  ;;  %v11517_v63 = vld [vmem:[#allocation95_spill] sm:$0xff]  ;;  %v11518_v58 = vld [vmem:[#allocation97_spill] sm:$0xff] }
 0x2f5   : > { %5077 = vst [vmem:[#allocation2 + $0x8a8] sm:$0xff] %v4789_v36  ;;  %v3096_v19 = vadd.f32 %v3095_v16, %v2742_v18  ;;  %v3097_v48 = vpop.f32.mrb[95].mxu0  ;;  %4248 = vmatmul.mubr.f32.gmra.mrb[104].mxu0 %v11478_v47  ;;  %3547 = vmatprep.mubr.f32.mxu1 %v11479_v13  ;;  %v11519_v57 = vld [vmem:[#allocation99_spill] sm:$0xff]  ;;  %v11520_v23 = vld [vmem:[#allocation101_spill] sm:$0xff] }
 0x2f6   : > { %v3098_v55 = vadd.f32 %v3097_v48, %v2744_v11  ;;  %4253 = vmatprep.mubr.f32.mxu0 %v11479_v13  ;;  %v11521_v45 = vld [vmem:[#allocation103_spill] sm:$0xff]  ;;  %v11522_v53 = vld [vmem:[#allocation105_spill] sm:$0xff] }
 0x2f7   : > { %v4794_v5 = vadd.f32 %v3096_v19, %v2004_v26  ;;  %v11523_v30 = vld [vmem:[#allocation107_spill] sm:$0xff]  ;;  %v11524_v25 = vld [vmem:[#allocation109_spill] sm:$0xff] }
 0x2f8   : > { %v4795_v15 = vadd.f32 %v3098_v55, %v2005_v21  ;;  %3548 = vmatmul.mubr.f32.gmra.mrb[106].mxu1 %v11480_v6  ;;  %v11525_v20 = vld [vmem:[#allocation111_spill] sm:$0xff]  ;;  %v11526_v9 = vld [vmem:[#allocation113_spill] sm:$0xff] }
 0x2f9   : > { %5082 = vst [vmem:[#allocation2 + $0x8d0] sm:$0xff] %v4794_v5  ;;  %4254 = vmatmul.mubr.f32.gmra.mrb[106].mxu0 %v11480_v6  ;;  %3553 = vmatprep.mubr.f32.mxu1 %v11481_v44  ;;  %v11527_v36 = vld [vmem:[#allocation115_spill] sm:$0xff]  ;;  %v11528_v18 = vld [vmem:[#allocation117_spill] sm:$0xff] }
 0x2fa   : > { %5083 = vst [vmem:[#allocation2 + $0x8d8] sm:$0xff] %v4795_v15  ;;  %4259 = vmatprep.mubr.f32.mxu0 %v11481_v44  ;;  %v11529_v26 = vld [vmem:[#allocation119_spill] sm:$0xff]  ;;  %v11530_v16 = vld [vmem:[#allocation121_spill] sm:$0xff] }
 0x2fb   : > { %v11531_v11 = vld [vmem:[#allocation123_spill] sm:$0xff]  ;;  %v11532_v47 = vld [vmem:[#allocation125_spill] sm:$0xff] }
 0x2fc   : > { %3554 = vmatmul.mubr.f32.gmra.mrb[108].mxu1 %v11482_v0  ;;  %v11533_v19 = vld [vmem:[#allocation127_spill] sm:$0xff]  ;;  %v11534_v21 = vld [vmem:[#allocation129_spill] sm:$0xff] }
 0x2fd   : > { %4260 = vmatmul.mubr.f32.gmra.mrb[108].mxu0 %v11482_v0  ;;  %3559 = vmatprep.mubr.f32.mxu1 %v11483_v38  ;;  %v11535_v48 = vld [vmem:[#allocation131_spill] sm:$0xff]  ;;  %v11536_v13 = vld [vmem:[#allocation133_spill] sm:$0xff] }
 0x2fe   : > { %4265 = vmatprep.mubr.f32.mxu0 %v11483_v38  ;;  %v11537_v55 = vld [vmem:[#allocation135_spill] sm:$0xff]  ;;  %v11538_v5 = vld [vmem:[#allocation137_spill] sm:$0xff] }
 0x2ff   : > { %v11539_v15 = vld [vmem:[#allocation139_spill] sm:$0xff]  ;;  %v11540_v6 = vld [vmem:[#allocation141_spill] sm:$0xff] }
 0x300   : > { %3560 = vmatmul.mubr.f32.gmra.mrb[110].mxu1 %v11484_v46  ;;  %v11541_v44 = vld [vmem:[#allocation143_spill] sm:$0xff]  ;;  %v11542_v0 = vld [vmem:[#allocation145_spill] sm:$0xff] }
 0x301   : > { %4266 = vmatmul.mubr.f32.gmra.mrb[110].mxu0 %v11484_v46  ;;  %3565 = vmatprep.mubr.f32.mxu1 %v11485_v27  ;;  %v11543_v38 = vld [vmem:[#allocation147_spill] sm:$0xff]  ;;  %v11544_v46 = vld [vmem:[#allocation149_spill] sm:$0xff] }
 0x302   : > { %4271 = vmatprep.mubr.f32.mxu0 %v11485_v27  ;;  %v11545_v27 = vld [vmem:[#allocation151_spill] sm:$0xff] }
 0x304   : > { %3566 = vmatmul.mubr.f32.gmra.mrb[112].mxu1 %v11486_v12 }
 0x305   : > { %4272 = vmatmul.mubr.f32.gmra.mrb[112].mxu0 %v11486_v12  ;;  %3571 = vmatprep.mubr.f32.mxu1 %v11487_v28  ;;  %v11546_v12 = vld [vmem:[#allocation153_spill] sm:$0xff] }
 0x306   : > { %4277 = vmatprep.mubr.f32.mxu0 %v11487_v28  ;;  %v11547_v28 = vld [vmem:[#allocation155_spill] sm:$0xff] }
 0x308   : > { %3572 = vmatmul.mubr.f32.gmra.mrb[114].mxu1 %v11488_v4 }
 0x309   : > { %4278 = vmatmul.mubr.f32.gmra.mrb[114].mxu0 %v11488_v4  ;;  %3577 = vmatprep.mubr.f32.mxu1 %v11489_v59  ;;  %v11548_v4 = vld [vmem:[#allocation157_spill] sm:$0xff] }
 0x30a   : > { %4283 = vmatprep.mubr.f32.mxu0 %v11489_v59  ;;  %v11549_v59 = vld [vmem:[#allocation159_spill] sm:$0xff] }
 0x30c   : > { %3578 = vmatmul.mubr.f32.gmra.mrb[116].mxu1 %v11490_v31 }
 0x30d   : > { %4284 = vmatmul.mubr.f32.gmra.mrb[116].mxu0 %v11490_v31  ;;  %3583 = vmatprep.mubr.f32.mxu1 %v11491_v39  ;;  %v11550_v31 = vld [vmem:[#allocation161_spill] sm:$0xff] }
 0x30e   : > { %4289 = vmatprep.mubr.f32.mxu0 %v11491_v39  ;;  %v11551_v39 = vld [vmem:[#allocation163_spill] sm:$0xff] }
 0x310   : > { %3584 = vmatmul.mubr.f32.gmra.mrb[118].mxu1 %v11492_v10 }
 0x311   : > { %4290 = vmatmul.mubr.f32.gmra.mrb[118].mxu0 %v11492_v10  ;;  %3589 = vmatprep.mubr.f32.mxu1 %v11493_v43  ;;  %v11552_v10 = vld [vmem:[#allocation165_spill] sm:$0xff] }
 0x312   : > { %4295 = vmatprep.mubr.f32.mxu0 %v11493_v43  ;;  %v11553_v43 = vld [vmem:[#allocation167_spill] sm:$0xff] }
 0x314   : > { %3590 = vmatmul.mubr.f32.gmra.mrb[120].mxu1 %v11494_v62 }
 0x315   : > { %4296 = vmatmul.mubr.f32.gmra.mrb[120].mxu0 %v11494_v62  ;;  %3595 = vmatprep.mubr.f32.mxu1 %v11495_v41  ;;  %v11554_v62 = vld [vmem:[#allocation169_spill] sm:$0xff] }
 0x316   : > { %4301 = vmatprep.mubr.f32.mxu0 %v11495_v41  ;;  %v11555_v41 = vld [vmem:[#allocation171_spill] sm:$0xff] }
 0x318   : > { %3596 = vmatmul.mubr.f32.gmra.mrb[122].mxu1 %v11496_v60 }
 0x319   : > { %4302 = vmatmul.mubr.f32.gmra.mrb[122].mxu0 %v11496_v60  ;;  %3601 = vmatprep.mubr.f32.mxu1 %v11497_v35  ;;  %v11556_v60 = vld [vmem:[#allocation173_spill] sm:$0xff] }
 0x31a   : > { %4307 = vmatprep.mubr.f32.mxu0 %v11497_v35  ;;  %v11557_v35 = vld [vmem:[#allocation175_spill] sm:$0xff] }
 0x31c   : > { %3602 = vmatmul.mubr.f32.gmra.mrb[124].mxu1 %v11498_v24 }
 0x31d   : > { %4308 = vmatmul.mubr.f32.gmra.mrb[124].mxu0 %v11498_v24  ;;  %3607 = vmatprep.mubr.f32.mxu1 %v11499_v29  ;;  %v11558_v24 = vld [vmem:[#allocation177_spill] sm:$0xff] }
 0x31e   : > { %4313 = vmatprep.mubr.f32.mxu0 %v11499_v29  ;;  %v11559_v29 = vld [vmem:[#allocation179_spill] sm:$0xff] }
 0x320   : > { %3608 = vmatmul.mubr.f32.gmra.mrb[126].mxu1 %v11500_v33 }
 0x321   : > { %4314 = vmatmul.mubr.f32.gmra.mrb[126].mxu0 %v11500_v33  ;;  %3613 = vmatprep.mubr.f32.mxu1 %v11501_v56  ;;  %v11560_v33 = vld [vmem:[#allocation181_spill] sm:$0xff] }
 0x322   : > { %4319 = vmatprep.mubr.f32.mxu0 %v11501_v56  ;;  %v1724_v56 = vld [vmem:[#allocation2 + $0x10] sm:$0xff] }
 0x324   : > { %3614 = vmatmul.mubr.f32.gmra.mrb[128].mxu1 %v11502_v3 }
 0x325   : > { %4320 = vmatmul.mubr.f32.gmra.mrb[128].mxu0 %v11502_v3  ;;  %3619 = vmatprep.mubr.f32.mxu1 %v11503_v2  ;;  %v1726_v3 = vld [vmem:[#allocation2 + $0x20] sm:$0xff] }
 0x326   : > { %4325 = vmatprep.mubr.f32.mxu0 %v11503_v2  ;;  %v1725_v2 = vld [vmem:[#allocation2 + $0x18] sm:$0xff] }
 0x328   : > { %3620 = vmatmul.mubr.f32.gmra.mrb[130].mxu1 %v11504_v14 }
 0x329   : > { %4326 = vmatmul.mubr.f32.gmra.mrb[130].mxu0 %v11504_v14  ;;  %3625 = vmatprep.mubr.f32.mxu1 %v11505_v49 }
 0x32a   : > { %4331 = vmatprep.mubr.f32.mxu0 %v11505_v49  ;;  %v1727_v49 = vld [vmem:[#allocation2 + $0x28] sm:$0xff] }
 0x32c   : > { %3626 = vmatmul.mubr.f32.gmra.mrb[132].mxu1 %v11506_v50 }
 0x32d   : > { %4332 = vmatmul.mubr.f32.gmra.mrb[132].mxu0 %v11506_v50  ;;  %3631 = vmatprep.mubr.f32.mxu1 %v11507_v7 }
 0x32e   : > { %4337 = vmatprep.mubr.f32.mxu0 %v11507_v7 }
 0x330   : > { %3632 = vmatmul.mubr.f32.gmra.mrb[134].mxu1 %v11508_v52 }
 0x331   : > { %4338 = vmatmul.mubr.f32.gmra.mrb[134].mxu0 %v11508_v52  ;;  %3637 = vmatprep.mubr.f32.mxu1 %v11509_v54 }
 0x332   : > { %4343 = vmatprep.mubr.f32.mxu0 %v11509_v54 }
 0x334   : > { %3638 = vmatmul.mubr.f32.gmra.mrb[136].mxu1 %v11510_v42 }
 0x335   : > { %4344 = vmatmul.mubr.f32.gmra.mrb[136].mxu0 %v11510_v42  ;;  %3643 = vmatprep.mubr.f32.mxu1 %v11511_v37 }
 0x336   : > { %4349 = vmatprep.mubr.f32.mxu0 %v11511_v37 }
 0x338   : > { %3644 = vmatmul.mubr.f32.gmra.mrb[138].mxu1 %v11512_v1 }
 0x339   : > { %4350 = vmatmul.mubr.f32.gmra.mrb[138].mxu0 %v11512_v1  ;;  %3649 = vmatprep.mubr.f32.mxu1 %v11513_v17  ;;  %v1732_v1 = vld [vmem:[#allocation2 + $0x50] sm:$0xff] }
 0x33a   : > { %4355 = vmatprep.mubr.f32.mxu0 %v11513_v17 }
 0x33c   : > { %3650 = vmatmul.mubr.f32.gmra.mrb[140].mxu1 %v11514_v51 }
 0x33d   : > { %4356 = vmatmul.mubr.f32.gmra.mrb[140].mxu0 %v11514_v51  ;;  %3655 = vmatprep.mubr.f32.mxu1 %v11515_v22 }
 0x33e   : > { %4361 = vmatprep.mubr.f32.mxu0 %v11515_v22 }
 0x340   : > { %3656 = vmatmul.mubr.f32.gmra.mrb[142].mxu1 %v11516_v40 }
 0x341   : > { %4362 = vmatmul.mubr.f32.gmra.mrb[142].mxu0 %v11516_v40  ;;  %3661 = vmatprep.mubr.f32.mxu1 %v11517_v63 }
 0x342   : > { %4367 = vmatprep.mubr.f32.mxu0 %v11517_v63 }
 0x344   : > { %3662 = vmatmul.mubr.f32.gmra.mrb[144].mxu1 %v11518_v58 }
 0x345   : > { %4368 = vmatmul.mubr.f32.gmra.mrb[144].mxu0 %v11518_v58  ;;  %3667 = vmatprep.mubr.f32.mxu1 %v11519_v57 }
 0x346   : > { %4373 = vmatprep.mubr.f32.mxu0 %v11519_v57 }
 0x348   : > { %3668 = vmatmul.mubr.f32.gmra.mrb[146].mxu1 %v11520_v23 }
 0x349   : > { %4374 = vmatmul.mubr.f32.gmra.mrb[146].mxu0 %v11520_v23  ;;  %3673 = vmatprep.mubr.f32.mxu1 %v11521_v45  ;;  %v1736_v23 = vld [vmem:[#allocation2 + $0x70] sm:$0xff] }
 0x34a   : > { %4379 = vmatprep.mubr.f32.mxu0 %v11521_v45 }
 0x34c   : > { %3674 = vmatmul.mubr.f32.gmra.mrb[148].mxu1 %v11522_v53 }
 0x34d   : > { %4380 = vmatmul.mubr.f32.gmra.mrb[148].mxu0 %v11522_v53  ;;  %3679 = vmatprep.mubr.f32.mxu1 %v11523_v30  ;;  %v1738_v53 = vld [vmem:[#allocation2 + $0x80] sm:$0xff] }
 0x34e   : > { %4385 = vmatprep.mubr.f32.mxu0 %v11523_v30  ;;  %v1737_v30 = vld [vmem:[#allocation2 + $0x78] sm:$0xff] }
 0x350   : > { %3680 = vmatmul.mubr.f32.gmra.mrb[150].mxu1 %v11524_v25 }
 0x351   : > { %4386 = vmatmul.mubr.f32.gmra.mrb[150].mxu0 %v11524_v25  ;;  %3685 = vmatprep.mubr.f32.mxu1 %v11525_v20 }
 0x352   : > { %4391 = vmatprep.mubr.f32.mxu0 %v11525_v20  ;;  %v1739_v20 = vld [vmem:[#allocation2 + $0x88] sm:$0xff] }
 0x354   : > { %3686 = vmatmul.mubr.f32.gmra.mrb[152].mxu1 %v11526_v9 }
 0x355   : > { %4392 = vmatmul.mubr.f32.gmra.mrb[152].mxu0 %v11526_v9  ;;  %3691 = vmatprep.mubr.f32.mxu1 %v11527_v36 }
 0x356   : > { %4397 = vmatprep.mubr.f32.mxu0 %v11527_v36 }
 0x358   : > { %3692 = vmatmul.mubr.f32.gmra.mrb[154].mxu1 %v11528_v18 }
 0x359   : > { %4398 = vmatmul.mubr.f32.gmra.mrb[154].mxu0 %v11528_v18  ;;  %3697 = vmatprep.mubr.f32.mxu1 %v11529_v26 }
 0x35a   : > { %4403 = vmatprep.mubr.f32.mxu0 %v11529_v26 }
 0x35c   : > { %3698 = vmatmul.mubr.f32.gmra.mrb[156].mxu1 %v11530_v16 }
 0x35d   : > { %4404 = vmatmul.mubr.f32.gmra.mrb[156].mxu0 %v11530_v16  ;;  %3703 = vmatprep.mubr.f32.mxu1 %v11531_v11 }
 0x35e   : > { %4409 = vmatprep.mubr.f32.mxu0 %v11531_v11 }
 0x360   : > { %3704 = vmatmul.mubr.f32.gmra.mrb[158].mxu1 %v11532_v47 }
 0x361   : > { %4410 = vmatmul.mubr.f32.gmra.mrb[158].mxu0 %v11532_v47  ;;  %3709 = vmatprep.mubr.f32.mxu1 %v11533_v19  ;;  %v1742_v47 = vld [vmem:[#allocation2 + $0xa0] sm:$0xff] }
 0x362   : > { %4415 = vmatprep.mubr.f32.mxu0 %v11533_v19 }
 0x364   : > { %3710 = vmatmul.mubr.f32.gmra.mrb[160].mxu1 %v11534_v21 }
 0x365   : > { %4416 = vmatmul.mubr.f32.gmra.mrb[160].mxu0 %v11534_v21  ;;  %3715 = vmatprep.mubr.f32.mxu1 %v11535_v48  ;;  %v1744_v21 = vld [vmem:[#allocation2 + $0xb0] sm:$0xff] }
 0x366   : > { %4421 = vmatprep.mubr.f32.mxu0 %v11535_v48  ;;  %v1743_v48 = vld [vmem:[#allocation2 + $0xa8] sm:$0xff] }
 0x368   : > { %3716 = vmatmul.mubr.f32.gmra.mrb[162].mxu1 %v11536_v13 }
 0x369   : > { %4422 = vmatmul.mubr.f32.gmra.mrb[162].mxu0 %v11536_v13  ;;  %3721 = vmatprep.mubr.f32.mxu1 %v11537_v55 }
 0x36a   : > { %4427 = vmatprep.mubr.f32.mxu0 %v11537_v55  ;;  %v1745_v55 = vld [vmem:[#allocation2 + $0xb8] sm:$0xff] }
 0x36c   : > { %3722 = vmatmul.mubr.f32.gmra.mrb[164].mxu1 %v11538_v5 }
 0x36d   : > { %4428 = vmatmul.mubr.f32.gmra.mrb[164].mxu0 %v11538_v5  ;;  %3727 = vmatprep.mubr.f32.mxu1 %v11539_v15 }
 0x36e   : > { %4433 = vmatprep.mubr.f32.mxu0 %v11539_v15 }
 0x370   : > { %3728 = vmatmul.mubr.f32.gmra.mrb[166].mxu1 %v11540_v6 }
 0x371   : > { %4434 = vmatmul.mubr.f32.gmra.mrb[166].mxu0 %v11540_v6  ;;  %3733 = vmatprep.mubr.f32.mxu1 %v11541_v44 }
 0x372   : > { %4439 = vmatprep.mubr.f32.mxu0 %v11541_v44 }
 0x374   : > { %3734 = vmatmul.mubr.f32.gmra.mrb[168].mxu1 %v11542_v0 }
 0x375   : > { %4440 = vmatmul.mubr.f32.gmra.mrb[168].mxu0 %v11542_v0  ;;  %3739 = vmatprep.mubr.f32.mxu1 %v11543_v38 }
 0x376   : > { %4445 = vmatprep.mubr.f32.mxu0 %v11543_v38 }
 0x378   : > { %3740 = vmatmul.mubr.f32.gmra.mrb[170].mxu1 %v11544_v46 }
 0x379   : > { %4446 = vmatmul.mubr.f32.gmra.mrb[170].mxu0 %v11544_v46  ;;  %3745 = vmatprep.mubr.f32.mxu1 %v11545_v27  ;;  %v1748_v46 = vld [vmem:[#allocation2 + $0xd0] sm:$0xff] }
 0x37a   : > { %4451 = vmatprep.mubr.f32.mxu0 %v11545_v27 }
 0x37c   : > { %3746 = vmatmul.mubr.f32.gmra.mrb[172].mxu1 %v11546_v12 }
 0x37d   : > { %4452 = vmatmul.mubr.f32.gmra.mrb[172].mxu0 %v11546_v12  ;;  %3751 = vmatprep.mubr.f32.mxu1 %v11547_v28  ;;  %v1750_v12 = vld [vmem:[#allocation2 + $0xe0] sm:$0xff] }
 0x37e   : > { %4457 = vmatprep.mubr.f32.mxu0 %v11547_v28  ;;  %v1749_v28 = vld [vmem:[#allocation2 + $0xd8] sm:$0xff] }
 0x380   : > { %3752 = vmatmul.mubr.f32.gmra.mrb[174].mxu1 %v11548_v4 }
 0x381   : > { %4458 = vmatmul.mubr.f32.gmra.mrb[174].mxu0 %v11548_v4  ;;  %3757 = vmatprep.mubr.f32.mxu1 %v11549_v59 }
 0x382   : > { %4463 = vmatprep.mubr.f32.mxu0 %v11549_v59  ;;  %v1751_v59 = vld [vmem:[#allocation2 + $0xe8] sm:$0xff] }
 0x384   : > { %3758 = vmatmul.mubr.f32.gmra.mrb[176].mxu1 %v11550_v31 }
 0x385   : > { %4464 = vmatmul.mubr.f32.gmra.mrb[176].mxu0 %v11550_v31  ;;  %3763 = vmatprep.mubr.f32.mxu1 %v11551_v39 }
 0x386   : > { %4469 = vmatprep.mubr.f32.mxu0 %v11551_v39 }
 0x388   : > { %3764 = vmatmul.mubr.f32.gmra.mrb[178].mxu1 %v11552_v10 }
 0x389   : > { %4470 = vmatmul.mubr.f32.gmra.mrb[178].mxu0 %v11552_v10  ;;  %3769 = vmatprep.mubr.f32.mxu1 %v11553_v43 }
 0x38a   : > { %4475 = vmatprep.mubr.f32.mxu0 %v11553_v43 }
 0x38c   : > { %3770 = vmatmul.mubr.f32.gmra.mrb[180].mxu1 %v11554_v62 }
 0x38d   : > { %4476 = vmatmul.mubr.f32.gmra.mrb[180].mxu0 %v11554_v62  ;;  %3775 = vmatprep.mubr.f32.mxu1 %v11555_v41 }
 0x38e   : > { %4481 = vmatprep.mubr.f32.mxu0 %v11555_v41 }
 0x390   : > { %3776 = vmatmul.mubr.f32.gmra.mrb[182].mxu1 %v11556_v60 }
 0x391   : > { %4482 = vmatmul.mubr.f32.gmra.mrb[182].mxu0 %v11556_v60  ;;  %3781 = vmatprep.mubr.f32.mxu1 %v11557_v35  ;;  %v1754_v60 = vld [vmem:[#allocation2 + $0x100] sm:$0xff] }
 0x392   : > { %4487 = vmatprep.mubr.f32.mxu0 %v11557_v35 }
 0x394   : > { %3782 = vmatmul.mubr.f32.gmra.mrb[184].mxu1 %v11558_v24 }
 0x395   : > { %4488 = vmatmul.mubr.f32.gmra.mrb[184].mxu0 %v11558_v24  ;;  %3787 = vmatprep.mubr.f32.mxu1 %v11559_v29  ;;  %v1756_v24 = vld [vmem:[#allocation2 + $0x110] sm:$0xff] }
 0x396   : > { %4493 = vmatprep.mubr.f32.mxu0 %v11559_v29  ;;  %v1755_v29 = vld [vmem:[#allocation2 + $0x108] sm:$0xff] }
 0x398   : > { %3788 = vmatmul.mubr.f32.gmra.mrb[186].mxu1 %v11560_v33 }
 0x399   : > { %4494 = vmatmul.mubr.f32.gmra.mrb[186].mxu0 %v11560_v33  ;;  %3793 = vmatprep.mubr.f32.mxu1 %v9947_v61 }
 0x39a   : > { %4499 = vmatprep.mubr.f32.mxu0 %v9947_v61 }
 0x39c   : > { %3794 = vmatmul.mubr.f32.gmra.mrb[188].mxu1 %v9957_v32 }
 0x39d   : > { %4500 = vmatmul.mubr.f32.gmra.mrb[188].mxu0 %v9957_v32  ;;  %3799 = vmatprep.mubr.f32.mxu1 %v9980_v8  ;;  %v1730_v32 = vld [vmem:[#allocation2 + $0x40] sm:$0xff] }
 0x39e   : > { %4505 = vmatprep.mubr.f32.mxu0 %v9980_v8  ;;  %v1731_v8 = vld [vmem:[#allocation2 + $0x48] sm:$0xff] }
 0x3a0   : > { %3800 = vmatmul.mubr.f32.gmra.mrb[190].mxu1 %v9993_v34 }
 0x3a1   : > { %4506 = vmatmul.mubr.f32.gmra.mrb[190].mxu0 %v9993_v34  ;;  %v1733_v34 = vld [vmem:[#allocation2 + $0x58] sm:$0xff] }
 0x3b7   : > { %v3519_v14 = vpop.f32.mrb[96].mxu1 }
 0x3b8   : > { %v4514_v50 = vadd.f32 %v3519_v14, %v1724_v56  ;;  %v4225_v7 = vpop.f32.mrb[96].mxu0  ;;  %v3521_v61 = vpop.f32.mrb[97].mxu1  ;;  %v1757_v56 = vld [vmem:[#allocation2 + $0x118] sm:$0xff] }
 0x3b9   : > { %v4516_v52 = vadd.f32 %v4225_v7, %v1726_v3  ;;  %v4515_v54 = vadd.f32 %v3521_v61, %v1725_v2  ;;  %v4227_v42 = vpop.f32.mrb[97].mxu0  ;;  %v1760_v61 = vld [vmem:[#allocation2 + $0x130] sm:$0xff] }
 0x3ba   : > { %4802 = vst [vmem:[#allocation2 + $0x10] sm:$0xff] %v4514_v50  ;;  %v4517_v37 = vadd.f32 %v4227_v42, %v1727_v49  ;;  %v1761_v42 = vld [vmem:[#allocation2 + $0x138] sm:$0xff] }
 0x3bb   : > { %4804 = vst [vmem:[#allocation2 + $0x20] sm:$0xff] %v4516_v52  ;;  %4803 = vst [vmem:[#allocation2 + $0x18] sm:$0xff] %v4515_v54  ;;  %v3525_v17 = vpop.f32.mrb[98].mxu1  ;;  %v1762_v54 = vld [vmem:[#allocation2 + $0x140] sm:$0xff] }
 0x3bc   : > { %4805 = vst [vmem:[#allocation2 + $0x28] sm:$0xff] %v4517_v37  ;;  %v4520_v51 = vadd.f32 %v3525_v17, %v1730_v32  ;;  %v4231_v22 = vpop.f32.mrb[98].mxu0  ;;  %v3527_v40 = vpop.f32.mrb[99].mxu1  ;;  %v1763_v37 = vld [vmem:[#allocation2 + $0x148] sm:$0xff] }
 0x3bd   : > { %v4522_v63 = vadd.f32 %v4231_v22, %v1732_v1  ;;  %v4521_v58 = vadd.f32 %v3527_v40, %v1731_v8  ;;  %v4233_v57 = vpop.f32.mrb[99].mxu0  ;;  %v1766_v40 = vld [vmem:[#allocation2 + $0x160] sm:$0xff] }
 0x3be   : > { %4808 = vst [vmem:[#allocation2 + $0x40] sm:$0xff] %v4520_v51  ;;  %v4523_v45 = vadd.f32 %v4233_v57, %v1733_v34  ;;  %v1767_v57 = vld [vmem:[#allocation2 + $0x168] sm:$0xff] }
 0x3bf   : > { %4810 = vst [vmem:[#allocation2 + $0x50] sm:$0xff] %v4522_v63  ;;  %4809 = vst [vmem:[#allocation2 + $0x48] sm:$0xff] %v4521_v58  ;;  %v3531_v25 = vpop.f32.mrb[100].mxu1  ;;  %v1768_v58 = vld [vmem:[#allocation2 + $0x170] sm:$0xff] }
 0x3c0   : > { %4811 = vst [vmem:[#allocation2 + $0x58] sm:$0xff] %v4523_v45  ;;  %v4526_v9 = vadd.f32 %v3531_v25, %v1736_v23  ;;  %v4237_v36 = vpop.f32.mrb[100].mxu0  ;;  %v3533_v18 = vpop.f32.mrb[101].mxu1  ;;  %v1769_v45 = vld [vmem:[#allocation2 + $0x178] sm:$0xff] }
 0x3c1   : > { %v4528_v26 = vadd.f32 %v4237_v36, %v1738_v53  ;;  %v4527_v16 = vadd.f32 %v3533_v18, %v1737_v30  ;;  %v4239_v11 = vpop.f32.mrb[101].mxu0  ;;  %v1772_v18 = vld [vmem:[#allocation2 + $0x190] sm:$0xff] }
 0x3c2   : > { %4814 = vst [vmem:[#allocation2 + $0x70] sm:$0xff] %v4526_v9  ;;  %v4529_v19 = vadd.f32 %v4239_v11, %v1739_v20  ;;  %v1773_v11 = vld [vmem:[#allocation2 + $0x198] sm:$0xff] }
 0x3c3   : > { %4816 = vst [vmem:[#allocation2 + $0x80] sm:$0xff] %v4528_v26  ;;  %4815 = vst [vmem:[#allocation2 + $0x78] sm:$0xff] %v4527_v16  ;;  %v3537_v13 = vpop.f32.mrb[102].mxu1  ;;  %v1774_v16 = vld [vmem:[#allocation2 + $0x1a0] sm:$0xff] }
 0x3c4   : > { %4817 = vst [vmem:[#allocation2 + $0x88] sm:$0xff] %v4529_v19  ;;  %v4532_v5 = vadd.f32 %v3537_v13, %v1742_v47  ;;  %v4243_v15 = vpop.f32.mrb[102].mxu0  ;;  %v3539_v6 = vpop.f32.mrb[103].mxu1  ;;  %v1775_v19 = vld [vmem:[#allocation2 + $0x1a8] sm:$0xff] }
 0x3c5   : > { %v4534_v44 = vadd.f32 %v4243_v15, %v1744_v21  ;;  %v4533_v0 = vadd.f32 %v3539_v6, %v1743_v48  ;;  %v4245_v38 = vpop.f32.mrb[103].mxu0  ;;  %v1778_v6 = vld [vmem:[#allocation2 + $0x1c0] sm:$0xff] }
 0x3c6   : > { %4820 = vst [vmem:[#allocation2 + $0xa0] sm:$0xff] %v4532_v5  ;;  %v4535_v27 = vadd.f32 %v4245_v38, %v1745_v55  ;;  %v1779_v38 = vld [vmem:[#allocation2 + $0x1c8] sm:$0xff] }
 0x3c7   : > { %4822 = vst [vmem:[#allocation2 + $0xb0] sm:$0xff] %v4534_v44  ;;  %4821 = vst [vmem:[#allocation2 + $0xa8] sm:$0xff] %v4533_v0  ;;  %v3543_v4 = vpop.f32.mrb[104].mxu1  ;;  %v1780_v0 = vld [vmem:[#allocation2 + $0x1d0] sm:$0xff] }
 0x3c8   : > { %4823 = vst [vmem:[#allocation2 + $0xb8] sm:$0xff] %v4535_v27  ;;  %v4538_v31 = vadd.f32 %v3543_v4, %v1748_v46  ;;  %v4249_v39 = vpop.f32.mrb[104].mxu0  ;;  %v3545_v10 = vpop.f32.mrb[105].mxu1  ;;  %v1781_v27 = vld [vmem:[#allocation2 + $0x1d8] sm:$0xff] }
 0x3c9   : > { %v4540_v43 = vadd.f32 %v4249_v39, %v1750_v12  ;;  %v4539_v62 = vadd.f32 %v3545_v10, %v1749_v28  ;;  %v4251_v41 = vpop.f32.mrb[105].mxu0  ;;  %v1784_v10 = vld [vmem:[#allocation2 + $0x1f0] sm:$0xff] }
 0x3ca   : > { %4826 = vst [vmem:[#allocation2 + $0xd0] sm:$0xff] %v4538_v31  ;;  %v4541_v35 = vadd.f32 %v4251_v41, %v1751_v59  ;;  %v1785_v41 = vld [vmem:[#allocation2 + $0x1f8] sm:$0xff] }
 0x3cb   : > { %4828 = vst [vmem:[#allocation2 + $0xe0] sm:$0xff] %v4540_v43  ;;  %4827 = vst [vmem:[#allocation2 + $0xd8] sm:$0xff] %v4539_v62  ;;  %v3549_v33 = vpop.f32.mrb[106].mxu1  ;;  %v1786_v62 = vld [vmem:[#allocation2 + $0x200] sm:$0xff] }
 0x3cc   : > { %4829 = vst [vmem:[#allocation2 + $0xe8] sm:$0xff] %v4541_v35  ;;  %v4544_v3 = vadd.f32 %v3549_v33, %v1754_v60  ;;  %v4255_v2 = vpop.f32.mrb[106].mxu0  ;;  %v3551_v14 = vpop.f32.mrb[107].mxu1  ;;  %v1787_v35 = vld [vmem:[#allocation2 + $0x208] sm:$0xff] }
 0x3cd   : > { %v4546_v49 = vadd.f32 %v4255_v2, %v1756_v24  ;;  %v4545_v50 = vadd.f32 %v3551_v14, %v1755_v29  ;;  %v4257_v7 = vpop.f32.mrb[107].mxu0  ;;  %v1790_v14 = vld [vmem:[#allocation2 + $0x220] sm:$0xff] }
 0x3ce   : > { %4832 = vst [vmem:[#allocation2 + $0x100] sm:$0xff] %v4544_v3  ;;  %v4547_v52 = vadd.f32 %v4257_v7, %v1757_v56  ;;  %v1791_v7 = vld [vmem:[#allocation2 + $0x228] sm:$0xff] }
 0x3cf   : > { %4834 = vst [vmem:[#allocation2 + $0x110] sm:$0xff] %v4546_v49  ;;  %4833 = vst [vmem:[#allocation2 + $0x108] sm:$0xff] %v4545_v50  ;;  %v3555_v32 = vpop.f32.mrb[108].mxu1  ;;  %v1792_v50 = vld [vmem:[#allocation2 + $0x230] sm:$0xff] }
 0x3d0   : > { %4835 = vst [vmem:[#allocation2 + $0x118] sm:$0xff] %v4547_v52  ;;  %v4550_v1 = vadd.f32 %v3555_v32, %v1760_v61  ;;  %v4261_v8 = vpop.f32.mrb[108].mxu0  ;;  %v3557_v17 = vpop.f32.mrb[109].mxu1  ;;  %v1793_v52 = vld [vmem:[#allocation2 + $0x238] sm:$0xff] }
 0x3d1   : > { %v4552_v34 = vadd.f32 %v4261_v8, %v1762_v54  ;;  %v4551_v51 = vadd.f32 %v3557_v17, %v1761_v42  ;;  %v4263_v22 = vpop.f32.mrb[109].mxu0  ;;  %v1796_v17 = vld [vmem:[#allocation2 + $0x250] sm:$0xff] }
 0x3d2   : > { %4838 = vst [vmem:[#allocation2 + $0x130] sm:$0xff] %v4550_v1  ;;  %v4553_v63 = vadd.f32 %v4263_v22, %v1763_v37  ;;  %v1797_v22 = vld [vmem:[#allocation2 + $0x258] sm:$0xff] }
 0x3d3   : > { %4840 = vst [vmem:[#allocation2 + $0x140] sm:$0xff] %v4552_v34  ;;  %4839 = vst [vmem:[#allocation2 + $0x138] sm:$0xff] %v4551_v51  ;;  %v3561_v23 = vpop.f32.mrb[110].mxu1  ;;  %v1798_v51 = vld [vmem:[#allocation2 + $0x260] sm:$0xff] }
 0x3d4   : > { %4841 = vst [vmem:[#allocation2 + $0x148] sm:$0xff] %v4553_v63  ;;  %v4556_v53 = vadd.f32 %v3561_v23, %v1766_v40  ;;  %v4267_v30 = vpop.f32.mrb[110].mxu0  ;;  %v3563_v25 = vpop.f32.mrb[111].mxu1  ;;  %v1799_v63 = vld [vmem:[#allocation2 + $0x268] sm:$0xff] }
 0x3d5   : > { %v4558_v20 = vadd.f32 %v4267_v30, %v1768_v58  ;;  %v4557_v9 = vadd.f32 %v3563_v25, %v1767_v57  ;;  %v4269_v36 = vpop.f32.mrb[111].mxu0  ;;  %v1802_v25 = vld [vmem:[#allocation2 + $0x280] sm:$0xff] }
 0x3d6   : > { %4844 = vst [vmem:[#allocation2 + $0x160] sm:$0xff] %v4556_v53  ;;  %v4559_v26 = vadd.f32 %v4269_v36, %v1769_v45  ;;  %v1803_v36 = vld [vmem:[#allocation2 + $0x288] sm:$0xff] }
 0x3d7   : > { %4846 = vst [vmem:[#allocation2 + $0x170] sm:$0xff] %v4558_v20  ;;  %4845 = vst [vmem:[#allocation2 + $0x168] sm:$0xff] %v4557_v9  ;;  %v3567_v47 = vpop.f32.mrb[112].mxu1  ;;  %v1804_v9 = vld [vmem:[#allocation2 + $0x290] sm:$0xff] }
 0x3d8   : > { %4847 = vst [vmem:[#allocation2 + $0x178] sm:$0xff] %v4559_v26  ;;  %v4562_v21 = vadd.f32 %v3567_v47, %v1772_v18  ;;  %v4273_v48 = vpop.f32.mrb[112].mxu0  ;;  %v3569_v13 = vpop.f32.mrb[113].mxu1  ;;  %v1805_v26 = vld [vmem:[#allocation2 + $0x298] sm:$0xff] }
 0x3d9   : > { %v4564_v55 = vadd.f32 %v4273_v48, %v1774_v16  ;;  %v4563_v5 = vadd.f32 %v3569_v13, %v1773_v11  ;;  %v4275_v15 = vpop.f32.mrb[113].mxu0  ;;  %v1808_v13 = vld [vmem:[#allocation2 + $0x2b0] sm:$0xff] }
 0x3da   : > { %4850 = vst [vmem:[#allocation2 + $0x190] sm:$0xff] %v4562_v21  ;;  %v4565_v44 = vadd.f32 %v4275_v15, %v1775_v19  ;;  %v1809_v15 = vld [vmem:[#allocation2 + $0x2b8] sm:$0xff] }
 0x3db   : > { %4852 = vst [vmem:[#allocation2 + $0x1a0] sm:$0xff] %v4564_v55  ;;  %4851 = vst [vmem:[#allocation2 + $0x198] sm:$0xff] %v4563_v5  ;;  %v3573_v46 = vpop.f32.mrb[114].mxu1  ;;  %v1810_v5 = vld [vmem:[#allocation2 + $0x2c0] sm:$0xff] }
 0x3dc   : > { %4853 = vst [vmem:[#allocation2 + $0x1a8] sm:$0xff] %v4565_v44  ;;  %v4568_v12 = vadd.f32 %v3573_v46, %v1778_v6  ;;  %v4279_v28 = vpop.f32.mrb[114].mxu0  ;;  %v3575_v4 = vpop.f32.mrb[115].mxu1  ;;  %v1811_v44 = vld [vmem:[#allocation2 + $0x2c8] sm:$0xff] }
 0x3dd   : > { %v4570_v59 = vadd.f32 %v4279_v28, %v1780_v0  ;;  %v4569_v31 = vadd.f32 %v3575_v4, %v1779_v38  ;;  %v4281_v39 = vpop.f32.mrb[115].mxu0  ;;  %v1814_v4 = vld [vmem:[#allocation2 + $0x2e0] sm:$0xff] }
 0x3de   : > { %4856 = vst [vmem:[#allocation2 + $0x1c0] sm:$0xff] %v4568_v12  ;;  %v4571_v43 = vadd.f32 %v4281_v39, %v1781_v27  ;;  %v1815_v39 = vld [vmem:[#allocation2 + $0x2e8] sm:$0xff] }
 0x3df   : > { %4858 = vst [vmem:[#allocation2 + $0x1d0] sm:$0xff] %v4570_v59  ;;  %4857 = vst [vmem:[#allocation2 + $0x1c8] sm:$0xff] %v4569_v31  ;;  %v3579_v60 = vpop.f32.mrb[116].mxu1  ;;  %v1816_v31 = vld [vmem:[#allocation2 + $0x2f0] sm:$0xff] }
 0x3e0   : > { %4859 = vst [vmem:[#allocation2 + $0x1d8] sm:$0xff] %v4571_v43  ;;  %v4574_v24 = vadd.f32 %v3579_v60, %v1784_v10  ;;  %v4285_v29 = vpop.f32.mrb[116].mxu0  ;;  %v3581_v33 = vpop.f32.mrb[117].mxu1  ;;  %v1817_v43 = vld [vmem:[#allocation2 + $0x2f8] sm:$0xff] }
 0x3e1   : > { %v4576_v56 = vadd.f32 %v4285_v29, %v1786_v62  ;;  %v4575_v3 = vadd.f32 %v3581_v33, %v1785_v41  ;;  %v4287_v2 = vpop.f32.mrb[117].mxu0  ;;  %v1820_v33 = vld [vmem:[#allocation2 + $0x310] sm:$0xff] }
 0x3e2   : > { %4862 = vst [vmem:[#allocation2 + $0x1f0] sm:$0xff] %v4574_v24  ;;  %v4577_v49 = vadd.f32 %v4287_v2, %v1787_v35  ;;  %v1821_v2 = vld [vmem:[#allocation2 + $0x318] sm:$0xff] }
 0x3e3   : > { %4864 = vst [vmem:[#allocation2 + $0x200] sm:$0xff] %v4576_v56  ;;  %4863 = vst [vmem:[#allocation2 + $0x1f8] sm:$0xff] %v4575_v3  ;;  %v3585_v61 = vpop.f32.mrb[118].mxu1  ;;  %v1822_v3 = vld [vmem:[#allocation2 + $0x320] sm:$0xff] }
 0x3e4   : > { %4865 = vst [vmem:[#allocation2 + $0x208] sm:$0xff] %v4577_v49  ;;  %v4580_v54 = vadd.f32 %v3585_v61, %v1790_v14  ;;  %v4291_v42 = vpop.f32.mrb[118].mxu0  ;;  %v3587_v32 = vpop.f32.mrb[119].mxu1  ;;  %v1823_v49 = vld [vmem:[#allocation2 + $0x328] sm:$0xff] }
 0x3e5   : > { %v4582_v37 = vadd.f32 %v4291_v42, %v1792_v50  ;;  %v4581_v1 = vadd.f32 %v3587_v32, %v1791_v7  ;;  %v4293_v8 = vpop.f32.mrb[119].mxu0  ;;  %v1826_v32 = vld [vmem:[#allocation2 + $0x340] sm:$0xff] }
 0x3e6   : > { %4868 = vst [vmem:[#allocation2 + $0x220] sm:$0xff] %v4580_v54  ;;  %v4583_v34 = vadd.f32 %v4293_v8, %v1793_v52  ;;  %v1827_v8 = vld [vmem:[#allocation2 + $0x348] sm:$0xff] }
 0x3e7   : > { %4870 = vst [vmem:[#allocation2 + $0x230] sm:$0xff] %v4582_v37  ;;  %4869 = vst [vmem:[#allocation2 + $0x228] sm:$0xff] %v4581_v1  ;;  %v3591_v40 = vpop.f32.mrb[120].mxu1  ;;  %v1828_v1 = vld [vmem:[#allocation2 + $0x350] sm:$0xff] }
 0x3e8   : > { %4871 = vst [vmem:[#allocation2 + $0x238] sm:$0xff] %v4583_v34  ;;  %v4586_v58 = vadd.f32 %v3591_v40, %v1796_v17  ;;  %v4297_v57 = vpop.f32.mrb[120].mxu0  ;;  %v3593_v23 = vpop.f32.mrb[121].mxu1  ;;  %v1829_v34 = vld [vmem:[#allocation2 + $0x358] sm:$0xff] }
 0x3e9   : > { %v4588_v45 = vadd.f32 %v4297_v57, %v1798_v51  ;;  %v4587_v53 = vadd.f32 %v3593_v23, %v1797_v22  ;;  %v4299_v30 = vpop.f32.mrb[121].mxu0  ;;  %v1832_v23 = vld [vmem:[#allocation2 + $0x370] sm:$0xff] }
 0x3ea   : > { %4874 = vst [vmem:[#allocation2 + $0x250] sm:$0xff] %v4586_v58  ;;  %v4589_v20 = vadd.f32 %v4299_v30, %v1799_v63  ;;  %v1833_v30 = vld [vmem:[#allocation2 + $0x378] sm:$0xff] }
 0x3eb   : > { %4876 = vst [vmem:[#allocation2 + $0x260] sm:$0xff] %v4588_v45  ;;  %4875 = vst [vmem:[#allocation2 + $0x258] sm:$0xff] %v4587_v53  ;;  %v3597_v18 = vpop.f32.mrb[122].mxu1  ;;  %v1834_v53 = vld [vmem:[#allocation2 + $0x380] sm:$0xff] }
 0x3ec   : > { %4877 = vst [vmem:[#allocation2 + $0x268] sm:$0xff] %v4589_v20  ;;  %v4592_v16 = vadd.f32 %v3597_v18, %v1802_v25  ;;  %v4303_v11 = vpop.f32.mrb[122].mxu0  ;;  %v3599_v47 = vpop.f32.mrb[123].mxu1  ;;  %v1835_v20 = vld [vmem:[#allocation2 + $0x388] sm:$0xff] }
 0x3ed   : > { %v4594_v19 = vadd.f32 %v4303_v11, %v1804_v9  ;;  %v4593_v21 = vadd.f32 %v3599_v47, %v1803_v36  ;;  %v4305_v48 = vpop.f32.mrb[123].mxu0  ;;  %v1838_v47 = vld [vmem:[#allocation2 + $0x3a0] sm:$0xff] }
 0x3ee   : > { %4880 = vst [vmem:[#allocation2 + $0x280] sm:$0xff] %v4592_v16  ;;  %v4595_v55 = vadd.f32 %v4305_v48, %v1805_v26  ;;  %v1839_v48 = vld [vmem:[#allocation2 + $0x3a8] sm:$0xff] }
 0x3ef   : > { %4882 = vst [vmem:[#allocation2 + $0x290] sm:$0xff] %v4594_v19  ;;  %4881 = vst [vmem:[#allocation2 + $0x288] sm:$0xff] %v4593_v21  ;;  %v3603_v6 = vpop.f32.mrb[124].mxu1  ;;  %v1840_v21 = vld [vmem:[#allocation2 + $0x3b0] sm:$0xff] }
 0x3f0   : > { %4883 = vst [vmem:[#allocation2 + $0x298] sm:$0xff] %v4595_v55  ;;  %v4598_v0 = vadd.f32 %v3603_v6, %v1808_v13  ;;  %v4309_v38 = vpop.f32.mrb[124].mxu0  ;;  %v3605_v46 = vpop.f32.mrb[125].mxu1  ;;  %v1841_v55 = vld [vmem:[#allocation2 + $0x3b8] sm:$0xff] }
 0x3f1   : > { %v4600_v27 = vadd.f32 %v4309_v38, %v1810_v5  ;;  %v4599_v12 = vadd.f32 %v3605_v46, %v1809_v15  ;;  %v4311_v28 = vpop.f32.mrb[125].mxu0  ;;  %v1844_v46 = vld [vmem:[#allocation2 + $0x3d0] sm:$0xff] }
 0x3f2   : > { %4886 = vst [vmem:[#allocation2 + $0x2b0] sm:$0xff] %v4598_v0  ;;  %v4601_v59 = vadd.f32 %v4311_v28, %v1811_v44  ;;  %v1845_v28 = vld [vmem:[#allocation2 + $0x3d8] sm:$0xff] }
 0x3f3   : > { %4888 = vst [vmem:[#allocation2 + $0x2c0] sm:$0xff] %v4600_v27  ;;  %4887 = vst [vmem:[#allocation2 + $0x2b8] sm:$0xff] %v4599_v12  ;;  %v3609_v10 = vpop.f32.mrb[126].mxu1  ;;  %v1846_v12 = vld [vmem:[#allocation2 + $0x3e0] sm:$0xff] }
 0x3f4   : > { %4889 = vst [vmem:[#allocation2 + $0x2c8] sm:$0xff] %v4601_v59  ;;  %v4604_v62 = vadd.f32 %v3609_v10, %v1814_v4  ;;  %v4315_v41 = vpop.f32.mrb[126].mxu0  ;;  %v3611_v60 = vpop.f32.mrb[127].mxu1  ;;  %v1847_v59 = vld [vmem:[#allocation2 + $0x3e8] sm:$0xff] }
 0x3f5   : > { %v4606_v35 = vadd.f32 %v4315_v41, %v1816_v31  ;;  %v4605_v24 = vadd.f32 %v3611_v60, %v1815_v39  ;;  %v4317_v29 = vpop.f32.mrb[127].mxu0  ;;  %v1850_v60 = vld [vmem:[#allocation2 + $0x400] sm:$0xff] }
 0x3f6   : > { %4892 = vst [vmem:[#allocation2 + $0x2e0] sm:$0xff] %v4604_v62  ;;  %v4607_v56 = vadd.f32 %v4317_v29, %v1817_v43  ;;  %v1851_v29 = vld [vmem:[#allocation2 + $0x408] sm:$0xff] }
 0x3f7   : > { %4894 = vst [vmem:[#allocation2 + $0x2f0] sm:$0xff] %v4606_v35  ;;  %4893 = vst [vmem:[#allocation2 + $0x2e8] sm:$0xff] %v4605_v24  ;;  %v3615_v14 = vpop.f32.mrb[128].mxu1  ;;  %v1852_v24 = vld [vmem:[#allocation2 + $0x410] sm:$0xff] }
 0x3f8   : > { %4895 = vst [vmem:[#allocation2 + $0x2f8] sm:$0xff] %v4607_v56  ;;  %v4610_v50 = vadd.f32 %v3615_v14, %v1820_v33  ;;  %v4321_v7 = vpop.f32.mrb[128].mxu0  ;;  %v3617_v61 = vpop.f32.mrb[129].mxu1  ;;  %v1853_v56 = vld [vmem:[#allocation2 + $0x418] sm:$0xff] }
 0x3f9   : > { %v4612_v52 = vadd.f32 %v4321_v7, %v1822_v3  ;;  %v4611_v54 = vadd.f32 %v3617_v61, %v1821_v2  ;;  %v4323_v42 = vpop.f32.mrb[129].mxu0  ;;  %v1856_v61 = vld [vmem:[#allocation2 + $0x430] sm:$0xff] }
 0x3fa   : > { %4898 = vst [vmem:[#allocation2 + $0x310] sm:$0xff] %v4610_v50  ;;  %v4613_v37 = vadd.f32 %v4323_v42, %v1823_v49  ;;  %v1857_v42 = vld [vmem:[#allocation2 + $0x438] sm:$0xff] }
 0x3fb   : > { %4900 = vst [vmem:[#allocation2 + $0x320] sm:$0xff] %v4612_v52  ;;  %4899 = vst [vmem:[#allocation2 + $0x318] sm:$0xff] %v4611_v54  ;;  %v3621_v17 = vpop.f32.mrb[130].mxu1  ;;  %v1858_v54 = vld [vmem:[#allocation2 + $0x440] sm:$0xff] }
 0x3fc   : > { %4901 = vst [vmem:[#allocation2 + $0x328] sm:$0xff] %v4613_v37  ;;  %v4616_v51 = vadd.f32 %v3621_v17, %v1826_v32  ;;  %v4327_v22 = vpop.f32.mrb[130].mxu0  ;;  %v3623_v40 = vpop.f32.mrb[131].mxu1  ;;  %v1859_v37 = vld [vmem:[#allocation2 + $0x448] sm:$0xff] }
 0x3fd   : > { %v4618_v63 = vadd.f32 %v4327_v22, %v1828_v1  ;;  %v4617_v58 = vadd.f32 %v3623_v40, %v1827_v8  ;;  %v4329_v57 = vpop.f32.mrb[131].mxu0  ;;  %v1862_v40 = vld [vmem:[#allocation2 + $0x460] sm:$0xff] }
 0x3fe   : > { %4904 = vst [vmem:[#allocation2 + $0x340] sm:$0xff] %v4616_v51  ;;  %v4619_v45 = vadd.f32 %v4329_v57, %v1829_v34  ;;  %v1863_v57 = vld [vmem:[#allocation2 + $0x468] sm:$0xff] }
 0x3ff   : > { %4906 = vst [vmem:[#allocation2 + $0x350] sm:$0xff] %v4618_v63  ;;  %4905 = vst [vmem:[#allocation2 + $0x348] sm:$0xff] %v4617_v58  ;;  %v3627_v25 = vpop.f32.mrb[132].mxu1  ;;  %v1864_v58 = vld [vmem:[#allocation2 + $0x470] sm:$0xff] }
 0x400   : > { %4907 = vst [vmem:[#allocation2 + $0x358] sm:$0xff] %v4619_v45  ;;  %v4622_v9 = vadd.f32 %v3627_v25, %v1832_v23  ;;  %v4333_v36 = vpop.f32.mrb[132].mxu0  ;;  %v3629_v18 = vpop.f32.mrb[133].mxu1  ;;  %v1865_v45 = vld [vmem:[#allocation2 + $0x478] sm:$0xff] }
 0x401   : > { %v4624_v26 = vadd.f32 %v4333_v36, %v1834_v53  ;;  %v4623_v16 = vadd.f32 %v3629_v18, %v1833_v30  ;;  %v4335_v11 = vpop.f32.mrb[133].mxu0  ;;  %v1868_v18 = vld [vmem:[#allocation2 + $0x490] sm:$0xff] }
 0x402   : > { %4910 = vst [vmem:[#allocation2 + $0x370] sm:$0xff] %v4622_v9  ;;  %v4625_v19 = vadd.f32 %v4335_v11, %v1835_v20  ;;  %v1869_v11 = vld [vmem:[#allocation2 + $0x498] sm:$0xff] }
 0x403   : > { %4912 = vst [vmem:[#allocation2 + $0x380] sm:$0xff] %v4624_v26  ;;  %4911 = vst [vmem:[#allocation2 + $0x378] sm:$0xff] %v4623_v16  ;;  %v3633_v13 = vpop.f32.mrb[134].mxu1  ;;  %v1870_v16 = vld [vmem:[#allocation2 + $0x4a0] sm:$0xff] }
 0x404   : > { %4913 = vst [vmem:[#allocation2 + $0x388] sm:$0xff] %v4625_v19  ;;  %v4628_v5 = vadd.f32 %v3633_v13, %v1838_v47  ;;  %v4339_v15 = vpop.f32.mrb[134].mxu0  ;;  %v3635_v6 = vpop.f32.mrb[135].mxu1  ;;  %v1871_v19 = vld [vmem:[#allocation2 + $0x4a8] sm:$0xff] }
 0x405   : > { %v4630_v44 = vadd.f32 %v4339_v15, %v1840_v21  ;;  %v4629_v0 = vadd.f32 %v3635_v6, %v1839_v48  ;;  %v4341_v38 = vpop.f32.mrb[135].mxu0  ;;  %v1874_v6 = vld [vmem:[#allocation2 + $0x4c0] sm:$0xff] }
 0x406   : > { %4916 = vst [vmem:[#allocation2 + $0x3a0] sm:$0xff] %v4628_v5  ;;  %v4631_v27 = vadd.f32 %v4341_v38, %v1841_v55  ;;  %v1875_v38 = vld [vmem:[#allocation2 + $0x4c8] sm:$0xff] }
 0x407   : > { %4918 = vst [vmem:[#allocation2 + $0x3b0] sm:$0xff] %v4630_v44  ;;  %4917 = vst [vmem:[#allocation2 + $0x3a8] sm:$0xff] %v4629_v0  ;;  %v3639_v4 = vpop.f32.mrb[136].mxu1  ;;  %v1876_v0 = vld [vmem:[#allocation2 + $0x4d0] sm:$0xff] }
 0x408   : > { %4919 = vst [vmem:[#allocation2 + $0x3b8] sm:$0xff] %v4631_v27  ;;  %v4634_v31 = vadd.f32 %v3639_v4, %v1844_v46  ;;  %v4345_v39 = vpop.f32.mrb[136].mxu0  ;;  %v3641_v10 = vpop.f32.mrb[137].mxu1  ;;  %v1877_v27 = vld [vmem:[#allocation2 + $0x4d8] sm:$0xff] }
 0x409   : > { %v4636_v43 = vadd.f32 %v4345_v39, %v1846_v12  ;;  %v4635_v62 = vadd.f32 %v3641_v10, %v1845_v28  ;;  %v4347_v41 = vpop.f32.mrb[137].mxu0  ;;  %v1880_v10 = vld [vmem:[#allocation2 + $0x4f0] sm:$0xff] }
 0x40a   : > { %4922 = vst [vmem:[#allocation2 + $0x3d0] sm:$0xff] %v4634_v31  ;;  %v4637_v35 = vadd.f32 %v4347_v41, %v1847_v59  ;;  %v1881_v41 = vld [vmem:[#allocation2 + $0x4f8] sm:$0xff] }
 0x40b   : > { %4924 = vst [vmem:[#allocation2 + $0x3e0] sm:$0xff] %v4636_v43  ;;  %4923 = vst [vmem:[#allocation2 + $0x3d8] sm:$0xff] %v4635_v62  ;;  %v3645_v33 = vpop.f32.mrb[138].mxu1  ;;  %v1882_v62 = vld [vmem:[#allocation2 + $0x500] sm:$0xff] }
 0x40c   : > { %4925 = vst [vmem:[#allocation2 + $0x3e8] sm:$0xff] %v4637_v35  ;;  %v4640_v3 = vadd.f32 %v3645_v33, %v1850_v60  ;;  %v4351_v2 = vpop.f32.mrb[138].mxu0  ;;  %v3647_v14 = vpop.f32.mrb[139].mxu1  ;;  %v1883_v35 = vld [vmem:[#allocation2 + $0x508] sm:$0xff] }
 0x40d   : > { %v4642_v49 = vadd.f32 %v4351_v2, %v1852_v24  ;;  %v4641_v50 = vadd.f32 %v3647_v14, %v1851_v29  ;;  %v4353_v7 = vpop.f32.mrb[139].mxu0  ;;  %v1886_v14 = vld [vmem:[#allocation2 + $0x520] sm:$0xff] }
 0x40e   : > { %4928 = vst [vmem:[#allocation2 + $0x400] sm:$0xff] %v4640_v3  ;;  %v4643_v52 = vadd.f32 %v4353_v7, %v1853_v56  ;;  %v1887_v7 = vld [vmem:[#allocation2 + $0x528] sm:$0xff] }
 0x40f   : > { %4930 = vst [vmem:[#allocation2 + $0x410] sm:$0xff] %v4642_v49  ;;  %4929 = vst [vmem:[#allocation2 + $0x408] sm:$0xff] %v4641_v50  ;;  %v3651_v32 = vpop.f32.mrb[140].mxu1  ;;  %v1888_v50 = vld [vmem:[#allocation2 + $0x530] sm:$0xff] }
 0x410   : > { %4931 = vst [vmem:[#allocation2 + $0x418] sm:$0xff] %v4643_v52  ;;  %v4646_v1 = vadd.f32 %v3651_v32, %v1856_v61  ;;  %v4357_v8 = vpop.f32.mrb[140].mxu0  ;;  %v3653_v17 = vpop.f32.mrb[141].mxu1  ;;  %v1889_v52 = vld [vmem:[#allocation2 + $0x538] sm:$0xff] }
 0x411   : > { %v4648_v34 = vadd.f32 %v4357_v8, %v1858_v54  ;;  %v4647_v51 = vadd.f32 %v3653_v17, %v1857_v42  ;;  %v4359_v22 = vpop.f32.mrb[141].mxu0  ;;  %v1892_v17 = vld [vmem:[#allocation2 + $0x550] sm:$0xff] }
 0x412   : > { %4934 = vst [vmem:[#allocation2 + $0x430] sm:$0xff] %v4646_v1  ;;  %v4649_v63 = vadd.f32 %v4359_v22, %v1859_v37  ;;  %v1893_v22 = vld [vmem:[#allocation2 + $0x558] sm:$0xff] }
 0x413   : > { %4936 = vst [vmem:[#allocation2 + $0x440] sm:$0xff] %v4648_v34  ;;  %4935 = vst [vmem:[#allocation2 + $0x438] sm:$0xff] %v4647_v51  ;;  %v3657_v23 = vpop.f32.mrb[142].mxu1  ;;  %v1894_v51 = vld [vmem:[#allocation2 + $0x560] sm:$0xff] }
 0x414   : > { %4937 = vst [vmem:[#allocation2 + $0x448] sm:$0xff] %v4649_v63  ;;  %v4652_v53 = vadd.f32 %v3657_v23, %v1862_v40  ;;  %v4363_v30 = vpop.f32.mrb[142].mxu0  ;;  %v3659_v25 = vpop.f32.mrb[143].mxu1  ;;  %v1895_v63 = vld [vmem:[#allocation2 + $0x568] sm:$0xff] }
 0x415   : > { %v4654_v20 = vadd.f32 %v4363_v30, %v1864_v58  ;;  %v4653_v9 = vadd.f32 %v3659_v25, %v1863_v57  ;;  %v4365_v36 = vpop.f32.mrb[143].mxu0  ;;  %v1898_v25 = vld [vmem:[#allocation2 + $0x580] sm:$0xff] }
 0x416   : > { %4940 = vst [vmem:[#allocation2 + $0x460] sm:$0xff] %v4652_v53  ;;  %v4655_v26 = vadd.f32 %v4365_v36, %v1865_v45  ;;  %v1899_v36 = vld [vmem:[#allocation2 + $0x588] sm:$0xff] }
 0x417   : > { %4942 = vst [vmem:[#allocation2 + $0x470] sm:$0xff] %v4654_v20  ;;  %4941 = vst [vmem:[#allocation2 + $0x468] sm:$0xff] %v4653_v9  ;;  %v3663_v47 = vpop.f32.mrb[144].mxu1  ;;  %v1900_v9 = vld [vmem:[#allocation2 + $0x590] sm:$0xff] }
 0x418   : > { %4943 = vst [vmem:[#allocation2 + $0x478] sm:$0xff] %v4655_v26  ;;  %v4658_v21 = vadd.f32 %v3663_v47, %v1868_v18  ;;  %v4369_v48 = vpop.f32.mrb[144].mxu0  ;;  %v3665_v13 = vpop.f32.mrb[145].mxu1  ;;  %v1901_v26 = vld [vmem:[#allocation2 + $0x598] sm:$0xff] }
 0x419   : > { %v4660_v55 = vadd.f32 %v4369_v48, %v1870_v16  ;;  %v4659_v5 = vadd.f32 %v3665_v13, %v1869_v11  ;;  %v4371_v15 = vpop.f32.mrb[145].mxu0  ;;  %v1904_v13 = vld [vmem:[#allocation2 + $0x5b0] sm:$0xff] }
 0x41a   : > { %4946 = vst [vmem:[#allocation2 + $0x490] sm:$0xff] %v4658_v21  ;;  %v4661_v44 = vadd.f32 %v4371_v15, %v1871_v19  ;;  %v1905_v15 = vld [vmem:[#allocation2 + $0x5b8] sm:$0xff] }
 0x41b   : > { %4948 = vst [vmem:[#allocation2 + $0x4a0] sm:$0xff] %v4660_v55  ;;  %4947 = vst [vmem:[#allocation2 + $0x498] sm:$0xff] %v4659_v5  ;;  %v3669_v46 = vpop.f32.mrb[146].mxu1  ;;  %v1906_v5 = vld [vmem:[#allocation2 + $0x5c0] sm:$0xff] }
 0x41c   : > { %4949 = vst [vmem:[#allocation2 + $0x4a8] sm:$0xff] %v4661_v44  ;;  %v4664_v12 = vadd.f32 %v3669_v46, %v1874_v6  ;;  %v4375_v28 = vpop.f32.mrb[146].mxu0  ;;  %v3671_v4 = vpop.f32.mrb[147].mxu1  ;;  %v1907_v44 = vld [vmem:[#allocation2 + $0x5c8] sm:$0xff] }
 0x41d   : > { %v4666_v59 = vadd.f32 %v4375_v28, %v1876_v0  ;;  %v4665_v31 = vadd.f32 %v3671_v4, %v1875_v38  ;;  %v4377_v39 = vpop.f32.mrb[147].mxu0  ;;  %v1910_v4 = vld [vmem:[#allocation2 + $0x5e0] sm:$0xff] }
 0x41e   : > { %4952 = vst [vmem:[#allocation2 + $0x4c0] sm:$0xff] %v4664_v12  ;;  %v4667_v43 = vadd.f32 %v4377_v39, %v1877_v27  ;;  %v1911_v39 = vld [vmem:[#allocation2 + $0x5e8] sm:$0xff] }
 0x41f   : > { %4954 = vst [vmem:[#allocation2 + $0x4d0] sm:$0xff] %v4666_v59  ;;  %4953 = vst [vmem:[#allocation2 + $0x4c8] sm:$0xff] %v4665_v31  ;;  %v3675_v60 = vpop.f32.mrb[148].mxu1  ;;  %v1912_v31 = vld [vmem:[#allocation2 + $0x5f0] sm:$0xff] }
 0x420   : > { %4955 = vst [vmem:[#allocation2 + $0x4d8] sm:$0xff] %v4667_v43  ;;  %v4670_v24 = vadd.f32 %v3675_v60, %v1880_v10  ;;  %v4381_v29 = vpop.f32.mrb[148].mxu0  ;;  %v3677_v33 = vpop.f32.mrb[149].mxu1  ;;  %v1913_v43 = vld [vmem:[#allocation2 + $0x5f8] sm:$0xff] }
 0x421   : > { %v4672_v56 = vadd.f32 %v4381_v29, %v1882_v62  ;;  %v4671_v3 = vadd.f32 %v3677_v33, %v1881_v41  ;;  %v4383_v2 = vpop.f32.mrb[149].mxu0  ;;  %v1916_v33 = vld [vmem:[#allocation2 + $0x610] sm:$0xff] }
 0x422   : > { %4958 = vst [vmem:[#allocation2 + $0x4f0] sm:$0xff] %v4670_v24  ;;  %v4673_v49 = vadd.f32 %v4383_v2, %v1883_v35  ;;  %v1917_v2 = vld [vmem:[#allocation2 + $0x618] sm:$0xff] }
 0x423   : > { %4960 = vst [vmem:[#allocation2 + $0x500] sm:$0xff] %v4672_v56  ;;  %4959 = vst [vmem:[#allocation2 + $0x4f8] sm:$0xff] %v4671_v3  ;;  %v3681_v61 = vpop.f32.mrb[150].mxu1  ;;  %v1918_v3 = vld [vmem:[#allocation2 + $0x620] sm:$0xff] }
 0x424   : > { %4961 = vst [vmem:[#allocation2 + $0x508] sm:$0xff] %v4673_v49  ;;  %v4676_v54 = vadd.f32 %v3681_v61, %v1886_v14  ;;  %v4387_v42 = vpop.f32.mrb[150].mxu0  ;;  %v3683_v32 = vpop.f32.mrb[151].mxu1  ;;  %v1919_v49 = vld [vmem:[#allocation2 + $0x628] sm:$0xff] }
 0x425   : > { %v4678_v37 = vadd.f32 %v4387_v42, %v1888_v50  ;;  %v4677_v1 = vadd.f32 %v3683_v32, %v1887_v7  ;;  %v4389_v8 = vpop.f32.mrb[151].mxu0  ;;  %v1922_v32 = vld [vmem:[#allocation2 + $0x640] sm:$0xff] }
 0x426   : > { %4964 = vst [vmem:[#allocation2 + $0x520] sm:$0xff] %v4676_v54  ;;  %v4679_v34 = vadd.f32 %v4389_v8, %v1889_v52  ;;  %v1923_v8 = vld [vmem:[#allocation2 + $0x648] sm:$0xff] }
 0x427   : > { %4966 = vst [vmem:[#allocation2 + $0x530] sm:$0xff] %v4678_v37  ;;  %4965 = vst [vmem:[#allocation2 + $0x528] sm:$0xff] %v4677_v1  ;;  %v3687_v40 = vpop.f32.mrb[152].mxu1  ;;  %v1924_v1 = vld [vmem:[#allocation2 + $0x650] sm:$0xff] }
 0x428   : > { %4967 = vst [vmem:[#allocation2 + $0x538] sm:$0xff] %v4679_v34  ;;  %v4682_v58 = vadd.f32 %v3687_v40, %v1892_v17  ;;  %v4393_v57 = vpop.f32.mrb[152].mxu0  ;;  %v3689_v23 = vpop.f32.mrb[153].mxu1  ;;  %v1925_v34 = vld [vmem:[#allocation2 + $0x658] sm:$0xff] }
 0x429   : > { %v4684_v45 = vadd.f32 %v4393_v57, %v1894_v51  ;;  %v4683_v53 = vadd.f32 %v3689_v23, %v1893_v22  ;;  %v4395_v30 = vpop.f32.mrb[153].mxu0  ;;  %v1928_v23 = vld [vmem:[#allocation2 + $0x670] sm:$0xff] }
 0x42a   : > { %4970 = vst [vmem:[#allocation2 + $0x550] sm:$0xff] %v4682_v58  ;;  %v4685_v20 = vadd.f32 %v4395_v30, %v1895_v63  ;;  %v1929_v30 = vld [vmem:[#allocation2 + $0x678] sm:$0xff] }
 0x42b   : > { %4972 = vst [vmem:[#allocation2 + $0x560] sm:$0xff] %v4684_v45  ;;  %4971 = vst [vmem:[#allocation2 + $0x558] sm:$0xff] %v4683_v53  ;;  %v3693_v18 = vpop.f32.mrb[154].mxu1  ;;  %v1930_v53 = vld [vmem:[#allocation2 + $0x680] sm:$0xff] }
 0x42c   : > { %4973 = vst [vmem:[#allocation2 + $0x568] sm:$0xff] %v4685_v20  ;;  %v4688_v16 = vadd.f32 %v3693_v18, %v1898_v25  ;;  %v4399_v11 = vpop.f32.mrb[154].mxu0  ;;  %v3695_v47 = vpop.f32.mrb[155].mxu1  ;;  %v1931_v20 = vld [vmem:[#allocation2 + $0x688] sm:$0xff] }
 0x42d   : > { %v4690_v19 = vadd.f32 %v4399_v11, %v1900_v9  ;;  %v4689_v21 = vadd.f32 %v3695_v47, %v1899_v36  ;;  %v4401_v48 = vpop.f32.mrb[155].mxu0  ;;  %v1934_v47 = vld [vmem:[#allocation2 + $0x6a0] sm:$0xff] }
 0x42e   : > { %4976 = vst [vmem:[#allocation2 + $0x580] sm:$0xff] %v4688_v16  ;;  %v4691_v55 = vadd.f32 %v4401_v48, %v1901_v26  ;;  %v1935_v48 = vld [vmem:[#allocation2 + $0x6a8] sm:$0xff] }
 0x42f   : > { %4978 = vst [vmem:[#allocation2 + $0x590] sm:$0xff] %v4690_v19  ;;  %4977 = vst [vmem:[#allocation2 + $0x588] sm:$0xff] %v4689_v21  ;;  %v3699_v6 = vpop.f32.mrb[156].mxu1  ;;  %v1936_v21 = vld [vmem:[#allocation2 + $0x6b0] sm:$0xff] }
 0x430   : > { %4979 = vst [vmem:[#allocation2 + $0x598] sm:$0xff] %v4691_v55  ;;  %v4694_v0 = vadd.f32 %v3699_v6, %v1904_v13  ;;  %v4405_v38 = vpop.f32.mrb[156].mxu0  ;;  %v3701_v46 = vpop.f32.mrb[157].mxu1  ;;  %v1937_v55 = vld [vmem:[#allocation2 + $0x6b8] sm:$0xff] }
 0x431   : > { %v4696_v27 = vadd.f32 %v4405_v38, %v1906_v5  ;;  %v4695_v12 = vadd.f32 %v3701_v46, %v1905_v15  ;;  %v4407_v28 = vpop.f32.mrb[157].mxu0  ;;  %v1940_v46 = vld [vmem:[#allocation2 + $0x6d0] sm:$0xff] }
 0x432   : > { %4982 = vst [vmem:[#allocation2 + $0x5b0] sm:$0xff] %v4694_v0  ;;  %v4697_v59 = vadd.f32 %v4407_v28, %v1907_v44  ;;  %v1941_v28 = vld [vmem:[#allocation2 + $0x6d8] sm:$0xff] }
 0x433   : > { %4984 = vst [vmem:[#allocation2 + $0x5c0] sm:$0xff] %v4696_v27  ;;  %4983 = vst [vmem:[#allocation2 + $0x5b8] sm:$0xff] %v4695_v12  ;;  %v3705_v10 = vpop.f32.mrb[158].mxu1  ;;  %v1942_v12 = vld [vmem:[#allocation2 + $0x6e0] sm:$0xff] }
 0x434   : > { %4985 = vst [vmem:[#allocation2 + $0x5c8] sm:$0xff] %v4697_v59  ;;  %v4700_v62 = vadd.f32 %v3705_v10, %v1910_v4  ;;  %v4411_v41 = vpop.f32.mrb[158].mxu0  ;;  %v3707_v60 = vpop.f32.mrb[159].mxu1  ;;  %v1943_v59 = vld [vmem:[#allocation2 + $0x6e8] sm:$0xff] }
 0x435   : > { %v4702_v35 = vadd.f32 %v4411_v41, %v1912_v31  ;;  %v4701_v24 = vadd.f32 %v3707_v60, %v1911_v39  ;;  %v4413_v29 = vpop.f32.mrb[159].mxu0  ;;  %v1946_v60 = vld [vmem:[#allocation2 + $0x700] sm:$0xff] }
 0x436   : > { %4988 = vst [vmem:[#allocation2 + $0x5e0] sm:$0xff] %v4700_v62  ;;  %v4703_v56 = vadd.f32 %v4413_v29, %v1913_v43  ;;  %v1947_v29 = vld [vmem:[#allocation2 + $0x708] sm:$0xff] }
 0x437   : > { %4990 = vst [vmem:[#allocation2 + $0x5f0] sm:$0xff] %v4702_v35  ;;  %4989 = vst [vmem:[#allocation2 + $0x5e8] sm:$0xff] %v4701_v24  ;;  %v3711_v14 = vpop.f32.mrb[160].mxu1  ;;  %v1948_v24 = vld [vmem:[#allocation2 + $0x710] sm:$0xff] }
 0x438   : > { %4991 = vst [vmem:[#allocation2 + $0x5f8] sm:$0xff] %v4703_v56  ;;  %v4706_v50 = vadd.f32 %v3711_v14, %v1916_v33  ;;  %v4417_v7 = vpop.f32.mrb[160].mxu0  ;;  %v3713_v61 = vpop.f32.mrb[161].mxu1  ;;  %v1949_v56 = vld [vmem:[#allocation2 + $0x718] sm:$0xff] }
 0x439   : > { %v4708_v52 = vadd.f32 %v4417_v7, %v1918_v3  ;;  %v4707_v54 = vadd.f32 %v3713_v61, %v1917_v2  ;;  %v4419_v42 = vpop.f32.mrb[161].mxu0  ;;  %v1952_v61 = vld [vmem:[#allocation2 + $0x730] sm:$0xff] }
 0x43a   : > { %4994 = vst [vmem:[#allocation2 + $0x610] sm:$0xff] %v4706_v50  ;;  %v4709_v37 = vadd.f32 %v4419_v42, %v1919_v49  ;;  %v1953_v42 = vld [vmem:[#allocation2 + $0x738] sm:$0xff] }
 0x43b   : > { %4996 = vst [vmem:[#allocation2 + $0x620] sm:$0xff] %v4708_v52  ;;  %4995 = vst [vmem:[#allocation2 + $0x618] sm:$0xff] %v4707_v54  ;;  %v3717_v17 = vpop.f32.mrb[162].mxu1  ;;  %v1954_v54 = vld [vmem:[#allocation2 + $0x740] sm:$0xff] }
 0x43c   : > { %4997 = vst [vmem:[#allocation2 + $0x628] sm:$0xff] %v4709_v37  ;;  %v4712_v51 = vadd.f32 %v3717_v17, %v1922_v32  ;;  %v4423_v22 = vpop.f32.mrb[162].mxu0  ;;  %v3719_v40 = vpop.f32.mrb[163].mxu1  ;;  %v1955_v37 = vld [vmem:[#allocation2 + $0x748] sm:$0xff] }
 0x43d   : > { %v4714_v63 = vadd.f32 %v4423_v22, %v1924_v1  ;;  %v4713_v58 = vadd.f32 %v3719_v40, %v1923_v8  ;;  %v4425_v57 = vpop.f32.mrb[163].mxu0  ;;  %v1958_v40 = vld [vmem:[#allocation2 + $0x760] sm:$0xff] }
 0x43e   : > { %5000 = vst [vmem:[#allocation2 + $0x640] sm:$0xff] %v4712_v51  ;;  %v4715_v45 = vadd.f32 %v4425_v57, %v1925_v34  ;;  %v1959_v57 = vld [vmem:[#allocation2 + $0x768] sm:$0xff] }
 0x43f   : > { %5002 = vst [vmem:[#allocation2 + $0x650] sm:$0xff] %v4714_v63  ;;  %5001 = vst [vmem:[#allocation2 + $0x648] sm:$0xff] %v4713_v58  ;;  %v3723_v25 = vpop.f32.mrb[164].mxu1  ;;  %v1960_v58 = vld [vmem:[#allocation2 + $0x770] sm:$0xff] }
 0x440   : > { %5003 = vst [vmem:[#allocation2 + $0x658] sm:$0xff] %v4715_v45  ;;  %v4718_v9 = vadd.f32 %v3723_v25, %v1928_v23  ;;  %v4429_v36 = vpop.f32.mrb[164].mxu0  ;;  %v3725_v18 = vpop.f32.mrb[165].mxu1  ;;  %v1961_v45 = vld [vmem:[#allocation2 + $0x778] sm:$0xff] }
 0x441   : > { %v4720_v26 = vadd.f32 %v4429_v36, %v1930_v53  ;;  %v4719_v16 = vadd.f32 %v3725_v18, %v1929_v30  ;;  %v4431_v11 = vpop.f32.mrb[165].mxu0  ;;  %v1964_v18 = vld [vmem:[#allocation2 + $0x790] sm:$0xff] }
 0x442   : > { %5006 = vst [vmem:[#allocation2 + $0x670] sm:$0xff] %v4718_v9  ;;  %v4721_v19 = vadd.f32 %v4431_v11, %v1931_v20  ;;  %v1965_v11 = vld [vmem:[#allocation2 + $0x798] sm:$0xff] }
 0x443   : > { %5008 = vst [vmem:[#allocation2 + $0x680] sm:$0xff] %v4720_v26  ;;  %5007 = vst [vmem:[#allocation2 + $0x678] sm:$0xff] %v4719_v16  ;;  %v3729_v13 = vpop.f32.mrb[166].mxu1  ;;  %v1966_v16 = vld [vmem:[#allocation2 + $0x7a0] sm:$0xff] }
 0x444   : > { %5009 = vst [vmem:[#allocation2 + $0x688] sm:$0xff] %v4721_v19  ;;  %v4724_v5 = vadd.f32 %v3729_v13, %v1934_v47  ;;  %v4435_v15 = vpop.f32.mrb[166].mxu0  ;;  %v3731_v6 = vpop.f32.mrb[167].mxu1  ;;  %v1967_v19 = vld [vmem:[#allocation2 + $0x7a8] sm:$0xff] }
 0x445   : > { %v4726_v44 = vadd.f32 %v4435_v15, %v1936_v21  ;;  %v4725_v0 = vadd.f32 %v3731_v6, %v1935_v48  ;;  %v4437_v38 = vpop.f32.mrb[167].mxu0  ;;  %v1970_v6 = vld [vmem:[#allocation2 + $0x7c0] sm:$0xff] }
 0x446   : > { %5012 = vst [vmem:[#allocation2 + $0x6a0] sm:$0xff] %v4724_v5  ;;  %v4727_v27 = vadd.f32 %v4437_v38, %v1937_v55  ;;  %v1971_v38 = vld [vmem:[#allocation2 + $0x7c8] sm:$0xff] }
 0x447   : > { %5014 = vst [vmem:[#allocation2 + $0x6b0] sm:$0xff] %v4726_v44  ;;  %5013 = vst [vmem:[#allocation2 + $0x6a8] sm:$0xff] %v4725_v0  ;;  %v3735_v4 = vpop.f32.mrb[168].mxu1  ;;  %v1972_v0 = vld [vmem:[#allocation2 + $0x7d0] sm:$0xff] }
 0x448   : > { %5015 = vst [vmem:[#allocation2 + $0x6b8] sm:$0xff] %v4727_v27  ;;  %v4730_v31 = vadd.f32 %v3735_v4, %v1940_v46  ;;  %v4441_v39 = vpop.f32.mrb[168].mxu0  ;;  %v3737_v10 = vpop.f32.mrb[169].mxu1  ;;  %v1973_v27 = vld [vmem:[#allocation2 + $0x7d8] sm:$0xff] }
 0x449   : > { %v4732_v43 = vadd.f32 %v4441_v39, %v1942_v12  ;;  %v4731_v62 = vadd.f32 %v3737_v10, %v1941_v28  ;;  %v4443_v41 = vpop.f32.mrb[169].mxu0  ;;  %v1976_v10 = vld [vmem:[#allocation2 + $0x7f0] sm:$0xff] }
 0x44a   : > { %5018 = vst [vmem:[#allocation2 + $0x6d0] sm:$0xff] %v4730_v31  ;;  %v4733_v35 = vadd.f32 %v4443_v41, %v1943_v59  ;;  %v1977_v41 = vld [vmem:[#allocation2 + $0x7f8] sm:$0xff] }
 0x44b   : > { %5020 = vst [vmem:[#allocation2 + $0x6e0] sm:$0xff] %v4732_v43  ;;  %5019 = vst [vmem:[#allocation2 + $0x6d8] sm:$0xff] %v4731_v62  ;;  %v3741_v33 = vpop.f32.mrb[170].mxu1  ;;  %v1978_v62 = vld [vmem:[#allocation2 + $0x800] sm:$0xff] }
 0x44c   : > { %5021 = vst [vmem:[#allocation2 + $0x6e8] sm:$0xff] %v4733_v35  ;;  %v4736_v3 = vadd.f32 %v3741_v33, %v1946_v60  ;;  %v4447_v2 = vpop.f32.mrb[170].mxu0  ;;  %v3743_v14 = vpop.f32.mrb[171].mxu1  ;;  %v1979_v35 = vld [vmem:[#allocation2 + $0x808] sm:$0xff] }
 0x44d   : > { %v4738_v49 = vadd.f32 %v4447_v2, %v1948_v24  ;;  %v4737_v50 = vadd.f32 %v3743_v14, %v1947_v29  ;;  %v4449_v7 = vpop.f32.mrb[171].mxu0  ;;  %v1982_v14 = vld [vmem:[#allocation2 + $0x820] sm:$0xff] }
 0x44e   : > { %5024 = vst [vmem:[#allocation2 + $0x700] sm:$0xff] %v4736_v3  ;;  %v4739_v52 = vadd.f32 %v4449_v7, %v1949_v56  ;;  %v1983_v7 = vld [vmem:[#allocation2 + $0x828] sm:$0xff] }
 0x44f   : > { %5026 = vst [vmem:[#allocation2 + $0x710] sm:$0xff] %v4738_v49  ;;  %5025 = vst [vmem:[#allocation2 + $0x708] sm:$0xff] %v4737_v50  ;;  %v3747_v32 = vpop.f32.mrb[172].mxu1  ;;  %v1984_v50 = vld [vmem:[#allocation2 + $0x830] sm:$0xff] }
 0x450   : > { %5027 = vst [vmem:[#allocation2 + $0x718] sm:$0xff] %v4739_v52  ;;  %v4742_v1 = vadd.f32 %v3747_v32, %v1952_v61  ;;  %v4453_v8 = vpop.f32.mrb[172].mxu0  ;;  %v3749_v17 = vpop.f32.mrb[173].mxu1  ;;  %v1985_v52 = vld [vmem:[#allocation2 + $0x838] sm:$0xff] }
 0x451   : > { %v4744_v34 = vadd.f32 %v4453_v8, %v1954_v54  ;;  %v4743_v51 = vadd.f32 %v3749_v17, %v1953_v42  ;;  %v4455_v22 = vpop.f32.mrb[173].mxu0  ;;  %v1988_v17 = vld [vmem:[#allocation2 + $0x850] sm:$0xff] }
 0x452   : > { %5030 = vst [vmem:[#allocation2 + $0x730] sm:$0xff] %v4742_v1  ;;  %v4745_v63 = vadd.f32 %v4455_v22, %v1955_v37  ;;  %v1989_v22 = vld [vmem:[#allocation2 + $0x858] sm:$0xff] }
 0x453   : > { %5032 = vst [vmem:[#allocation2 + $0x740] sm:$0xff] %v4744_v34  ;;  %5031 = vst [vmem:[#allocation2 + $0x738] sm:$0xff] %v4743_v51  ;;  %v3753_v23 = vpop.f32.mrb[174].mxu1  ;;  %v1990_v51 = vld [vmem:[#allocation2 + $0x860] sm:$0xff] }
 0x454   : > { %5033 = vst [vmem:[#allocation2 + $0x748] sm:$0xff] %v4745_v63  ;;  %v4748_v53 = vadd.f32 %v3753_v23, %v1958_v40  ;;  %v4459_v30 = vpop.f32.mrb[174].mxu0  ;;  %v3755_v25 = vpop.f32.mrb[175].mxu1  ;;  %v1991_v63 = vld [vmem:[#allocation2 + $0x868] sm:$0xff] }
 0x455   : > { %v4750_v20 = vadd.f32 %v4459_v30, %v1960_v58  ;;  %v4749_v9 = vadd.f32 %v3755_v25, %v1959_v57  ;;  %v4461_v36 = vpop.f32.mrb[175].mxu0  ;;  %v1994_v25 = vld [vmem:[#allocation2 + $0x880] sm:$0xff] }
 0x456   : > { %5036 = vst [vmem:[#allocation2 + $0x760] sm:$0xff] %v4748_v53  ;;  %v4751_v26 = vadd.f32 %v4461_v36, %v1961_v45  ;;  %v1995_v36 = vld [vmem:[#allocation2 + $0x888] sm:$0xff] }
 0x457   : > { %5038 = vst [vmem:[#allocation2 + $0x770] sm:$0xff] %v4750_v20  ;;  %5037 = vst [vmem:[#allocation2 + $0x768] sm:$0xff] %v4749_v9  ;;  %v3759_v47 = vpop.f32.mrb[176].mxu1  ;;  %v1996_v9 = vld [vmem:[#allocation2 + $0x890] sm:$0xff] }
 0x458   : > { %5039 = vst [vmem:[#allocation2 + $0x778] sm:$0xff] %v4751_v26  ;;  %v4754_v21 = vadd.f32 %v3759_v47, %v1964_v18  ;;  %v4465_v48 = vpop.f32.mrb[176].mxu0  ;;  %v3761_v13 = vpop.f32.mrb[177].mxu1  ;;  %v1997_v26 = vld [vmem:[#allocation2 + $0x898] sm:$0xff] }
 0x459   : > { %v4756_v55 = vadd.f32 %v4465_v48, %v1966_v16  ;;  %v4755_v5 = vadd.f32 %v3761_v13, %v1965_v11  ;;  %v4467_v15 = vpop.f32.mrb[177].mxu0  ;;  %v2000_v13 = vld [vmem:[#allocation2 + $0x8b0] sm:$0xff] }
 0x45a   : > { %5042 = vst [vmem:[#allocation2 + $0x790] sm:$0xff] %v4754_v21  ;;  %v4757_v44 = vadd.f32 %v4467_v15, %v1967_v19  ;;  %v2001_v15 = vld [vmem:[#allocation2 + $0x8b8] sm:$0xff] }
 0x45b   : > { %5044 = vst [vmem:[#allocation2 + $0x7a0] sm:$0xff] %v4756_v55  ;;  %5043 = vst [vmem:[#allocation2 + $0x798] sm:$0xff] %v4755_v5  ;;  %v3765_v46 = vpop.f32.mrb[178].mxu1  ;;  %v2002_v5 = vld [vmem:[#allocation2 + $0x8c0] sm:$0xff] }
 0x45c   : > { %5045 = vst [vmem:[#allocation2 + $0x7a8] sm:$0xff] %v4757_v44  ;;  %v4760_v12 = vadd.f32 %v3765_v46, %v1970_v6  ;;  %v4471_v28 = vpop.f32.mrb[178].mxu0  ;;  %v3767_v4 = vpop.f32.mrb[179].mxu1  ;;  %v2003_v44 = vld [vmem:[#allocation2 + $0x8c8] sm:$0xff] }
 0x45d   : > { %v4762_v59 = vadd.f32 %v4471_v28, %v1972_v0  ;;  %v4761_v31 = vadd.f32 %v3767_v4, %v1971_v38  ;;  %v4473_v39 = vpop.f32.mrb[179].mxu0  ;;  %v2006_v4 = vld [vmem:[#allocation2 + $0x8e0] sm:$0xff] }
 0x45e   : > { %5048 = vst [vmem:[#allocation2 + $0x7c0] sm:$0xff] %v4760_v12  ;;  %v4763_v43 = vadd.f32 %v4473_v39, %v1973_v27  ;;  %v2007_v39 = vld [vmem:[#allocation2 + $0x8e8] sm:$0xff] }
 0x45f   : > { %5050 = vst [vmem:[#allocation2 + $0x7d0] sm:$0xff] %v4762_v59  ;;  %5049 = vst [vmem:[#allocation2 + $0x7c8] sm:$0xff] %v4761_v31  ;;  %v3771_v60 = vpop.f32.mrb[180].mxu1  ;;  %v2008_v31 = vld [vmem:[#allocation2 + $0x8f0] sm:$0xff] }
 0x460   : > { %5051 = vst [vmem:[#allocation2 + $0x7d8] sm:$0xff] %v4763_v43  ;;  %v4766_v24 = vadd.f32 %v3771_v60, %v1976_v10  ;;  %v4477_v29 = vpop.f32.mrb[180].mxu0  ;;  %v3773_v33 = vpop.f32.mrb[181].mxu1  ;;  %v2009_v43 = vld [vmem:[#allocation2 + $0x8f8] sm:$0xff] }
 0x461   : > { %v4768_v56 = vadd.f32 %v4477_v29, %v1978_v62  ;;  %v4767_v3 = vadd.f32 %v3773_v33, %v1977_v41  ;;  %v4479_v2 = vpop.f32.mrb[181].mxu0 }
 0x462   : > { %5054 = vst [vmem:[#allocation2 + $0x7f0] sm:$0xff] %v4766_v24  ;;  %v4769_v49 = vadd.f32 %v4479_v2, %v1979_v35 }
 0x463   : > { %5056 = vst [vmem:[#allocation2 + $0x800] sm:$0xff] %v4768_v56  ;;  %5055 = vst [vmem:[#allocation2 + $0x7f8] sm:$0xff] %v4767_v3  ;;  %v3777_v61 = vpop.f32.mrb[182].mxu1  ;;  %v5382_v56 = vlaneseq (!%p6122_p12)  ;;  %v5380_v3 = vld [vmem:[%s10862_s2] sm:$0x3f] (!%p6122_p12) }
 0x464   : > { %5057 = vst [vmem:[#allocation2 + $0x808] sm:$0xff] %v4769_v49  ;;  %v4772_v54 = vadd.f32 %v3777_v61, %v1982_v14  ;;  %v4483_v42 = vpop.f32.mrb[182].mxu0  ;;  %v3779_v32 = vpop.f32.mrb[183].mxu1  ;;  %v5092_v14 = vld [vmem:[#allocation2] sm:$0xff] (!%p6122_p12)  ;;  %v5093_v49 = vld [vmem:[#allocation2 + $0x8] sm:$0xff] (!%p6122_p12) }
 0x465   : > { %v4774_v37 = vadd.f32 %v4483_v42, %v1984_v50  ;;  %v4773_v1 = vadd.f32 %v3779_v32, %v1983_v7  ;;  %v4485_v8 = vpop.f32.mrb[183].mxu0  ;;  %v5383_v2 = vshrl.u32 (!%p6122_p12), %v5382_v56, 7  ;;  %v5094_v50 = vld [vmem:[#allocation2 + $0x10] sm:$0xff] (!%p6122_p12)  ;;  %v5095_v7 = vld [vmem:[#allocation2 + $0x18] sm:$0xff] (!%p6122_p12)  ;;  %v5096_v32 = vld [vmem:[#allocation2 + $0x20] sm:$0xff] (!%p6122_p12) }
 0x466   : > { %5060 = vst [vmem:[#allocation2 + $0x820] sm:$0xff] %v4772_v54  ;;  %v4775_v34 = vadd.f32 %v4485_v8, %v1985_v52  ;;  %v5099_v8 = vld [vmem:[#allocation2 + $0x38] sm:$0xff] (!%p6122_p12)  ;;  %v5125_v56 = vld [vmem:[#allocation2 + $0x108] sm:$0xff] (!%p6122_p12) }
 0x467   : > { %5062 = vst [vmem:[#allocation2 + $0x830] sm:$0xff] %v4774_v37  ;;  %5061 = vst [vmem:[#allocation2 + $0x828] sm:$0xff] %v4773_v1  ;;  %v3783_v40 = vpop.f32.mrb[184].mxu1  ;;  %v5384_v61 = vsub.s32 (!%p6122_p12), 0, %v5383_v2  ;;  %v5388_v52 = vsub.s32 (!%p6122_p12), 1, %v5383_v2  ;;  %v5392_v54 = vsub.s32 (!%p6122_p12), 2, %v5383_v2 }
 0x468   : > { %5063 = vst [vmem:[#allocation2 + $0x838] sm:$0xff] %v4775_v34  ;;  %v4778_v58 = vadd.f32 %v3783_v40, %v1988_v17  ;;  %v4489_v57 = vpop.f32.mrb[184].mxu0  ;;  %v3785_v23 = vpop.f32.mrb[185].mxu1  ;;  %v5396_v42 = vsub.s32 (!%p6122_p12), 3, %v5383_v2  ;;  %v5097_v37 = vld [vmem:[#allocation2 + $0x28] sm:$0xff] (!%p6122_p12)  ;;  %v5098_v1 = vld [vmem:[#allocation2 + $0x30] sm:$0xff] (!%p6122_p12) }
 0x469   : > { %v4780_v45 = vadd.f32 %v4489_v57, %v1990_v51  ;;  %v4779_v53 = vadd.f32 %v3785_v23, %v1989_v22  ;;  %v4491_v30 = vpop.f32.mrb[185].mxu0  ;;  %v5400_v17 = vsub.s32 (!%p6122_p12), 4, %v5383_v2  ;;  %v5404_v34 = vsub.s32 (!%p6122_p12), 5, %v5383_v2  ;;  %v5100_v51 = vld [vmem:[#allocation2 + $0x40] sm:$0xff] (!%p6122_p12)  ;;  %v5101_v22 = vld [vmem:[#allocation2 + $0x48] sm:$0xff] (!%p6122_p12)  ;;  %v5102_v40 = vld [vmem:[#allocation2 + $0x50] sm:$0xff] (!%p6122_p12) }
 0x46a   : > { %5066 = vst [vmem:[#allocation2 + $0x850] sm:$0xff] %v4778_v58  ;;  %v4781_v20 = vadd.f32 %v4491_v30, %v1991_v63  ;;  %v5103_v63 = vld [vmem:[#allocation2 + $0x58] sm:$0xff] (!%p6122_p12)  ;;  %v10514_v58 = vrot.slane (!%p6122_p12), %v5380_v3, %v5384_v61  ;;  %v10516_v57 = vrot.slane (!%p6122_p12), %v5380_v3, %v5388_v52  ;;  %v10518_v23 = vrot.slane (!%p6122_p12), %v5380_v3, %v5392_v54  ;;  %v5105_v30 = vld [vmem:[#allocation2 + $0x68] sm:$0xff] (!%p6122_p12)  ;;  %v5128_v61 = vld [vmem:[#allocation2 + $0x120] sm:$0xff] (!%p6122_p12) }
 0x46b   : > { %5068 = vst [vmem:[#allocation2 + $0x860] sm:$0xff] %v4780_v45  ;;  %5067 = vst [vmem:[#allocation2 + $0x858] sm:$0xff] %v4779_v53  ;;  %v3789_v18 = vpop.f32.mrb[186].mxu1  ;;  %v10520_v45 = vrot.slane (!%p6122_p12), %v5380_v3, %v5396_v42  ;;  %v5104_v53 = vld [vmem:[#allocation2 + $0x60] sm:$0xff] (!%p6122_p12) }
 0x46c   : > { %5069 = vst [vmem:[#allocation2 + $0x868] sm:$0xff] %v4781_v20  ;;  %v4784_v16 = vadd.f32 %v3789_v18, %v1994_v25  ;;  %v4495_v11 = vpop.f32.mrb[186].mxu0  ;;  %v3791_v47 = vpop.f32.mrb[187].mxu1  ;;  %v5106_v25 = vld [vmem:[#allocation2 + $0x70] sm:$0xff] (!%p6122_p12)  ;;  %v5107_v20 = vld [vmem:[#allocation2 + $0x78] sm:$0xff] (!%p6122_p12)  ;;  %v5108_v18 = vld [vmem:[#allocation2 + $0x80] sm:$0xff] (!%p6122_p12) }
 0x46d   : > { %v4786_v19 = vadd.f32 %v4495_v11, %v1996_v9  ;;  %v4785_v21 = vadd.f32 %v3791_v47, %v1995_v36  ;;  %v4497_v48 = vpop.f32.mrb[187].mxu0  ;;  %v10522_v9 = vrot.slane (!%p6122_p12), %v5380_v3, %v5400_v17  ;;  %v10524_v36 = vrot.slane (!%p6122_p12), %v5380_v3, %v5404_v34  ;;  %v5111_v11 = vld [vmem:[#allocation2 + $0x98] sm:$0xff] (!%p6122_p12) }
 0x46e   : > { %5072 = vst [vmem:[#allocation2 + $0x880] sm:$0xff] %v4784_v16  ;;  %v4787_v55 = vadd.f32 %v4497_v48, %v1997_v26  ;;  %v5109_v26 = vld [vmem:[#allocation2 + $0x88] sm:$0xff] (!%p6122_p12)  ;;  %v5110_v16 = vld [vmem:[#allocation2 + $0x90] sm:$0xff] (!%p6122_p12)  ;;  %v5412_v47 = vadd.f32 (!%p6122_p12), %v10514_v58, %v5092_v14  ;;  %v5415_v48 = vadd.f32 (!%p6122_p12), %v10520_v45, %v5095_v7  ;;  %v5127_v7 = vld [vmem:[#allocation2 + $0x118] sm:$0xff] (!%p6122_p12) }
 0x46f   : > { %5074 = vst [vmem:[#allocation2 + $0x890] sm:$0xff] %v4786_v19  ;;  %5073 = vst [vmem:[#allocation2 + $0x888] sm:$0xff] %v4785_v21  ;;  %v3795_v6 = vpop.f32.mrb[188].mxu1  ;;  %v5413_v19 = vadd.f32 (!%p6122_p12), %v10516_v57, %v5093_v49  ;;  %v5414_v21 = vadd.f32 (!%p6122_p12), %v10518_v23, %v5094_v50  ;;  %v5428_v3 = vadd.f32 (!%p6122_p12), %v10522_v9, %v5108_v18  ;;  %v5126_v50 = vld [vmem:[#allocation2 + $0x110] sm:$0xff] (!%p6122_p12) }
 0x470   : > { %5075 = vst [vmem:[#allocation2 + $0x898] sm:$0xff] %v4787_v55  ;;  %v4790_v0 = vadd.f32 %v3795_v6, %v2000_v13  ;;  %v4501_v38 = vpop.f32.mrb[188].mxu0  ;;  %v3797_v46 = vpop.f32.mrb[189].mxu1  ;;  %v5112_v13 = vld [vmem:[#allocation2 + $0xa0] sm:$0xff] (!%p6122_p12)  ;;  %v5113_v55 = vld [vmem:[#allocation2 + $0xa8] sm:$0xff] (!%p6122_p12)  ;;  %v5416_v6 = vadd.f32 (!%p6122_p12), %v10522_v9, %v5096_v32  ;;  %5700 = vst [vmem:[#allocation8] sm:$0xff] (!%p6122_p12), %v5412_v47  ;;  %v5429_v2 = vadd.f32 (!%p6122_p12), %v10524_v36, %v5109_v26 }
 0x471   : > { %v4792_v27 = vadd.f32 %v4501_v38, %v2002_v5  ;;  %v4791_v12 = vadd.f32 %v3797_v46, %v2001_v15  ;;  %v4503_v28 = vpop.f32.mrb[189].mxu0  ;;  %v5114_v5 = vld [vmem:[#allocation2 + $0xb0] sm:$0xff] (!%p6122_p12)  ;;  %v5115_v15 = vld [vmem:[#allocation2 + $0xb8] sm:$0xff] (!%p6122_p12)  ;;  %v5419_v38 = vadd.f32 (!%p6122_p12), %v10516_v57, %v5099_v8  ;;  %v5116_v46 = vld [vmem:[#allocation2 + $0xc0] sm:$0xff] (!%p6122_p12)  ;;  %5701 = vst [vmem:[#allocation8 + $0x8] sm:$0xff] (!%p6122_p12), %v5413_v19  ;;  %v5430_v14 = vadd.f32 (!%p6122_p12), %v10514_v58, %v5110_v16 }
 0x472   : > { %5078 = vst [vmem:[#allocation2 + $0x8b0] sm:$0xff] %v4790_v0  ;;  %v4793_v59 = vadd.f32 %v4503_v28, %v2003_v44  ;;  %5091 = sbr.rel (%p6122_p12) target bundleno = 1286 (0x506), region = 48  ;;  %v5417_v44 = vadd.f32 (!%p6122_p12), %v10524_v36, %v5097_v37  ;;  %v5418_v0 = vadd.f32 (!%p6122_p12), %v10514_v58, %v5098_v1  ;;  %v5119_v28 = vld [vmem:[#allocation2 + $0xd8] sm:$0xff] (!%p6122_p12)  ;;  %5702 = vst [vmem:[#allocation8 + $0x10] sm:$0xff] (!%p6122_p12), %v5414_v21  ;;  %v5129_v37 = vld [vmem:[#allocation2 + $0x128] sm:$0xff] (!%p6122_p12) }
 0x473   : > { %5080 = vst [vmem:[#allocation2 + $0x8c0] sm:$0xff] %v4792_v27  ;;  %5079 = vst [vmem:[#allocation2 + $0x8b8] sm:$0xff] %v4791_v12  ;;  %v3801_v10 = vpop.f32.mrb[190].mxu1  ;;  %v5117_v27 = vld [vmem:[#allocation2 + $0xc8] sm:$0xff] (!%p6122_p12)  ;;  %v5118_v12 = vld [vmem:[#allocation2 + $0xd0] sm:$0xff] (!%p6122_p12)  ;;  %v5431_v49 = vadd.f32 (!%p6122_p12), %v10516_v57, %v5111_v11  ;;  %v5432_v52 = vadd.f32 (!%p6122_p12), %v10518_v23, %v5112_v13  ;;  %v5433_v54 = vadd.f32 (!%p6122_p12), %v10520_v45, %v5113_v55 }
 0x474   : > { %5081 = vst [vmem:[#allocation2 + $0x8c8] sm:$0xff] %v4793_v59  ;;  %v4796_v62 = vadd.f32 %v3801_v10, %v2006_v4  ;;  %v4507_v41 = vpop.f32.mrb[190].mxu0  ;;  %v3803_v60 = vpop.f32.mrb[191].mxu1  ;;  %5703 = vst [vmem:[#allocation8 + $0x18] sm:$0xff] (!%p6122_p12), %v5415_v48  ;;  %v5420_v4 = vadd.f32 (!%p6122_p12), %v10518_v23, %v5100_v51  ;;  %v5421_v59 = vadd.f32 (!%p6122_p12), %v10520_v45, %v5101_v22  ;;  %v5120_v10 = vld [vmem:[#allocation2 + $0xe0] sm:$0xff] (!%p6122_p12)  ;;  %v5130_v1 = vld [vmem:[#allocation2 + $0x130] sm:$0xff] (!%p6122_p12) }
 0x475   : > { %v4798_v35 = vadd.f32 %v4507_v41, %v2008_v31  ;;  %v4797_v24 = vadd.f32 %v3803_v60, %v2007_v39  ;;  %v4509_v29 = vpop.f32.mrb[191].mxu0  ;;  %v5422_v31 = vadd.f32 (!%p6122_p12), %v10522_v9, %v5102_v40  ;;  %v5423_v39 = vadd.f32 (!%p6122_p12), %v10524_v36, %v5103_v63  ;;  %5704 = vst [vmem:[#allocation8 + $0x20] sm:$0xff] (!%p6122_p12), %v5416_v6  ;;  %v5131_v8 = vld [vmem:[#allocation2 + $0x138] sm:$0xff] (!%p6122_p12)  ;;  %v5132_v40 = vld [vmem:[#allocation2 + $0x140] sm:$0xff] (!%p6122_p12)  ;;  %v5133_v63 = vld [vmem:[#allocation2 + $0x148] sm:$0xff] (!%p6122_p12) }
 0x476   : > { %5084 = vst [vmem:[#allocation2 + $0x8e0] sm:$0xff] %v4796_v62  ;;  %v4799_v33 = vadd.f32 %v4509_v29, %v2009_v43  ;;  %v5121_v43 = vld [vmem:[#allocation2 + $0xe8] sm:$0xff] (!%p6122_p12)  ;;  %v5122_v62 = vld [vmem:[#allocation2 + $0xf0] sm:$0xff] (!%p6122_p12)  ;;  %5705 = vst [vmem:[#allocation8 + $0x28] sm:$0xff] (!%p6122_p12), %v5417_v44  ;;  %v5424_v41 = vadd.f32 (!%p6122_p12), %v10514_v58, %v5104_v53  ;;  %v5425_v60 = vadd.f32 (!%p6122_p12), %v10516_v57, %v5105_v30 }
 0x477   : > { %5086 = vst [vmem:[#allocation2 + $0x8f0] sm:$0xff] %v4798_v35  ;;  %5085 = vst [vmem:[#allocation2 + $0x8e8] sm:$0xff] %v4797_v24  ;;  %v5426_v35 = vadd.f32 (!%p6122_p12), %v10518_v23, %v5106_v25  ;;  %v5427_v24 = vadd.f32 (!%p6122_p12), %v10520_v45, %v5107_v20  ;;  %v5123_v29 = vld [vmem:[#allocation2 + $0xf8] sm:$0xff] (!%p6122_p12)  ;;  %v5434_v42 = vadd.f32 (!%p6122_p12), %v10522_v9, %v5114_v5  ;;  %v5134_v53 = vld [vmem:[#allocation2 + $0x150] sm:$0xff] (!%p6122_p12) }
 0x478   : > { %5087 = vst [vmem:[#allocation2 + $0x8f8] sm:$0xff] %v4799_v33  ;;  %5706 = vst [vmem:[#allocation8 + $0x30] sm:$0xff] (!%p6122_p12), %v5418_v0  ;;  %v5124_v33 = vld [vmem:[#allocation2 + $0x100] sm:$0xff] (!%p6122_p12)  ;;  %v5435_v32 = vadd.f32 (!%p6122_p12), %v10524_v36, %v5115_v15  ;;  %v5436_v17 = vadd.f32 (!%p6122_p12), %v10514_v58, %v5116_v46  ;;  %v5437_v34 = vadd.f32 (!%p6122_p12), %v10516_v57, %v5117_v27  ;;  %v5135_v26 = vld [vmem:[#allocation2 + $0x158] sm:$0xff] (!%p6122_p12) }
 0x479   : > { %5707 = vst [vmem:[#allocation8 + $0x38] sm:$0xff] %v5419_v38  ;;  %5708 = vst [vmem:[#allocation8 + $0x40] sm:$0xff] %v5420_v4  ;;  %v5438_v51 = vadd.f32 %v10518_v23, %v5118_v12  ;;  %v5439_v22 = vadd.f32 %v10520_v45, %v5119_v28  ;;  %v5440_v30 = vadd.f32 %v10522_v9, %v5120_v10  ;;  %v5136_v16 = vld [vmem:[#allocation2 + $0x160] sm:$0xff]  ;;  %v5137_v11 = vld [vmem:[#allocation2 + $0x168] sm:$0xff] }
 0x47a   : > { %5709 = vst [vmem:[#allocation8 + $0x48] sm:$0xff] %v5421_v59  ;;  %5710 = vst [vmem:[#allocation8 + $0x50] sm:$0xff] %v5422_v31  ;;  %v5441_v25 = vadd.f32 %v10524_v36, %v5121_v43  ;;  %v5442_v20 = vadd.f32 %v10514_v58, %v5122_v62  ;;  %v5443_v18 = vadd.f32 %v10516_v57, %v5123_v29  ;;  %v5138_v13 = vld [vmem:[#allocation2 + $0x170] sm:$0xff]  ;;  %v5139_v55 = vld [vmem:[#allocation2 + $0x178] sm:$0xff] }
 0x47b   : > { %5711 = vst [vmem:[#allocation8 + $0x58] sm:$0xff] %v5423_v39  ;;  %5712 = vst [vmem:[#allocation8 + $0x60] sm:$0xff] %v5424_v41  ;;  %v5444_v47 = vadd.f32 %v10518_v23, %v5124_v33  ;;  %v5445_v19 = vadd.f32 %v10520_v45, %v5125_v56  ;;  %v5446_v21 = vadd.f32 %v10522_v9, %v5126_v50  ;;  %v5140_v5 = vld [vmem:[#allocation2 + $0x180] sm:$0xff]  ;;  %v5141_v38 = vld [vmem:[#allocation2 + $0x188] sm:$0xff] }
 0x47c   : > { %5713 = vst [vmem:[#allocation8 + $0x68] sm:$0xff] %v5425_v60  ;;  %5714 = vst [vmem:[#allocation8 + $0x70] sm:$0xff] %v5426_v35  ;;  %v5447_v48 = vadd.f32 %v10524_v36, %v5127_v7  ;;  %v5448_v15 = vadd.f32 %v10514_v58, %v5128_v61  ;;  %v5449_v6 = vadd.f32 %v10516_v57, %v5129_v37  ;;  %v5142_v46 = vld [vmem:[#allocation2 + $0x190] sm:$0xff]  ;;  %v5143_v27 = vld [vmem:[#allocation2 + $0x198] sm:$0xff] }
 0x47d   : > { %5715 = vst [vmem:[#allocation8 + $0x78] sm:$0xff] %v5427_v24  ;;  %5716 = vst [vmem:[#allocation8 + $0x80] sm:$0xff] %v5428_v3  ;;  %v5450_v44 = vadd.f32 %v10518_v23, %v5130_v1  ;;  %v5451_v0 = vadd.f32 %v10520_v45, %v5131_v8  ;;  %v5452_v12 = vadd.f32 %v10522_v9, %v5132_v40  ;;  %v5144_v31 = vld [vmem:[#allocation2 + $0x1a0] sm:$0xff]  ;;  %v5145_v39 = vld [vmem:[#allocation2 + $0x1a8] sm:$0xff] }
 0x47e   : > { %5717 = vst [vmem:[#allocation8 + $0x88] sm:$0xff] %v5429_v2  ;;  %5718 = vst [vmem:[#allocation8 + $0x90] sm:$0xff] %v5430_v14  ;;  %v5453_v28 = vadd.f32 %v10524_v36, %v5133_v63  ;;  %v5454_v4 = vadd.f32 %v10514_v58, %v5134_v53  ;;  %v5455_v59 = vadd.f32 %v10516_v57, %v5135_v26  ;;  %v5146_v10 = vld [vmem:[#allocation2 + $0x1b0] sm:$0xff]  ;;  %v5147_v35 = vld [vmem:[#allocation2 + $0x1b8] sm:$0xff] }
 0x47f   : > { %5719 = vst [vmem:[#allocation8 + $0x98] sm:$0xff] %v5431_v49  ;;  %5720 = vst [vmem:[#allocation8 + $0xa0] sm:$0xff] %v5432_v52  ;;  %v5456_v43 = vadd.f32 %v10518_v23, %v5136_v16  ;;  %v5457_v62 = vadd.f32 %v10520_v45, %v5137_v11  ;;  %v5458_v41 = vadd.f32 %v10522_v9, %v5138_v13  ;;  %v5148_v24 = vld [vmem:[#allocation2 + $0x1c0] sm:$0xff]  ;;  %v5149_v29 = vld [vmem:[#allocation2 + $0x1c8] sm:$0xff] }
 0x480   : > { %5721 = vst [vmem:[#allocation8 + $0xa8] sm:$0xff] %v5433_v54  ;;  %5722 = vst [vmem:[#allocation8 + $0xb0] sm:$0xff] %v5434_v42  ;;  %v5459_v60 = vadd.f32 %v10524_v36, %v5139_v55  ;;  %v5460_v33 = vadd.f32 %v10514_v58, %v5140_v5  ;;  %v5461_v56 = vadd.f32 %v10516_v57, %v5141_v38  ;;  %v5150_v14 = vld [vmem:[#allocation2 + $0x1d0] sm:$0xff]  ;;  %v5151_v49 = vld [vmem:[#allocation2 + $0x1d8] sm:$0xff] }
 0x481   : > { %5723 = vst [vmem:[#allocation8 + $0xb8] sm:$0xff] %v5435_v32  ;;  %5724 = vst [vmem:[#allocation8 + $0xc0] sm:$0xff] %v5436_v17  ;;  %v5462_v3 = vadd.f32 %v10518_v23, %v5142_v46  ;;  %v5463_v2 = vadd.f32 %v10520_v45, %v5143_v27  ;;  %v5152_v50 = vld [vmem:[#allocation2 + $0x1e0] sm:$0xff]  ;;  %v5464_v7 = vadd.f32 %v10522_v9, %v5144_v31  ;;  %v5153_v42 = vld [vmem:[#allocation2 + $0x1e8] sm:$0xff] }
 0x482   : > { %5725 = vst [vmem:[#allocation8 + $0xc8] sm:$0xff] %v5437_v34  ;;  %5726 = vst [vmem:[#allocation8 + $0xd0] sm:$0xff] %v5438_v51  ;;  %v5465_v61 = vadd.f32 %v10524_v36, %v5145_v39  ;;  %v5466_v52 = vadd.f32 %v10514_v58, %v5146_v10  ;;  %v5467_v54 = vadd.f32 %v10516_v57, %v5147_v35  ;;  %v5154_v32 = vld [vmem:[#allocation2 + $0x1f0] sm:$0xff]  ;;  %v5155_v37 = vld [vmem:[#allocation2 + $0x1f8] sm:$0xff] }
 0x483   : > { %5727 = vst [vmem:[#allocation8 + $0xd8] sm:$0xff] %v5439_v22  ;;  %5728 = vst [vmem:[#allocation8 + $0xe0] sm:$0xff] %v5440_v30  ;;  %v5468_v1 = vadd.f32 %v10518_v23, %v5148_v24  ;;  %v5469_v8 = vadd.f32 %v10520_v45, %v5149_v29  ;;  %v5470_v17 = vadd.f32 %v10522_v9, %v5150_v14  ;;  %v5156_v51 = vld [vmem:[#allocation2 + $0x200] sm:$0xff]  ;;  %v5157_v22 = vld [vmem:[#allocation2 + $0x208] sm:$0xff] }
 0x484   : > { %5729 = vst [vmem:[#allocation8 + $0xe8] sm:$0xff] %v5441_v25  ;;  %5730 = vst [vmem:[#allocation8 + $0xf0] sm:$0xff] %v5442_v20  ;;  %v5471_v34 = vadd.f32 %v10524_v36, %v5151_v49  ;;  %v5158_v40 = vld [vmem:[#allocation2 + $0x210] sm:$0xff]  ;;  %v5472_v63 = vadd.f32 %v10514_v58, %v5152_v50  ;;  %v5473_v53 = vadd.f32 %v10516_v57, %v5153_v42  ;;  %v5159_v20 = vld [vmem:[#allocation2 + $0x218] sm:$0xff] }
 0x485   : > { %5731 = vst [vmem:[#allocation8 + $0xf8] sm:$0xff] %v5443_v18  ;;  %5732 = vst [vmem:[#allocation8 + $0x100] sm:$0xff] %v5444_v47  ;;  %v5474_v30 = vadd.f32 %v10518_v23, %v5154_v32  ;;  %v5475_v25 = vadd.f32 %v10520_v45, %v5155_v37  ;;  %v5160_v18 = vld [vmem:[#allocation2 + $0x220] sm:$0xff]  ;;  %v5161_v26 = vld [vmem:[#allocation2 + $0x228] sm:$0xff]  ;;  %v5476_v16 = vadd.f32 %v10522_v9, %v5156_v51 }
 0x486   : > { %5733 = vst [vmem:[#allocation8 + $0x108] sm:$0xff] %v5445_v19  ;;  %5734 = vst [vmem:[#allocation8 + $0x110] sm:$0xff] %v5446_v21  ;;  %v5477_v11 = vadd.f32 %v10524_v36, %v5157_v22  ;;  %v5478_v47 = vadd.f32 %v10514_v58, %v5158_v40  ;;  %v5479_v19 = vadd.f32 %v10516_v57, %v5159_v20  ;;  %v5162_v21 = vld [vmem:[#allocation2 + $0x230] sm:$0xff]  ;;  %v5164_v13 = vld [vmem:[#allocation2 + $0x240] sm:$0xff] }
 0x487   : > { %5735 = vst [vmem:[#allocation8 + $0x118] sm:$0xff] %v5447_v48  ;;  %5736 = vst [vmem:[#allocation8 + $0x120] sm:$0xff] %v5448_v15  ;;  %v5163_v48 = vld [vmem:[#allocation2 + $0x238] sm:$0xff]  ;;  %v5480_v55 = vadd.f32 %v10518_v23, %v5160_v18  ;;  %v5481_v5 = vadd.f32 %v10520_v45, %v5161_v26  ;;  %v5482_v15 = vadd.f32 %v10522_v9, %v5162_v21  ;;  %v5170_v31 = vld [vmem:[#allocation2 + $0x270] sm:$0xff] }
 0x488   : > { %5737 = vst [vmem:[#allocation8 + $0x128] sm:$0xff] %v5449_v6  ;;  %5738 = vst [vmem:[#allocation8 + $0x130] sm:$0xff] %v5450_v44  ;;  %v5483_v6 = vadd.f32 %v10524_v36, %v5163_v48  ;;  %v5165_v44 = vld [vmem:[#allocation2 + $0x248] sm:$0xff]  ;;  %v5167_v38 = vld [vmem:[#allocation2 + $0x258] sm:$0xff]  ;;  %v5484_v46 = vadd.f32 %v10514_v58, %v5164_v13 }
 0x489   : > { %5739 = vst [vmem:[#allocation8 + $0x138] sm:$0xff] %v5451_v0  ;;  %5740 = vst [vmem:[#allocation8 + $0x140] sm:$0xff] %v5452_v12  ;;  %v5166_v0 = vld [vmem:[#allocation2 + $0x250] sm:$0xff]  ;;  %v5485_v27 = vadd.f32 %v10516_v57, %v5165_v44  ;;  %v5177_v50 = vld [vmem:[#allocation2 + $0x2a8] sm:$0xff] }
 0x48a   : > { %5741 = vst [vmem:[#allocation8 + $0x148] sm:$0xff] %v5453_v28  ;;  %5742 = vst [vmem:[#allocation8 + $0x150] sm:$0xff] %v5454_v4  ;;  %v5486_v12 = vadd.f32 %v10518_v23, %v5166_v0  ;;  %v5487_v28 = vadd.f32 %v10520_v45, %v5167_v38  ;;  %v5168_v4 = vld [vmem:[#allocation2 + $0x260] sm:$0xff]  ;;  %v5181_v37 = vld [vmem:[#allocation2 + $0x2c8] sm:$0xff] }
 0x48b   : > { %5743 = vst [vmem:[#allocation8 + $0x158] sm:$0xff] %v5455_v59  ;;  %5744 = vst [vmem:[#allocation8 + $0x160] sm:$0xff] %v5456_v43  ;;  %v5169_v59 = vld [vmem:[#allocation2 + $0x268] sm:$0xff]  ;;  %v5488_v39 = vadd.f32 %v10522_v9, %v5168_v4  ;;  %v5490_v43 = vadd.f32 %v10514_v58, %v5170_v31  ;;  %v5180_v32 = vld [vmem:[#allocation2 + $0x2c0] sm:$0xff] }
 0x48c   : > { %5745 = vst [vmem:[#allocation8 + $0x168] sm:$0xff] %v5457_v62  ;;  %5746 = vst [vmem:[#allocation8 + $0x170] sm:$0xff] %v5458_v41  ;;  %v5489_v10 = vadd.f32 %v10524_v36, %v5169_v59  ;;  %v5171_v62 = vld [vmem:[#allocation2 + $0x278] sm:$0xff]  ;;  %v5172_v41 = vld [vmem:[#allocation2 + $0x280] sm:$0xff] }
 0x48d   : > { %5747 = vst [vmem:[#allocation8 + $0x178] sm:$0xff] %v5459_v60  ;;  %5748 = vst [vmem:[#allocation8 + $0x180] sm:$0xff] %v5460_v33  ;;  %v5173_v60 = vld [vmem:[#allocation2 + $0x288] sm:$0xff]  ;;  %v5491_v35 = vadd.f32 %v10516_v57, %v5171_v62  ;;  %v5492_v24 = vadd.f32 %v10518_v23, %v5172_v41  ;;  %v5174_v33 = vld [vmem:[#allocation2 + $0x290] sm:$0xff] }
 0x48e   : > { %5749 = vst [vmem:[#allocation8 + $0x188] sm:$0xff] %v5461_v56  ;;  %5750 = vst [vmem:[#allocation8 + $0x190] sm:$0xff] %v5462_v3  ;;  %v5493_v29 = vadd.f32 %v10520_v45, %v5173_v60  ;;  %v5175_v56 = vld [vmem:[#allocation2 + $0x298] sm:$0xff]  ;;  %v5176_v3 = vld [vmem:[#allocation2 + $0x2a0] sm:$0xff] }
 0x48f   : > { %5751 = vst [vmem:[#allocation8 + $0x198] sm:$0xff] %v5463_v2  ;;  %5752 = vst [vmem:[#allocation8 + $0x1a0] sm:$0xff] %v5464_v7  ;;  %v5494_v2 = vadd.f32 %v10522_v9, %v5174_v33  ;;  %v5495_v14 = vadd.f32 %v10524_v36, %v5175_v56  ;;  %v5496_v49 = vadd.f32 %v10514_v58, %v5176_v3  ;;  %v5178_v7 = vld [vmem:[#allocation2 + $0x2b0] sm:$0xff]  ;;  %v5183_v51 = vld [vmem:[#allocation2 + $0x2d8] sm:$0xff] }
 0x490   : > { %5753 = vst [vmem:[#allocation8 + $0x1a8] sm:$0xff] %v5465_v61  ;;  %5754 = vst [vmem:[#allocation8 + $0x1b0] sm:$0xff] %v5466_v52  ;;  %v5179_v61 = vld [vmem:[#allocation2 + $0x2b8] sm:$0xff]  ;;  %v5497_v52 = vadd.f32 %v10516_v57, %v5177_v50  ;;  %v5184_v22 = vld [vmem:[#allocation2 + $0x2e0] sm:$0xff] }
 0x491   : > { %5755 = vst [vmem:[#allocation8 + $0x1b8] sm:$0xff] %v5467_v54  ;;  %5756 = vst [vmem:[#allocation8 + $0x1c0] sm:$0xff] %v5468_v1  ;;  %v5498_v54 = vadd.f32 %v10518_v23, %v5178_v7  ;;  %v5499_v42 = vadd.f32 %v10520_v45, %v5179_v61  ;;  %v5182_v1 = vld [vmem:[#allocation2 + $0x2d0] sm:$0xff]  ;;  %v5185_v40 = vld [vmem:[#allocation2 + $0x2e8] sm:$0xff] }
 0x492   : > { %5757 = vst [vmem:[#allocation8 + $0x1c8] sm:$0xff] %v5469_v8  ;;  %5758 = vst [vmem:[#allocation8 + $0x1d0] sm:$0xff] %v5470_v17  ;;  %v5500_v8 = vadd.f32 %v10522_v9, %v5180_v32  ;;  %v5501_v17 = vadd.f32 %v10524_v36, %v5181_v37  ;;  %v5187_v20 = vld [vmem:[#allocation2 + $0x2f8] sm:$0xff]  ;;  %v5188_v18 = vld [vmem:[#allocation2 + $0x300] sm:$0xff] }
 0x493   : > { %5759 = vst [vmem:[#allocation8 + $0x1d8] sm:$0xff] %v5471_v34  ;;  %5760 = vst [vmem:[#allocation8 + $0x1e0] sm:$0xff] %v5472_v63  ;;  %v5502_v34 = vadd.f32 %v10514_v58, %v5182_v1  ;;  %v5503_v63 = vadd.f32 %v10516_v57, %v5183_v51  ;;  %v5191_v21 = vld [vmem:[#allocation2 + $0x318] sm:$0xff]  ;;  %v5198_v31 = vld [vmem:[#allocation2 + $0x350] sm:$0xff] }
 0x494   : > { %5761 = vst [vmem:[#allocation8 + $0x1e8] sm:$0xff] %v5473_v53  ;;  %5762 = vst [vmem:[#allocation8 + $0x1f0] sm:$0xff] %v5474_v30  ;;  %v5504_v53 = vadd.f32 %v10518_v23, %v5184_v22  ;;  %v5505_v30 = vadd.f32 %v10520_v45, %v5185_v40  ;;  %v5201_v60 = vld [vmem:[#allocation2 + $0x368] sm:$0xff]  ;;  %v5204_v3 = vld [vmem:[#allocation2 + $0x380] sm:$0xff] }
 0x495   : > { %5763 = vst [vmem:[#allocation8 + $0x1f8] sm:$0xff] %v5475_v25  ;;  %5764 = vst [vmem:[#allocation8 + $0x200] sm:$0xff] %v5476_v16  ;;  %v5186_v25 = vld [vmem:[#allocation2 + $0x2f0] sm:$0xff]  ;;  %v5507_v16 = vadd.f32 %v10524_v36, %v5187_v20  ;;  %v5207_v61 = vld [vmem:[#allocation2 + $0x398] sm:$0xff] }
 0x496   : > { %5765 = vst [vmem:[#allocation8 + $0x208] sm:$0xff] %v5477_v11  ;;  %5766 = vst [vmem:[#allocation8 + $0x210] sm:$0xff] %v5478_v47  ;;  %v5506_v26 = vadd.f32 %v10522_v9, %v5186_v25  ;;  %v5508_v11 = vadd.f32 %v10514_v58, %v5188_v18  ;;  %v5189_v47 = vld [vmem:[#allocation2 + $0x308] sm:$0xff]  ;;  %v5210_v1 = vld [vmem:[#allocation2 + $0x3b0] sm:$0xff] }
 0x497   : > { %5767 = vst [vmem:[#allocation8 + $0x218] sm:$0xff] %v5479_v19  ;;  %5768 = vst [vmem:[#allocation8 + $0x220] sm:$0xff] %v5480_v55  ;;  %v5190_v19 = vld [vmem:[#allocation2 + $0x310] sm:$0xff]  ;;  %v5509_v48 = vadd.f32 %v10516_v57, %v5189_v47  ;;  %v5511_v55 = vadd.f32 %v10520_v45, %v5191_v21  ;;  %v5213_v40 = vld [vmem:[#allocation2 + $0x3c8] sm:$0xff] }
 0x498   : > { %5769 = vst [vmem:[#allocation8 + $0x228] sm:$0xff] %v5481_v5  ;;  %5770 = vst [vmem:[#allocation8 + $0x230] sm:$0xff] %v5482_v15  ;;  %v5510_v13 = vadd.f32 %v10518_v23, %v5190_v19  ;;  %v5192_v5 = vld [vmem:[#allocation2 + $0x320] sm:$0xff]  ;;  %v5193_v15 = vld [vmem:[#allocation2 + $0x328] sm:$0xff] }
 0x499   : > { %5771 = vst [vmem:[#allocation8 + $0x238] sm:$0xff] %v5483_v6  ;;  %5772 = vst [vmem:[#allocation8 + $0x240] sm:$0xff] %v5484_v46  ;;  %v5194_v6 = vld [vmem:[#allocation2 + $0x330] sm:$0xff]  ;;  %v5512_v44 = vadd.f32 %v10522_v9, %v5192_v5  ;;  %v5513_v0 = vadd.f32 %v10524_v36, %v5193_v15  ;;  %v5195_v46 = vld [vmem:[#allocation2 + $0x338] sm:$0xff] }
 0x49a   : > { %5773 = vst [vmem:[#allocation8 + $0x248] sm:$0xff] %v5485_v27  ;;  %5774 = vst [vmem:[#allocation8 + $0x250] sm:$0xff] %v5486_v12  ;;  %v5514_v38 = vadd.f32 %v10514_v58, %v5194_v6  ;;  %v5196_v27 = vld [vmem:[#allocation2 + $0x340] sm:$0xff]  ;;  %v5197_v12 = vld [vmem:[#allocation2 + $0x348] sm:$0xff] }
 0x49b   : > { %5775 = vst [vmem:[#allocation8 + $0x258] sm:$0xff] %v5487_v28  ;;  %5776 = vst [vmem:[#allocation8 + $0x260] sm:$0xff] %v5488_v39  ;;  %v5515_v28 = vadd.f32 %v10516_v57, %v5195_v46  ;;  %v5516_v4 = vadd.f32 %v10518_v23, %v5196_v27  ;;  %v5517_v59 = vadd.f32 %v10520_v45, %v5197_v12  ;;  %v5199_v39 = vld [vmem:[#allocation2 + $0x358] sm:$0xff]  ;;  %v5216_v18 = vld [vmem:[#allocation2 + $0x3e0] sm:$0xff] }
 0x49c   : > { %5777 = vst [vmem:[#allocation8 + $0x268] sm:$0xff] %v5489_v10  ;;  %5778 = vst [vmem:[#allocation8 + $0x270] sm:$0xff] %v5490_v43  ;;  %v5200_v10 = vld [vmem:[#allocation2 + $0x360] sm:$0xff]  ;;  %v5518_v43 = vadd.f32 %v10522_v9, %v5198_v31  ;;  %v5519_v62 = vadd.f32 %v10524_v36, %v5199_v39  ;;  %v5219_v21 = vld [vmem:[#allocation2 + $0x3f8] sm:$0xff] }
 0x49d   : > { %5779 = vst [vmem:[#allocation8 + $0x278] sm:$0xff] %v5491_v35  ;;  %5780 = vst [vmem:[#allocation8 + $0x280] sm:$0xff] %v5492_v24  ;;  %v5520_v41 = vadd.f32 %v10514_v58, %v5200_v10  ;;  %v5202_v35 = vld [vmem:[#allocation2 + $0x370] sm:$0xff]  ;;  %v5203_v24 = vld [vmem:[#allocation2 + $0x378] sm:$0xff] }
 0x49e   : > { %5781 = vst [vmem:[#allocation8 + $0x288] sm:$0xff] %v5493_v29  ;;  %5782 = vst [vmem:[#allocation8 + $0x290] sm:$0xff] %v5494_v2  ;;  %v5521_v29 = vadd.f32 %v10516_v57, %v5201_v60  ;;  %v5522_v33 = vadd.f32 %v10518_v23, %v5202_v35  ;;  %v5523_v56 = vadd.f32 %v10520_v45, %v5203_v24  ;;  %v5205_v2 = vld [vmem:[#allocation2 + $0x388] sm:$0xff]  ;;  %v5222_v6 = vld [vmem:[#allocation2 + $0x410] sm:$0xff] }
 0x49f   : > { %5783 = vst [vmem:[#allocation8 + $0x298] sm:$0xff] %v5495_v14  ;;  %5784 = vst [vmem:[#allocation8 + $0x2a0] sm:$0xff] %v5496_v49  ;;  %v5206_v14 = vld [vmem:[#allocation2 + $0x390] sm:$0xff]  ;;  %v5524_v49 = vadd.f32 %v10522_v9, %v5204_v3  ;;  %v5525_v50 = vadd.f32 %v10524_v36, %v5205_v2  ;;  %v5225_v12 = vld [vmem:[#allocation2 + $0x428] sm:$0xff] }
 0x4a0   : > { %5785 = vst [vmem:[#allocation8 + $0x2a8] sm:$0xff] %v5497_v52  ;;  %5786 = vst [vmem:[#allocation8 + $0x2b0] sm:$0xff] %v5498_v54  ;;  %v5526_v7 = vadd.f32 %v10514_v58, %v5206_v14  ;;  %v5208_v52 = vld [vmem:[#allocation2 + $0x3a0] sm:$0xff]  ;;  %v5209_v54 = vld [vmem:[#allocation2 + $0x3a8] sm:$0xff] }
 0x4a1   : > { %5787 = vst [vmem:[#allocation8 + $0x2b8] sm:$0xff] %v5499_v42  ;;  %5788 = vst [vmem:[#allocation8 + $0x2c0] sm:$0xff] %v5500_v8  ;;  %v5527_v42 = vadd.f32 %v10516_v57, %v5207_v61  ;;  %v5528_v32 = vadd.f32 %v10518_v23, %v5208_v52  ;;  %v5529_v37 = vadd.f32 %v10520_v45, %v5209_v54  ;;  %v5211_v8 = vld [vmem:[#allocation2 + $0x3b8] sm:$0xff]  ;;  %v5228_v10 = vld [vmem:[#allocation2 + $0x440] sm:$0xff] }
 0x4a2   : > { %5789 = vst [vmem:[#allocation8 + $0x2c8] sm:$0xff] %v5501_v17  ;;  %5790 = vst [vmem:[#allocation8 + $0x2d0] sm:$0xff] %v5502_v34  ;;  %v5212_v17 = vld [vmem:[#allocation2 + $0x3c0] sm:$0xff]  ;;  %v5530_v34 = vadd.f32 %v10522_v9, %v5210_v1  ;;  %v5531_v51 = vadd.f32 %v10524_v36, %v5211_v8  ;;  %v5231_v24 = vld [vmem:[#allocation2 + $0x458] sm:$0xff] }
 0x4a3   : > { %5791 = vst [vmem:[#allocation8 + $0x2d8] sm:$0xff] %v5503_v63  ;;  %5792 = vst [vmem:[#allocation8 + $0x2e0] sm:$0xff] %v5504_v53  ;;  %v5532_v22 = vadd.f32 %v10514_v58, %v5212_v17  ;;  %v5214_v63 = vld [vmem:[#allocation2 + $0x3d0] sm:$0xff]  ;;  %v5215_v53 = vld [vmem:[#allocation2 + $0x3d8] sm:$0xff] }
 0x4a4   : > { %5793 = vst [vmem:[#allocation8 + $0x2e8] sm:$0xff] %v5505_v30  ;;  %5794 = vst [vmem:[#allocation8 + $0x2f0] sm:$0xff] %v5506_v26  ;;  %v5533_v30 = vadd.f32 %v10516_v57, %v5213_v40  ;;  %v5534_v25 = vadd.f32 %v10518_v23, %v5214_v63  ;;  %v5535_v20 = vadd.f32 %v10520_v45, %v5215_v53  ;;  %v5217_v26 = vld [vmem:[#allocation2 + $0x3e8] sm:$0xff]  ;;  %v5234_v14 = vld [vmem:[#allocation2 + $0x470] sm:$0xff] }
 0x4a5   : > { %5795 = vst [vmem:[#allocation8 + $0x2f8] sm:$0xff] %v5507_v16  ;;  %5796 = vst [vmem:[#allocation8 + $0x300] sm:$0xff] %v5508_v11  ;;  %v5218_v16 = vld [vmem:[#allocation2 + $0x3f0] sm:$0xff]  ;;  %v5536_v11 = vadd.f32 %v10522_v9, %v5216_v18  ;;  %v5537_v47 = vadd.f32 %v10524_v36, %v5217_v26  ;;  %v5237_v54 = vld [vmem:[#allocation2 + $0x488] sm:$0xff] }
 0x4a6   : > { %5797 = vst [vmem:[#allocation8 + $0x308] sm:$0xff] %v5509_v48  ;;  %5798 = vst [vmem:[#allocation8 + $0x310] sm:$0xff] %v5510_v13  ;;  %v5538_v19 = vadd.f32 %v10514_v58, %v5218_v16  ;;  %v5220_v48 = vld [vmem:[#allocation2 + $0x400] sm:$0xff]  ;;  %v5221_v13 = vld [vmem:[#allocation2 + $0x408] sm:$0xff] }
 0x4a7   : > { %5799 = vst [vmem:[#allocation8 + $0x318] sm:$0xff] %v5511_v55  ;;  %5800 = vst [vmem:[#allocation8 + $0x320] sm:$0xff] %v5512_v44  ;;  %v5539_v55 = vadd.f32 %v10516_v57, %v5219_v21  ;;  %v5540_v5 = vadd.f32 %v10518_v23, %v5220_v48  ;;  %v5541_v15 = vadd.f32 %v10520_v45, %v5221_v13  ;;  %v5223_v44 = vld [vmem:[#allocation2 + $0x418] sm:$0xff]  ;;  %v5240_v17 = vld [vmem:[#allocation2 + $0x4a0] sm:$0xff] }
 0x4a8   : > { %5801 = vst [vmem:[#allocation8 + $0x328] sm:$0xff] %v5513_v0  ;;  %5802 = vst [vmem:[#allocation8 + $0x330] sm:$0xff] %v5514_v38  ;;  %v5224_v0 = vld [vmem:[#allocation2 + $0x420] sm:$0xff]  ;;  %v5542_v38 = vadd.f32 %v10522_v9, %v5222_v6  ;;  %v5543_v46 = vadd.f32 %v10524_v36, %v5223_v44  ;;  %v5243_v53 = vld [vmem:[#allocation2 + $0x4b8] sm:$0xff] }
 0x4a9   : > { %5803 = vst [vmem:[#allocation8 + $0x338] sm:$0xff] %v5515_v28  ;;  %5804 = vst [vmem:[#allocation8 + $0x340] sm:$0xff] %v5516_v4  ;;  %v5544_v27 = vadd.f32 %v10514_v58, %v5224_v0  ;;  %v5226_v28 = vld [vmem:[#allocation2 + $0x430] sm:$0xff]  ;;  %v5227_v4 = vld [vmem:[#allocation2 + $0x438] sm:$0xff] }
 0x4aa   : > { %5805 = vst [vmem:[#allocation8 + $0x348] sm:$0xff] %v5517_v59  ;;  %5806 = vst [vmem:[#allocation8 + $0x350] sm:$0xff] %v5518_v43  ;;  %v5545_v59 = vadd.f32 %v10516_v57, %v5225_v12  ;;  %v5546_v31 = vadd.f32 %v10518_v23, %v5226_v28  ;;  %v5547_v39 = vadd.f32 %v10520_v45, %v5227_v4  ;;  %v5229_v43 = vld [vmem:[#allocation2 + $0x448] sm:$0xff]  ;;  %v5246_v16 = vld [vmem:[#allocation2 + $0x4d0] sm:$0xff] }
 0x4ab   : > { %5807 = vst [vmem:[#allocation8 + $0x358] sm:$0xff] %v5519_v62  ;;  %5808 = vst [vmem:[#allocation8 + $0x360] sm:$0xff] %v5520_v41  ;;  %v5230_v62 = vld [vmem:[#allocation2 + $0x450] sm:$0xff]  ;;  %v5548_v41 = vadd.f32 %v10522_v9, %v5228_v10  ;;  %v5549_v60 = vadd.f32 %v10524_v36, %v5229_v43  ;;  %v5249_v13 = vld [vmem:[#allocation2 + $0x4e8] sm:$0xff] }
 0x4ac   : > { %5809 = vst [vmem:[#allocation8 + $0x368] sm:$0xff] %v5521_v29  ;;  %5810 = vst [vmem:[#allocation8 + $0x370] sm:$0xff] %v5522_v33  ;;  %v5550_v35 = vadd.f32 %v10514_v58, %v5230_v62  ;;  %v5232_v29 = vld [vmem:[#allocation2 + $0x460] sm:$0xff]  ;;  %v5233_v33 = vld [vmem:[#allocation2 + $0x468] sm:$0xff] }
 0x4ad   : > { %5811 = vst [vmem:[#allocation8 + $0x378] sm:$0xff] %v5523_v56  ;;  %5812 = vst [vmem:[#allocation8 + $0x380] sm:$0xff] %v5524_v49  ;;  %v5551_v56 = vadd.f32 %v10516_v57, %v5231_v24  ;;  %v5552_v3 = vadd.f32 %v10518_v23, %v5232_v29  ;;  %v5553_v2 = vadd.f32 %v10520_v45, %v5233_v33  ;;  %v5235_v49 = vld [vmem:[#allocation2 + $0x478] sm:$0xff]  ;;  %v5252_v0 = vld [vmem:[#allocation2 + $0x500] sm:$0xff] }
 0x4ae   : > { %5813 = vst [vmem:[#allocation8 + $0x388] sm:$0xff] %v5525_v50  ;;  %5814 = vst [vmem:[#allocation8 + $0x390] sm:$0xff] %v5526_v7  ;;  %v5236_v50 = vld [vmem:[#allocation2 + $0x480] sm:$0xff]  ;;  %v5554_v7 = vadd.f32 %v10522_v9, %v5234_v14  ;;  %v5555_v61 = vadd.f32 %v10524_v36, %v5235_v49  ;;  %v5255_v4 = vld [vmem:[#allocation2 + $0x518] sm:$0xff] }
 0x4af   : > { %5815 = vst [vmem:[#allocation8 + $0x398] sm:$0xff] %v5527_v42  ;;  %5816 = vst [vmem:[#allocation8 + $0x3a0] sm:$0xff] %v5528_v32  ;;  %v5556_v52 = vadd.f32 %v10514_v58, %v5236_v50  ;;  %v5238_v42 = vld [vmem:[#allocation2 + $0x490] sm:$0xff]  ;;  %v5239_v32 = vld [vmem:[#allocation2 + $0x498] sm:$0xff] }
 0x4b0   : > { %5817 = vst [vmem:[#allocation8 + $0x3a8] sm:$0xff] %v5529_v37  ;;  %5818 = vst [vmem:[#allocation8 + $0x3b0] sm:$0xff] %v5530_v34  ;;  %v5557_v37 = vadd.f32 %v10516_v57, %v5237_v54  ;;  %v5558_v1 = vadd.f32 %v10518_v23, %v5238_v42  ;;  %v5559_v8 = vadd.f32 %v10520_v45, %v5239_v32  ;;  %v5241_v34 = vld [vmem:[#allocation2 + $0x4a8] sm:$0xff]  ;;  %v5258_v62 = vld [vmem:[#allocation2 + $0x530] sm:$0xff] }
 0x4b1   : > { %5819 = vst [vmem:[#allocation8 + $0x3b8] sm:$0xff] %v5531_v51  ;;  %5820 = vst [vmem:[#allocation8 + $0x3c0] sm:$0xff] %v5532_v22  ;;  %v5242_v51 = vld [vmem:[#allocation2 + $0x4b0] sm:$0xff]  ;;  %v5560_v22 = vadd.f32 %v10522_v9, %v5240_v17  ;;  %v5561_v40 = vadd.f32 %v10524_v36, %v5241_v34  ;;  %v5261_v33 = vld [vmem:[#allocation2 + $0x548] sm:$0xff] }
 0x4b2   : > { %5821 = vst [vmem:[#allocation8 + $0x3c8] sm:$0xff] %v5533_v30  ;;  %5822 = vst [vmem:[#allocation8 + $0x3d0] sm:$0xff] %v5534_v25  ;;  %v5562_v63 = vadd.f32 %v10514_v58, %v5242_v51  ;;  %v5244_v30 = vld [vmem:[#allocation2 + $0x4c0] sm:$0xff]  ;;  %v5245_v25 = vld [vmem:[#allocation2 + $0x4c8] sm:$0xff] }
 0x4b3   : > { %5823 = vst [vmem:[#allocation8 + $0x3d8] sm:$0xff] %v5535_v20  ;;  %5824 = vst [vmem:[#allocation8 + $0x3e0] sm:$0xff] %v5536_v11  ;;  %v5563_v20 = vadd.f32 %v10516_v57, %v5243_v53  ;;  %v5564_v18 = vadd.f32 %v10518_v23, %v5244_v30  ;;  %v5565_v26 = vadd.f32 %v10520_v45, %v5245_v25  ;;  %v5247_v11 = vld [vmem:[#allocation2 + $0x4d8] sm:$0xff]  ;;  %v5264_v50 = vld [vmem:[#allocation2 + $0x560] sm:$0xff] }
 0x4b4   : > { %5825 = vst [vmem:[#allocation8 + $0x3e8] sm:$0xff] %v5537_v47  ;;  %5826 = vst [vmem:[#allocation8 + $0x3f0] sm:$0xff] %v5538_v19  ;;  %v5248_v47 = vld [vmem:[#allocation2 + $0x4e0] sm:$0xff]  ;;  %v5566_v19 = vadd.f32 %v10522_v9, %v5246_v16  ;;  %v5567_v21 = vadd.f32 %v10524_v36, %v5247_v11  ;;  %v5267_v32 = vld [vmem:[#allocation2 + $0x578] sm:$0xff] }
 0x4b5   : > { %5827 = vst [vmem:[#allocation8 + $0x3f8] sm:$0xff] %v5539_v55  ;;  %5828 = vst [vmem:[#allocation8 + $0x400] sm:$0xff] %v5540_v5  ;;  %v5568_v48 = vadd.f32 %v10514_v58, %v5248_v47  ;;  %v5250_v55 = vld [vmem:[#allocation2 + $0x4f0] sm:$0xff]  ;;  %v5251_v5 = vld [vmem:[#allocation2 + $0x4f8] sm:$0xff] }
 0x4b6   : > { %5829 = vst [vmem:[#allocation8 + $0x408] sm:$0xff] %v5541_v15  ;;  %5830 = vst [vmem:[#allocation8 + $0x410] sm:$0xff] %v5542_v38  ;;  %v5569_v15 = vadd.f32 %v10516_v57, %v5249_v13  ;;  %v5570_v6 = vadd.f32 %v10518_v23, %v5250_v55  ;;  %v5571_v44 = vadd.f32 %v10520_v45, %v5251_v5  ;;  %v5253_v38 = vld [vmem:[#allocation2 + $0x508] sm:$0xff]  ;;  %v5270_v51 = vld [vmem:[#allocation2 + $0x590] sm:$0xff] }
 0x4b7   : > { %5831 = vst [vmem:[#allocation8 + $0x418] sm:$0xff] %v5543_v46  ;;  %5832 = vst [vmem:[#allocation8 + $0x420] sm:$0xff] %v5544_v27  ;;  %v5254_v46 = vld [vmem:[#allocation2 + $0x510] sm:$0xff]  ;;  %v5572_v27 = vadd.f32 %v10522_v9, %v5252_v0  ;;  %v5573_v12 = vadd.f32 %v10524_v36, %v5253_v38  ;;  %v5273_v25 = vld [vmem:[#allocation2 + $0x5a8] sm:$0xff] }
 0x4b8   : > { %5833 = vst [vmem:[#allocation8 + $0x428] sm:$0xff] %v5545_v59  ;;  %5834 = vst [vmem:[#allocation8 + $0x430] sm:$0xff] %v5546_v31  ;;  %v5574_v28 = vadd.f32 %v10514_v58, %v5254_v46  ;;  %v5256_v59 = vld [vmem:[#allocation2 + $0x520] sm:$0xff]  ;;  %v5257_v31 = vld [vmem:[#allocation2 + $0x528] sm:$0xff] }
 0x4b9   : > { %5835 = vst [vmem:[#allocation8 + $0x438] sm:$0xff] %v5547_v39  ;;  %5836 = vst [vmem:[#allocation8 + $0x440] sm:$0xff] %v5548_v41  ;;  %v5575_v39 = vadd.f32 %v10516_v57, %v5255_v4  ;;  %v5576_v10 = vadd.f32 %v10518_v23, %v5256_v59  ;;  %v5577_v43 = vadd.f32 %v10520_v45, %v5257_v31  ;;  %v5259_v41 = vld [vmem:[#allocation2 + $0x538] sm:$0xff]  ;;  %v5276_v47 = vld [vmem:[#allocation2 + $0x5c0] sm:$0xff] }
 0x4ba   : > { %5837 = vst [vmem:[#allocation8 + $0x448] sm:$0xff] %v5549_v60  ;;  %5838 = vst [vmem:[#allocation8 + $0x450] sm:$0xff] %v5550_v35  ;;  %v5260_v60 = vld [vmem:[#allocation2 + $0x540] sm:$0xff]  ;;  %v5578_v35 = vadd.f32 %v10522_v9, %v5258_v62  ;;  %v5579_v24 = vadd.f32 %v10524_v36, %v5259_v41  ;;  %v5279_v5 = vld [vmem:[#allocation2 + $0x5d8] sm:$0xff] }
 0x4bb   : > { %5839 = vst [vmem:[#allocation8 + $0x458] sm:$0xff] %v5551_v56  ;;  %5840 = vst [vmem:[#allocation8 + $0x460] sm:$0xff] %v5552_v3  ;;  %v5580_v29 = vadd.f32 %v10514_v58, %v5260_v60  ;;  %v5262_v56 = vld [vmem:[#allocation2 + $0x550] sm:$0xff]  ;;  %v5263_v3 = vld [vmem:[#allocation2 + $0x558] sm:$0xff] }
 0x4bc   : > { %5841 = vst [vmem:[#allocation8 + $0x468] sm:$0xff] %v5553_v2  ;;  %5842 = vst [vmem:[#allocation8 + $0x470] sm:$0xff] %v5554_v7  ;;  %v5581_v2 = vadd.f32 %v10516_v57, %v5261_v33  ;;  %v5582_v14 = vadd.f32 %v10518_v23, %v5262_v56  ;;  %v5583_v49 = vadd.f32 %v10520_v45, %v5263_v3  ;;  %v5265_v7 = vld [vmem:[#allocation2 + $0x568] sm:$0xff]  ;;  %v5282_v46 = vld [vmem:[#allocation2 + $0x5f0] sm:$0xff] }
 0x4bd   : > { %5843 = vst [vmem:[#allocation8 + $0x478] sm:$0xff] %v5555_v61  ;;  %5844 = vst [vmem:[#allocation8 + $0x480] sm:$0xff] %v5556_v52  ;;  %v5266_v61 = vld [vmem:[#allocation2 + $0x570] sm:$0xff]  ;;  %v5584_v52 = vadd.f32 %v10522_v9, %v5264_v50  ;;  %v5585_v54 = vadd.f32 %v10524_v36, %v5265_v7  ;;  %v5285_v31 = vld [vmem:[#allocation2 + $0x608] sm:$0xff] }
 0x4be   : > { %5845 = vst [vmem:[#allocation8 + $0x488] sm:$0xff] %v5557_v37  ;;  %5846 = vst [vmem:[#allocation8 + $0x490] sm:$0xff] %v5558_v1  ;;  %v5586_v42 = vadd.f32 %v10514_v58, %v5266_v61  ;;  %v5268_v37 = vld [vmem:[#allocation2 + $0x580] sm:$0xff]  ;;  %v5269_v1 = vld [vmem:[#allocation2 + $0x588] sm:$0xff] }
 0x4bf   : > { %5847 = vst [vmem:[#allocation8 + $0x498] sm:$0xff] %v5559_v8  ;;  %5848 = vst [vmem:[#allocation8 + $0x4a0] sm:$0xff] %v5560_v22  ;;  %v5587_v8 = vadd.f32 %v10516_v57, %v5267_v32  ;;  %v5588_v17 = vadd.f32 %v10518_v23, %v5268_v37  ;;  %v5589_v34 = vadd.f32 %v10520_v45, %v5269_v1  ;;  %v5271_v22 = vld [vmem:[#allocation2 + $0x598] sm:$0xff]  ;;  %v5288_v60 = vld [vmem:[#allocation2 + $0x620] sm:$0xff] }
 0x4c0   : > { %5849 = vst [vmem:[#allocation8 + $0x4a8] sm:$0xff] %v5561_v40  ;;  %5850 = vst [vmem:[#allocation8 + $0x4b0] sm:$0xff] %v5562_v63  ;;  %v5272_v40 = vld [vmem:[#allocation2 + $0x5a0] sm:$0xff]  ;;  %v5590_v63 = vadd.f32 %v10522_v9, %v5270_v51  ;;  %v5591_v53 = vadd.f32 %v10524_v36, %v5271_v22  ;;  %v5291_v3 = vld [vmem:[#allocation2 + $0x638] sm:$0xff] }
 0x4c1   : > { %5851 = vst [vmem:[#allocation8 + $0x4b8] sm:$0xff] %v5563_v20  ;;  %5852 = vst [vmem:[#allocation8 + $0x4c0] sm:$0xff] %v5564_v18  ;;  %v5592_v30 = vadd.f32 %v10514_v58, %v5272_v40  ;;  %v5274_v20 = vld [vmem:[#allocation2 + $0x5b0] sm:$0xff]  ;;  %v5275_v18 = vld [vmem:[#allocation2 + $0x5b8] sm:$0xff] }
 0x4c2   : > { %5853 = vst [vmem:[#allocation8 + $0x4c8] sm:$0xff] %v5565_v26  ;;  %5854 = vst [vmem:[#allocation8 + $0x4d0] sm:$0xff] %v5566_v19  ;;  %v5593_v26 = vadd.f32 %v10516_v57, %v5273_v25  ;;  %v5594_v16 = vadd.f32 %v10518_v23, %v5274_v20  ;;  %v5595_v11 = vadd.f32 %v10520_v45, %v5275_v18  ;;  %v5277_v19 = vld [vmem:[#allocation2 + $0x5c8] sm:$0xff]  ;;  %v5294_v61 = vld [vmem:[#allocation2 + $0x650] sm:$0xff] }
 0x4c3   : > { %5855 = vst [vmem:[#allocation8 + $0x4d8] sm:$0xff] %v5567_v21  ;;  %5856 = vst [vmem:[#allocation8 + $0x4e0] sm:$0xff] %v5568_v48  ;;  %v5278_v21 = vld [vmem:[#allocation2 + $0x5d0] sm:$0xff]  ;;  %v5596_v48 = vadd.f32 %v10522_v9, %v5276_v47  ;;  %v5597_v13 = vadd.f32 %v10524_v36, %v5277_v19  ;;  %v5297_v1 = vld [vmem:[#allocation2 + $0x668] sm:$0xff] }
 0x4c4   : > { %5857 = vst [vmem:[#allocation8 + $0x4e8] sm:$0xff] %v5569_v15  ;;  %5858 = vst [vmem:[#allocation8 + $0x4f0] sm:$0xff] %v5570_v6  ;;  %v5598_v55 = vadd.f32 %v10514_v58, %v5278_v21  ;;  %v5280_v15 = vld [vmem:[#allocation2 + $0x5e0] sm:$0xff]  ;;  %v5281_v6 = vld [vmem:[#allocation2 + $0x5e8] sm:$0xff] }
 0x4c5   : > { %5859 = vst [vmem:[#allocation8 + $0x4f8] sm:$0xff] %v5571_v44  ;;  %5860 = vst [vmem:[#allocation8 + $0x500] sm:$0xff] %v5572_v27  ;;  %v5599_v44 = vadd.f32 %v10516_v57, %v5279_v5  ;;  %v5600_v0 = vadd.f32 %v10518_v23, %v5280_v15  ;;  %v5601_v38 = vadd.f32 %v10520_v45, %v5281_v6  ;;  %v5283_v27 = vld [vmem:[#allocation2 + $0x5f8] sm:$0xff]  ;;  %v5300_v40 = vld [vmem:[#allocation2 + $0x680] sm:$0xff] }
 0x4c6   : > { %5861 = vst [vmem:[#allocation8 + $0x508] sm:$0xff] %v5573_v12  ;;  %5862 = vst [vmem:[#allocation8 + $0x510] sm:$0xff] %v5574_v28  ;;  %v5284_v12 = vld [vmem:[#allocation2 + $0x600] sm:$0xff]  ;;  %v5602_v28 = vadd.f32 %v10522_v9, %v5282_v46  ;;  %v5603_v4 = vadd.f32 %v10524_v36, %v5283_v27  ;;  %v5303_v18 = vld [vmem:[#allocation2 + $0x698] sm:$0xff] }
 0x4c7   : > { %5863 = vst [vmem:[#allocation8 + $0x518] sm:$0xff] %v5575_v39  ;;  %5864 = vst [vmem:[#allocation8 + $0x520] sm:$0xff] %v5576_v10  ;;  %v5604_v59 = vadd.f32 %v10514_v58, %v5284_v12  ;;  %v5286_v39 = vld [vmem:[#allocation2 + $0x610] sm:$0xff]  ;;  %v5287_v10 = vld [vmem:[#allocation2 + $0x618] sm:$0xff] }
 0x4c8   : > { %5865 = vst [vmem:[#allocation8 + $0x528] sm:$0xff] %v5577_v43  ;;  %5866 = vst [vmem:[#allocation8 + $0x530] sm:$0xff] %v5578_v35  ;;  %v5605_v43 = vadd.f32 %v10516_v57, %v5285_v31  ;;  %v5606_v62 = vadd.f32 %v10518_v23, %v5286_v39  ;;  %v5607_v41 = vadd.f32 %v10520_v45, %v5287_v10  ;;  %v5289_v35 = vld [vmem:[#allocation2 + $0x628] sm:$0xff]  ;;  %v5306_v21 = vld [vmem:[#allocation2 + $0x6b0] sm:$0xff] }
 0x4c9   : > { %5867 = vst [vmem:[#allocation8 + $0x538] sm:$0xff] %v5579_v24  ;;  %5868 = vst [vmem:[#allocation8 + $0x540] sm:$0xff] %v5580_v29  ;;  %v5290_v24 = vld [vmem:[#allocation2 + $0x630] sm:$0xff]  ;;  %v5608_v29 = vadd.f32 %v10522_v9, %v5288_v60  ;;  %v5609_v33 = vadd.f32 %v10524_v36, %v5289_v35  ;;  %v5309_v6 = vld [vmem:[#allocation2 + $0x6c8] sm:$0xff] }
 0x4ca   : > { %5869 = vst [vmem:[#allocation8 + $0x548] sm:$0xff] %v5581_v2  ;;  %5870 = vst [vmem:[#allocation8 + $0x550] sm:$0xff] %v5582_v14  ;;  %v5610_v56 = vadd.f32 %v10514_v58, %v5290_v24  ;;  %v5292_v2 = vld [vmem:[#allocation2 + $0x640] sm:$0xff]  ;;  %v5293_v14 = vld [vmem:[#allocation2 + $0x648] sm:$0xff] }
 0x4cb   : > { %5871 = vst [vmem:[#allocation8 + $0x558] sm:$0xff] %v5583_v49  ;;  %5872 = vst [vmem:[#allocation8 + $0x560] sm:$0xff] %v5584_v52  ;;  %v5611_v49 = vadd.f32 %v10516_v57, %v5291_v3  ;;  %v5612_v50 = vadd.f32 %v10518_v23, %v5292_v2  ;;  %v5613_v7 = vadd.f32 %v10520_v45, %v5293_v14  ;;  %v5295_v52 = vld [vmem:[#allocation2 + $0x658] sm:$0xff]  ;;  %v5312_v12 = vld [vmem:[#allocation2 + $0x6e0] sm:$0xff] }
 0x4cc   : > { %5873 = vst [vmem:[#allocation8 + $0x568] sm:$0xff] %v5585_v54  ;;  %5874 = vst [vmem:[#allocation8 + $0x570] sm:$0xff] %v5586_v42  ;;  %v5296_v54 = vld [vmem:[#allocation2 + $0x660] sm:$0xff]  ;;  %v5614_v42 = vadd.f32 %v10522_v9, %v5294_v61  ;;  %v5615_v32 = vadd.f32 %v10524_v36, %v5295_v52  ;;  %v5315_v10 = vld [vmem:[#allocation2 + $0x6f8] sm:$0xff] }
 0x4cd   : > { %5875 = vst [vmem:[#allocation8 + $0x578] sm:$0xff] %v5587_v8  ;;  %5876 = vst [vmem:[#allocation8 + $0x580] sm:$0xff] %v5588_v17  ;;  %v5616_v37 = vadd.f32 %v10514_v58, %v5296_v54  ;;  %v5298_v8 = vld [vmem:[#allocation2 + $0x670] sm:$0xff]  ;;  %v5299_v17 = vld [vmem:[#allocation2 + $0x678] sm:$0xff] }
 0x4ce   : > { %5877 = vst [vmem:[#allocation8 + $0x588] sm:$0xff] %v5589_v34  ;;  %5878 = vst [vmem:[#allocation8 + $0x590] sm:$0xff] %v5590_v63  ;;  %v5617_v34 = vadd.f32 %v10516_v57, %v5297_v1  ;;  %v5618_v51 = vadd.f32 %v10518_v23, %v5298_v8  ;;  %v5619_v22 = vadd.f32 %v10520_v45, %v5299_v17  ;;  %v5301_v63 = vld [vmem:[#allocation2 + $0x688] sm:$0xff]  ;;  %v5318_v24 = vld [vmem:[#allocation2 + $0x710] sm:$0xff] }
 0x4cf   : > { %5879 = vst [vmem:[#allocation8 + $0x598] sm:$0xff] %v5591_v53  ;;  %5880 = vst [vmem:[#allocation8 + $0x5a0] sm:$0xff] %v5592_v30  ;;  %v5302_v53 = vld [vmem:[#allocation2 + $0x690] sm:$0xff]  ;;  %v5620_v30 = vadd.f32 %v10522_v9, %v5300_v40  ;;  %v5621_v25 = vadd.f32 %v10524_v36, %v5301_v63  ;;  %v5321_v14 = vld [vmem:[#allocation2 + $0x728] sm:$0xff] }
 0x4d0   : > { %5881 = vst [vmem:[#allocation8 + $0x5a8] sm:$0xff] %v5593_v26  ;;  %5882 = vst [vmem:[#allocation8 + $0x5b0] sm:$0xff] %v5594_v16  ;;  %v5622_v20 = vadd.f32 %v10514_v58, %v5302_v53  ;;  %v5304_v26 = vld [vmem:[#allocation2 + $0x6a0] sm:$0xff]  ;;  %v5305_v16 = vld [vmem:[#allocation2 + $0x6a8] sm:$0xff] }
 0x4d1   : > { %5883 = vst [vmem:[#allocation8 + $0x5b8] sm:$0xff] %v5595_v11  ;;  %5884 = vst [vmem:[#allocation8 + $0x5c0] sm:$0xff] %v5596_v48  ;;  %v5623_v11 = vadd.f32 %v10516_v57, %v5303_v18  ;;  %v5624_v47 = vadd.f32 %v10518_v23, %v5304_v26  ;;  %v5625_v19 = vadd.f32 %v10520_v45, %v5305_v16  ;;  %v5307_v48 = vld [vmem:[#allocation2 + $0x6b8] sm:$0xff]  ;;  %v5324_v54 = vld [vmem:[#allocation2 + $0x740] sm:$0xff] }
 0x4d2   : > { %5885 = vst [vmem:[#allocation8 + $0x5c8] sm:$0xff] %v5597_v13  ;;  %5886 = vst [vmem:[#allocation8 + $0x5d0] sm:$0xff] %v5598_v55  ;;  %v5308_v13 = vld [vmem:[#allocation2 + $0x6c0] sm:$0xff]  ;;  %v5626_v55 = vadd.f32 %v10522_v9, %v5306_v21  ;;  %v5627_v5 = vadd.f32 %v10524_v36, %v5307_v48  ;;  %v5327_v17 = vld [vmem:[#allocation2 + $0x758] sm:$0xff] }
 0x4d3   : > { %5887 = vst [vmem:[#allocation8 + $0x5d8] sm:$0xff] %v5599_v44  ;;  %5888 = vst [vmem:[#allocation8 + $0x5e0] sm:$0xff] %v5600_v0  ;;  %v5628_v15 = vadd.f32 %v10514_v58, %v5308_v13  ;;  %v5310_v44 = vld [vmem:[#allocation2 + $0x6d0] sm:$0xff]  ;;  %v5311_v0 = vld [vmem:[#allocation2 + $0x6d8] sm:$0xff] }
 0x4d4   : > { %5889 = vst [vmem:[#allocation8 + $0x5e8] sm:$0xff] %v5601_v38  ;;  %5890 = vst [vmem:[#allocation8 + $0x5f0] sm:$0xff] %v5602_v28  ;;  %v5629_v38 = vadd.f32 %v10516_v57, %v5309_v6  ;;  %v5630_v46 = vadd.f32 %v10518_v23, %v5310_v44  ;;  %v5631_v27 = vadd.f32 %v10520_v45, %v5311_v0  ;;  %v5313_v28 = vld [vmem:[#allocation2 + $0x6e8] sm:$0xff]  ;;  %v5330_v53 = vld [vmem:[#allocation2 + $0x770] sm:$0xff] }
 0x4d5   : > { %5891 = vst [vmem:[#allocation8 + $0x5f8] sm:$0xff] %v5603_v4  ;;  %5892 = vst [vmem:[#allocation8 + $0x600] sm:$0xff] %v5604_v59  ;;  %v5314_v4 = vld [vmem:[#allocation2 + $0x6f0] sm:$0xff]  ;;  %v5632_v59 = vadd.f32 %v10522_v9, %v5312_v12  ;;  %v5633_v31 = vadd.f32 %v10524_v36, %v5313_v28  ;;  %v5333_v16 = vld [vmem:[#allocation2 + $0x788] sm:$0xff] }
 0x4d6   : > { %5893 = vst [vmem:[#allocation8 + $0x608] sm:$0xff] %v5605_v43  ;;  %5894 = vst [vmem:[#allocation8 + $0x610] sm:$0xff] %v5606_v62  ;;  %v5634_v39 = vadd.f32 %v10514_v58, %v5314_v4  ;;  %v5316_v43 = vld [vmem:[#allocation2 + $0x700] sm:$0xff]  ;;  %v5317_v62 = vld [vmem:[#allocation2 + $0x708] sm:$0xff] }
 0x4d7   : > { %5895 = vst [vmem:[#allocation8 + $0x618] sm:$0xff] %v5607_v41  ;;  %5896 = vst [vmem:[#allocation8 + $0x620] sm:$0xff] %v5608_v29  ;;  %v5635_v41 = vadd.f32 %v10516_v57, %v5315_v10  ;;  %v5636_v60 = vadd.f32 %v10518_v23, %v5316_v43  ;;  %v5637_v35 = vadd.f32 %v10520_v45, %v5317_v62  ;;  %v5319_v29 = vld [vmem:[#allocation2 + $0x718] sm:$0xff]  ;;  %v5336_v13 = vld [vmem:[#allocation2 + $0x7a0] sm:$0xff] }
 0x4d8   : > { %5897 = vst [vmem:[#allocation8 + $0x628] sm:$0xff] %v5609_v33  ;;  %5898 = vst [vmem:[#allocation8 + $0x630] sm:$0xff] %v5610_v56  ;;  %v5320_v33 = vld [vmem:[#allocation2 + $0x720] sm:$0xff]  ;;  %v5638_v56 = vadd.f32 %v10522_v9, %v5318_v24  ;;  %v5639_v3 = vadd.f32 %v10524_v36, %v5319_v29  ;;  %v5339_v0 = vld [vmem:[#allocation2 + $0x7b8] sm:$0xff] }
 0x4d9   : > { %5899 = vst [vmem:[#allocation8 + $0x638] sm:$0xff] %v5611_v49  ;;  %5900 = vst [vmem:[#allocation8 + $0x640] sm:$0xff] %v5612_v50  ;;  %v5640_v2 = vadd.f32 %v10514_v58, %v5320_v33  ;;  %v5322_v49 = vld [vmem:[#allocation2 + $0x730] sm:$0xff]  ;;  %v5323_v50 = vld [vmem:[#allocation2 + $0x738] sm:$0xff] }
 0x4da   : > { %5901 = vst [vmem:[#allocation8 + $0x648] sm:$0xff] %v5613_v7  ;;  %5902 = vst [vmem:[#allocation8 + $0x650] sm:$0xff] %v5614_v42  ;;  %v5641_v7 = vadd.f32 %v10516_v57, %v5321_v14  ;;  %v5642_v61 = vadd.f32 %v10518_v23, %v5322_v49  ;;  %v5643_v52 = vadd.f32 %v10520_v45, %v5323_v50  ;;  %v5325_v42 = vld [vmem:[#allocation2 + $0x748] sm:$0xff]  ;;  %v5342_v4 = vld [vmem:[#allocation2 + $0x7d0] sm:$0xff] }
 0x4db   : > { %5903 = vst [vmem:[#allocation8 + $0x658] sm:$0xff] %v5615_v32  ;;  %5904 = vst [vmem:[#allocation8 + $0x660] sm:$0xff] %v5616_v37  ;;  %v5326_v32 = vld [vmem:[#allocation2 + $0x750] sm:$0xff]  ;;  %v5644_v37 = vadd.f32 %v10522_v9, %v5324_v54  ;;  %v5645_v1 = vadd.f32 %v10524_v36, %v5325_v42  ;;  %v5345_v62 = vld [vmem:[#allocation2 + $0x7e8] sm:$0xff] }
 0x4dc   : > { %5905 = vst [vmem:[#allocation8 + $0x668] sm:$0xff] %v5617_v34  ;;  %5906 = vst [vmem:[#allocation8 + $0x670] sm:$0xff] %v5618_v51  ;;  %v5646_v8 = vadd.f32 %v10514_v58, %v5326_v32  ;;  %v5328_v34 = vld [vmem:[#allocation2 + $0x760] sm:$0xff]  ;;  %v5329_v51 = vld [vmem:[#allocation2 + $0x768] sm:$0xff] }
 0x4dd   : > { %5907 = vst [vmem:[#allocation8 + $0x678] sm:$0xff] %v5619_v22  ;;  %5908 = vst [vmem:[#allocation8 + $0x680] sm:$0xff] %v5620_v30  ;;  %v5647_v22 = vadd.f32 %v10516_v57, %v5327_v17  ;;  %v5648_v40 = vadd.f32 %v10518_v23, %v5328_v34  ;;  %v5649_v63 = vadd.f32 %v10520_v45, %v5329_v51  ;;  %v5331_v30 = vld [vmem:[#allocation2 + $0x778] sm:$0xff]  ;;  %v5348_v33 = vld [vmem:[#allocation2 + $0x800] sm:$0xff] }
 0x4de   : > { %5909 = vst [vmem:[#allocation8 + $0x688] sm:$0xff] %v5621_v25  ;;  %5910 = vst [vmem:[#allocation8 + $0x690] sm:$0xff] %v5622_v20  ;;  %v5332_v25 = vld [vmem:[#allocation2 + $0x780] sm:$0xff]  ;;  %v5650_v20 = vadd.f32 %v10522_v9, %v5330_v53  ;;  %v5651_v18 = vadd.f32 %v10524_v36, %v5331_v30  ;;  %v5351_v50 = vld [vmem:[#allocation2 + $0x818] sm:$0xff] }
 0x4df   : > { %5911 = vst [vmem:[#allocation8 + $0x698] sm:$0xff] %v5623_v11  ;;  %5912 = vst [vmem:[#allocation8 + $0x6a0] sm:$0xff] %v5624_v47  ;;  %v5652_v26 = vadd.f32 %v10514_v58, %v5332_v25  ;;  %v5334_v11 = vld [vmem:[#allocation2 + $0x790] sm:$0xff]  ;;  %v5335_v47 = vld [vmem:[#allocation2 + $0x798] sm:$0xff] }
 0x4e0   : > { %5913 = vst [vmem:[#allocation8 + $0x6a8] sm:$0xff] %v5625_v19  ;;  %5914 = vst [vmem:[#allocation8 + $0x6b0] sm:$0xff] %v5626_v55  ;;  %v5653_v19 = vadd.f32 %v10516_v57, %v5333_v16  ;;  %v5654_v21 = vadd.f32 %v10518_v23, %v5334_v11  ;;  %v5655_v48 = vadd.f32 %v10520_v45, %v5335_v47  ;;  %v5337_v55 = vld [vmem:[#allocation2 + $0x7a8] sm:$0xff]  ;;  %v5354_v32 = vld [vmem:[#allocation2 + $0x830] sm:$0xff] }
 0x4e1   : > { %5915 = vst [vmem:[#allocation8 + $0x6b8] sm:$0xff] %v5627_v5  ;;  %5916 = vst [vmem:[#allocation8 + $0x6c0] sm:$0xff] %v5628_v15  ;;  %v5338_v5 = vld [vmem:[#allocation2 + $0x7b0] sm:$0xff]  ;;  %v5656_v15 = vadd.f32 %v10522_v9, %v5336_v13  ;;  %v5657_v6 = vadd.f32 %v10524_v36, %v5337_v55  ;;  %v5357_v51 = vld [vmem:[#allocation2 + $0x848] sm:$0xff] }
 0x4e2   : > { %5917 = vst [vmem:[#allocation8 + $0x6c8] sm:$0xff] %v5629_v38  ;;  %5918 = vst [vmem:[#allocation8 + $0x6d0] sm:$0xff] %v5630_v46  ;;  %v5658_v44 = vadd.f32 %v10514_v58, %v5338_v5  ;;  %v5340_v38 = vld [vmem:[#allocation2 + $0x7c0] sm:$0xff]  ;;  %v5341_v46 = vld [vmem:[#allocation2 + $0x7c8] sm:$0xff] }
 0x4e3   : > { %5919 = vst [vmem:[#allocation8 + $0x6d8] sm:$0xff] %v5631_v27  ;;  %5920 = vst [vmem:[#allocation8 + $0x6e0] sm:$0xff] %v5632_v59  ;;  %v5659_v27 = vadd.f32 %v10516_v57, %v5339_v0  ;;  %v5660_v12 = vadd.f32 %v10518_v23, %v5340_v38  ;;  %v5661_v28 = vadd.f32 %v10520_v45, %v5341_v46  ;;  %v5343_v59 = vld [vmem:[#allocation2 + $0x7d8] sm:$0xff]  ;;  %v5360_v25 = vld [vmem:[#allocation2 + $0x860] sm:$0xff] }
 0x4e4   : > { %5921 = vst [vmem:[#allocation8 + $0x6e8] sm:$0xff] %v5633_v31  ;;  %5922 = vst [vmem:[#allocation8 + $0x6f0] sm:$0xff] %v5634_v39  ;;  %v5344_v31 = vld [vmem:[#allocation2 + $0x7e0] sm:$0xff]  ;;  %v5662_v39 = vadd.f32 %v10522_v9, %v5342_v4  ;;  %v5663_v10 = vadd.f32 %v10524_v36, %v5343_v59  ;;  %v5363_v47 = vld [vmem:[#allocation2 + $0x878] sm:$0xff] }
 0x4e5   : > { %5923 = vst [vmem:[#allocation8 + $0x6f8] sm:$0xff] %v5635_v41  ;;  %5924 = vst [vmem:[#allocation8 + $0x700] sm:$0xff] %v5636_v60  ;;  %v5664_v43 = vadd.f32 %v10514_v58, %v5344_v31  ;;  %v5346_v41 = vld [vmem:[#allocation2 + $0x7f0] sm:$0xff]  ;;  %v5347_v60 = vld [vmem:[#allocation2 + $0x7f8] sm:$0xff] }
 0x4e6   : > { %5925 = vst [vmem:[#allocation8 + $0x708] sm:$0xff] %v5637_v35  ;;  %5926 = vst [vmem:[#allocation8 + $0x710] sm:$0xff] %v5638_v56  ;;  %v5665_v35 = vadd.f32 %v10516_v57, %v5345_v62  ;;  %v5666_v24 = vadd.f32 %v10518_v23, %v5346_v41  ;;  %v5667_v29 = vadd.f32 %v10520_v45, %v5347_v60  ;;  %v5349_v56 = vld [vmem:[#allocation2 + $0x808] sm:$0xff]  ;;  %v5366_v5 = vld [vmem:[#allocation2 + $0x890] sm:$0xff] }
 0x4e7   : > { %5927 = vst [vmem:[#allocation8 + $0x718] sm:$0xff] %v5639_v3  ;;  %5928 = vst [vmem:[#allocation8 + $0x720] sm:$0xff] %v5640_v2  ;;  %v5350_v3 = vld [vmem:[#allocation2 + $0x810] sm:$0xff]  ;;  %v5668_v2 = vadd.f32 %v10522_v9, %v5348_v33  ;;  %v5669_v14 = vadd.f32 %v10524_v36, %v5349_v56  ;;  %v5369_v46 = vld [vmem:[#allocation2 + $0x8a8] sm:$0xff] }
 0x4e8   : > { %5929 = vst [vmem:[#allocation8 + $0x728] sm:$0xff] %v5641_v7  ;;  %5930 = vst [vmem:[#allocation8 + $0x730] sm:$0xff] %v5642_v61  ;;  %v5670_v49 = vadd.f32 %v10514_v58, %v5350_v3  ;;  %v5352_v7 = vld [vmem:[#allocation2 + $0x820] sm:$0xff]  ;;  %v5353_v61 = vld [vmem:[#allocation2 + $0x828] sm:$0xff] }
 0x4e9   : > { %5931 = vst [vmem:[#allocation8 + $0x738] sm:$0xff] %v5643_v52  ;;  %5932 = vst [vmem:[#allocation8 + $0x740] sm:$0xff] %v5644_v37  ;;  %v5671_v52 = vadd.f32 %v10516_v57, %v5351_v50  ;;  %v5672_v54 = vadd.f32 %v10518_v23, %v5352_v7  ;;  %v5673_v42 = vadd.f32 %v10520_v45, %v5353_v61  ;;  %v5355_v37 = vld [vmem:[#allocation2 + $0x838] sm:$0xff]  ;;  %v5372_v31 = vld [vmem:[#allocation2 + $0x8c0] sm:$0xff] }
 0x4ea   : > { %5933 = vst [vmem:[#allocation8 + $0x748] sm:$0xff] %v5645_v1  ;;  %5934 = vst [vmem:[#allocation8 + $0x750] sm:$0xff] %v5646_v8  ;;  %v5356_v1 = vld [vmem:[#allocation2 + $0x840] sm:$0xff]  ;;  %v5674_v8 = vadd.f32 %v10522_v9, %v5354_v32  ;;  %v5675_v17 = vadd.f32 %v10524_v36, %v5355_v37  ;;  %v5375_v60 = vld [vmem:[#allocation2 + $0x8d8] sm:$0xff] }
 0x4eb   : > { %5935 = vst [vmem:[#allocation8 + $0x758] sm:$0xff] %v5647_v22  ;;  %5936 = vst [vmem:[#allocation8 + $0x760] sm:$0xff] %v5648_v40  ;;  %v5676_v34 = vadd.f32 %v10514_v58, %v5356_v1  ;;  %v5358_v22 = vld [vmem:[#allocation2 + $0x850] sm:$0xff]  ;;  %v5359_v40 = vld [vmem:[#allocation2 + $0x858] sm:$0xff] }
 0x4ec   : > { %5937 = vst [vmem:[#allocation8 + $0x768] sm:$0xff] %v5649_v63  ;;  %5938 = vst [vmem:[#allocation8 + $0x770] sm:$0xff] %v5650_v20  ;;  %v5677_v63 = vadd.f32 %v10516_v57, %v5357_v51  ;;  %v5678_v53 = vadd.f32 %v10518_v23, %v5358_v22  ;;  %v5679_v30 = vadd.f32 %v10520_v45, %v5359_v40  ;;  %v5361_v20 = vld [vmem:[#allocation2 + $0x868] sm:$0xff]  ;;  %v5378_v3 = vld [vmem:[#allocation2 + $0x8f0] sm:$0xff] }
 0x4ed   : > { %5939 = vst [vmem:[#allocation8 + $0x778] sm:$0xff] %v5651_v18  ;;  %5940 = vst [vmem:[#allocation8 + $0x780] sm:$0xff] %v5652_v26  ;;  %v5362_v18 = vld [vmem:[#allocation2 + $0x870] sm:$0xff]  ;;  %v5680_v26 = vadd.f32 %v10522_v9, %v5360_v25  ;;  %v5681_v16 = vadd.f32 %v10524_v36, %v5361_v20 }
 0x4ee   : > { %5941 = vst [vmem:[#allocation8 + $0x788] sm:$0xff] %v5653_v19  ;;  %5942 = vst [vmem:[#allocation8 + $0x790] sm:$0xff] %v5654_v21  ;;  %v5682_v11 = vadd.f32 %v10514_v58, %v5362_v18  ;;  %v5364_v19 = vld [vmem:[#allocation2 + $0x880] sm:$0xff]  ;;  %v5365_v21 = vld [vmem:[#allocation2 + $0x888] sm:$0xff] }
 0x4ef   : > { %5943 = vst [vmem:[#allocation8 + $0x798] sm:$0xff] %v5655_v48  ;;  %5944 = vst [vmem:[#allocation8 + $0x7a0] sm:$0xff] %v5656_v15  ;;  %v5683_v48 = vadd.f32 %v10516_v57, %v5363_v47  ;;  %v5684_v13 = vadd.f32 %v10518_v23, %v5364_v19  ;;  %v5685_v55 = vadd.f32 %v10520_v45, %v5365_v21  ;;  %v5367_v15 = vld [vmem:[#allocation2 + $0x898] sm:$0xff] }
 0x4f0   : > { %5945 = vst [vmem:[#allocation8 + $0x7a8] sm:$0xff] %v5657_v6  ;;  %5946 = vst [vmem:[#allocation8 + $0x7b0] sm:$0xff] %v5658_v44  ;;  %v5368_v6 = vld [vmem:[#allocation2 + $0x8a0] sm:$0xff]  ;;  %v5686_v44 = vadd.f32 %v10522_v9, %v5366_v5  ;;  %v5687_v0 = vadd.f32 %v10524_v36, %v5367_v15 }
 0x4f1   : > { %5947 = vst [vmem:[#allocation8 + $0x7b8] sm:$0xff] %v5659_v27  ;;  %5948 = vst [vmem:[#allocation8 + $0x7c0] sm:$0xff] %v5660_v12  ;;  %v5688_v38 = vadd.f32 %v10514_v58, %v5368_v6  ;;  %v5370_v27 = vld [vmem:[#allocation2 + $0x8b0] sm:$0xff]  ;;  %v5371_v12 = vld [vmem:[#allocation2 + $0x8b8] sm:$0xff] }
 0x4f2   : > { %5949 = vst [vmem:[#allocation8 + $0x7c8] sm:$0xff] %v5661_v28  ;;  %5950 = vst [vmem:[#allocation8 + $0x7d0] sm:$0xff] %v5662_v39  ;;  %v5689_v28 = vadd.f32 %v10516_v57, %v5369_v46  ;;  %v5690_v4 = vadd.f32 %v10518_v23, %v5370_v27  ;;  %v5691_v59 = vadd.f32 %v10520_v45, %v5371_v12  ;;  %v5373_v39 = vld [vmem:[#allocation2 + $0x8c8] sm:$0xff] }
 0x4f3   : > { %5951 = vst [vmem:[#allocation8 + $0x7d8] sm:$0xff] %v5663_v10  ;;  %5952 = vst [vmem:[#allocation8 + $0x7e0] sm:$0xff] %v5664_v43  ;;  %v5374_v10 = vld [vmem:[#allocation2 + $0x8d0] sm:$0xff]  ;;  %v5692_v43 = vadd.f32 %v10522_v9, %v5372_v31  ;;  %v5693_v62 = vadd.f32 %v10524_v36, %v5373_v39 }
 0x4f4   : > { %5953 = vst [vmem:[#allocation8 + $0x7e8] sm:$0xff] %v5665_v35  ;;  %5954 = vst [vmem:[#allocation8 + $0x7f0] sm:$0xff] %v5666_v24  ;;  %v5694_v41 = vadd.f32 %v10514_v58, %v5374_v10  ;;  %v5376_v35 = vld [vmem:[#allocation2 + $0x8e0] sm:$0xff]  ;;  %v5377_v24 = vld [vmem:[#allocation2 + $0x8e8] sm:$0xff] }
 0x4f5   : > { %5955 = vst [vmem:[#allocation8 + $0x7f8] sm:$0xff] %v5667_v29  ;;  %5956 = vst [vmem:[#allocation8 + $0x800] sm:$0xff] %v5668_v2  ;;  %v5695_v29 = vadd.f32 %v10516_v57, %v5375_v60  ;;  %v5696_v33 = vadd.f32 %v10518_v23, %v5376_v35  ;;  %v5697_v56 = vadd.f32 %v10520_v45, %v5377_v24  ;;  %v5379_v2 = vld [vmem:[#allocation2 + $0x8f8] sm:$0xff] }
 0x4f6   : > { %5957 = vst [vmem:[#allocation8 + $0x808] sm:$0xff] %v5669_v14  ;;  %5958 = vst [vmem:[#allocation8 + $0x810] sm:$0xff] %v5670_v49  ;;  %v5698_v14 = vadd.f32 %v10522_v9, %v5378_v3  ;;  %v5699_v58 = vadd.f32 %v10524_v36, %v5379_v2 }
 0x4f7   : > { %5959 = vst [vmem:[#allocation8 + $0x818] sm:$0xff] %v5671_v52  ;;  %5960 = vst [vmem:[#allocation8 + $0x820] sm:$0xff] %v5672_v54 }
 0x4f8   : > { %5961 = vst [vmem:[#allocation8 + $0x828] sm:$0xff] %v5673_v42  ;;  %5962 = vst [vmem:[#allocation8 + $0x830] sm:$0xff] %v5674_v8 }
 0x4f9   : > { %5963 = vst [vmem:[#allocation8 + $0x838] sm:$0xff] %v5675_v17  ;;  %5964 = vst [vmem:[#allocation8 + $0x840] sm:$0xff] %v5676_v34 }
 0x4fa   : > { %5965 = vst [vmem:[#allocation8 + $0x848] sm:$0xff] %v5677_v63  ;;  %5966 = vst [vmem:[#allocation8 + $0x850] sm:$0xff] %v5678_v53 }
 0x4fb   : > { %5967 = vst [vmem:[#allocation8 + $0x858] sm:$0xff] %v5679_v30  ;;  %5968 = vst [vmem:[#allocation8 + $0x860] sm:$0xff] %v5680_v26 }
 0x4fc   : > { %5969 = vst [vmem:[#allocation8 + $0x868] sm:$0xff] %v5681_v16  ;;  %5970 = vst [vmem:[#allocation8 + $0x870] sm:$0xff] %v5682_v11 }
 0x4fd   : > { %5971 = vst [vmem:[#allocation8 + $0x878] sm:$0xff] %v5683_v48  ;;  %5972 = vst [vmem:[#allocation8 + $0x880] sm:$0xff] %v5684_v13 }
 0x4fe   : > { %5973 = vst [vmem:[#allocation8 + $0x888] sm:$0xff] %v5685_v55  ;;  %5974 = vst [vmem:[#allocation8 + $0x890] sm:$0xff] %v5686_v44 }
 0x4ff   : > { %5975 = vst [vmem:[#allocation8 + $0x898] sm:$0xff] %v5687_v0  ;;  %5976 = vst [vmem:[#allocation8 + $0x8a0] sm:$0xff] %v5688_v38 }
 0x500   : > { %5977 = vst [vmem:[#allocation8 + $0x8a8] sm:$0xff] %v5689_v28  ;;  %5978 = vst [vmem:[#allocation8 + $0x8b0] sm:$0xff] %v5690_v4 }
 0x501   : > { %5979 = vst [vmem:[#allocation8 + $0x8b8] sm:$0xff] %v5691_v59  ;;  %5980 = vst [vmem:[#allocation8 + $0x8c0] sm:$0xff] %v5692_v43 }
 0x502   : > { %5981 = vst [vmem:[#allocation8 + $0x8c8] sm:$0xff] %v5693_v62  ;;  %5982 = vst [vmem:[#allocation8 + $0x8d0] sm:$0xff] %v5694_v41 }
 0x503   : > { %5983 = vst [vmem:[#allocation8 + $0x8d8] sm:$0xff] %v5695_v29  ;;  %5984 = vst [vmem:[#allocation8 + $0x8e0] sm:$0xff] %v5696_v33 }
 0x504   : > { %5985 = vst [vmem:[#allocation8 + $0x8e8] sm:$0xff] %v5697_v56  ;;  %5986 = vst [vmem:[#allocation8 + $0x8f0] sm:$0xff] %v5698_v14 }
 0x505   : > { %5987 = vst [vmem:[#allocation8 + $0x8f8] sm:$0xff] %v5699_v58 }
 0x506 PF: > { %p10816_p4 = scmp.eq.s32.totalorder %s6111_s18, 5  ;;  %s7418_s12 = smov [#allocation8]  }
 0x507   : > { %s6000_s21 = sshll.u32 %s7418_s12, 4  ;;  %s6001_s21 = int_to_ptr.vmem [resolvable:$true] %s6000_s21 }
 0x508   : > { %s7324_s29 = scalar_lea.vmem %s6001_s21, 36864  ;;  %p7331_p0 = scmp.lt.s32.totalorder %s6001_s21, %s6001_s21 }
 0x509   : > { %p7325_p8 = scmp.ne.s32.totalorder %s6001_s21, %s7324_s29  ;;  %p7332_p10 = scmp.lt.s32.totalorder %s7324_s29, %s7324_s29 }
 0x50b   : > { %p7326_p2 = pnand %p7325_p8, %p10816_p4  ;;  %p7333_p5 = por %p7332_p10, %p7331_p0 }
 0x50d   : > { %p7327_p3 = pneg %p7326_p2 }
 0x50f   : > { %p7334_p6 = pnand %p7333_p5, %p7327_p3 }
 0x511   : > { %7337 = shalt.err (!%p7334_p6)
}
 0x512   : > { %s7338_s18 = scalar_lea.hbm %s10863_s3, 36864 }
 0x513   : > { %p7339_p11 = scmp.ne.s32.totalorder %s10863_s3, %s7338_s18  ;;  %p7344_p7 = scmp.lt.u32.totalorder %s7338_s18, %s10863_s3 }
 0x515   : > { %p7340_p13 = pnand %p7339_p11, %p10816_p4 }
 0x517   : > { %p7341_p1 = pneg %p7340_p13 }
 0x519   : > { %p7346_p9 = pnand %p7344_p7, %p7341_p1 }
 0x51b   : > { %7349 = shalt.err (!%p7346_p9)
}
 0x51c   : > { %s7419_s20 = smov 768   ;;  %s7420_s5 = smov 48  }
 0x51d   : > { %6810 = dma.vmem_to_hbm [thread:$0]  (%p10816_p4), %s6001_s21, 36864, %s10863_s3, [#allocation5], %s7419_s20, %s7419_s20, %s7420_s5  }
 0x51e   : > { %7383 = dma.done.wait (%p10816_p4), [#allocation5], 36864  }
 0x51f   : > { %7385 = vsyncadd (%p10816_p4), [#allocation5], 4294930432 }
 0x520 PF: > { %s20_s17 = sadd.s32 1, %s7408_s17   ;;  %s11562_s12 = smov %s7392_s13 }
 0x521   : > { %p17_p12 = scmp.ge.s32.totalorder %s20_s17, 8   ;;  %s11563_s13 = smov %s7396_s14 }
 0x522   : > { %s11564_s14 = smov %s7488_s23  ;;  %s11565_s15 = smov %s7404_s16 }
 0x523   : > { %s11566_s16 = smov %s11568_s19  ;;  %19 = sbr.rel (!%p17_p12) target bundleno = 7 (0x7), region = 94 }
 0x52a   :  { %6016 = vsyncpa [#allocation4], 1 }
 0x52b   :  { %6018 = vsyncpa [#allocation4 + $0x1], 1 }
 0x52c   :  { %6019 = vsyncpa [#allocation7], 1 }
 0x52d   :  { %6021 = vsyncpa [#allocation7 + $0x1], 1 }
 0x52e   :  { %6022 = vsyncpa [#allocation5], 1 }
 0x52f   :  { %6024 = vsyncpa [#allocation5 + $0x1], 1 }

</bundles_post_ra>
